<compile_context>
chip_gen: v7x
topology: tpu7x:2x2x1
jax: 0.10.0
libtpu: 0.0.40
codegen_flags: <defaults>
</compile_context>

<pallas_src>
import functools

import jax
import jax.numpy as jnp
from jax.experimental import pallas as pl
from jax.experimental.pallas import tpu as pltpu

# ----------------------------- model dimensions (small) -----------------------------
SEQ_LEN = 8          # sequence_length (module default 16, scaled down)
BATCH = 2            # video batch
C, HS, WS = 3, 16, 16
FLAT = C * HS * WS   # 768
D_CNN = 128          # stand-in for efficientnet_b0 1280-d features
D_VIT = 128          # stand-in for ViT-base 768-d CLS features
D_FEAT = D_CNN + D_VIT           # 256
LSTM_H = 64          # stand-in for lstm_hidden_size=256
EMB = 2 * LSTM_H     # 128  bidirectional output / attention embed_dim
N_HEADS = 8
CLS_HID = 512
NUM_CLASSES = 2


# ----------------------------- fused forward kernel ---------------------------------
def fused_forward_kernel(
    x_ref,                               # (V, T, FLAT) f32 : V videos' frames
    wf_ref, bf_ref,                      # feature projection (backbone stand-in)
    wih0_ref, whh0_ref, bl0_ref,         # BiLSTM layer 0 (direction-fused weights)
    wih1_ref, whh1_ref, bl1_ref,         # BiLSTM layer 1
    wqkv_ref, bqkv_ref, wo_ref, bo_ref,  # MultiheadAttention
    w1_ref, b1_ref, w2_ref, b2_ref,      # classifier head
    out_ref,                             # (V, 1, NUM_CLASSES)
    hs0_ref, hs1_ref,                    # VMEM scratch (V, T, 2H) per LSTM layer
    *, seq_len, lstm_h, num_heads, videos,
):
    T = seq_len
    H = lstm_h
    V = videos
    E = 2 * H

    # fwd/bwd lane mask over the fused 8H gate row:
    # layout [i_f i_b | f_f f_b | o_f o_b | g_f g_b], each slot H lanes wide.
    lane = jax.lax.broadcasted_iota(jnp.int32, (1, 8 * H), 1)
    fwd_lanes = (lane % (2 * H)) < H                                     # (1, 8H) bool

    # ---- 1) per-frame backbone stand-in: [cnn_feat | vit_CLS_feat] -----------------
    # TODO(synk): EfficientNet-B0 + ViT backbones replaced by a linear projection.
    x = x_ref[...].reshape(V * T, x_ref.shape[2])                       # (V*T, FLAT)
    feats = jnp.dot(x.astype(jnp.bfloat16), wf_ref[...],
                    preferred_element_type=jnp.float32) + bf_ref[...]   # (V*T, D_FEAT)

    # ---- 2) 2-layer bidirectional LSTM (directions fused) ---------------------------
    def bilstm_layer(seq_flat, wih_ref, whh_ref, b_ref, hs_ref):
        # One fused input projection for BOTH directions (hoisted out of recurrence).
        gx = jnp.dot(seq_flat.astype(jnp.bfloat16), wih_ref[...],
                     preferred_element_type=jnp.float32) + b_ref[...]   # (V*T, 8H)
        gx = gx.reshape(V, T, 8 * H)
        h = jnp.zeros((V, 2 * H), jnp.float32)        # [h_fwd | h_bwd]
        c = jnp.zeros((V, 2 * H), jnp.float32)
        for s in range(T):
            # fwd direction consumes time s, bwd direction consumes time T-1-s.
            gx_row = jnp.where(fwd_lanes, gx[:, s, :], gx[:, T - 1 - s, :])  # (V, 8H)
            gates = gx_row + jnp.dot(h.astype(jnp.bfloat16), whh_ref[...],
                                     preferred_element_type=jnp.float32)    # (V, 8H)
            sig = jax.nn.sigmoid(gates[:, :6 * H])    # [ i | f | o ] fused 384-lane slab
            g_g = jnp.tanh(gates[:, 6 * H:])          # g slab (both directions)
            i_g = sig[:, 0:2 * H]
            f_g = sig[:, 2 * H:4 * H]
            o_g = sig[:, 4 * H:6 * H]
            c = f_g * c + i_g * g_g
            h = o_g * jnp.tanh(c)
            # fwd half belongs to time s, bwd half to original time T-1-s.
            hs_ref[:, s:s + 1, 0:H] = h[:, 0:H].reshape(V, 1, H)
            hs_ref[:, T - 1 - s:T - s, H:2 * H] = h[:, H:2 * H].reshape(V, 1, H)
        return hs_ref[...].reshape(V * T, 2 * H)

    seq = bilstm_layer(feats, wih0_ref, whh0_ref, bl0_ref, hs0_ref)
    seq = bilstm_layer(seq, wih1_ref, whh1_ref, bl1_ref, hs1_ref)        # (V*T, E)

    # ---- 3) multi-head self-attention over each video's sequence --------------------
    dh = E // num_heads
    qkv = jnp.dot(seq.astype(jnp.bfloat16), wqkv_ref[...],
                  preferred_element_type=jnp.float32) + bqkv_ref[...]    # (V*T, 3E)
    q3 = qkv[:, 0:E].reshape(V, T, E)
    k3 = qkv[:, E:2 * E].reshape(V, T, E)
    v3 = qkv[:, 2 * E:3 * E].reshape(V, T, E)
    qh = jnp.stack([q3[vv, :, i * dh:(i + 1) * dh]
                    for vv in range(V) for i in range(num_heads)], axis=0)  # (V*nh,T,dh)
    kh = jnp.stack([k3[vv, :, i * dh:(i + 1) * dh]
                    for vv in range(V) for i in range(num_heads)], axis=0)
    vh = jnp.stack([v3[vv, :, i * dh:(i + 1) * dh]
                    for vv in range(V) for i in range(num_heads)], axis=0)
    scale = 1.0 / (dh ** 0.5)
    scores = jnp.einsum('bqd,bkd->bqk',
                        qh.astype(jnp.bfloat16), kh.astype(jnp.bfloat16),
                        preferred_element_type=jnp.float32) * scale         # (V*nh,T,T)
    probs = jax.nn.softmax(scores, axis=-1)
    ctx = jnp.einsum('bqk,bkd->bqd',
                     probs.astype(jnp.bfloat16), vh.astype(jnp.bfloat16),
                     preferred_element_type=jnp.float32)                    # (V*nh,T,dh)
    ctx_rows = [jnp.concatenate([ctx[vv * num_heads + i] for i in range(num_heads)],
                                axis=-1) for vv in range(V)]                # V x (T, E)
    ctx_all = jnp.concatenate(ctx_rows, axis=0)                             # (V*T, E)
    attn = jnp.dot(ctx_all.astype(jnp.bfloat16), wo_ref[...],
                   preferred_element_type=jnp.float32) + bo_ref[...]        # (V*T, E)

    # ---- 4) mean over time + MLP classifier ------------------------------------------
    pooled = jnp.mean(attn.reshape(V, T, E), axis=1)                        # (V, E)
    hid = jnp.dot(pooled.astype(jnp.bfloat16), w1_ref[...],
                  preferred_element_type=jnp.float32) + b1_ref[...]
    hid = jnp.maximum(hid, 0.0)
    # TODO(synk): Dropout(p=0.5) applied as identity (eval-mode semantics).
    logits = jnp.dot(hid.astype(jnp.bfloat16), w2_ref[...],
                     preferred_element_type=jnp.float32) + b2_ref[...]      # (V, NC)
    out_ref[...] = logits.reshape(V, 1, logits.shape[1])


# ----------------------------- parameter init (deterministic) ------------------------
def _uniform(key, shape, scale):
    return jax.random.uniform(key, shape, jnp.float32, minval=-scale, maxval=scale)


def _fuse_gate_cols(w_fwd, w_bwd, h):
    # Interleave per-gate column blocks: [i_f i_b | f_f f_b | o_f o_b | g_f g_b].
    parts = []
    for g in range(4):
        parts.append(w_fwd[..., g * h:(g + 1) * h])
        parts.append(w_bwd[..., g * h:(g + 1) * h])
    return jnp.concatenate(parts, axis=-1)


def init_params(key):
    keys = iter(jax.random.split(key, 64))
    p = {}

    # backbone stand-in projection  (TODO(synk): replaces EfficientNet-B0 + ViT)
    kf = 1.0 / (FLAT ** 0.5)
    p['w_feat'] = _uniform(next(keys), (FLAT, D_FEAT), kf).astype(jnp.bfloat16)
    p['b_feat'] = _uniform(next(keys), (1, D_FEAT), kf)

    # BiLSTM: 2 layers x 2 directions, direction-fused weights.
    # Gate order within a direction is [i, f, o, g]; b = b_ih + b_hh.
    k_l = 1.0 / (LSTM_H ** 0.5)
    d_in = D_FEAT
    lstm = []
    for _layer in range(2):
        wih_dir, whh_dir, b_dir = [], [], []
        for _d in range(2):
            wih_dir.append(_uniform(next(keys), (d_in, 4 * LSTM_H), k_l))
            whh_dir.append(_uniform(next(keys), (LSTM_H, 4 * LSTM_H), k_l))
            b_ih = _uniform(next(keys), (1, 4 * LSTM_H), k_l)
            b_hh = _uniform(next(keys), (1, 4 * LSTM_H), k_l)
            b_dir.append(b_ih + b_hh)
        wih_fused = _fuse_gate_cols(wih_dir[0], wih_dir[1], LSTM_H)       # (d_in, 8H)
        zeros_hh = jnp.zeros_like(whh_dir[0])
        whh_fused = jnp.concatenate(                                      # block-diagonal
            [_fuse_gate_cols(whh_dir[0], zeros_hh, LSTM_H),               # fwd-h rows
             _fuse_gate_cols(zeros_hh, whh_dir[1], LSTM_H)], axis=0)      # bwd-h rows
        b_fused = _fuse_gate_cols(b_dir[0], b_dir[1], LSTM_H)             # (1, 8H)
        lstm.append({'wih': wih_fused.astype(jnp.bfloat16),               # (d_in, 8H)
                     'whh': whh_fused.astype(jnp.bfloat16),               # (2H, 8H)
                     'b': b_fused})                                       # (1, 8H) f32
        d_in = 2 * LSTM_H
    p['lstm'] = lstm

    # MultiheadAttention (embed_dim=EMB, 8 heads) — fused q|k|v in-proj
    ka = 1.0 / (EMB ** 0.5)
    p['attn'] = {
        'wqkv': _uniform(next(keys), (EMB, 3 * EMB), ka).astype(jnp.bfloat16),
        'bqkv': _uniform(next(keys), (1, 3 * EMB), ka),
        'wo':   _uniform(next(keys), (EMB, EMB), ka).astype(jnp.bfloat16),
        'bo':   _uniform(next(keys), (1, EMB), ka),
    }

    # classifier: Linear(EMB,512) -> ReLU -> Dropout(id) -> Linear(512,NUM_CLASSES)
    kh1 = 1.0 / (EMB ** 0.5)
    kh2 = 1.0 / (CLS_HID ** 0.5)
    p['head'] = {
        'w1': _uniform(next(keys), (EMB, CLS_HID), kh1).astype(jnp.bfloat16),
        'b1': _uniform(next(keys), (1, CLS_HID), kh1),
        'w2': _uniform(next(keys), (CLS_HID, NUM_CLASSES), kh2).astype(jnp.bfloat16),
        'b2': _uniform(next(keys), (1, NUM_CLASSES), kh2),
    }
    return p


# ----------------------------- cost estimate -----------------------------------------
def _cost_estimate(batch, seq_len, weight_arrays):
    T = seq_len
    H = LSTM_H
    flops = 2 * T * FLAT * D_FEAT                        # feature projection
    d_in = D_FEAT
    for _ in range(2):                                   # two fused BiLSTM layers
        flops += 2 * T * d_in * 8 * H                    # fused input projection
        flops += T * 2 * (2 * H) * (8 * H)               # fused recurrent matmul
        d_in = 2 * H
    flops += 2 * T * EMB * 3 * EMB                       # QKV proj
    flops += 2 * 2 * N_HEADS * T * T * (EMB // N_HEADS)  # scores + ctx
    flops += 2 * T * EMB * EMB                           # out proj
    flops += 2 * EMB * CLS_HID + 2 * CLS_HID * NUM_CLASSES
    flops *= batch
    transcendentals = batch * (2 * T * (8 * H + 2 * H) + N_HEADS * T * T)
    bytes_accessed = (batch * T * FLAT * 4
                      + sum(int(a.size) * a.dtype.itemsize for a in weight_arrays)
                      + batch * NUM_CLASSES * 4)
    return pl.CostEstimate(flops=int(flops), transcendentals=int(transcendentals),
                           bytes_accessed=int(bytes_accessed))


# ----------------------------- forward pass -------------------------------------------
def hybrid_forward(x, params, sequence_length=SEQ_LEN, videos_per_program=None):
    # x: (batch*seq, C, H, W) — mirrors the PyTorch forward contract.
    n = x.shape[0]
    b = n // sequence_length
    flat = int(x.shape[1] * x.shape[2] * x.shape[3])
    frames = x.reshape(b, sequence_length, flat).astype(jnp.float32)    # (B, T, FLAT)

    # Default: ALL videos in one grid program (fattest matmuls, no serial grid steps)
    # — best on single-TC v5e/v6e.  On v7x pass videos_per_program=b//2 so both
    # TensorCores get half the batch (grid of 2 "parallel" programs).
    V = b if videos_per_program is None else int(videos_per_program)
    assert b % V == 0, "batch must be divisible by videos_per_program"
    num_programs = b // V

    weights = [
        params['w_feat'], params['b_feat'],
        params['lstm'][0]['wih'], params['lstm'][0]['whh'], params['lstm'][0]['b'],
        params['lstm'][1]['wih'], params['lstm'][1]['whh'], params['lstm'][1]['b'],
        params['attn']['wqkv'], params['attn']['bqkv'],
        params['attn']['wo'], params['attn']['bo'],
        params['head']['w1'], params['head']['b1'],
        params['head']['w2'], params['head']['b2'],
    ]

    def resident(arr):
        # whole-array block, same block every grid step -> stays resident in VMEM
        nd = arr.ndim
        return pl.BlockSpec(arr.shape, lambda i, _n=nd: (0,) * _n)

    in_specs = [pl.BlockSpec((V, sequence_length, flat), lambda i: (i, 0, 0))]
    in_specs += [resident(w) for w in weights]

    kernel = functools.partial(fused_forward_kernel, seq_len=sequence_length,
                               lstm_h=LSTM_H, num_heads=N_HEADS, videos=V)

    out = pl.pallas_call(
        kernel,
        out_shape=jax.ShapeDtypeStruct((b, 1, NUM_CLASSES), jnp.float32),
        grid=(num_programs,),
        in_specs=in_specs,
        out_specs=pl.BlockSpec((V, 1, NUM_CLASSES), lambda i: (i, 0, 0)),
        scratch_shapes=[
            pltpu.VMEM((V, sequence_length, 2 * LSTM_H), jnp.float32),  # layer-0 h_t
            pltpu.VMEM((V, sequence_length, 2 * LSTM_H), jnp.float32),  # layer-1 h_t
        ],
        compiler_params=pltpu.CompilerParams(
            dimension_semantics=("parallel",)),
        cost_estimate=_cost_estimate(b, sequence_length, weights),
    )(frames, *weights)
    return out[:, 0, :]                            # (B, NUM_CLASSES)


# ----------------------------- main ----------------------------------------------------
if __name__ == "__main__":
    key = jax.random.PRNGKey(0)
    k_x, k_p = jax.random.split(key)

    params = init_params(k_p)
    # input mirrors the PyTorch call: (batch*sequence_length, 3, H, W)
    x = jax.random.normal(k_x, (BATCH * SEQ_LEN, C, HS, WS), dtype=jnp.float32)

    out = hybrid_forward(x, params, sequence_length=SEQ_LEN)
    out = jax.block_until_ready(out)
    assert out.shape == (BATCH, NUM_CLASSES)
    assert bool(jnp.all(jnp.isfinite(out)))
    print("KERNEL_OK")
</pallas_src>

<mosaic_0001>
module attributes {stable_mosaic.version = 11 : i64} {
  func.func @fused_forward_kernel(%arg0: i32, %arg1: memref<2x8x768xf32, #tpu.memory_space<vmem>>, %arg2: memref<768x256xbf16, #tpu.memory_space<vmem>>, %arg3: memref<1x256xf32, #tpu.memory_space<vmem>>, %arg4: memref<256x512xbf16, #tpu.memory_space<vmem>>, %arg5: memref<128x512xbf16, #tpu.memory_space<vmem>>, %arg6: memref<1x512xf32, #tpu.memory_space<vmem>>, %arg7: memref<128x512xbf16, #tpu.memory_space<vmem>>, %arg8: memref<128x512xbf16, #tpu.memory_space<vmem>>, %arg9: memref<1x512xf32, #tpu.memory_space<vmem>>, %arg10: memref<128x384xbf16, #tpu.memory_space<vmem>>, %arg11: memref<1x384xf32, #tpu.memory_space<vmem>>, %arg12: memref<128x128xbf16, #tpu.memory_space<vmem>>, %arg13: memref<1x128xf32, #tpu.memory_space<vmem>>, %arg14: memref<128x512xbf16, #tpu.memory_space<vmem>>, %arg15: memref<1x512xf32, #tpu.memory_space<vmem>>, %arg16: memref<512x2xbf16, #tpu.memory_space<vmem>>, %arg17: memref<1x2xf32, #tpu.memory_space<vmem>>, %arg18: memref<2x1x2xf32, #tpu.memory_space<vmem>>, %arg19: memref<2x8x128xf32, #tpu.memory_space<vmem>>, %arg20: memref<2x8x128xf32, #tpu.memory_space<vmem>>) attributes {dimension_semantics = [#tpu.dimension_semantics<parallel>], iteration_bounds = array<i64: 1>, scalar_prefetch = 0 : i64, scratch_operands = 2 : i64, tpu.core_type = #tpu.core_type<tc>, window_params = [{transform_indices = @transform_0, window_bounds = array<i64: 2, 8, 768>}, {pipeline_mode = #tpu.pipeline_mode<synchronous>, transform_indices = @transform_1, window_bounds = array<i64: 768, 256>}, {pipeline_mode = #tpu.pipeline_mode<synchronous>, transform_indices = @transform_2, window_bounds = array<i64: 1, 256>}, {pipeline_mode = #tpu.pipeline_mode<synchronous>, transform_indices = @transform_3, window_bounds = array<i64: 256, 512>}, {pipeline_mode = #tpu.pipeline_mode<synchronous>, transform_indices = @transform_4, window_bounds = array<i64: 128, 512>}, {pipeline_mode = #tpu.pipeline_mode<synchronous>, transform_indices = @transform_5, window_bounds = array<i64: 1, 512>}, {pipeline_mode = #tpu.pipeline_mode<synchronous>, transform_indices = @transform_6, window_bounds = array<i64: 128, 512>}, {pipeline_mode = #tpu.pipeline_mode<synchronous>, transform_indices = @transform_7, window_bounds = array<i64: 128, 512>}, {pipeline_mode = #tpu.pipeline_mode<synchronous>, transform_indices = @transform_8, window_bounds = array<i64: 1, 512>}, {pipeline_mode = #tpu.pipeline_mode<synchronous>, transform_indices = @transform_9, window_bounds = array<i64: 128, 384>}, {pipeline_mode = #tpu.pipeline_mode<synchronous>, transform_indices = @transform_10, window_bounds = array<i64: 1, 384>}, {pipeline_mode = #tpu.pipeline_mode<synchronous>, transform_indices = @transform_11, window_bounds = array<i64: 128, 128>}, {pipeline_mode = #tpu.pipeline_mode<synchronous>, transform_indices = @transform_12, window_bounds = array<i64: 1, 128>}, {pipeline_mode = #tpu.pipeline_mode<synchronous>, transform_indices = @transform_13, window_bounds = array<i64: 128, 512>}, {pipeline_mode = #tpu.pipeline_mode<synchronous>, transform_indices = @transform_14, window_bounds = array<i64: 1, 512>}, {pipeline_mode = #tpu.pipeline_mode<synchronous>, transform_indices = @transform_15, window_bounds = array<i64: 512, 2>}, {pipeline_mode = #tpu.pipeline_mode<synchronous>, transform_indices = @transform_16, window_bounds = array<i64: 1, 2>}, {transform_indices = @transform_17, window_bounds = array<i64: 2, 1, 2>}]} {
    %0 = tpu.iota {dimensions = array<i32: 1>} : vector<1x512xi32>
    %c128_i32 = arith.constant 128 : i32
    %c0_i32 = arith.constant 0 : i32
    %1 = arith.cmpi eq, %c128_i32, %c0_i32 : i32
    %c1_i32 = arith.constant 1 : i32
    %2 = arith.select %1, %c1_i32, %c128_i32 : i32
    %3 = vector.broadcast %2 : i32 to vector<1x512xi32>
    %4 = arith.remsi %0, %3 : vector<1x512xi32>
    %c0_i32_0 = arith.constant 0 : i32
    %5 = vector.broadcast %c0_i32_0 : i32 to vector<1x512xi32>
    %6 = arith.cmpi ne, %4, %5 : vector<1x512xi32>
    %c0_i32_1 = arith.constant 0 : i32
    %7 = vector.broadcast %c0_i32_1 : i32 to vector<1x512xi32>
    %8 = arith.cmpi slt, %4, %7 : vector<1x512xi32>
    %c0_i32_2 = arith.constant 0 : i32
    %9 = arith.cmpi slt, %2, %c0_i32_2 : i32
    %10 = vector.broadcast %9 : i1 to vector<1x512xi1>
    %11 = vector.broadcast %10 : vector<1x512xi1> to vector<1x512xi1>
    %12 = arith.xori %8, %11 : vector<1x512xi1>
    %13 = arith.andi %12, %6 : vector<1x512xi1>
    %14 = vector.broadcast %2 : i32 to vector<1x512xi32>
    %15 = arith.addi %4, %14 : vector<1x512xi32>
    %16 = arith.select %13, %15, %4 : vector<1x512xi1>, vector<1x512xi32>
    %c64_i32 = arith.constant 64 : i32
    %17 = vector.broadcast %c64_i32 : i32 to vector<1x512xi32>
    %18 = arith.cmpi slt, %16, %17 : vector<1x512xi32>
    %c0 = arith.constant 0 : index
    %c0_3 = arith.constant 0 : index
    %c0_4 = arith.constant 0 : index
    %19 = vector.load %arg1[%c0, %c0_3, %c0_4] : memref<2x8x768xf32, #tpu.memory_space<vmem>>, vector<2x8x768xf32>
    %20 = vector.shape_cast %19 : vector<2x8x768xf32> to vector<16x768xf32>
    %21 = arith.truncf %20 : vector<16x768xf32> to vector<16x768xbf16>
    %c0_5 = arith.constant 0 : index
    %c0_6 = arith.constant 0 : index
    %22 = vector.load %arg2[%c0_5, %c0_6] : memref<768x256xbf16, #tpu.memory_space<vmem>>, vector<768x256xbf16>
    %cst = arith.constant dense<0.000000e+00> : vector<16x256xf32>
    %23 = tpu.matmul %21, %22, %cst {dimension_numbers = #tpu.dot_dimension_numbers<[1], [0], [0], [1], [0, 0, 1, 1], [], []>} : vector<16x768xbf16>, vector<768x256xbf16>, vector<16x256xf32> -> vector<16x256xf32>
    %c0_7 = arith.constant 0 : index
    %c0_8 = arith.constant 0 : index
    %24 = vector.load %arg3[%c0_7, %c0_8] : memref<1x256xf32, #tpu.memory_space<vmem>>, vector<1x256xf32>
    %25 = vector.broadcast %24 : vector<1x256xf32> to vector<16x256xf32>
    %26 = arith.addf %23, %25 : vector<16x256xf32>
    %27 = arith.truncf %26 : vector<16x256xf32> to vector<16x256xbf16>
    %c0_9 = arith.constant 0 : index
    %c0_10 = arith.constant 0 : index
    %28 = vector.load %arg4[%c0_9, %c0_10] : memref<256x512xbf16, #tpu.memory_space<vmem>>, vector<256x512xbf16>
    %cst_11 = arith.constant dense<0.000000e+00> : vector<16x512xf32>
    %29 = tpu.matmul %27, %28, %cst_11 {dimension_numbers = #tpu.dot_dimension_numbers<[1], [0], [0], [1], [0, 0, 1, 1], [], []>} : vector<16x256xbf16>, vector<256x512xbf16>, vector<16x512xf32> -> vector<16x512xf32>
    %c0_12 = arith.constant 0 : index
    %c0_13 = arith.constant 0 : index
    %30 = vector.load %arg6[%c0_12, %c0_13] : memref<1x512xf32, #tpu.memory_space<vmem>>, vector<1x512xf32>
    %31 = vector.broadcast %30 : vector<1x512xf32> to vector<16x512xf32>
    %32 = arith.addf %29, %31 : vector<16x512xf32>
    %33 = vector.shape_cast %32 : vector<16x512xf32> to vector<2x8x512xf32>
    %cst_14 = arith.constant 0.000000e+00 : f32
    %34 = vector.broadcast %cst_14 : f32 to vector<2x128xf32>
    %cst_15 = arith.constant 0.000000e+00 : f32
    %35 = vector.broadcast %cst_15 : f32 to vector<2x128xf32>
    %36 = vector.extract_strided_slice %33 {offsets = [0, 0, 0], sizes = [2, 1, 512], strides = [1, 1, 1]} : vector<2x8x512xf32> to vector<2x1x512xf32>
    %37 = vector.shape_cast %36 : vector<2x1x512xf32> to vector<2x512xf32>
    %38 = vector.extract_strided_slice %33 {offsets = [0, 7, 0], sizes = [2, 1, 512], strides = [1, 1, 1]} : vector<2x8x512xf32> to vector<2x1x512xf32>
    %39 = vector.shape_cast %38 : vector<2x1x512xf32> to vector<2x512xf32>
    %40 = vector.shape_cast %18 : vector<1x512xi1> to vector<1x512xi1>
    %41 = vector.broadcast %40 : vector<1x512xi1> to vector<2x512xi1>
    %42 = arith.select %41, %37, %39 : vector<2x512xi1>, vector<2x512xf32>
    %43 = arith.truncf %34 : vector<2x128xf32> to vector<2x128xbf16>
    %c0_16 = arith.constant 0 : index
    %c0_17 = arith.constant 0 : index
    %44 = vector.load %arg5[%c0_16, %c0_17] : memref<128x512xbf16, #tpu.memory_space<vmem>>, vector<128x512xbf16>
    %cst_18 = arith.constant dense<0.000000e+00> : vector<2x512xf32>
    %45 = tpu.matmul %43, %44, %cst_18 {dimension_numbers = #tpu.dot_dimension_numbers<[1], [0], [0], [1], [0, 0, 1, 1], [], []>} : vector<2x128xbf16>, vector<128x512xbf16>, vector<2x512xf32> -> vector<2x512xf32>
    %46 = arith.addf %42, %45 : vector<2x512xf32>
    %47 = vector.extract_strided_slice %46 {offsets = [0, 0], sizes = [2, 384], strides = [1, 1]} : vector<2x512xf32> to vector<2x384xf32>
    %48 = arith.negf %47 : vector<2x384xf32>
    %49 = math.exp %48 : vector<2x384xf32>
    %cst_19 = arith.constant 1.000000e+00 : f32
    %50 = vector.broadcast %cst_19 : f32 to vector<2x384xf32>
    %51 = arith.addf %50, %49 : vector<2x384xf32>
    %52 = arith.divf %50, %51 : vector<2x384xf32>
    %53 = vector.extract_strided_slice %46 {offsets = [0, 384], sizes = [2, 128], strides = [1, 1]} : vector<2x512xf32> to vector<2x128xf32>
    %54 = math.tanh %53 : vector<2x128xf32>
    %55 = vector.extract_strided_slice %52 {offsets = [0, 0], sizes = [2, 128], strides = [1, 1]} : vector<2x384xf32> to vector<2x128xf32>
    %56 = vector.extract_strided_slice %52 {offsets = [0, 128], sizes = [2, 128], strides = [1, 1]} : vector<2x384xf32> to vector<2x128xf32>
    %57 = vector.extract_strided_slice %52 {offsets = [0, 256], sizes = [2, 128], strides = [1, 1]} : vector<2x384xf32> to vector<2x128xf32>
    %58 = arith.mulf %56, %35 : vector<2x128xf32>
    %59 = arith.mulf %55, %54 : vector<2x128xf32>
    %60 = arith.addf %58, %59 : vector<2x128xf32>
    %61 = math.tanh %60 : vector<2x128xf32>
    %62 = arith.mulf %57, %61 : vector<2x128xf32>
    %63 = vector.extract_strided_slice %62 {offsets = [0, 0], sizes = [2, 64], strides = [1, 1]} : vector<2x128xf32> to vector<2x64xf32>
    %64 = vector.shape_cast %63 : vector<2x64xf32> to vector<2x1x64xf32>
    %c0_20 = arith.constant 0 : index
    %c0_21 = arith.constant 0 : index
    %c0_22 = arith.constant 0 : index
    %65 = vector.load %arg19[%c0_20, %c0_21, %c0_22] : memref<2x8x128xf32, #tpu.memory_space<vmem>>, vector<2x1x64xf32>
    tpu.vector_store %arg19[%c0_20, %c0_21, %c0_22], %64 {strides = array<i32>} : memref<2x8x128xf32, #tpu.memory_space<vmem>>, vector<2x1x64xf32>,
    %66 = vector.extract_strided_slice %62 {offsets = [0, 64], sizes = [2, 64], strides = [1, 1]} : vector<2x128xf32> to vector<2x64xf32>
    %67 = vector.shape_cast %66 : vector<2x64xf32> to vector<2x1x64xf32>
    %c0_23 = arith.constant 0 : index
    %c7 = arith.constant 7 : index
    %c64 = arith.constant 64 : index
    %68 = vector.load %arg19[%c0_23, %c7, %c64] : memref<2x8x128xf32, #tpu.memory_space<vmem>>, vector<2x1x64xf32>
    tpu.vector_store %arg19[%c0_23, %c7, %c64], %67 {strides = array<i32>} : memref<2x8x128xf32, #tpu.memory_space<vmem>>, vector<2x1x64xf32>,
    %69 = vector.extract_strided_slice %33 {offsets = [0, 1, 0], sizes = [2, 1, 512], strides = [1, 1, 1]} : vector<2x8x512xf32> to vector<2x1x512xf32>
    %70 = vector.shape_cast %69 : vector<2x1x512xf32> to vector<2x512xf32>
    %71 = vector.extract_strided_slice %33 {offsets = [0, 6, 0], sizes = [2, 1, 512], strides = [1, 1, 1]} : vector<2x8x512xf32> to vector<2x1x512xf32>
    %72 = vector.shape_cast %71 : vector<2x1x512xf32> to vector<2x512xf32>
    %73 = vector.shape_cast %18 : vector<1x512xi1> to vector<1x512xi1>
    %74 = vector.broadcast %73 : vector<1x512xi1> to vector<2x512xi1>
    %75 = arith.select %74, %70, %72 : vector<2x512xi1>, vector<2x512xf32>
    %76 = arith.truncf %62 : vector<2x128xf32> to vector<2x128xbf16>
    %c0_24 = arith.constant 0 : index
    %c0_25 = arith.constant 0 : index
    %77 = vector.load %arg5[%c0_24, %c0_25] : memref<128x512xbf16, #tpu.memory_space<vmem>>, vector<128x512xbf16>
    %cst_26 = arith.constant dense<0.000000e+00> : vector<2x512xf32>
    %78 = tpu.matmul %76, %77, %cst_26 {dimension_numbers = #tpu.dot_dimension_numbers<[1], [0], [0], [1], [0, 0, 1, 1], [], []>} : vector<2x128xbf16>, vector<128x512xbf16>, vector<2x512xf32> -> vector<2x512xf32>
    %79 = arith.addf %75, %78 : vector<2x512xf32>
    %80 = vector.extract_strided_slice %79 {offsets = [0, 0], sizes = [2, 384], strides = [1, 1]} : vector<2x512xf32> to vector<2x384xf32>
    %81 = arith.negf %80 : vector<2x384xf32>
    %82 = math.exp %81 : vector<2x384xf32>
    %cst_27 = arith.constant 1.000000e+00 : f32
    %83 = vector.broadcast %cst_27 : f32 to vector<2x384xf32>
    %84 = arith.addf %83, %82 : vector<2x384xf32>
    %85 = arith.divf %83, %84 : vector<2x384xf32>
    %86 = vector.extract_strided_slice %79 {offsets = [0, 384], sizes = [2, 128], strides = [1, 1]} : vector<2x512xf32> to vector<2x128xf32>
    %87 = math.tanh %86 : vector<2x128xf32>
    %88 = vector.extract_strided_slice %85 {offsets = [0, 0], sizes = [2, 128], strides = [1, 1]} : vector<2x384xf32> to vector<2x128xf32>
    %89 = vector.extract_strided_slice %85 {offsets = [0, 128], sizes = [2, 128], strides = [1, 1]} : vector<2x384xf32> to vector<2x128xf32>
    %90 = vector.extract_strided_slice %85 {offsets = [0, 256], sizes = [2, 128], strides = [1, 1]} : vector<2x384xf32> to vector<2x128xf32>
    %91 = arith.mulf %89, %60 : vector<2x128xf32>
    %92 = arith.mulf %88, %87 : vector<2x128xf32>
    %93 = arith.addf %91, %92 : vector<2x128xf32>
    %94 = math.tanh %93 : vector<2x128xf32>
    %95 = arith.mulf %90, %94 : vector<2x128xf32>
    %96 = vector.extract_strided_slice %95 {offsets = [0, 0], sizes = [2, 64], strides = [1, 1]} : vector<2x128xf32> to vector<2x64xf32>
    %97 = vector.shape_cast %96 : vector<2x64xf32> to vector<2x1x64xf32>
    %c0_28 = arith.constant 0 : index
    %c1 = arith.constant 1 : index
    %c0_29 = arith.constant 0 : index
    %98 = vector.load %arg19[%c0_28, %c1, %c0_29] : memref<2x8x128xf32, #tpu.memory_space<vmem>>, vector<2x1x64xf32>
    tpu.vector_store %arg19[%c0_28, %c1, %c0_29], %97 {strides = array<i32>} : memref<2x8x128xf32, #tpu.memory_space<vmem>>, vector<2x1x64xf32>,
    %99 = vector.extract_strided_slice %95 {offsets = [0, 64], sizes = [2, 64], strides = [1, 1]} : vector<2x128xf32> to vector<2x64xf32>
    %100 = vector.shape_cast %99 : vector<2x64xf32> to vector<2x1x64xf32>
    %c0_30 = arith.constant 0 : index
    %c6 = arith.constant 6 : index
    %c64_31 = arith.constant 64 : index
    %101 = vector.load %arg19[%c0_30, %c6, %c64_31] : memref<2x8x128xf32, #tpu.memory_space<vmem>>, vector<2x1x64xf32>
    tpu.vector_store %arg19[%c0_30, %c6, %c64_31], %100 {strides = array<i32>} : memref<2x8x128xf32, #tpu.memory_space<vmem>>, vector<2x1x64xf32>,
    %102 = vector.extract_strided_slice %33 {offsets = [0, 2, 0], sizes = [2, 1, 512], strides = [1, 1, 1]} : vector<2x8x512xf32> to vector<2x1x512xf32>
    %103 = vector.shape_cast %102 : vector<2x1x512xf32> to vector<2x512xf32>
    %104 = vector.extract_strided_slice %33 {offsets = [0, 5, 0], sizes = [2, 1, 512], strides = [1, 1, 1]} : vector<2x8x512xf32> to vector<2x1x512xf32>
    %105 = vector.shape_cast %104 : vector<2x1x512xf32> to vector<2x512xf32>
    %106 = vector.shape_cast %18 : vector<1x512xi1> to vector<1x512xi1>
    %107 = vector.broadcast %106 : vector<1x512xi1> to vector<2x512xi1>
    %108 = arith.select %107, %103, %105 : vector<2x512xi1>, vector<2x512xf32>
    %109 = arith.truncf %95 : vector<2x128xf32> to vector<2x128xbf16>
    %c0_32 = arith.constant 0 : index
    %c0_33 = arith.constant 0 : index
    %110 = vector.load %arg5[%c0_32, %c0_33] : memref<128x512xbf16, #tpu.memory_space<vmem>>, vector<128x512xbf16>
    %cst_34 = arith.constant dense<0.000000e+00> : vector<2x512xf32>
    %111 = tpu.matmul %109, %110, %cst_34 {dimension_numbers = #tpu.dot_dimension_numbers<[1], [0], [0], [1], [0, 0, 1, 1], [], []>} : vector<2x128xbf16>, vector<128x512xbf16>, vector<2x512xf32> -> vector<2x512xf32>
    %112 = arith.addf %108, %111 : vector<2x512xf32>
    %113 = vector.extract_strided_slice %112 {offsets = [0, 0], sizes = [2, 384], strides = [1, 1]} : vector<2x512xf32> to vector<2x384xf32>
    %114 = arith.negf %113 : vector<2x384xf32>
    %115 = math.exp %114 : vector<2x384xf32>
    %cst_35 = arith.constant 1.000000e+00 : f32
    %116 = vector.broadcast %cst_35 : f32 to vector<2x384xf32>
    %117 = arith.addf %116, %115 : vector<2x384xf32>
    %118 = arith.divf %116, %117 : vector<2x384xf32>
    %119 = vector.extract_strided_slice %112 {offsets = [0, 384], sizes = [2, 128], strides = [1, 1]} : vector<2x512xf32> to vector<2x128xf32>
    %120 = math.tanh %119 : vector<2x128xf32>
    %121 = vector.extract_strided_slice %118 {offsets = [0, 0], sizes = [2, 128], strides = [1, 1]} : vector<2x384xf32> to vector<2x128xf32>
    %122 = vector.extract_strided_slice %118 {offsets = [0, 128], sizes = [2, 128], strides = [1, 1]} : vector<2x384xf32> to vector<2x128xf32>
    %123 = vector.extract_strided_slice %118 {offsets = [0, 256], sizes = [2, 128], strides = [1, 1]} : vector<2x384xf32> to vector<2x128xf32>
    %124 = arith.mulf %122, %93 : vector<2x128xf32>
    %125 = arith.mulf %121, %120 : vector<2x128xf32>
    %126 = arith.addf %124, %125 : vector<2x128xf32>
    %127 = math.tanh %126 : vector<2x128xf32>
    %128 = arith.mulf %123, %127 : vector<2x128xf32>
    %129 = vector.extract_strided_slice %128 {offsets = [0, 0], sizes = [2, 64], strides = [1, 1]} : vector<2x128xf32> to vector<2x64xf32>
    %130 = vector.shape_cast %129 : vector<2x64xf32> to vector<2x1x64xf32>
    %c0_36 = arith.constant 0 : index
    %c2 = arith.constant 2 : index
    %c0_37 = arith.constant 0 : index
    %131 = vector.load %arg19[%c0_36, %c2, %c0_37] : memref<2x8x128xf32, #tpu.memory_space<vmem>>, vector<2x1x64xf32>
    tpu.vector_store %arg19[%c0_36, %c2, %c0_37], %130 {strides = array<i32>} : memref<2x8x128xf32, #tpu.memory_space<vmem>>, vector<2x1x64xf32>,
    %132 = vector.extract_strided_slice %128 {offsets = [0, 64], sizes = [2, 64], strides = [1, 1]} : vector<2x128xf32> to vector<2x64xf32>
    %133 = vector.shape_cast %132 : vector<2x64xf32> to vector<2x1x64xf32>
    %c0_38 = arith.constant 0 : index
    %c5 = arith.constant 5 : index
    %c64_39 = arith.constant 64 : index
    %134 = vector.load %arg19[%c0_38, %c5, %c64_39] : memref<2x8x128xf32, #tpu.memory_space<vmem>>, vector<2x1x64xf32>
    tpu.vector_store %arg19[%c0_38, %c5, %c64_39], %133 {strides = array<i32>} : memref<2x8x128xf32, #tpu.memory_space<vmem>>, vector<2x1x64xf32>,
    %135 = vector.extract_strided_slice %33 {offsets = [0, 3, 0], sizes = [2, 1, 512], strides = [1, 1, 1]} : vector<2x8x512xf32> to vector<2x1x512xf32>
    %136 = vector.shape_cast %135 : vector<2x1x512xf32> to vector<2x512xf32>
    %137 = vector.extract_strided_slice %33 {offsets = [0, 4, 0], sizes = [2, 1, 512], strides = [1, 1, 1]} : vector<2x8x512xf32> to vector<2x1x512xf32>
    %138 = vector.shape_cast %137 : vector<2x1x512xf32> to vector<2x512xf32>
    %139 = vector.shape_cast %18 : vector<1x512xi1> to vector<1x512xi1>
    %140 = vector.broadcast %139 : vector<1x512xi1> to vector<2x512xi1>
    %141 = arith.select %140, %136, %138 : vector<2x512xi1>, vector<2x512xf32>
    %142 = arith.truncf %128 : vector<2x128xf32> to vector<2x128xbf16>
    %c0_40 = arith.constant 0 : index
    %c0_41 = arith.constant 0 : index
    %143 = vector.load %arg5[%c0_40, %c0_41] : memref<128x512xbf16, #tpu.memory_space<vmem>>, vector<128x512xbf16>
    %cst_42 = arith.constant dense<0.000000e+00> : vector<2x512xf32>
    %144 = tpu.matmul %142, %143, %cst_42 {dimension_numbers = #tpu.dot_dimension_numbers<[1], [0], [0], [1], [0, 0, 1, 1], [], []>} : vector<2x128xbf16>, vector<128x512xbf16>, vector<2x512xf32> -> vector<2x512xf32>
    %145 = arith.addf %141, %144 : vector<2x512xf32>
    %146 = vector.extract_strided_slice %145 {offsets = [0, 0], sizes = [2, 384], strides = [1, 1]} : vector<2x512xf32> to vector<2x384xf32>
    %147 = arith.negf %146 : vector<2x384xf32>
    %148 = math.exp %147 : vector<2x384xf32>
    %cst_43 = arith.constant 1.000000e+00 : f32
    %149 = vector.broadcast %cst_43 : f32 to vector<2x384xf32>
    %150 = arith.addf %149, %148 : vector<2x384xf32>
    %151 = arith.divf %149, %150 : vector<2x384xf32>
    %152 = vector.extract_strided_slice %145 {offsets = [0, 384], sizes = [2, 128], strides = [1, 1]} : vector<2x512xf32> to vector<2x128xf32>
    %153 = math.tanh %152 : vector<2x128xf32>
    %154 = vector.extract_strided_slice %151 {offsets = [0, 0], sizes = [2, 128], strides = [1, 1]} : vector<2x384xf32> to vector<2x128xf32>
    %155 = vector.extract_strided_slice %151 {offsets = [0, 128], sizes = [2, 128], strides = [1, 1]} : vector<2x384xf32> to vector<2x128xf32>
    %156 = vector.extract_strided_slice %151 {offsets = [0, 256], sizes = [2, 128], strides = [1, 1]} : vector<2x384xf32> to vector<2x128xf32>
    %157 = arith.mulf %155, %126 : vector<2x128xf32>
    %158 = arith.mulf %154, %153 : vector<2x128xf32>
    %159 = arith.addf %157, %158 : vector<2x128xf32>
    %160 = math.tanh %159 : vector<2x128xf32>
    %161 = arith.mulf %156, %160 : vector<2x128xf32>
    %162 = vector.extract_strided_slice %161 {offsets = [0, 0], sizes = [2, 64], strides = [1, 1]} : vector<2x128xf32> to vector<2x64xf32>
    %163 = vector.shape_cast %162 : vector<2x64xf32> to vector<2x1x64xf32>
    %c0_44 = arith.constant 0 : index
    %c3 = arith.constant 3 : index
    %c0_45 = arith.constant 0 : index
    %164 = vector.load %arg19[%c0_44, %c3, %c0_45] : memref<2x8x128xf32, #tpu.memory_space<vmem>>, vector<2x1x64xf32>
    tpu.vector_store %arg19[%c0_44, %c3, %c0_45], %163 {strides = array<i32>} : memref<2x8x128xf32, #tpu.memory_space<vmem>>, vector<2x1x64xf32>,
    %165 = vector.extract_strided_slice %161 {offsets = [0, 64], sizes = [2, 64], strides = [1, 1]} : vector<2x128xf32> to vector<2x64xf32>
    %166 = vector.shape_cast %165 : vector<2x64xf32> to vector<2x1x64xf32>
    %c0_46 = arith.constant 0 : index
    %c4 = arith.constant 4 : index
    %c64_47 = arith.constant 64 : index
    %167 = vector.load %arg19[%c0_46, %c4, %c64_47] : memref<2x8x128xf32, #tpu.memory_space<vmem>>, vector<2x1x64xf32>
    tpu.vector_store %arg19[%c0_46, %c4, %c64_47], %166 {strides = array<i32>} : memref<2x8x128xf32, #tpu.memory_space<vmem>>, vector<2x1x64xf32>,
    %168 = vector.extract_strided_slice %33 {offsets = [0, 4, 0], sizes = [2, 1, 512], strides = [1, 1, 1]} : vector<2x8x512xf32> to vector<2x1x512xf32>
    %169 = vector.shape_cast %168 : vector<2x1x512xf32> to vector<2x512xf32>
    %170 = vector.extract_strided_slice %33 {offsets = [0, 3, 0], sizes = [2, 1, 512], strides = [1, 1, 1]} : vector<2x8x512xf32> to vector<2x1x512xf32>
    %171 = vector.shape_cast %170 : vector<2x1x512xf32> to vector<2x512xf32>
    %172 = vector.shape_cast %18 : vector<1x512xi1> to vector<1x512xi1>
    %173 = vector.broadcast %172 : vector<1x512xi1> to vector<2x512xi1>
    %174 = arith.select %173, %169, %171 : vector<2x512xi1>, vector<2x512xf32>
    %175 = arith.truncf %161 : vector<2x128xf32> to vector<2x128xbf16>
    %c0_48 = arith.constant 0 : index
    %c0_49 = arith.constant 0 : index
    %176 = vector.load %arg5[%c0_48, %c0_49] : memref<128x512xbf16, #tpu.memory_space<vmem>>, vector<128x512xbf16>
    %cst_50 = arith.constant dense<0.000000e+00> : vector<2x512xf32>
    %177 = tpu.matmul %175, %176, %cst_50 {dimension_numbers = #tpu.dot_dimension_numbers<[1], [0], [0], [1], [0, 0, 1, 1], [], []>} : vector<2x128xbf16>, vector<128x512xbf16>, vector<2x512xf32> -> vector<2x512xf32>
    %178 = arith.addf %174, %177 : vector<2x512xf32>
    %179 = vector.extract_strided_slice %178 {offsets = [0, 0], sizes = [2, 384], strides = [1, 1]} : vector<2x512xf32> to vector<2x384xf32>
    %180 = arith.negf %179 : vector<2x384xf32>
    %181 = math.exp %180 : vector<2x384xf32>
    %cst_51 = arith.constant 1.000000e+00 : f32
    %182 = vector.broadcast %cst_51 : f32 to vector<2x384xf32>
    %183 = arith.addf %182, %181 : vector<2x384xf32>
    %184 = arith.divf %182, %183 : vector<2x384xf32>
    %185 = vector.extract_strided_slice %178 {offsets = [0, 384], sizes = [2, 128], strides = [1, 1]} : vector<2x512xf32> to vector<2x128xf32>
    %186 = math.tanh %185 : vector<2x128xf32>
    %187 = vector.extract_strided_slice %184 {offsets = [0, 0], sizes = [2, 128], strides = [1, 1]} : vector<2x384xf32> to vector<2x128xf32>
    %188 = vector.extract_strided_slice %184 {offsets = [0, 128], sizes = [2, 128], strides = [1, 1]} : vector<2x384xf32> to vector<2x128xf32>
    %189 = vector.extract_strided_slice %184 {offsets = [0, 256], sizes = [2, 128], strides = [1, 1]} : vector<2x384xf32> to vector<2x128xf32>
    %190 = arith.mulf %188, %159 : vector<2x128xf32>
    %191 = arith.mulf %187, %186 : vector<2x128xf32>
    %192 = arith.addf %190, %191 : vector<2x128xf32>
    %193 = math.tanh %192 : vector<2x128xf32>
    %194 = arith.mulf %189, %193 : vector<2x128xf32>
    %195 = vector.extract_strided_slice %194 {offsets = [0, 0], sizes = [2, 64], strides = [1, 1]} : vector<2x128xf32> to vector<2x64xf32>
    %196 = vector.shape_cast %195 : vector<2x64xf32> to vector<2x1x64xf32>
    %c0_52 = arith.constant 0 : index
    %c4_53 = arith.constant 4 : index
    %c0_54 = arith.constant 0 : index
    %197 = vector.load %arg19[%c0_52, %c4_53, %c0_54] : memref<2x8x128xf32, #tpu.memory_space<vmem>>, vector<2x1x64xf32>
    tpu.vector_store %arg19[%c0_52, %c4_53, %c0_54], %196 {strides = array<i32>} : memref<2x8x128xf32, #tpu.memory_space<vmem>>, vector<2x1x64xf32>,
    %198 = vector.extract_strided_slice %194 {offsets = [0, 64], sizes = [2, 64], strides = [1, 1]} : vector<2x128xf32> to vector<2x64xf32>
    %199 = vector.shape_cast %198 : vector<2x64xf32> to vector<2x1x64xf32>
    %c0_55 = arith.constant 0 : index
    %c3_56 = arith.constant 3 : index
    %c64_57 = arith.constant 64 : index
    %200 = vector.load %arg19[%c0_55, %c3_56, %c64_57] : memref<2x8x128xf32, #tpu.memory_space<vmem>>, vector<2x1x64xf32>
    tpu.vector_store %arg19[%c0_55, %c3_56, %c64_57], %199 {strides = array<i32>} : memref<2x8x128xf32, #tpu.memory_space<vmem>>, vector<2x1x64xf32>,
    %201 = vector.extract_strided_slice %33 {offsets = [0, 5, 0], sizes = [2, 1, 512], strides = [1, 1, 1]} : vector<2x8x512xf32> to vector<2x1x512xf32>
    %202 = vector.shape_cast %201 : vector<2x1x512xf32> to vector<2x512xf32>
    %203 = vector.extract_strided_slice %33 {offsets = [0, 2, 0], sizes = [2, 1, 512], strides = [1, 1, 1]} : vector<2x8x512xf32> to vector<2x1x512xf32>
    %204 = vector.shape_cast %203 : vector<2x1x512xf32> to vector<2x512xf32>
    %205 = vector.shape_cast %18 : vector<1x512xi1> to vector<1x512xi1>
    %206 = vector.broadcast %205 : vector<1x512xi1> to vector<2x512xi1>
    %207 = arith.select %206, %202, %204 : vector<2x512xi1>, vector<2x512xf32>
    %208 = arith.truncf %194 : vector<2x128xf32> to vector<2x128xbf16>
    %c0_58 = arith.constant 0 : index
    %c0_59 = arith.constant 0 : index
    %209 = vector.load %arg5[%c0_58, %c0_59] : memref<128x512xbf16, #tpu.memory_space<vmem>>, vector<128x512xbf16>
    %cst_60 = arith.constant dense<0.000000e+00> : vector<2x512xf32>
    %210 = tpu.matmul %208, %209, %cst_60 {dimension_numbers = #tpu.dot_dimension_numbers<[1], [0], [0], [1], [0, 0, 1, 1], [], []>} : vector<2x128xbf16>, vector<128x512xbf16>, vector<2x512xf32> -> vector<2x512xf32>
    %211 = arith.addf %207, %210 : vector<2x512xf32>
    %212 = vector.extract_strided_slice %211 {offsets = [0, 0], sizes = [2, 384], strides = [1, 1]} : vector<2x512xf32> to vector<2x384xf32>
    %213 = arith.negf %212 : vector<2x384xf32>
    %214 = math.exp %213 : vector<2x384xf32>
    %cst_61 = arith.constant 1.000000e+00 : f32
    %215 = vector.broadcast %cst_61 : f32 to vector<2x384xf32>
    %216 = arith.addf %215, %214 : vector<2x384xf32>
    %217 = arith.divf %215, %216 : vector<2x384xf32>
    %218 = vector.extract_strided_slice %211 {offsets = [0, 384], sizes = [2, 128], strides = [1, 1]} : vector<2x512xf32> to vector<2x128xf32>
    %219 = math.tanh %218 : vector<2x128xf32>
    %220 = vector.extract_strided_slice %217 {offsets = [0, 0], sizes = [2, 128], strides = [1, 1]} : vector<2x384xf32> to vector<2x128xf32>
    %221 = vector.extract_strided_slice %217 {offsets = [0, 128], sizes = [2, 128], strides = [1, 1]} : vector<2x384xf32> to vector<2x128xf32>
    %222 = vector.extract_strided_slice %217 {offsets = [0, 256], sizes = [2, 128], strides = [1, 1]} : vector<2x384xf32> to vector<2x128xf32>
    %223 = arith.mulf %221, %192 : vector<2x128xf32>
    %224 = arith.mulf %220, %219 : vector<2x128xf32>
    %225 = arith.addf %223, %224 : vector<2x128xf32>
    %226 = math.tanh %225 : vector<2x128xf32>
    %227 = arith.mulf %222, %226 : vector<2x128xf32>
    %228 = vector.extract_strided_slice %227 {offsets = [0, 0], sizes = [2, 64], strides = [1, 1]} : vector<2x128xf32> to vector<2x64xf32>
    %229 = vector.shape_cast %228 : vector<2x64xf32> to vector<2x1x64xf32>
    %c0_62 = arith.constant 0 : index
    %c5_63 = arith.constant 5 : index
    %c0_64 = arith.constant 0 : index
    %230 = vector.load %arg19[%c0_62, %c5_63, %c0_64] : memref<2x8x128xf32, #tpu.memory_space<vmem>>, vector<2x1x64xf32>
    tpu.vector_store %arg19[%c0_62, %c5_63, %c0_64], %229 {strides = array<i32>} : memref<2x8x128xf32, #tpu.memory_space<vmem>>, vector<2x1x64xf32>,
    %231 = vector.extract_strided_slice %227 {offsets = [0, 64], sizes = [2, 64], strides = [1, 1]} : vector<2x128xf32> to vector<2x64xf32>
    %232 = vector.shape_cast %231 : vector<2x64xf32> to vector<2x1x64xf32>
    %c0_65 = arith.constant 0 : index
    %c2_66 = arith.constant 2 : index
    %c64_67 = arith.constant 64 : index
    %233 = vector.load %arg19[%c0_65, %c2_66, %c64_67] : memref<2x8x128xf32, #tpu.memory_space<vmem>>, vector<2x1x64xf32>
    tpu.vector_store %arg19[%c0_65, %c2_66, %c64_67], %232 {strides = array<i32>} : memref<2x8x128xf32, #tpu.memory_space<vmem>>, vector<2x1x64xf32>,
    %234 = vector.extract_strided_slice %33 {offsets = [0, 6, 0], sizes = [2, 1, 512], strides = [1, 1, 1]} : vector<2x8x512xf32> to vector<2x1x512xf32>
    %235 = vector.shape_cast %234 : vector<2x1x512xf32> to vector<2x512xf32>
    %236 = vector.extract_strided_slice %33 {offsets = [0, 1, 0], sizes = [2, 1, 512], strides = [1, 1, 1]} : vector<2x8x512xf32> to vector<2x1x512xf32>
    %237 = vector.shape_cast %236 : vector<2x1x512xf32> to vector<2x512xf32>
    %238 = vector.shape_cast %18 : vector<1x512xi1> to vector<1x512xi1>
    %239 = vector.broadcast %238 : vector<1x512xi1> to vector<2x512xi1>
    %240 = arith.select %239, %235, %237 : vector<2x512xi1>, vector<2x512xf32>
    %241 = arith.truncf %227 : vector<2x128xf32> to vector<2x128xbf16>
    %c0_68 = arith.constant 0 : index
    %c0_69 = arith.constant 0 : index
    %242 = vector.load %arg5[%c0_68, %c0_69] : memref<128x512xbf16, #tpu.memory_space<vmem>>, vector<128x512xbf16>
    %cst_70 = arith.constant dense<0.000000e+00> : vector<2x512xf32>
    %243 = tpu.matmul %241, %242, %cst_70 {dimension_numbers = #tpu.dot_dimension_numbers<[1], [0], [0], [1], [0, 0, 1, 1], [], []>} : vector<2x128xbf16>, vector<128x512xbf16>, vector<2x512xf32> -> vector<2x512xf32>
    %244 = arith.addf %240, %243 : vector<2x512xf32>
    %245 = vector.extract_strided_slice %244 {offsets = [0, 0], sizes = [2, 384], strides = [1, 1]} : vector<2x512xf32> to vector<2x384xf32>
    %246 = arith.negf %245 : vector<2x384xf32>
    %247 = math.exp %246 : vector<2x384xf32>
    %cst_71 = arith.constant 1.000000e+00 : f32
    %248 = vector.broadcast %cst_71 : f32 to vector<2x384xf32>
    %249 = arith.addf %248, %247 : vector<2x384xf32>
    %250 = arith.divf %248, %249 : vector<2x384xf32>
    %251 = vector.extract_strided_slice %244 {offsets = [0, 384], sizes = [2, 128], strides = [1, 1]} : vector<2x512xf32> to vector<2x128xf32>
    %252 = math.tanh %251 : vector<2x128xf32>
    %253 = vector.extract_strided_slice %250 {offsets = [0, 0], sizes = [2, 128], strides = [1, 1]} : vector<2x384xf32> to vector<2x128xf32>
    %254 = vector.extract_strided_slice %250 {offsets = [0, 128], sizes = [2, 128], strides = [1, 1]} : vector<2x384xf32> to vector<2x128xf32>
    %255 = vector.extract_strided_slice %250 {offsets = [0, 256], sizes = [2, 128], strides = [1, 1]} : vector<2x384xf32> to vector<2x128xf32>
    %256 = arith.mulf %254, %225 : vector<2x128xf32>
    %257 = arith.mulf %253, %252 : vector<2x128xf32>
    %258 = arith.addf %256, %257 : vector<2x128xf32>
    %259 = math.tanh %258 : vector<2x128xf32>
    %260 = arith.mulf %255, %259 : vector<2x128xf32>
    %261 = vector.extract_strided_slice %260 {offsets = [0, 0], sizes = [2, 64], strides = [1, 1]} : vector<2x128xf32> to vector<2x64xf32>
    %262 = vector.shape_cast %261 : vector<2x64xf32> to vector<2x1x64xf32>
    %c0_72 = arith.constant 0 : index
    %c6_73 = arith.constant 6 : index
    %c0_74 = arith.constant 0 : index
    %263 = vector.load %arg19[%c0_72, %c6_73, %c0_74] : memref<2x8x128xf32, #tpu.memory_space<vmem>>, vector<2x1x64xf32>
    tpu.vector_store %arg19[%c0_72, %c6_73, %c0_74], %262 {strides = array<i32>} : memref<2x8x128xf32, #tpu.memory_space<vmem>>, vector<2x1x64xf32>,
    %264 = vector.extract_strided_slice %260 {offsets = [0, 64], sizes = [2, 64], strides = [1, 1]} : vector<2x128xf32> to vector<2x64xf32>
    %265 = vector.shape_cast %264 : vector<2x64xf32> to vector<2x1x64xf32>
    %c0_75 = arith.constant 0 : index
    %c1_76 = arith.constant 1 : index
    %c64_77 = arith.constant 64 : index
    %266 = vector.load %arg19[%c0_75, %c1_76, %c64_77] : memref<2x8x128xf32, #tpu.memory_space<vmem>>, vector<2x1x64xf32>
    tpu.vector_store %arg19[%c0_75, %c1_76, %c64_77], %265 {strides = array<i32>} : memref<2x8x128xf32, #tpu.memory_space<vmem>>, vector<2x1x64xf32>,
    %267 = vector.extract_strided_slice %33 {offsets = [0, 7, 0], sizes = [2, 1, 512], strides = [1, 1, 1]} : vector<2x8x512xf32> to vector<2x1x512xf32>
    %268 = vector.shape_cast %267 : vector<2x1x512xf32> to vector<2x512xf32>
    %269 = vector.extract_strided_slice %33 {offsets = [0, 0, 0], sizes = [2, 1, 512], strides = [1, 1, 1]} : vector<2x8x512xf32> to vector<2x1x512xf32>
    %270 = vector.shape_cast %269 : vector<2x1x512xf32> to vector<2x512xf32>
    %271 = vector.shape_cast %18 : vector<1x512xi1> to vector<1x512xi1>
    %272 = vector.broadcast %271 : vector<1x512xi1> to vector<2x512xi1>
    %273 = arith.select %272, %268, %270 : vector<2x512xi1>, vector<2x512xf32>
    %274 = arith.truncf %260 : vector<2x128xf32> to vector<2x128xbf16>
    %c0_78 = arith.constant 0 : index
    %c0_79 = arith.constant 0 : index
    %275 = vector.load %arg5[%c0_78, %c0_79] : memref<128x512xbf16, #tpu.memory_space<vmem>>, vector<128x512xbf16>
    %cst_80 = arith.constant dense<0.000000e+00> : vector<2x512xf32>
    %276 = tpu.matmul %274, %275, %cst_80 {dimension_numbers = #tpu.dot_dimension_numbers<[1], [0], [0], [1], [0, 0, 1, 1], [], []>} : vector<2x128xbf16>, vector<128x512xbf16>, vector<2x512xf32> -> vector<2x512xf32>
    %277 = arith.addf %273, %276 : vector<2x512xf32>
    %278 = vector.extract_strided_slice %277 {offsets = [0, 0], sizes = [2, 384], strides = [1, 1]} : vector<2x512xf32> to vector<2x384xf32>
    %279 = arith.negf %278 : vector<2x384xf32>
    %280 = math.exp %279 : vector<2x384xf32>
    %cst_81 = arith.constant 1.000000e+00 : f32
    %281 = vector.broadcast %cst_81 : f32 to vector<2x384xf32>
    %282 = arith.addf %281, %280 : vector<2x384xf32>
    %283 = arith.divf %281, %282 : vector<2x384xf32>
    %284 = vector.extract_strided_slice %277 {offsets = [0, 384], sizes = [2, 128], strides = [1, 1]} : vector<2x512xf32> to vector<2x128xf32>
    %285 = math.tanh %284 : vector<2x128xf32>
    %286 = vector.extract_strided_slice %283 {offsets = [0, 0], sizes = [2, 128], strides = [1, 1]} : vector<2x384xf32> to vector<2x128xf32>
    %287 = vector.extract_strided_slice %283 {offsets = [0, 128], sizes = [2, 128], strides = [1, 1]} : vector<2x384xf32> to vector<2x128xf32>
    %288 = vector.extract_strided_slice %283 {offsets = [0, 256], sizes = [2, 128], strides = [1, 1]} : vector<2x384xf32> to vector<2x128xf32>
    %289 = arith.mulf %287, %258 : vector<2x128xf32>
    %290 = arith.mulf %286, %285 : vector<2x128xf32>
    %291 = arith.addf %289, %290 : vector<2x128xf32>
    %292 = math.tanh %291 : vector<2x128xf32>
    %293 = arith.mulf %288, %292 : vector<2x128xf32>
    %294 = vector.extract_strided_slice %293 {offsets = [0, 0], sizes = [2, 64], strides = [1, 1]} : vector<2x128xf32> to vector<2x64xf32>
    %295 = vector.shape_cast %294 : vector<2x64xf32> to vector<2x1x64xf32>
    %c0_82 = arith.constant 0 : index
    %c7_83 = arith.constant 7 : index
    %c0_84 = arith.constant 0 : index
    %296 = vector.load %arg19[%c0_82, %c7_83, %c0_84] : memref<2x8x128xf32, #tpu.memory_space<vmem>>, vector<2x1x64xf32>
    tpu.vector_store %arg19[%c0_82, %c7_83, %c0_84], %295 {strides = array<i32>} : memref<2x8x128xf32, #tpu.memory_space<vmem>>, vector<2x1x64xf32>,
    %297 = vector.extract_strided_slice %293 {offsets = [0, 64], sizes = [2, 64], strides = [1, 1]} : vector<2x128xf32> to vector<2x64xf32>
    %298 = vector.shape_cast %297 : vector<2x64xf32> to vector<2x1x64xf32>
    %c0_85 = arith.constant 0 : index
    %c0_86 = arith.constant 0 : index
    %c64_87 = arith.constant 64 : index
    %299 = vector.load %arg19[%c0_85, %c0_86, %c64_87] : memref<2x8x128xf32, #tpu.memory_space<vmem>>, vector<2x1x64xf32>
    tpu.vector_store %arg19[%c0_85, %c0_86, %c64_87], %298 {strides = array<i32>} : memref<2x8x128xf32, #tpu.memory_space<vmem>>, vector<2x1x64xf32>,
    %c0_88 = arith.constant 0 : index
    %c0_89 = arith.constant 0 : index
    %c0_90 = arith.constant 0 : index
    %300 = vector.load %arg19[%c0_88, %c0_89, %c0_90] : memref<2x8x128xf32, #tpu.memory_space<vmem>>, vector<2x8x128xf32>
    %301 = vector.shape_cast %300 : vector<2x8x128xf32> to vector<16x128xf32>
    %302 = arith.truncf %301 : vector<16x128xf32> to vector<16x128xbf16>
    %c0_91 = arith.constant 0 : index
    %c0_92 = arith.constant 0 : index
    %303 = vector.load %arg7[%c0_91, %c0_92] : memref<128x512xbf16, #tpu.memory_space<vmem>>, vector<128x512xbf16>
    %cst_93 = arith.constant dense<0.000000e+00> : vector<16x512xf32>
    %304 = tpu.matmul %302, %303, %cst_93 {dimension_numbers = #tpu.dot_dimension_numbers<[1], [0], [0], [1], [0, 0, 1, 1], [], []>} : vector<16x128xbf16>, vector<128x512xbf16>, vector<16x512xf32> -> vector<16x512xf32>
    %c0_94 = arith.constant 0 : index
    %c0_95 = arith.constant 0 : index
    %305 = vector.load %arg9[%c0_94, %c0_95] : memref<1x512xf32, #tpu.memory_space<vmem>>, vector<1x512xf32>
    %306 = vector.broadcast %305 : vector<1x512xf32> to vector<16x512xf32>
    %307 = arith.addf %304, %306 : vector<16x512xf32>
    %308 = vector.shape_cast %307 : vector<16x512xf32> to vector<2x8x512xf32>
    %cst_96 = arith.constant 0.000000e+00 : f32
    %309 = vector.broadcast %cst_96 : f32 to vector<2x128xf32>
    %cst_97 = arith.constant 0.000000e+00 : f32
    %310 = vector.broadcast %cst_97 : f32 to vector<2x128xf32>
    %311 = vector.extract_strided_slice %308 {offsets = [0, 0, 0], sizes = [2, 1, 512], strides = [1, 1, 1]} : vector<2x8x512xf32> to vector<2x1x512xf32>
    %312 = vector.shape_cast %311 : vector<2x1x512xf32> to vector<2x512xf32>
    %313 = vector.extract_strided_slice %308 {offsets = [0, 7, 0], sizes = [2, 1, 512], strides = [1, 1, 1]} : vector<2x8x512xf32> to vector<2x1x512xf32>
    %314 = vector.shape_cast %313 : vector<2x1x512xf32> to vector<2x512xf32>
    %315 = vector.shape_cast %18 : vector<1x512xi1> to vector<1x512xi1>
    %316 = vector.broadcast %315 : vector<1x512xi1> to vector<2x512xi1>
    %317 = arith.select %316, %312, %314 : vector<2x512xi1>, vector<2x512xf32>
    %318 = arith.truncf %309 : vector<2x128xf32> to vector<2x128xbf16>
    %c0_98 = arith.constant 0 : index
    %c0_99 = arith.constant 0 : index
    %319 = vector.load %arg8[%c0_98, %c0_99] : memref<128x512xbf16, #tpu.memory_space<vmem>>, vector<128x512xbf16>
    %cst_100 = arith.constant dense<0.000000e+00> : vector<2x512xf32>
    %320 = tpu.matmul %318, %319, %cst_100 {dimension_numbers = #tpu.dot_dimension_numbers<[1], [0], [0], [1], [0, 0, 1, 1], [], []>} : vector<2x128xbf16>, vector<128x512xbf16>, vector<2x512xf32> -> vector<2x512xf32>
    %321 = arith.addf %317, %320 : vector<2x512xf32>
    %322 = vector.extract_strided_slice %321 {offsets = [0, 0], sizes = [2, 384], strides = [1, 1]} : vector<2x512xf32> to vector<2x384xf32>
    %323 = arith.negf %322 : vector<2x384xf32>
    %324 = math.exp %323 : vector<2x384xf32>
    %cst_101 = arith.constant 1.000000e+00 : f32
    %325 = vector.broadcast %cst_101 : f32 to vector<2x384xf32>
    %326 = arith.addf %325, %324 : vector<2x384xf32>
    %327 = arith.divf %325, %326 : vector<2x384xf32>
    %328 = vector.extract_strided_slice %321 {offsets = [0, 384], sizes = [2, 128], strides = [1, 1]} : vector<2x512xf32> to vector<2x128xf32>
    %329 = math.tanh %328 : vector<2x128xf32>
    %330 = vector.extract_strided_slice %327 {offsets = [0, 0], sizes = [2, 128], strides = [1, 1]} : vector<2x384xf32> to vector<2x128xf32>
    %331 = vector.extract_strided_slice %327 {offsets = [0, 128], sizes = [2, 128], strides = [1, 1]} : vector<2x384xf32> to vector<2x128xf32>
    %332 = vector.extract_strided_slice %327 {offsets = [0, 256], sizes = [2, 128], strides = [1, 1]} : vector<2x384xf32> to vector<2x128xf32>
    %333 = arith.mulf %331, %310 : vector<2x128xf32>
    %334 = arith.mulf %330, %329 : vector<2x128xf32>
    %335 = arith.addf %333, %334 : vector<2x128xf32>
    %336 = math.tanh %335 : vector<2x128xf32>
    %337 = arith.mulf %332, %336 : vector<2x128xf32>
    %338 = vector.extract_strided_slice %337 {offsets = [0, 0], sizes = [2, 64], strides = [1, 1]} : vector<2x128xf32> to vector<2x64xf32>
    %339 = vector.shape_cast %338 : vector<2x64xf32> to vector<2x1x64xf32>
    %c0_102 = arith.constant 0 : index
    %c0_103 = arith.constant 0 : index
    %c0_104 = arith.constant 0 : index
    %340 = vector.load %arg20[%c0_102, %c0_103, %c0_104] : memref<2x8x128xf32, #tpu.memory_space<vmem>>, vector<2x1x64xf32>
    tpu.vector_store %arg20[%c0_102, %c0_103, %c0_104], %339 {strides = array<i32>} : memref<2x8x128xf32, #tpu.memory_space<vmem>>, vector<2x1x64xf32>,
    %341 = vector.extract_strided_slice %337 {offsets = [0, 64], sizes = [2, 64], strides = [1, 1]} : vector<2x128xf32> to vector<2x64xf32>
    %342 = vector.shape_cast %341 : vector<2x64xf32> to vector<2x1x64xf32>
    %c0_105 = arith.constant 0 : index
    %c7_106 = arith.constant 7 : index
    %c64_107 = arith.constant 64 : index
    %343 = vector.load %arg20[%c0_105, %c7_106, %c64_107] : memref<2x8x128xf32, #tpu.memory_space<vmem>>, vector<2x1x64xf32>
    tpu.vector_store %arg20[%c0_105, %c7_106, %c64_107], %342 {strides = array<i32>} : memref<2x8x128xf32, #tpu.memory_space<vmem>>, vector<2x1x64xf32>,
    %344 = vector.extract_strided_slice %308 {offsets = [0, 1, 0], sizes = [2, 1, 512], strides = [1, 1, 1]} : vector<2x8x512xf32> to vector<2x1x512xf32>
    %345 = vector.shape_cast %344 : vector<2x1x512xf32> to vector<2x512xf32>
    %346 = vector.extract_strided_slice %308 {offsets = [0, 6, 0], sizes = [2, 1, 512], strides = [1, 1, 1]} : vector<2x8x512xf32> to vector<2x1x512xf32>
    %347 = vector.shape_cast %346 : vector<2x1x512xf32> to vector<2x512xf32>
    %348 = vector.shape_cast %18 : vector<1x512xi1> to vector<1x512xi1>
    %349 = vector.broadcast %348 : vector<1x512xi1> to vector<2x512xi1>
    %350 = arith.select %349, %345, %347 : vector<2x512xi1>, vector<2x512xf32>
    %351 = arith.truncf %337 : vector<2x128xf32> to vector<2x128xbf16>
    %c0_108 = arith.constant 0 : index
    %c0_109 = arith.constant 0 : index
    %352 = vector.load %arg8[%c0_108, %c0_109] : memref<128x512xbf16, #tpu.memory_space<vmem>>, vector<128x512xbf16>
    %cst_110 = arith.constant dense<0.000000e+00> : vector<2x512xf32>
    %353 = tpu.matmul %351, %352, %cst_110 {dimension_numbers = #tpu.dot_dimension_numbers<[1], [0], [0], [1], [0, 0, 1, 1], [], []>} : vector<2x128xbf16>, vector<128x512xbf16>, vector<2x512xf32> -> vector<2x512xf32>
    %354 = arith.addf %350, %353 : vector<2x512xf32>
    %355 = vector.extract_strided_slice %354 {offsets = [0, 0], sizes = [2, 384], strides = [1, 1]} : vector<2x512xf32> to vector<2x384xf32>
    %356 = arith.negf %355 : vector<2x384xf32>
    %357 = math.exp %356 : vector<2x384xf32>
    %cst_111 = arith.constant 1.000000e+00 : f32
    %358 = vector.broadcast %cst_111 : f32 to vector<2x384xf32>
    %359 = arith.addf %358, %357 : vector<2x384xf32>
    %360 = arith.divf %358, %359 : vector<2x384xf32>
    %361 = vector.extract_strided_slice %354 {offsets = [0, 384], sizes = [2, 128], strides = [1, 1]} : vector<2x512xf32> to vector<2x128xf32>
    %362 = math.tanh %361 : vector<2x128xf32>
    %363 = vector.extract_strided_slice %360 {offsets = [0, 0], sizes = [2, 128], strides = [1, 1]} : vector<2x384xf32> to vector<2x128xf32>
    %364 = vector.extract_strided_slice %360 {offsets = [0, 128], sizes = [2, 128], strides = [1, 1]} : vector<2x384xf32> to vector<2x128xf32>
    %365 = vector.extract_strided_slice %360 {offsets = [0, 256], sizes = [2, 128], strides = [1, 1]} : vector<2x384xf32> to vector<2x128xf32>
    %366 = arith.mulf %364, %335 : vector<2x128xf32>
    %367 = arith.mulf %363, %362 : vector<2x128xf32>
    %368 = arith.addf %366, %367 : vector<2x128xf32>
    %369 = math.tanh %368 : vector<2x128xf32>
    %370 = arith.mulf %365, %369 : vector<2x128xf32>
    %371 = vector.extract_strided_slice %370 {offsets = [0, 0], sizes = [2, 64], strides = [1, 1]} : vector<2x128xf32> to vector<2x64xf32>
    %372 = vector.shape_cast %371 : vector<2x64xf32> to vector<2x1x64xf32>
    %c0_112 = arith.constant 0 : index
    %c1_113 = arith.constant 1 : index
    %c0_114 = arith.constant 0 : index
    %373 = vector.load %arg20[%c0_112, %c1_113, %c0_114] : memref<2x8x128xf32, #tpu.memory_space<vmem>>, vector<2x1x64xf32>
    tpu.vector_store %arg20[%c0_112, %c1_113, %c0_114], %372 {strides = array<i32>} : memref<2x8x128xf32, #tpu.memory_space<vmem>>, vector<2x1x64xf32>,
    %374 = vector.extract_strided_slice %370 {offsets = [0, 64], sizes = [2, 64], strides = [1, 1]} : vector<2x128xf32> to vector<2x64xf32>
    %375 = vector.shape_cast %374 : vector<2x64xf32> to vector<2x1x64xf32>
    %c0_115 = arith.constant 0 : index
    %c6_116 = arith.constant 6 : index
    %c64_117 = arith.constant 64 : index
    %376 = vector.load %arg20[%c0_115, %c6_116, %c64_117] : memref<2x8x128xf32, #tpu.memory_space<vmem>>, vector<2x1x64xf32>
    tpu.vector_store %arg20[%c0_115, %c6_116, %c64_117], %375 {strides = array<i32>} : memref<2x8x128xf32, #tpu.memory_space<vmem>>, vector<2x1x64xf32>,
    %377 = vector.extract_strided_slice %308 {offsets = [0, 2, 0], sizes = [2, 1, 512], strides = [1, 1, 1]} : vector<2x8x512xf32> to vector<2x1x512xf32>
    %378 = vector.shape_cast %377 : vector<2x1x512xf32> to vector<2x512xf32>
    %379 = vector.extract_strided_slice %308 {offsets = [0, 5, 0], sizes = [2, 1, 512], strides = [1, 1, 1]} : vector<2x8x512xf32> to vector<2x1x512xf32>
    %380 = vector.shape_cast %379 : vector<2x1x512xf32> to vector<2x512xf32>
    %381 = vector.shape_cast %18 : vector<1x512xi1> to vector<1x512xi1>
    %382 = vector.broadcast %381 : vector<1x512xi1> to vector<2x512xi1>
    %383 = arith.select %382, %378, %380 : vector<2x512xi1>, vector<2x512xf32>
    %384 = arith.truncf %370 : vector<2x128xf32> to vector<2x128xbf16>
    %c0_118 = arith.constant 0 : index
    %c0_119 = arith.constant 0 : index
    %385 = vector.load %arg8[%c0_118, %c0_119] : memref<128x512xbf16, #tpu.memory_space<vmem>>, vector<128x512xbf16>
    %cst_120 = arith.constant dense<0.000000e+00> : vector<2x512xf32>
    %386 = tpu.matmul %384, %385, %cst_120 {dimension_numbers = #tpu.dot_dimension_numbers<[1], [0], [0], [1], [0, 0, 1, 1], [], []>} : vector<2x128xbf16>, vector<128x512xbf16>, vector<2x512xf32> -> vector<2x512xf32>
    %387 = arith.addf %383, %386 : vector<2x512xf32>
    %388 = vector.extract_strided_slice %387 {offsets = [0, 0], sizes = [2, 384], strides = [1, 1]} : vector<2x512xf32> to vector<2x384xf32>
    %389 = arith.negf %388 : vector<2x384xf32>
    %390 = math.exp %389 : vector<2x384xf32>
    %cst_121 = arith.constant 1.000000e+00 : f32
    %391 = vector.broadcast %cst_121 : f32 to vector<2x384xf32>
    %392 = arith.addf %391, %390 : vector<2x384xf32>
    %393 = arith.divf %391, %392 : vector<2x384xf32>
    %394 = vector.extract_strided_slice %387 {offsets = [0, 384], sizes = [2, 128], strides = [1, 1]} : vector<2x512xf32> to vector<2x128xf32>
    %395 = math.tanh %394 : vector<2x128xf32>
    %396 = vector.extract_strided_slice %393 {offsets = [0, 0], sizes = [2, 128], strides = [1, 1]} : vector<2x384xf32> to vector<2x128xf32>
    %397 = vector.extract_strided_slice %393 {offsets = [0, 128], sizes = [2, 128], strides = [1, 1]} : vector<2x384xf32> to vector<2x128xf32>
    %398 = vector.extract_strided_slice %393 {offsets = [0, 256], sizes = [2, 128], strides = [1, 1]} : vector<2x384xf32> to vector<2x128xf32>
    %399 = arith.mulf %397, %368 : vector<2x128xf32>
    %400 = arith.mulf %396, %395 : vector<2x128xf32>
    %401 = arith.addf %399, %400 : vector<2x128xf32>
    %402 = math.tanh %401 : vector<2x128xf32>
    %403 = arith.mulf %398, %402 : vector<2x128xf32>
    %404 = vector.extract_strided_slice %403 {offsets = [0, 0], sizes = [2, 64], strides = [1, 1]} : vector<2x128xf32> to vector<2x64xf32>
    %405 = vector.shape_cast %404 : vector<2x64xf32> to vector<2x1x64xf32>
    %c0_122 = arith.constant 0 : index
    %c2_123 = arith.constant 2 : index
    %c0_124 = arith.constant 0 : index
    %406 = vector.load %arg20[%c0_122, %c2_123, %c0_124] : memref<2x8x128xf32, #tpu.memory_space<vmem>>, vector<2x1x64xf32>
    tpu.vector_store %arg20[%c0_122, %c2_123, %c0_124], %405 {strides = array<i32>} : memref<2x8x128xf32, #tpu.memory_space<vmem>>, vector<2x1x64xf32>,
    %407 = vector.extract_strided_slice %403 {offsets = [0, 64], sizes = [2, 64], strides = [1, 1]} : vector<2x128xf32> to vector<2x64xf32>
    %408 = vector.shape_cast %407 : vector<2x64xf32> to vector<2x1x64xf32>
    %c0_125 = arith.constant 0 : index
    %c5_126 = arith.constant 5 : index
    %c64_127 = arith.constant 64 : index
    %409 = vector.load %arg20[%c0_125, %c5_126, %c64_127] : memref<2x8x128xf32, #tpu.memory_space<vmem>>, vector<2x1x64xf32>
    tpu.vector_store %arg20[%c0_125, %c5_126, %c64_127], %408 {strides = array<i32>} : memref<2x8x128xf32, #tpu.memory_space<vmem>>, vector<2x1x64xf32>,
    %410 = vector.extract_strided_slice %308 {offsets = [0, 3, 0], sizes = [2, 1, 512], strides = [1, 1, 1]} : vector<2x8x512xf32> to vector<2x1x512xf32>
    %411 = vector.shape_cast %410 : vector<2x1x512xf32> to vector<2x512xf32>
    %412 = vector.extract_strided_slice %308 {offsets = [0, 4, 0], sizes = [2, 1, 512], strides = [1, 1, 1]} : vector<2x8x512xf32> to vector<2x1x512xf32>
    %413 = vector.shape_cast %412 : vector<2x1x512xf32> to vector<2x512xf32>
    %414 = vector.shape_cast %18 : vector<1x512xi1> to vector<1x512xi1>
    %415 = vector.broadcast %414 : vector<1x512xi1> to vector<2x512xi1>
    %416 = arith.select %415, %411, %413 : vector<2x512xi1>, vector<2x512xf32>
    %417 = arith.truncf %403 : vector<2x128xf32> to vector<2x128xbf16>
    %c0_128 = arith.constant 0 : index
    %c0_129 = arith.constant 0 : index
    %418 = vector.load %arg8[%c0_128, %c0_129] : memref<128x512xbf16, #tpu.memory_space<vmem>>, vector<128x512xbf16>
    %cst_130 = arith.constant dense<0.000000e+00> : vector<2x512xf32>
    %419 = tpu.matmul %417, %418, %cst_130 {dimension_numbers = #tpu.dot_dimension_numbers<[1], [0], [0], [1], [0, 0, 1, 1], [], []>} : vector<2x128xbf16>, vector<128x512xbf16>, vector<2x512xf32> -> vector<2x512xf32>
    %420 = arith.addf %416, %419 : vector<2x512xf32>
    %421 = vector.extract_strided_slice %420 {offsets = [0, 0], sizes = [2, 384], strides = [1, 1]} : vector<2x512xf32> to vector<2x384xf32>
    %422 = arith.negf %421 : vector<2x384xf32>
    %423 = math.exp %422 : vector<2x384xf32>
    %cst_131 = arith.constant 1.000000e+00 : f32
    %424 = vector.broadcast %cst_131 : f32 to vector<2x384xf32>
    %425 = arith.addf %424, %423 : vector<2x384xf32>
    %426 = arith.divf %424, %425 : vector<2x384xf32>
    %427 = vector.extract_strided_slice %420 {offsets = [0, 384], sizes = [2, 128], strides = [1, 1]} : vector<2x512xf32> to vector<2x128xf32>
    %428 = math.tanh %427 : vector<2x128xf32>
    %429 = vector.extract_strided_slice %426 {offsets = [0, 0], sizes = [2, 128], strides = [1, 1]} : vector<2x384xf32> to vector<2x128xf32>
    %430 = vector.extract_strided_slice %426 {offsets = [0, 128], sizes = [2, 128], strides = [1, 1]} : vector<2x384xf32> to vector<2x128xf32>
    %431 = vector.extract_strided_slice %426 {offsets = [0, 256], sizes = [2, 128], strides = [1, 1]} : vector<2x384xf32> to vector<2x128xf32>
    %432 = arith.mulf %430, %401 : vector<2x128xf32>
    %433 = arith.mulf %429, %428 : vector<2x128xf32>
    %434 = arith.addf %432, %433 : vector<2x128xf32>
    %435 = math.tanh %434 : vector<2x128xf32>
    %436 = arith.mulf %431, %435 : vector<2x128xf32>
    %437 = vector.extract_strided_slice %436 {offsets = [0, 0], sizes = [2, 64], strides = [1, 1]} : vector<2x128xf32> to vector<2x64xf32>
    %438 = vector.shape_cast %437 : vector<2x64xf32> to vector<2x1x64xf32>
    %c0_132 = arith.constant 0 : index
    %c3_133 = arith.constant 3 : index
    %c0_134 = arith.constant 0 : index
    %439 = vector.load %arg20[%c0_132, %c3_133, %c0_134] : memref<2x8x128xf32, #tpu.memory_space<vmem>>, vector<2x1x64xf32>
    tpu.vector_store %arg20[%c0_132, %c3_133, %c0_134], %438 {strides = array<i32>} : memref<2x8x128xf32, #tpu.memory_space<vmem>>, vector<2x1x64xf32>,
    %440 = vector.extract_strided_slice %436 {offsets = [0, 64], sizes = [2, 64], strides = [1, 1]} : vector<2x128xf32> to vector<2x64xf32>
    %441 = vector.shape_cast %440 : vector<2x64xf32> to vector<2x1x64xf32>
    %c0_135 = arith.constant 0 : index
    %c4_136 = arith.constant 4 : index
    %c64_137 = arith.constant 64 : index
    %442 = vector.load %arg20[%c0_135, %c4_136, %c64_137] : memref<2x8x128xf32, #tpu.memory_space<vmem>>, vector<2x1x64xf32>
    tpu.vector_store %arg20[%c0_135, %c4_136, %c64_137], %441 {strides = array<i32>} : memref<2x8x128xf32, #tpu.memory_space<vmem>>, vector<2x1x64xf32>,
    %443 = vector.extract_strided_slice %308 {offsets = [0, 4, 0], sizes = [2, 1, 512], strides = [1, 1, 1]} : vector<2x8x512xf32> to vector<2x1x512xf32>
    %444 = vector.shape_cast %443 : vector<2x1x512xf32> to vector<2x512xf32>
    %445 = vector.extract_strided_slice %308 {offsets = [0, 3, 0], sizes = [2, 1, 512], strides = [1, 1, 1]} : vector<2x8x512xf32> to vector<2x1x512xf32>
    %446 = vector.shape_cast %445 : vector<2x1x512xf32> to vector<2x512xf32>
    %447 = vector.shape_cast %18 : vector<1x512xi1> to vector<1x512xi1>
    %448 = vector.broadcast %447 : vector<1x512xi1> to vector<2x512xi1>
    %449 = arith.select %448, %444, %446 : vector<2x512xi1>, vector<2x512xf32>
    %450 = arith.truncf %436 : vector<2x128xf32> to vector<2x128xbf16>
    %c0_138 = arith.constant 0 : index
    %c0_139 = arith.constant 0 : index
    %451 = vector.load %arg8[%c0_138, %c0_139] : memref<128x512xbf16, #tpu.memory_space<vmem>>, vector<128x512xbf16>
    %cst_140 = arith.constant dense<0.000000e+00> : vector<2x512xf32>
    %452 = tpu.matmul %450, %451, %cst_140 {dimension_numbers = #tpu.dot_dimension_numbers<[1], [0], [0], [1], [0, 0, 1, 1], [], []>} : vector<2x128xbf16>, vector<128x512xbf16>, vector<2x512xf32> -> vector<2x512xf32>
    %453 = arith.addf %449, %452 : vector<2x512xf32>
    %454 = vector.extract_strided_slice %453 {offsets = [0, 0], sizes = [2, 384], strides = [1, 1]} : vector<2x512xf32> to vector<2x384xf32>
    %455 = arith.negf %454 : vector<2x384xf32>
    %456 = math.exp %455 : vector<2x384xf32>
    %cst_141 = arith.constant 1.000000e+00 : f32
    %457 = vector.broadcast %cst_141 : f32 to vector<2x384xf32>
    %458 = arith.addf %457, %456 : vector<2x384xf32>
    %459 = arith.divf %457, %458 : vector<2x384xf32>
    %460 = vector.extract_strided_slice %453 {offsets = [0, 384], sizes = [2, 128], strides = [1, 1]} : vector<2x512xf32> to vector<2x128xf32>
    %461 = math.tanh %460 : vector<2x128xf32>
    %462 = vector.extract_strided_slice %459 {offsets = [0, 0], sizes = [2, 128], strides = [1, 1]} : vector<2x384xf32> to vector<2x128xf32>
    %463 = vector.extract_strided_slice %459 {offsets = [0, 128], sizes = [2, 128], strides = [1, 1]} : vector<2x384xf32> to vector<2x128xf32>
    %464 = vector.extract_strided_slice %459 {offsets = [0, 256], sizes = [2, 128], strides = [1, 1]} : vector<2x384xf32> to vector<2x128xf32>
    %465 = arith.mulf %463, %434 : vector<2x128xf32>
    %466 = arith.mulf %462, %461 : vector<2x128xf32>
    %467 = arith.addf %465, %466 : vector<2x128xf32>
    %468 = math.tanh %467 : vector<2x128xf32>
    %469 = arith.mulf %464, %468 : vector<2x128xf32>
    %470 = vector.extract_strided_slice %469 {offsets = [0, 0], sizes = [2, 64], strides = [1, 1]} : vector<2x128xf32> to vector<2x64xf32>
    %471 = vector.shape_cast %470 : vector<2x64xf32> to vector<2x1x64xf32>
    %c0_142 = arith.constant 0 : index
    %c4_143 = arith.constant 4 : index
    %c0_144 = arith.constant 0 : index
    %472 = vector.load %arg20[%c0_142, %c4_143, %c0_144] : memref<2x8x128xf32, #tpu.memory_space<vmem>>, vector<2x1x64xf32>
    tpu.vector_store %arg20[%c0_142, %c4_143, %c0_144], %471 {strides = array<i32>} : memref<2x8x128xf32, #tpu.memory_space<vmem>>, vector<2x1x64xf32>,
    %473 = vector.extract_strided_slice %469 {offsets = [0, 64], sizes = [2, 64], strides = [1, 1]} : vector<2x128xf32> to vector<2x64xf32>
    %474 = vector.shape_cast %473 : vector<2x64xf32> to vector<2x1x64xf32>
    %c0_145 = arith.constant 0 : index
    %c3_146 = arith.constant 3 : index
    %c64_147 = arith.constant 64 : index
    %475 = vector.load %arg20[%c0_145, %c3_146, %c64_147] : memref<2x8x128xf32, #tpu.memory_space<vmem>>, vector<2x1x64xf32>
    tpu.vector_store %arg20[%c0_145, %c3_146, %c64_147], %474 {strides = array<i32>} : memref<2x8x128xf32, #tpu.memory_space<vmem>>, vector<2x1x64xf32>,
    %476 = vector.extract_strided_slice %308 {offsets = [0, 5, 0], sizes = [2, 1, 512], strides = [1, 1, 1]} : vector<2x8x512xf32> to vector<2x1x512xf32>
    %477 = vector.shape_cast %476 : vector<2x1x512xf32> to vector<2x512xf32>
    %478 = vector.extract_strided_slice %308 {offsets = [0, 2, 0], sizes = [2, 1, 512], strides = [1, 1, 1]} : vector<2x8x512xf32> to vector<2x1x512xf32>
    %479 = vector.shape_cast %478 : vector<2x1x512xf32> to vector<2x512xf32>
    %480 = vector.shape_cast %18 : vector<1x512xi1> to vector<1x512xi1>
    %481 = vector.broadcast %480 : vector<1x512xi1> to vector<2x512xi1>
    %482 = arith.select %481, %477, %479 : vector<2x512xi1>, vector<2x512xf32>
    %483 = arith.truncf %469 : vector<2x128xf32> to vector<2x128xbf16>
    %c0_148 = arith.constant 0 : index
    %c0_149 = arith.constant 0 : index
    %484 = vector.load %arg8[%c0_148, %c0_149] : memref<128x512xbf16, #tpu.memory_space<vmem>>, vector<128x512xbf16>
    %cst_150 = arith.constant dense<0.000000e+00> : vector<2x512xf32>
    %485 = tpu.matmul %483, %484, %cst_150 {dimension_numbers = #tpu.dot_dimension_numbers<[1], [0], [0], [1], [0, 0, 1, 1], [], []>} : vector<2x128xbf16>, vector<128x512xbf16>, vector<2x512xf32> -> vector<2x512xf32>
    %486 = arith.addf %482, %485 : vector<2x512xf32>
    %487 = vector.extract_strided_slice %486 {offsets = [0, 0], sizes = [2, 384], strides = [1, 1]} : vector<2x512xf32> to vector<2x384xf32>
    %488 = arith.negf %487 : vector<2x384xf32>
    %489 = math.exp %488 : vector<2x384xf32>
    %cst_151 = arith.constant 1.000000e+00 : f32
    %490 = vector.broadcast %cst_151 : f32 to vector<2x384xf32>
    %491 = arith.addf %490, %489 : vector<2x384xf32>
    %492 = arith.divf %490, %491 : vector<2x384xf32>
    %493 = vector.extract_strided_slice %486 {offsets = [0, 384], sizes = [2, 128], strides = [1, 1]} : vector<2x512xf32> to vector<2x128xf32>
    %494 = math.tanh %493 : vector<2x128xf32>
    %495 = vector.extract_strided_slice %492 {offsets = [0, 0], sizes = [2, 128], strides = [1, 1]} : vector<2x384xf32> to vector<2x128xf32>
    %496 = vector.extract_strided_slice %492 {offsets = [0, 128], sizes = [2, 128], strides = [1, 1]} : vector<2x384xf32> to vector<2x128xf32>
    %497 = vector.extract_strided_slice %492 {offsets = [0, 256], sizes = [2, 128], strides = [1, 1]} : vector<2x384xf32> to vector<2x128xf32>
    %498 = arith.mulf %496, %467 : vector<2x128xf32>
    %499 = arith.mulf %495, %494 : vector<2x128xf32>
    %500 = arith.addf %498, %499 : vector<2x128xf32>
    %501 = math.tanh %500 : vector<2x128xf32>
    %502 = arith.mulf %497, %501 : vector<2x128xf32>
    %503 = vector.extract_strided_slice %502 {offsets = [0, 0], sizes = [2, 64], strides = [1, 1]} : vector<2x128xf32> to vector<2x64xf32>
    %504 = vector.shape_cast %503 : vector<2x64xf32> to vector<2x1x64xf32>
    %c0_152 = arith.constant 0 : index
    %c5_153 = arith.constant 5 : index
    %c0_154 = arith.constant 0 : index
    %505 = vector.load %arg20[%c0_152, %c5_153, %c0_154] : memref<2x8x128xf32, #tpu.memory_space<vmem>>, vector<2x1x64xf32>
    tpu.vector_store %arg20[%c0_152, %c5_153, %c0_154], %504 {strides = array<i32>} : memref<2x8x128xf32, #tpu.memory_space<vmem>>, vector<2x1x64xf32>,
    %506 = vector.extract_strided_slice %502 {offsets = [0, 64], sizes = [2, 64], strides = [1, 1]} : vector<2x128xf32> to vector<2x64xf32>
    %507 = vector.shape_cast %506 : vector<2x64xf32> to vector<2x1x64xf32>
    %c0_155 = arith.constant 0 : index
    %c2_156 = arith.constant 2 : index
    %c64_157 = arith.constant 64 : index
    %508 = vector.load %arg20[%c0_155, %c2_156, %c64_157] : memref<2x8x128xf32, #tpu.memory_space<vmem>>, vector<2x1x64xf32>
    tpu.vector_store %arg20[%c0_155, %c2_156, %c64_157], %507 {strides = array<i32>} : memref<2x8x128xf32, #tpu.memory_space<vmem>>, vector<2x1x64xf32>,
    %509 = vector.extract_strided_slice %308 {offsets = [0, 6, 0], sizes = [2, 1, 512], strides = [1, 1, 1]} : vector<2x8x512xf32> to vector<2x1x512xf32>
    %510 = vector.shape_cast %509 : vector<2x1x512xf32> to vector<2x512xf32>
    %511 = vector.extract_strided_slice %308 {offsets = [0, 1, 0], sizes = [2, 1, 512], strides = [1, 1, 1]} : vector<2x8x512xf32> to vector<2x1x512xf32>
    %512 = vector.shape_cast %511 : vector<2x1x512xf32> to vector<2x512xf32>
    %513 = vector.shape_cast %18 : vector<1x512xi1> to vector<1x512xi1>
    %514 = vector.broadcast %513 : vector<1x512xi1> to vector<2x512xi1>
    %515 = arith.select %514, %510, %512 : vector<2x512xi1>, vector<2x512xf32>
    %516 = arith.truncf %502 : vector<2x128xf32> to vector<2x128xbf16>
    %c0_158 = arith.constant 0 : index
    %c0_159 = arith.constant 0 : index
    %517 = vector.load %arg8[%c0_158, %c0_159] : memref<128x512xbf16, #tpu.memory_space<vmem>>, vector<128x512xbf16>
    %cst_160 = arith.constant dense<0.000000e+00> : vector<2x512xf32>
    %518 = tpu.matmul %516, %517, %cst_160 {dimension_numbers = #tpu.dot_dimension_numbers<[1], [0], [0], [1], [0, 0, 1, 1], [], []>} : vector<2x128xbf16>, vector<128x512xbf16>, vector<2x512xf32> -> vector<2x512xf32>
    %519 = arith.addf %515, %518 : vector<2x512xf32>
    %520 = vector.extract_strided_slice %519 {offsets = [0, 0], sizes = [2, 384], strides = [1, 1]} : vector<2x512xf32> to vector<2x384xf32>
    %521 = arith.negf %520 : vector<2x384xf32>
    %522 = math.exp %521 : vector<2x384xf32>
    %cst_161 = arith.constant 1.000000e+00 : f32
    %523 = vector.broadcast %cst_161 : f32 to vector<2x384xf32>
    %524 = arith.addf %523, %522 : vector<2x384xf32>
    %525 = arith.divf %523, %524 : vector<2x384xf32>
    %526 = vector.extract_strided_slice %519 {offsets = [0, 384], sizes = [2, 128], strides = [1, 1]} : vector<2x512xf32> to vector<2x128xf32>
    %527 = math.tanh %526 : vector<2x128xf32>
    %528 = vector.extract_strided_slice %525 {offsets = [0, 0], sizes = [2, 128], strides = [1, 1]} : vector<2x384xf32> to vector<2x128xf32>
    %529 = vector.extract_strided_slice %525 {offsets = [0, 128], sizes = [2, 128], strides = [1, 1]} : vector<2x384xf32> to vector<2x128xf32>
    %530 = vector.extract_strided_slice %525 {offsets = [0, 256], sizes = [2, 128], strides = [1, 1]} : vector<2x384xf32> to vector<2x128xf32>
    %531 = arith.mulf %529, %500 : vector<2x128xf32>
    %532 = arith.mulf %528, %527 : vector<2x128xf32>
    %533 = arith.addf %531, %532 : vector<2x128xf32>
    %534 = math.tanh %533 : vector<2x128xf32>
    %535 = arith.mulf %530, %534 : vector<2x128xf32>
    %536 = vector.extract_strided_slice %535 {offsets = [0, 0], sizes = [2, 64], strides = [1, 1]} : vector<2x128xf32> to vector<2x64xf32>
    %537 = vector.shape_cast %536 : vector<2x64xf32> to vector<2x1x64xf32>
    %c0_162 = arith.constant 0 : index
    %c6_163 = arith.constant 6 : index
    %c0_164 = arith.constant 0 : index
    %538 = vector.load %arg20[%c0_162, %c6_163, %c0_164] : memref<2x8x128xf32, #tpu.memory_space<vmem>>, vector<2x1x64xf32>
    tpu.vector_store %arg20[%c0_162, %c6_163, %c0_164], %537 {strides = array<i32>} : memref<2x8x128xf32, #tpu.memory_space<vmem>>, vector<2x1x64xf32>,
    %539 = vector.extract_strided_slice %535 {offsets = [0, 64], sizes = [2, 64], strides = [1, 1]} : vector<2x128xf32> to vector<2x64xf32>
    %540 = vector.shape_cast %539 : vector<2x64xf32> to vector<2x1x64xf32>
    %c0_165 = arith.constant 0 : index
    %c1_166 = arith.constant 1 : index
    %c64_167 = arith.constant 64 : index
    %541 = vector.load %arg20[%c0_165, %c1_166, %c64_167] : memref<2x8x128xf32, #tpu.memory_space<vmem>>, vector<2x1x64xf32>
    tpu.vector_store %arg20[%c0_165, %c1_166, %c64_167], %540 {strides = array<i32>} : memref<2x8x128xf32, #tpu.memory_space<vmem>>, vector<2x1x64xf32>,
    %542 = vector.extract_strided_slice %308 {offsets = [0, 7, 0], sizes = [2, 1, 512], strides = [1, 1, 1]} : vector<2x8x512xf32> to vector<2x1x512xf32>
    %543 = vector.shape_cast %542 : vector<2x1x512xf32> to vector<2x512xf32>
    %544 = vector.extract_strided_slice %308 {offsets = [0, 0, 0], sizes = [2, 1, 512], strides = [1, 1, 1]} : vector<2x8x512xf32> to vector<2x1x512xf32>
    %545 = vector.shape_cast %544 : vector<2x1x512xf32> to vector<2x512xf32>
    %546 = vector.shape_cast %18 : vector<1x512xi1> to vector<1x512xi1>
    %547 = vector.broadcast %546 : vector<1x512xi1> to vector<2x512xi1>
    %548 = arith.select %547, %543, %545 : vector<2x512xi1>, vector<2x512xf32>
    %549 = arith.truncf %535 : vector<2x128xf32> to vector<2x128xbf16>
    %c0_168 = arith.constant 0 : index
    %c0_169 = arith.constant 0 : index
    %550 = vector.load %arg8[%c0_168, %c0_169] : memref<128x512xbf16, #tpu.memory_space<vmem>>, vector<128x512xbf16>
    %cst_170 = arith.constant dense<0.000000e+00> : vector<2x512xf32>
    %551 = tpu.matmul %549, %550, %cst_170 {dimension_numbers = #tpu.dot_dimension_numbers<[1], [0], [0], [1], [0, 0, 1, 1], [], []>} : vector<2x128xbf16>, vector<128x512xbf16>, vector<2x512xf32> -> vector<2x512xf32>
    %552 = arith.addf %548, %551 : vector<2x512xf32>
    %553 = vector.extract_strided_slice %552 {offsets = [0, 0], sizes = [2, 384], strides = [1, 1]} : vector<2x512xf32> to vector<2x384xf32>
    %554 = arith.negf %553 : vector<2x384xf32>
    %555 = math.exp %554 : vector<2x384xf32>
    %cst_171 = arith.constant 1.000000e+00 : f32
    %556 = vector.broadcast %cst_171 : f32 to vector<2x384xf32>
    %557 = arith.addf %556, %555 : vector<2x384xf32>
    %558 = arith.divf %556, %557 : vector<2x384xf32>
    %559 = vector.extract_strided_slice %552 {offsets = [0, 384], sizes = [2, 128], strides = [1, 1]} : vector<2x512xf32> to vector<2x128xf32>
    %560 = math.tanh %559 : vector<2x128xf32>
    %561 = vector.extract_strided_slice %558 {offsets = [0, 0], sizes = [2, 128], strides = [1, 1]} : vector<2x384xf32> to vector<2x128xf32>
    %562 = vector.extract_strided_slice %558 {offsets = [0, 128], sizes = [2, 128], strides = [1, 1]} : vector<2x384xf32> to vector<2x128xf32>
    %563 = vector.extract_strided_slice %558 {offsets = [0, 256], sizes = [2, 128], strides = [1, 1]} : vector<2x384xf32> to vector<2x128xf32>
    %564 = arith.mulf %562, %533 : vector<2x128xf32>
    %565 = arith.mulf %561, %560 : vector<2x128xf32>
    %566 = arith.addf %564, %565 : vector<2x128xf32>
    %567 = math.tanh %566 : vector<2x128xf32>
    %568 = arith.mulf %563, %567 : vector<2x128xf32>
    %569 = vector.extract_strided_slice %568 {offsets = [0, 0], sizes = [2, 64], strides = [1, 1]} : vector<2x128xf32> to vector<2x64xf32>
    %570 = vector.shape_cast %569 : vector<2x64xf32> to vector<2x1x64xf32>
    %c0_172 = arith.constant 0 : index
    %c7_173 = arith.constant 7 : index
    %c0_174 = arith.constant 0 : index
    %571 = vector.load %arg20[%c0_172, %c7_173, %c0_174] : memref<2x8x128xf32, #tpu.memory_space<vmem>>, vector<2x1x64xf32>
    tpu.vector_store %arg20[%c0_172, %c7_173, %c0_174], %570 {strides = array<i32>} : memref<2x8x128xf32, #tpu.memory_space<vmem>>, vector<2x1x64xf32>,
    %572 = vector.extract_strided_slice %568 {offsets = [0, 64], sizes = [2, 64], strides = [1, 1]} : vector<2x128xf32> to vector<2x64xf32>
    %573 = vector.shape_cast %572 : vector<2x64xf32> to vector<2x1x64xf32>
    %c0_175 = arith.constant 0 : index
    %c0_176 = arith.constant 0 : index
    %c64_177 = arith.constant 64 : index
    %574 = vector.load %arg20[%c0_175, %c0_176, %c64_177] : memref<2x8x128xf32, #tpu.memory_space<vmem>>, vector<2x1x64xf32>
    tpu.vector_store %arg20[%c0_175, %c0_176, %c64_177], %573 {strides = array<i32>} : memref<2x8x128xf32, #tpu.memory_space<vmem>>, vector<2x1x64xf32>,
    %c0_178 = arith.constant 0 : index
    %c0_179 = arith.constant 0 : index
    %c0_180 = arith.constant 0 : index
    %575 = vector.load %arg20[%c0_178, %c0_179, %c0_180] : memref<2x8x128xf32, #tpu.memory_space<vmem>>, vector<2x8x128xf32>
    %576 = vector.shape_cast %575 : vector<2x8x128xf32> to vector<16x128xf32>
    %577 = arith.truncf %576 : vector<16x128xf32> to vector<16x128xbf16>
    %c0_181 = arith.constant 0 : index
    %c0_182 = arith.constant 0 : index
    %578 = vector.load %arg10[%c0_181, %c0_182] : memref<128x384xbf16, #tpu.memory_space<vmem>>, vector<128x384xbf16>
    %cst_183 = arith.constant dense<0.000000e+00> : vector<16x384xf32>
    %579 = tpu.matmul %577, %578, %cst_183 {dimension_numbers = #tpu.dot_dimension_numbers<[1], [0], [0], [1], [0, 0, 1, 1], [], []>} : vector<16x128xbf16>, vector<128x384xbf16>, vector<16x384xf32> -> vector<16x384xf32>
    %c0_184 = arith.constant 0 : index
    %c0_185 = arith.constant 0 : index
    %580 = vector.load %arg11[%c0_184, %c0_185] : memref<1x384xf32, #tpu.memory_space<vmem>>, vector<1x384xf32>
    %581 = vector.broadcast %580 : vector<1x384xf32> to vector<16x384xf32>
    %582 = arith.addf %579, %581 : vector<16x384xf32>
    %583 = vector.extract_strided_slice %582 {offsets = [0, 0], sizes = [16, 128], strides = [1, 1]} : vector<16x384xf32> to vector<16x128xf32>
    %584 = vector.shape_cast %583 : vector<16x128xf32> to vector<2x8x128xf32>
    %585 = vector.extract_strided_slice %582 {offsets = [0, 128], sizes = [16, 128], strides = [1, 1]} : vector<16x384xf32> to vector<16x128xf32>
    %586 = vector.shape_cast %585 : vector<16x128xf32> to vector<2x8x128xf32>
    %587 = vector.extract_strided_slice %582 {offsets = [0, 256], sizes = [16, 128], strides = [1, 1]} : vector<16x384xf32> to vector<16x128xf32>
    %588 = vector.shape_cast %587 : vector<16x128xf32> to vector<2x8x128xf32>
    %589 = vector.extract_strided_slice %584 {offsets = [0, 0, 0], sizes = [1, 8, 16], strides = [1, 1, 1]} : vector<2x8x128xf32> to vector<1x8x16xf32>
    %590 = vector.shape_cast %589 : vector<1x8x16xf32> to vector<8x16xf32>
    %591 = vector.extract_strided_slice %584 {offsets = [0, 0, 16], sizes = [1, 8, 16], strides = [1, 1, 1]} : vector<2x8x128xf32> to vector<1x8x16xf32>
    %592 = vector.shape_cast %591 : vector<1x8x16xf32> to vector<8x16xf32>
    %593 = vector.extract_strided_slice %584 {offsets = [0, 0, 32], sizes = [1, 8, 16], strides = [1, 1, 1]} : vector<2x8x128xf32> to vector<1x8x16xf32>
    %594 = vector.shape_cast %593 : vector<1x8x16xf32> to vector<8x16xf32>
    %595 = vector.extract_strided_slice %584 {offsets = [0, 0, 48], sizes = [1, 8, 16], strides = [1, 1, 1]} : vector<2x8x128xf32> to vector<1x8x16xf32>
    %596 = vector.shape_cast %595 : vector<1x8x16xf32> to vector<8x16xf32>
    %597 = vector.extract_strided_slice %584 {offsets = [0, 0, 64], sizes = [1, 8, 16], strides = [1, 1, 1]} : vector<2x8x128xf32> to vector<1x8x16xf32>
    %598 = vector.shape_cast %597 : vector<1x8x16xf32> to vector<8x16xf32>
    %599 = vector.extract_strided_slice %584 {offsets = [0, 0, 80], sizes = [1, 8, 16], strides = [1, 1, 1]} : vector<2x8x128xf32> to vector<1x8x16xf32>
    %600 = vector.shape_cast %599 : vector<1x8x16xf32> to vector<8x16xf32>
    %601 = vector.extract_strided_slice %584 {offsets = [0, 0, 96], sizes = [1, 8, 16], strides = [1, 1, 1]} : vector<2x8x128xf32> to vector<1x8x16xf32>
    %602 = vector.shape_cast %601 : vector<1x8x16xf32> to vector<8x16xf32>
    %603 = vector.extract_strided_slice %584 {offsets = [0, 0, 112], sizes = [1, 8, 16], strides = [1, 1, 1]} : vector<2x8x128xf32> to vector<1x8x16xf32>
    %604 = vector.shape_cast %603 : vector<1x8x16xf32> to vector<8x16xf32>
    %605 = vector.extract_strided_slice %584 {offsets = [1, 0, 0], sizes = [1, 8, 16], strides = [1, 1, 1]} : vector<2x8x128xf32> to vector<1x8x16xf32>
    %606 = vector.shape_cast %605 : vector<1x8x16xf32> to vector<8x16xf32>
    %607 = vector.extract_strided_slice %584 {offsets = [1, 0, 16], sizes = [1, 8, 16], strides = [1, 1, 1]} : vector<2x8x128xf32> to vector<1x8x16xf32>
    %608 = vector.shape_cast %607 : vector<1x8x16xf32> to vector<8x16xf32>
    %609 = vector.extract_strided_slice %584 {offsets = [1, 0, 32], sizes = [1, 8, 16], strides = [1, 1, 1]} : vector<2x8x128xf32> to vector<1x8x16xf32>
    %610 = vector.shape_cast %609 : vector<1x8x16xf32> to vector<8x16xf32>
    %611 = vector.extract_strided_slice %584 {offsets = [1, 0, 48], sizes = [1, 8, 16], strides = [1, 1, 1]} : vector<2x8x128xf32> to vector<1x8x16xf32>
    %612 = vector.shape_cast %611 : vector<1x8x16xf32> to vector<8x16xf32>
    %613 = vector.extract_strided_slice %584 {offsets = [1, 0, 64], sizes = [1, 8, 16], strides = [1, 1, 1]} : vector<2x8x128xf32> to vector<1x8x16xf32>
    %614 = vector.shape_cast %613 : vector<1x8x16xf32> to vector<8x16xf32>
    %615 = vector.extract_strided_slice %584 {offsets = [1, 0, 80], sizes = [1, 8, 16], strides = [1, 1, 1]} : vector<2x8x128xf32> to vector<1x8x16xf32>
    %616 = vector.shape_cast %615 : vector<1x8x16xf32> to vector<8x16xf32>
    %617 = vector.extract_strided_slice %584 {offsets = [1, 0, 96], sizes = [1, 8, 16], strides = [1, 1, 1]} : vector<2x8x128xf32> to vector<1x8x16xf32>
    %618 = vector.shape_cast %617 : vector<1x8x16xf32> to vector<8x16xf32>
    %619 = vector.extract_strided_slice %584 {offsets = [1, 0, 112], sizes = [1, 8, 16], strides = [1, 1, 1]} : vector<2x8x128xf32> to vector<1x8x16xf32>
    %620 = vector.shape_cast %619 : vector<1x8x16xf32> to vector<8x16xf32>
    %621 = vector.shape_cast %590 : vector<8x16xf32> to vector<1x8x16xf32>
    %622 = vector.shape_cast %592 : vector<8x16xf32> to vector<1x8x16xf32>
    %623 = vector.shape_cast %594 : vector<8x16xf32> to vector<1x8x16xf32>
    %624 = vector.shape_cast %596 : vector<8x16xf32> to vector<1x8x16xf32>
    %625 = vector.shape_cast %598 : vector<8x16xf32> to vector<1x8x16xf32>
    %626 = vector.shape_cast %600 : vector<8x16xf32> to vector<1x8x16xf32>
    %627 = vector.shape_cast %602 : vector<8x16xf32> to vector<1x8x16xf32>
    %628 = vector.shape_cast %604 : vector<8x16xf32> to vector<1x8x16xf32>
    %629 = vector.shape_cast %606 : vector<8x16xf32> to vector<1x8x16xf32>
    %630 = vector.shape_cast %608 : vector<8x16xf32> to vector<1x8x16xf32>
    %631 = vector.shape_cast %610 : vector<8x16xf32> to vector<1x8x16xf32>
    %632 = vector.shape_cast %612 : vector<8x16xf32> to vector<1x8x16xf32>
    %633 = vector.shape_cast %614 : vector<8x16xf32> to vector<1x8x16xf32>
    %634 = vector.shape_cast %616 : vector<8x16xf32> to vector<1x8x16xf32>
    %635 = vector.shape_cast %618 : vector<8x16xf32> to vector<1x8x16xf32>
    %636 = vector.shape_cast %620 : vector<8x16xf32> to vector<1x8x16xf32>
    %637 = tpu.concatenate %621, %622, %623, %624, %625, %626, %627, %628, %629, %630, %631, %632, %633, %634, %635, %636 in 0 : vector<1x8x16xf32>, vector<1x8x16xf32>, vector<1x8x16xf32>, vector<1x8x16xf32>, vector<1x8x16xf32>, vector<1x8x16xf32>, vector<1x8x16xf32>, vector<1x8x16xf32>, vector<1x8x16xf32>, vector<1x8x16xf32>, vector<1x8x16xf32>, vector<1x8x16xf32>, vector<1x8x16xf32>, vector<1x8x16xf32>, vector<1x8x16xf32>, vector<1x8x16xf32> -> vector<16x8x16xf32>
    %638 = vector.extract_strided_slice %586 {offsets = [0, 0, 0], sizes = [1, 8, 16], strides = [1, 1, 1]} : vector<2x8x128xf32> to vector<1x8x16xf32>
    %639 = vector.shape_cast %638 : vector<1x8x16xf32> to vector<8x16xf32>
    %640 = vector.extract_strided_slice %586 {offsets = [0, 0, 16], sizes = [1, 8, 16], strides = [1, 1, 1]} : vector<2x8x128xf32> to vector<1x8x16xf32>
    %641 = vector.shape_cast %640 : vector<1x8x16xf32> to vector<8x16xf32>
    %642 = vector.extract_strided_slice %586 {offsets = [0, 0, 32], sizes = [1, 8, 16], strides = [1, 1, 1]} : vector<2x8x128xf32> to vector<1x8x16xf32>
    %643 = vector.shape_cast %642 : vector<1x8x16xf32> to vector<8x16xf32>
    %644 = vector.extract_strided_slice %586 {offsets = [0, 0, 48], sizes = [1, 8, 16], strides = [1, 1, 1]} : vector<2x8x128xf32> to vector<1x8x16xf32>
    %645 = vector.shape_cast %644 : vector<1x8x16xf32> to vector<8x16xf32>
    %646 = vector.extract_strided_slice %586 {offsets = [0, 0, 64], sizes = [1, 8, 16], strides = [1, 1, 1]} : vector<2x8x128xf32> to vector<1x8x16xf32>
    %647 = vector.shape_cast %646 : vector<1x8x16xf32> to vector<8x16xf32>
    %648 = vector.extract_strided_slice %586 {offsets = [0, 0, 80], sizes = [1, 8, 16], strides = [1, 1, 1]} : vector<2x8x128xf32> to vector<1x8x16xf32>
    %649 = vector.shape_cast %648 : vector<1x8x16xf32> to vector<8x16xf32>
    %650 = vector.extract_strided_slice %586 {offsets = [0, 0, 96], sizes = [1, 8, 16], strides = [1, 1, 1]} : vector<2x8x128xf32> to vector<1x8x16xf32>
    %651 = vector.shape_cast %650 : vector<1x8x16xf32> to vector<8x16xf32>
    %652 = vector.extract_strided_slice %586 {offsets = [0, 0, 112], sizes = [1, 8, 16], strides = [1, 1, 1]} : vector<2x8x128xf32> to vector<1x8x16xf32>
    %653 = vector.shape_cast %652 : vector<1x8x16xf32> to vector<8x16xf32>
    %654 = vector.extract_strided_slice %586 {offsets = [1, 0, 0], sizes = [1, 8, 16], strides = [1, 1, 1]} : vector<2x8x128xf32> to vector<1x8x16xf32>
    %655 = vector.shape_cast %654 : vector<1x8x16xf32> to vector<8x16xf32>
    %656 = vector.extract_strided_slice %586 {offsets = [1, 0, 16], sizes = [1, 8, 16], strides = [1, 1, 1]} : vector<2x8x128xf32> to vector<1x8x16xf32>
    %657 = vector.shape_cast %656 : vector<1x8x16xf32> to vector<8x16xf32>
    %658 = vector.extract_strided_slice %586 {offsets = [1, 0, 32], sizes = [1, 8, 16], strides = [1, 1, 1]} : vector<2x8x128xf32> to vector<1x8x16xf32>
    %659 = vector.shape_cast %658 : vector<1x8x16xf32> to vector<8x16xf32>
    %660 = vector.extract_strided_slice %586 {offsets = [1, 0, 48], sizes = [1, 8, 16], strides = [1, 1, 1]} : vector<2x8x128xf32> to vector<1x8x16xf32>
    %661 = vector.shape_cast %660 : vector<1x8x16xf32> to vector<8x16xf32>
    %662 = vector.extract_strided_slice %586 {offsets = [1, 0, 64], sizes = [1, 8, 16], strides = [1, 1, 1]} : vector<2x8x128xf32> to vector<1x8x16xf32>
    %663 = vector.shape_cast %662 : vector<1x8x16xf32> to vector<8x16xf32>
    %664 = vector.extract_strided_slice %586 {offsets = [1, 0, 80], sizes = [1, 8, 16], strides = [1, 1, 1]} : vector<2x8x128xf32> to vector<1x8x16xf32>
    %665 = vector.shape_cast %664 : vector<1x8x16xf32> to vector<8x16xf32>
    %666 = vector.extract_strided_slice %586 {offsets = [1, 0, 96], sizes = [1, 8, 16], strides = [1, 1, 1]} : vector<2x8x128xf32> to vector<1x8x16xf32>
    %667 = vector.shape_cast %666 : vector<1x8x16xf32> to vector<8x16xf32>
    %668 = vector.extract_strided_slice %586 {offsets = [1, 0, 112], sizes = [1, 8, 16], strides = [1, 1, 1]} : vector<2x8x128xf32> to vector<1x8x16xf32>
    %669 = vector.shape_cast %668 : vector<1x8x16xf32> to vector<8x16xf32>
    %670 = vector.shape_cast %639 : vector<8x16xf32> to vector<1x8x16xf32>
    %671 = vector.shape_cast %641 : vector<8x16xf32> to vector<1x8x16xf32>
    %672 = vector.shape_cast %643 : vector<8x16xf32> to vector<1x8x16xf32>
    %673 = vector.shape_cast %645 : vector<8x16xf32> to vector<1x8x16xf32>
    %674 = vector.shape_cast %647 : vector<8x16xf32> to vector<1x8x16xf32>
    %675 = vector.shape_cast %649 : vector<8x16xf32> to vector<1x8x16xf32>
    %676 = vector.shape_cast %651 : vector<8x16xf32> to vector<1x8x16xf32>
    %677 = vector.shape_cast %653 : vector<8x16xf32> to vector<1x8x16xf32>
    %678 = vector.shape_cast %655 : vector<8x16xf32> to vector<1x8x16xf32>
    %679 = vector.shape_cast %657 : vector<8x16xf32> to vector<1x8x16xf32>
    %680 = vector.shape_cast %659 : vector<8x16xf32> to vector<1x8x16xf32>
    %681 = vector.shape_cast %661 : vector<8x16xf32> to vector<1x8x16xf32>
    %682 = vector.shape_cast %663 : vector<8x16xf32> to vector<1x8x16xf32>
    %683 = vector.shape_cast %665 : vector<8x16xf32> to vector<1x8x16xf32>
    %684 = vector.shape_cast %667 : vector<8x16xf32> to vector<1x8x16xf32>
    %685 = vector.shape_cast %669 : vector<8x16xf32> to vector<1x8x16xf32>
    %686 = tpu.concatenate %670, %671, %672, %673, %674, %675, %676, %677, %678, %679, %680, %681, %682, %683, %684, %685 in 0 : vector<1x8x16xf32>, vector<1x8x16xf32>, vector<1x8x16xf32>, vector<1x8x16xf32>, vector<1x8x16xf32>, vector<1x8x16xf32>, vector<1x8x16xf32>, vector<1x8x16xf32>, vector<1x8x16xf32>, vector<1x8x16xf32>, vector<1x8x16xf32>, vector<1x8x16xf32>, vector<1x8x16xf32>, vector<1x8x16xf32>, vector<1x8x16xf32>, vector<1x8x16xf32> -> vector<16x8x16xf32>
    %687 = vector.extract_strided_slice %588 {offsets = [0, 0, 0], sizes = [1, 8, 16], strides = [1, 1, 1]} : vector<2x8x128xf32> to vector<1x8x16xf32>
    %688 = vector.shape_cast %687 : vector<1x8x16xf32> to vector<8x16xf32>
    %689 = vector.extract_strided_slice %588 {offsets = [0, 0, 16], sizes = [1, 8, 16], strides = [1, 1, 1]} : vector<2x8x128xf32> to vector<1x8x16xf32>
    %690 = vector.shape_cast %689 : vector<1x8x16xf32> to vector<8x16xf32>
    %691 = vector.extract_strided_slice %588 {offsets = [0, 0, 32], sizes = [1, 8, 16], strides = [1, 1, 1]} : vector<2x8x128xf32> to vector<1x8x16xf32>
    %692 = vector.shape_cast %691 : vector<1x8x16xf32> to vector<8x16xf32>
    %693 = vector.extract_strided_slice %588 {offsets = [0, 0, 48], sizes = [1, 8, 16], strides = [1, 1, 1]} : vector<2x8x128xf32> to vector<1x8x16xf32>
    %694 = vector.shape_cast %693 : vector<1x8x16xf32> to vector<8x16xf32>
    %695 = vector.extract_strided_slice %588 {offsets = [0, 0, 64], sizes = [1, 8, 16], strides = [1, 1, 1]} : vector<2x8x128xf32> to vector<1x8x16xf32>
    %696 = vector.shape_cast %695 : vector<1x8x16xf32> to vector<8x16xf32>
    %697 = vector.extract_strided_slice %588 {offsets = [0, 0, 80], sizes = [1, 8, 16], strides = [1, 1, 1]} : vector<2x8x128xf32> to vector<1x8x16xf32>
    %698 = vector.shape_cast %697 : vector<1x8x16xf32> to vector<8x16xf32>
    %699 = vector.extract_strided_slice %588 {offsets = [0, 0, 96], sizes = [1, 8, 16], strides = [1, 1, 1]} : vector<2x8x128xf32> to vector<1x8x16xf32>
    %700 = vector.shape_cast %699 : vector<1x8x16xf32> to vector<8x16xf32>
    %701 = vector.extract_strided_slice %588 {offsets = [0, 0, 112], sizes = [1, 8, 16], strides = [1, 1, 1]} : vector<2x8x128xf32> to vector<1x8x16xf32>
    %702 = vector.shape_cast %701 : vector<1x8x16xf32> to vector<8x16xf32>
    %703 = vector.extract_strided_slice %588 {offsets = [1, 0, 0], sizes = [1, 8, 16], strides = [1, 1, 1]} : vector<2x8x128xf32> to vector<1x8x16xf32>
    %704 = vector.shape_cast %703 : vector<1x8x16xf32> to vector<8x16xf32>
    %705 = vector.extract_strided_slice %588 {offsets = [1, 0, 16], sizes = [1, 8, 16], strides = [1, 1, 1]} : vector<2x8x128xf32> to vector<1x8x16xf32>
    %706 = vector.shape_cast %705 : vector<1x8x16xf32> to vector<8x16xf32>
    %707 = vector.extract_strided_slice %588 {offsets = [1, 0, 32], sizes = [1, 8, 16], strides = [1, 1, 1]} : vector<2x8x128xf32> to vector<1x8x16xf32>
    %708 = vector.shape_cast %707 : vector<1x8x16xf32> to vector<8x16xf32>
    %709 = vector.extract_strided_slice %588 {offsets = [1, 0, 48], sizes = [1, 8, 16], strides = [1, 1, 1]} : vector<2x8x128xf32> to vector<1x8x16xf32>
    %710 = vector.shape_cast %709 : vector<1x8x16xf32> to vector<8x16xf32>
    %711 = vector.extract_strided_slice %588 {offsets = [1, 0, 64], sizes = [1, 8, 16], strides = [1, 1, 1]} : vector<2x8x128xf32> to vector<1x8x16xf32>
    %712 = vector.shape_cast %711 : vector<1x8x16xf32> to vector<8x16xf32>
    %713 = vector.extract_strided_slice %588 {offsets = [1, 0, 80], sizes = [1, 8, 16], strides = [1, 1, 1]} : vector<2x8x128xf32> to vector<1x8x16xf32>
    %714 = vector.shape_cast %713 : vector<1x8x16xf32> to vector<8x16xf32>
    %715 = vector.extract_strided_slice %588 {offsets = [1, 0, 96], sizes = [1, 8, 16], strides = [1, 1, 1]} : vector<2x8x128xf32> to vector<1x8x16xf32>
    %716 = vector.shape_cast %715 : vector<1x8x16xf32> to vector<8x16xf32>
    %717 = vector.extract_strided_slice %588 {offsets = [1, 0, 112], sizes = [1, 8, 16], strides = [1, 1, 1]} : vector<2x8x128xf32> to vector<1x8x16xf32>
    %718 = vector.shape_cast %717 : vector<1x8x16xf32> to vector<8x16xf32>
    %719 = vector.shape_cast %688 : vector<8x16xf32> to vector<1x8x16xf32>
    %720 = vector.shape_cast %690 : vector<8x16xf32> to vector<1x8x16xf32>
    %721 = vector.shape_cast %692 : vector<8x16xf32> to vector<1x8x16xf32>
    %722 = vector.shape_cast %694 : vector<8x16xf32> to vector<1x8x16xf32>
    %723 = vector.shape_cast %696 : vector<8x16xf32> to vector<1x8x16xf32>
    %724 = vector.shape_cast %698 : vector<8x16xf32> to vector<1x8x16xf32>
    %725 = vector.shape_cast %700 : vector<8x16xf32> to vector<1x8x16xf32>
    %726 = vector.shape_cast %702 : vector<8x16xf32> to vector<1x8x16xf32>
    %727 = vector.shape_cast %704 : vector<8x16xf32> to vector<1x8x16xf32>
    %728 = vector.shape_cast %706 : vector<8x16xf32> to vector<1x8x16xf32>
    %729 = vector.shape_cast %708 : vector<8x16xf32> to vector<1x8x16xf32>
    %730 = vector.shape_cast %710 : vector<8x16xf32> to vector<1x8x16xf32>
    %731 = vector.shape_cast %712 : vector<8x16xf32> to vector<1x8x16xf32>
    %732 = vector.shape_cast %714 : vector<8x16xf32> to vector<1x8x16xf32>
    %733 = vector.shape_cast %716 : vector<8x16xf32> to vector<1x8x16xf32>
    %734 = vector.shape_cast %718 : vector<8x16xf32> to vector<1x8x16xf32>
    %735 = tpu.concatenate %719, %720, %721, %722, %723, %724, %725, %726, %727, %728, %729, %730, %731, %732, %733, %734 in 0 : vector<1x8x16xf32>, vector<1x8x16xf32>, vector<1x8x16xf32>, vector<1x8x16xf32>, vector<1x8x16xf32>, vector<1x8x16xf32>, vector<1x8x16xf32>, vector<1x8x16xf32>, vector<1x8x16xf32>, vector<1x8x16xf32>, vector<1x8x16xf32>, vector<1x8x16xf32>, vector<1x8x16xf32>, vector<1x8x16xf32>, vector<1x8x16xf32>, vector<1x8x16xf32> -> vector<16x8x16xf32>
    %736 = arith.truncf %637 : vector<16x8x16xf32> to vector<16x8x16xbf16>
    %737 = arith.truncf %686 : vector<16x8x16xf32> to vector<16x8x16xbf16>
    "tpu.trace_start"() <{level = 10 : i32, message = "bqd,bkd->bqk"}> : () -> ()
    %cst_186 = arith.constant dense<0.000000e+00> : vector<16x8x8xf32>
    %738 = tpu.matmul %736, %737, %cst_186 {dimension_numbers = #tpu.dot_dimension_numbers<[2], [2], [1], [1], [0, 0, 0, 1, 1, 1], [0], [0]>} : vector<16x8x16xbf16>, vector<16x8x16xbf16>, vector<16x8x8xf32> -> vector<16x8x8xf32>
    "tpu.trace_stop"() : () -> ()
    %cst_187 = arith.constant 2.500000e-01 : f32
    %739 = vector.broadcast %cst_187 : f32 to vector<16x8x8xf32>
    %740 = arith.mulf %738, %739 : vector<16x8x8xf32>
    %cst_188 = arith.constant dense<0xFF800000> : vector<16x8xf32>
    %741 = vector.multi_reduction <maximumf>, %740, %cst_188 [2] : vector<16x8x8xf32> to vector<16x8xf32>
    %cst_189 = arith.constant 0xFF800000 : f32
    %742 = vector.broadcast %cst_189 : f32 to vector<16x8xf32>
    %743 = arith.maximumf %742, %741 : vector<16x8xf32>
    %744 = vector.shape_cast %743 : vector<16x8xf32> to vector<16x8x1xf32>
    %745 = vector.broadcast %744 : vector<16x8x1xf32> to vector<16x8x8xf32>
    %746 = arith.subf %740, %745 : vector<16x8x8xf32>
    %747 = math.exp %746 : vector<16x8x8xf32>
    %cst_190 = arith.constant dense<0.000000e+00> : vector<16x8xf32>
    %748 = vector.multi_reduction <add>, %747, %cst_190 [2] : vector<16x8x8xf32> to vector<16x8xf32>
    %749 = vector.shape_cast %748 : vector<16x8xf32> to vector<16x8x1xf32>
    %750 = vector.broadcast %749 : vector<16x8x1xf32> to vector<16x8x8xf32>
    %751 = arith.divf %747, %750 : vector<16x8x8xf32>
    %752 = arith.truncf %751 : vector<16x8x8xf32> to vector<16x8x8xbf16>
    %753 = arith.truncf %735 : vector<16x8x16xf32> to vector<16x8x16xbf16>
    "tpu.trace_start"() <{level = 10 : i32, message = "bqk,bkd->bqd"}> : () -> ()
    %cst_191 = arith.constant dense<0.000000e+00> : vector<16x8x16xf32>
    %754 = tpu.matmul %752, %753, %cst_191 {dimension_numbers = #tpu.dot_dimension_numbers<[2], [1], [1], [2], [0, 0, 0, 1, 1, 2], [0], [0]>} : vector<16x8x8xbf16>, vector<16x8x16xbf16>, vector<16x8x16xf32> -> vector<16x8x16xf32>
    "tpu.trace_stop"() : () -> ()
    %755 = vector.extract_strided_slice %754 {offsets = [0, 0, 0], sizes = [1, 8, 16], strides = [1, 1, 1]} : vector<16x8x16xf32> to vector<1x8x16xf32>
    %756 = vector.shape_cast %755 : vector<1x8x16xf32> to vector<8x16xf32>
    %757 = vector.extract_strided_slice %754 {offsets = [1, 0, 0], sizes = [1, 8, 16], strides = [1, 1, 1]} : vector<16x8x16xf32> to vector<1x8x16xf32>
    %758 = vector.shape_cast %757 : vector<1x8x16xf32> to vector<8x16xf32>
    %759 = vector.extract_strided_slice %754 {offsets = [2, 0, 0], sizes = [1, 8, 16], strides = [1, 1, 1]} : vector<16x8x16xf32> to vector<1x8x16xf32>
    %760 = vector.shape_cast %759 : vector<1x8x16xf32> to vector<8x16xf32>
    %761 = vector.extract_strided_slice %754 {offsets = [3, 0, 0], sizes = [1, 8, 16], strides = [1, 1, 1]} : vector<16x8x16xf32> to vector<1x8x16xf32>
    %762 = vector.shape_cast %761 : vector<1x8x16xf32> to vector<8x16xf32>
    %763 = vector.extract_strided_slice %754 {offsets = [4, 0, 0], sizes = [1, 8, 16], strides = [1, 1, 1]} : vector<16x8x16xf32> to vector<1x8x16xf32>
    %764 = vector.shape_cast %763 : vector<1x8x16xf32> to vector<8x16xf32>
    %765 = vector.extract_strided_slice %754 {offsets = [5, 0, 0], sizes = [1, 8, 16], strides = [1, 1, 1]} : vector<16x8x16xf32> to vector<1x8x16xf32>
    %766 = vector.shape_cast %765 : vector<1x8x16xf32> to vector<8x16xf32>
    %767 = vector.extract_strided_slice %754 {offsets = [6, 0, 0], sizes = [1, 8, 16], strides = [1, 1, 1]} : vector<16x8x16xf32> to vector<1x8x16xf32>
    %768 = vector.shape_cast %767 : vector<1x8x16xf32> to vector<8x16xf32>
    %769 = vector.extract_strided_slice %754 {offsets = [7, 0, 0], sizes = [1, 8, 16], strides = [1, 1, 1]} : vector<16x8x16xf32> to vector<1x8x16xf32>
    %770 = vector.shape_cast %769 : vector<1x8x16xf32> to vector<8x16xf32>
    %771 = tpu.concatenate %756, %758, %760, %762, %764, %766, %768, %770 in 1 : vector<8x16xf32>, vector<8x16xf32>, vector<8x16xf32>, vector<8x16xf32>, vector<8x16xf32>, vector<8x16xf32>, vector<8x16xf32>, vector<8x16xf32> -> vector<8x128xf32>
    %772 = vector.extract_strided_slice %754 {offsets = [8, 0, 0], sizes = [1, 8, 16], strides = [1, 1, 1]} : vector<16x8x16xf32> to vector<1x8x16xf32>
    %773 = vector.shape_cast %772 : vector<1x8x16xf32> to vector<8x16xf32>
    %774 = vector.extract_strided_slice %754 {offsets = [9, 0, 0], sizes = [1, 8, 16], strides = [1, 1, 1]} : vector<16x8x16xf32> to vector<1x8x16xf32>
    %775 = vector.shape_cast %774 : vector<1x8x16xf32> to vector<8x16xf32>
    %776 = vector.extract_strided_slice %754 {offsets = [10, 0, 0], sizes = [1, 8, 16], strides = [1, 1, 1]} : vector<16x8x16xf32> to vector<1x8x16xf32>
    %777 = vector.shape_cast %776 : vector<1x8x16xf32> to vector<8x16xf32>
    %778 = vector.extract_strided_slice %754 {offsets = [11, 0, 0], sizes = [1, 8, 16], strides = [1, 1, 1]} : vector<16x8x16xf32> to vector<1x8x16xf32>
    %779 = vector.shape_cast %778 : vector<1x8x16xf32> to vector<8x16xf32>
    %780 = vector.extract_strided_slice %754 {offsets = [12, 0, 0], sizes = [1, 8, 16], strides = [1, 1, 1]} : vector<16x8x16xf32> to vector<1x8x16xf32>
    %781 = vector.shape_cast %780 : vector<1x8x16xf32> to vector<8x16xf32>
    %782 = vector.extract_strided_slice %754 {offsets = [13, 0, 0], sizes = [1, 8, 16], strides = [1, 1, 1]} : vector<16x8x16xf32> to vector<1x8x16xf32>
    %783 = vector.shape_cast %782 : vector<1x8x16xf32> to vector<8x16xf32>
    %784 = vector.extract_strided_slice %754 {offsets = [14, 0, 0], sizes = [1, 8, 16], strides = [1, 1, 1]} : vector<16x8x16xf32> to vector<1x8x16xf32>
    %785 = vector.shape_cast %784 : vector<1x8x16xf32> to vector<8x16xf32>
    %786 = vector.extract_strided_slice %754 {offsets = [15, 0, 0], sizes = [1, 8, 16], strides = [1, 1, 1]} : vector<16x8x16xf32> to vector<1x8x16xf32>
    %787 = vector.shape_cast %786 : vector<1x8x16xf32> to vector<8x16xf32>
    %788 = tpu.concatenate %773, %775, %777, %779, %781, %783, %785, %787 in 1 : vector<8x16xf32>, vector<8x16xf32>, vector<8x16xf32>, vector<8x16xf32>, vector<8x16xf32>, vector<8x16xf32>, vector<8x16xf32>, vector<8x16xf32> -> vector<8x128xf32>
    %789 = tpu.concatenate %771, %788 in 0 : vector<8x128xf32>, vector<8x128xf32> -> vector<16x128xf32>
    %790 = arith.truncf %789 : vector<16x128xf32> to vector<16x128xbf16>
    %c0_192 = arith.constant 0 : index
    %c0_193 = arith.constant 0 : index
    %791 = vector.load %arg12[%c0_192, %c0_193] : memref<128x128xbf16, #tpu.memory_space<vmem>>, vector<128x128xbf16>
    %cst_194 = arith.constant dense<0.000000e+00> : vector<16x128xf32>
    %792 = tpu.matmul %790, %791, %cst_194 {dimension_numbers = #tpu.dot_dimension_numbers<[1], [0], [0], [1], [0, 0, 1, 1], [], []>} : vector<16x128xbf16>, vector<128x128xbf16>, vector<16x128xf32> -> vector<16x128xf32>
    %c0_195 = arith.constant 0 : index
    %c0_196 = arith.constant 0 : index
    %793 = vector.load %arg13[%c0_195, %c0_196] : memref<1x128xf32, #tpu.memory_space<vmem>>, vector<1x128xf32>
    %794 = vector.broadcast %793 : vector<1x128xf32> to vector<16x128xf32>
    %795 = arith.addf %792, %794 : vector<16x128xf32>
    %796 = vector.shape_cast %795 : vector<16x128xf32> to vector<2x8x128xf32>
    %cst_197 = arith.constant dense<0.000000e+00> : vector<2x128xf32>
    %797 = vector.multi_reduction <add>, %796, %cst_197 [1] : vector<2x8x128xf32> to vector<2x128xf32>
    %cst_198 = arith.constant 8.000000e+00 : f32
    %798 = vector.broadcast %cst_198 : f32 to vector<2x128xf32>
    %799 = arith.divf %797, %798 : vector<2x128xf32>
    %800 = arith.truncf %799 : vector<2x128xf32> to vector<2x128xbf16>
    %c0_199 = arith.constant 0 : index
    %c0_200 = arith.constant 0 : index
    %801 = vector.load %arg14[%c0_199, %c0_200] : memref<128x512xbf16, #tpu.memory_space<vmem>>, vector<128x512xbf16>
    %cst_201 = arith.constant dense<0.000000e+00> : vector<2x512xf32>
    %802 = tpu.matmul %800, %801, %cst_201 {dimension_numbers = #tpu.dot_dimension_numbers<[1], [0], [0], [1], [0, 0, 1, 1], [], []>} : vector<2x128xbf16>, vector<128x512xbf16>, vector<2x512xf32> -> vector<2x512xf32>
    %c0_202 = arith.constant 0 : index
    %c0_203 = arith.constant 0 : index
    %803 = vector.load %arg15[%c0_202, %c0_203] : memref<1x512xf32, #tpu.memory_space<vmem>>, vector<1x512xf32>
    %804 = vector.broadcast %803 : vector<1x512xf32> to vector<2x512xf32>
    %805 = arith.addf %802, %804 : vector<2x512xf32>
    %cst_204 = arith.constant 0.000000e+00 : f32
    %806 = vector.broadcast %cst_204 : f32 to vector<2x512xf32>
    %807 = arith.maximumf %805, %806 : vector<2x512xf32>
    %808 = arith.truncf %807 : vector<2x512xf32> to vector<2x512xbf16>
    %c0_205 = arith.constant 0 : index
    %c0_206 = arith.constant 0 : index
    %809 = vector.load %arg16[%c0_205, %c0_206] : memref<512x2xbf16, #tpu.memory_space<vmem>>, vector<512x2xbf16>
    %cst_207 = arith.constant dense<0.000000e+00> : vector<2x2xf32>
    %810 = tpu.matmul %808, %809, %cst_207 {dimension_numbers = #tpu.dot_dimension_numbers<[1], [0], [0], [1], [0, 0, 1, 1], [], []>} : vector<2x512xbf16>, vector<512x2xbf16>, vector<2x2xf32> -> vector<2x2xf32>
    %c0_208 = arith.constant 0 : index
    %c0_209 = arith.constant 0 : index
    %811 = vector.load %arg17[%c0_208, %c0_209] : memref<1x2xf32, #tpu.memory_space<vmem>>, vector<1x2xf32>
    %812 = vector.broadcast %811 : vector<1x2xf32> to vector<2x2xf32>
    %813 = arith.addf %810, %812 : vector<2x2xf32>
    %814 = vector.shape_cast %813 : vector<2x2xf32> to vector<2x1x2xf32>
    %c0_210 = arith.constant 0 : index
    %c0_211 = arith.constant 0 : index
    %c0_212 = arith.constant 0 : index
    %815 = vector.load %arg18[%c0_210, %c0_211, %c0_212] : memref<2x1x2xf32, #tpu.memory_space<vmem>>, vector<2x1x2xf32>
    tpu.vector_store %arg18[%c0_210, %c0_211, %c0_212], %814 {strides = array<i32>} : memref<2x1x2xf32, #tpu.memory_space<vmem>>, vector<2x1x2xf32>,
    return
  }
  func.func @transform_0(%arg0: i32) -> (i32, i32, i32) {
    %c0_i32 = arith.constant 0 : i32
    %c0_i32_0 = arith.constant 0 : i32
    %c0_i32_1 = arith.constant 0 : i32
    return %arg0, %c0_i32, %c0_i32_0 : i32, i32, i32
  }
  func.func @transform_1(%arg0: i32) -> (i32, i32) {
    %c0_i32 = arith.constant 0 : i32
    %c0_i32_0 = arith.constant 0 : i32
    %c0_i32_1 = arith.constant 0 : i32
    return %c0_i32, %c0_i32_0 : i32, i32
  }
  func.func @transform_2(%arg0: i32) -> (i32, i32) {
    %c0_i32 = arith.constant 0 : i32
    %c0_i32_0 = arith.constant 0 : i32
    %c0_i32_1 = arith.constant 0 : i32
    return %c0_i32, %c0_i32_0 : i32, i32
  }
  func.func @transform_3(%arg0: i32) -> (i32, i32) {
    %c0_i32 = arith.constant 0 : i32
    %c0_i32_0 = arith.constant 0 : i32
    %c0_i32_1 = arith.constant 0 : i32
    return %c0_i32, %c0_i32_0 : i32, i32
  }
  func.func @transform_4(%arg0: i32) -> (i32, i32) {
    %c0_i32 = arith.constant 0 : i32
    %c0_i32_0 = arith.constant 0 : i32
    %c0_i32_1 = arith.constant 0 : i32
    return %c0_i32, %c0_i32_0 : i32, i32
  }
  func.func @transform_5(%arg0: i32) -> (i32, i32) {
    %c0_i32 = arith.constant 0 : i32
    %c0_i32_0 = arith.constant 0 : i32
    %c0_i32_1 = arith.constant 0 : i32
    return %c0_i32, %c0_i32_0 : i32, i32
  }
  func.func @transform_6(%arg0: i32) -> (i32, i32) {
    %c0_i32 = arith.constant 0 : i32
    %c0_i32_0 = arith.constant 0 : i32
    %c0_i32_1 = arith.constant 0 : i32
    return %c0_i32, %c0_i32_0 : i32, i32
  }
  func.func @transform_7(%arg0: i32) -> (i32, i32) {
    %c0_i32 = arith.constant 0 : i32
    %c0_i32_0 = arith.constant 0 : i32
    %c0_i32_1 = arith.constant 0 : i32
    return %c0_i32, %c0_i32_0 : i32, i32
  }
  func.func @transform_8(%arg0: i32) -> (i32, i32) {
    %c0_i32 = arith.constant 0 : i32
    %c0_i32_0 = arith.constant 0 : i32
    %c0_i32_1 = arith.constant 0 : i32
    return %c0_i32, %c0_i32_0 : i32, i32
  }
  func.func @transform_9(%arg0: i32) -> (i32, i32) {
    %c0_i32 = arith.constant 0 : i32
    %c0_i32_0 = arith.constant 0 : i32
    %c0_i32_1 = arith.constant 0 : i32
    return %c0_i32, %c0_i32_0 : i32, i32
  }
  func.func @transform_10(%arg0: i32) -> (i32, i32) {
    %c0_i32 = arith.constant 0 : i32
    %c0_i32_0 = arith.constant 0 : i32
    %c0_i32_1 = arith.constant 0 : i32
    return %c0_i32, %c0_i32_0 : i32, i32
  }
  func.func @transform_11(%arg0: i32) -> (i32, i32) {
    %c0_i32 = arith.constant 0 : i32
    %c0_i32_0 = arith.constant 0 : i32
    %c0_i32_1 = arith.constant 0 : i32
    return %c0_i32, %c0_i32_0 : i32, i32
  }
  func.func @transform_12(%arg0: i32) -> (i32, i32) {
    %c0_i32 = arith.constant 0 : i32
    %c0_i32_0 = arith.constant 0 : i32
    %c0_i32_1 = arith.constant 0 : i32
    return %c0_i32, %c0_i32_0 : i32, i32
  }
  func.func @transform_13(%arg0: i32) -> (i32, i32) {
    %c0_i32 = arith.constant 0 : i32
    %c0_i32_0 = arith.constant 0 : i32
    %c0_i32_1 = arith.constant 0 : i32
    return %c0_i32, %c0_i32_0 : i32, i32
  }
  func.func @transform_14(%arg0: i32) -> (i32, i32) {
    %c0_i32 = arith.constant 0 : i32
    %c0_i32_0 = arith.constant 0 : i32
    %c0_i32_1 = arith.constant 0 : i32
    return %c0_i32, %c0_i32_0 : i32, i32
  }
  func.func @transform_15(%arg0: i32) -> (i32, i32) {
    %c0_i32 = arith.constant 0 : i32
    %c0_i32_0 = arith.constant 0 : i32
    %c0_i32_1 = arith.constant 0 : i32
    return %c0_i32, %c0_i32_0 : i32, i32
  }
  func.func @transform_16(%arg0: i32) -> (i32, i32) {
    %c0_i32 = arith.constant 0 : i32
    %c0_i32_0 = arith.constant 0 : i32
    %c0_i32_1 = arith.constant 0 : i32
    return %c0_i32, %c0_i32_0 : i32, i32
  }
  func.func @transform_17(%arg0: i32) -> (i32, i32, i32) {
    %c0_i32 = arith.constant 0 : i32
    %c0_i32_0 = arith.constant 0 : i32
    %c0_i32_1 = arith.constant 0 : i32
    return %arg0, %c0_i32, %c0_i32_0 : i32, i32, i32
  }
}

</mosaic_0001>

<bundles_post_ra>
// kernel: tpu_custom_call.1
= control target key start
LH: loop header
LB: loop body
LE: loop exit
PB: predicated region body
PF: predicated region fallthrough
CT: control target
= control target key end

     0   :  { %s15781_s0 = inlined_call_operand.hbm [shape: f32[2,8,768], index: 0, kind: input, shape index: {}]   ;;  %s15782_s1 = inlined_call_operand.hbm [shape: bf16[768,256], index: 1, kind: input, shape index: {}]   ;;  %s15783_s2 = inlined_call_operand.vmem [shape: f32[1,256], index: 2, kind: input, shape index: {}]   ;;  %s15784_s3 = inlined_call_operand.hbm [shape: bf16[256,512], index: 3, kind: input, shape index: {}]   ;;  %s15785_s4 = inlined_call_operand.vmem [shape: bf16[128,512], index: 4, kind: input, shape index: {}]   ;;  %s15786_s5 = inlined_call_operand.vmem [shape: f32[1,512], index: 5, kind: input, shape index: {}]   ;;  %s15787_s6 = inlined_call_operand.hbm [shape: bf16[128,512], index: 6, kind: input, shape index: {}]   ;;  %s15788_s7 = inlined_call_operand.hbm [shape: bf16[128,512], index: 7, kind: input, shape index: {}]   ;;  %s15789_s8 = inlined_call_operand.vmem [shape: f32[1,512], index: 8, kind: input, shape index: {}]   ;;  %s15790_s9 = inlined_call_operand.hbm [shape: bf16[128,384], index: 9, kind: input, shape index: {}]   ;;  %s15791_s10 = inlined_call_operand.vmem [shape: f32[1,384], index: 10, kind: input, shape index: {}]   ;;  %s15792_s11 = inlined_call_operand.hbm [shape: bf16[128,128], index: 11, kind: input, shape index: {}]   ;;  %s15793_s12 = inlined_call_operand.vmem [shape: f32[1,128], index: 12, kind: input, shape index: {}]   ;;  %s15794_s13 = inlined_call_operand.hbm [shape: bf16[128,512], index: 13, kind: input, shape index: {}]   ;;  %s15795_s14 = inlined_call_operand.vmem [shape: f32[1,512], index: 14, kind: input, shape index: {}]   ;;  %s15796_s15 = inlined_call_operand.vmem [shape: bf16[512,2], index: 15, kind: input, shape index: {}]   ;;  %s15797_s16 = inlined_call_operand.vmem [shape: f32[1,2], index: 16, kind: input, shape index: {}]   ;;  %s15798_s17 = inlined_call_operand.hbm [shape: f32[2,1,2], index: 17, kind: output, shape index: {}]  }
   0x1   :  { %15912 = sst [smem:[#allocation77_spill]] %s15781_s0 }
   0x2   :  { %15913 = sst [smem:[#allocation78_spill]] %s15782_s1 }
   0x3   :  { %15914 = sst [smem:[#allocation79_spill]] %s15797_s16 }
   0x4   :  { %15915 = sst [smem:[#allocation80_spill]] %s15798_s17 }
   0x5   :  { %22 = vsyncpa [#allocation5], 0 }
   0x6   :  { %23 = vsyncpa [#allocation8], 0 }
   0x7   :  { %24 = vsyncpa [#allocation11], 0 }
   0x8   :  { %25 = vsyncpa [#allocation14], 0 }
   0x9   :  { %26 = vsyncpa [#allocation17], 0 }
   0xa   :  { %27 = vsyncpa [#allocation6], 0  ;;  %s12904_s24 = smov [#allocation7]   ;;  %s15916_s28 = sld [smem:[#allocation78_spill]] }
   0xb   :  { %s45_s25 = sshll.u32 %s12904_s24, 4  ;;  %s46_s25 = int_to_ptr.vmem [resolvable:$true] %s45_s25 }
  0x10   :  { %s12694_s29 = scalar_lea.hbm %s15916_s28, 12288 }
  0x11   :  { %p12695_p0 = scmp.ne.s32.totalorder %s15916_s28, %s12694_s29  ;;  %p12698_p1 = scmp.lt.u32.totalorder %s12694_s29, %s15916_s28 }
  0x13   :  { %p12700_p2 = pnand %p12698_p1, %p12695_p0 }
  0x15   :  { %12703 = shalt.err (!%p12700_p2)
}
  0x16   :  { %s12704_s1 = scalar_lea.vmem %s46_s25, 12288  ;;  %p12709_p4 = scmp.lt.s32.totalorder %s46_s25, %s46_s25 }
  0x17   :  { %p12705_p3 = scmp.ne.s32.totalorder %s46_s25, %s12704_s1  ;;  %p12710_p5 = scmp.lt.s32.totalorder %s12704_s1, %s12704_s1 }
  0x19   :  { %p12711_p6 = por %p12710_p5, %p12709_p4 }
  0x1b   :  { %p12712_p7 = pnand %p12711_p6, %p12705_p3 }
  0x1d   :  { %12715 = shalt.err (!%p12712_p7)
}
  0x1e   :  { %s12905_s20 = smov 128   ;;  %s12906_s21 = smov 8  }
  0x1f   :  { %51 = dma.hbm_to_vmem [thread:$0]  %s15916_s28, 12288, %s46_s25, [#allocation8], %s12905_s20, %s12905_s20, %s12906_s21  }
  0x20   :  { %s12907_s24 = smov [#allocation10]   ;;  %s12908_s27 = smov [#allocation13]  }
  0x21   :  { %s75_s26 = sshll.u32 %s12907_s24, 4  ;;  %s101_s29 = sshll.u32 %s12908_s27, 4  ;;  %s76_s26 = int_to_ptr.vmem [resolvable:$true] %s75_s26  ;;  %s102_s29 = int_to_ptr.vmem [resolvable:$true] %s101_s29 }
  0x22   :  { %s12716_s18 = scalar_lea.hbm %s15787_s6, 4096 }
  0x23   :  { %p12717_p8 = scmp.ne.s32.totalorder %s15787_s6, %s12716_s18  ;;  %p12720_p9 = scmp.lt.u32.totalorder %s12716_s18, %s15787_s6 }
  0x25   :  { %p12722_p10 = pnand %p12720_p9, %p12717_p8 }
  0x27   :  { %12725 = shalt.err (!%p12722_p10)
}
  0x28   :  { %s12726_s25 = scalar_lea.vmem %s76_s26, 4096  ;;  %p12731_p12 = scmp.lt.s32.totalorder %s76_s26, %s76_s26 }
  0x29   :  { %p12727_p11 = scmp.ne.s32.totalorder %s76_s26, %s12726_s25  ;;  %p12732_p13 = scmp.lt.s32.totalorder %s12726_s25, %s12726_s25 }
  0x2b   :  { %p12733_p0 = por %p12732_p13, %p12731_p12 }
  0x2d   :  { %p12734_p1 = pnand %p12733_p0, %p12727_p11 }
  0x2f   :  { %12737 = shalt.err (!%p12734_p1)
}
  0x30   :  { %s12909_s28 = smov 256   ;;  %s12910_s20 = smov 16  }
  0x31   :  { %81 = dma.hbm_to_vmem [thread:$0]  %s15787_s6, 4096, %s76_s26, [#allocation11], %s12909_s28, %s12909_s28, %s12910_s20  }
  0x32   :  { %s12738_s23 = scalar_lea.hbm %s15790_s9, 3072 }
  0x33   :  { %p12739_p2 = scmp.ne.s32.totalorder %s15790_s9, %s12738_s23  ;;  %p12742_p3 = scmp.lt.u32.totalorder %s12738_s23, %s15790_s9 }
  0x35   :  { %p12744_p4 = pnand %p12742_p3, %p12739_p2 }
  0x37   :  { %12747 = shalt.err (!%p12744_p4)
}
  0x38   :  { %s12748_s18 = scalar_lea.vmem %s102_s29, 3072  ;;  %p12753_p6 = scmp.lt.s32.totalorder %s102_s29, %s102_s29 }
  0x39   :  { %p12749_p5 = scmp.ne.s32.totalorder %s102_s29, %s12748_s18  ;;  %p12754_p7 = scmp.lt.s32.totalorder %s12748_s18, %s12748_s18 }
  0x3b   :  { %p12755_p8 = por %p12754_p7, %p12753_p6 }
  0x3d   :  { %p12756_p9 = pnand %p12755_p8, %p12749_p5 }
  0x3f   :  { %12759 = shalt.err (!%p12756_p9)
}
  0x40   :  { %s12911_s6 = smov 192   ;;  %s12912_s26 = smov 12  }
  0x41   :  { %107 = dma.hbm_to_vmem [thread:$0]  %s15790_s9, 3072, %s102_s29, [#allocation14], %s12911_s6, %s12911_s6, %s12912_s26  }
  0x42   :  { %s12913_s25 = smov [#allocation4]   ;;  %s15917_s17 = sld [smem:[#allocation77_spill]] }
  0x43   :  { %s33_s21 = sshll.u32 %s12913_s25, 4  ;;  %s34_s21 = int_to_ptr.vmem [resolvable:$true] %s33_s21 }
  0x48   :  { %s12760_s23 = scalar_lea.hbm %s15917_s17, 1536 }
  0x49   :  { %p12761_p10 = scmp.ne.s32.totalorder %s15917_s17, %s12760_s23  ;;  %p12764_p11 = scmp.lt.u32.totalorder %s12760_s23, %s15917_s17 }
  0x4b   :  { %p12766_p12 = pnand %p12764_p11, %p12761_p10 }
  0x4d   :  { %12769 = shalt.err (!%p12766_p12)
}
  0x4e   :  { %s12770_s18 = scalar_lea.vmem %s34_s21, 1536  ;;  %p12775_p0 = scmp.lt.s32.totalorder %s34_s21, %s34_s21 }
  0x4f   :  { %p12771_p13 = scmp.ne.s32.totalorder %s34_s21, %s12770_s18  ;;  %p12776_p1 = scmp.lt.s32.totalorder %s12770_s18, %s12770_s18 }
  0x51   :  { %p12777_p2 = por %p12776_p1, %p12775_p0 }
  0x53   :  { %p12778_p3 = pnand %p12777_p2, %p12771_p13 }
  0x55   :  { %12781 = shalt.err (!%p12778_p3)
}
  0x56   :  { %s12914_s9 = smov 768   ;;  %s12915_s29 = smov 48  }
  0x57   :  { %39 = dma.hbm_to_vmem [thread:$0]  %s15917_s17, 1536, %s34_s21, [#allocation5], %s12914_s9, %s12914_s9, %s12915_s29  }
  0x58   :  { %s12916_s19 = smov [#allocation9]   ;;  %s12917_s25 = smov [#allocation12]  }
  0x59   :  { %s59_s1 = sshll.u32 %s12916_s19, 4  ;;  %s87_s22 = sshll.u32 %s12917_s25, 4  ;;  %s60_s1 = int_to_ptr.vmem [resolvable:$true] %s59_s1  ;;  %s13074_s22 = int_to_ptr.vmem [resolvable:$true] %s87_s22 }
  0x5a   :  { %s12782_s24 = scalar_lea.hbm %s15784_s3, 8192 }
  0x5b   :  { %p12783_p4 = scmp.ne.s32.totalorder %s15784_s3, %s12782_s24  ;;  %p12786_p5 = scmp.lt.u32.totalorder %s12782_s24, %s15784_s3 }
  0x5d   :  { %p12788_p6 = pnand %p12786_p5, %p12783_p4 }
  0x5f   :  { %12791 = shalt.err (!%p12788_p6)
}
  0x60   :  { %s12792_s21 = scalar_lea.vmem %s60_s1, 8192  ;;  %p12797_p8 = scmp.lt.s32.totalorder %s60_s1, %s60_s1 }
  0x61   :  { %p12793_p7 = scmp.ne.s32.totalorder %s60_s1, %s12792_s21  ;;  %p12798_p9 = scmp.lt.s32.totalorder %s12792_s21, %s12792_s21 }
  0x63   :  { %p12799_p10 = por %p12798_p9, %p12797_p8 }
  0x65   :  { %p12800_p11 = pnand %p12799_p10, %p12793_p7 }
  0x67   :  { %12803 = shalt.err (!%p12800_p11)
}
  0x68   :  { %65 = dma.hbm_to_vmem [thread:$0]  %s15784_s3, 8192, %s60_s1, [#allocation8], %s12909_s28, %s12909_s28, %s12910_s20  }
  0x69   :  { %s12804_s19 = scalar_lea.hbm %s15788_s7, 4096 }
  0x6a   :  { %p12805_p12 = scmp.ne.s32.totalorder %s15788_s7, %s12804_s19  ;;  %p12808_p13 = scmp.lt.u32.totalorder %s12804_s19, %s15788_s7 }
  0x6c   :  { %p12810_p0 = pnand %p12808_p13, %p12805_p12 }
  0x6e   :  { %12813 = shalt.err (!%p12810_p0)
}
  0x6f   :  { %s12814_s27 = scalar_lea.vmem %s13074_s22, 4096  ;;  %p12819_p2 = scmp.lt.s32.totalorder %s13074_s22, %s13074_s22 }
  0x70   :  { %p12815_p1 = scmp.ne.s32.totalorder %s13074_s22, %s12814_s27  ;;  %p12820_p3 = scmp.lt.s32.totalorder %s12814_s27, %s12814_s27 }
  0x72   :  { %p12821_p4 = por %p12820_p3, %p12819_p2 }
  0x74   :  { %p12822_p5 = pnand %p12821_p4, %p12815_p1 }
  0x76   :  { %12825 = shalt.err (!%p12822_p5)
}
  0x77   :  { %93 = dma.hbm_to_vmem [thread:$0]  %s15788_s7, 4096, %s13074_s22, [#allocation11], %s12909_s28, %s12909_s28, %s12910_s20  }
  0x78   :  { %s12918_s0 = smov [#allocation15]   ;;  %s12826_s17 = scalar_lea.hbm %s15792_s11, 1024 }
  0x79   :  { %s115_s30 = sshll.u32 %s12918_s0, 4  ;;  %p12827_p6 = scmp.ne.s32.totalorder %s15792_s11, %s12826_s17  ;;  %s116_s30 = int_to_ptr.vmem [resolvable:$true] %s115_s30 }
  0x7a   :  { %p12830_p7 = scmp.lt.u32.totalorder %s12826_s17, %s15792_s11 }
  0x7c   :  { %p12832_p8 = pnand %p12830_p7, %p12827_p6 }
  0x7e   :  { %12835 = shalt.err (!%p12832_p8)
}
  0x7f   :  { %s12836_s25 = scalar_lea.vmem %s116_s30, 1024  ;;  %p12841_p10 = scmp.lt.s32.totalorder %s116_s30, %s116_s30 }
  0x80   :  { %p12837_p9 = scmp.ne.s32.totalorder %s116_s30, %s12836_s25  ;;  %p12842_p11 = scmp.lt.s32.totalorder %s12836_s25, %s12836_s25 }
  0x82   :  { %p12843_p12 = por %p12842_p11, %p12841_p10 }
  0x84   :  { %p12844_p13 = pnand %p12843_p12, %p12837_p9 }
  0x86   :  { %12847 = shalt.err (!%p12844_p13)
}
  0x87   :  { %s12919_s7 = smov 64   ;;  %s12920_s22 = smov 4  }
  0x88   :  { %121 = dma.hbm_to_vmem [thread:$0]  %s15792_s11, 1024, %s116_s30, [#allocation14], %s12919_s7, %s12919_s7, %s12920_s22  }
  0x89   :  { %s12921_s24 = smov [#allocation16]   ;;  %s12848_s0 = scalar_lea.hbm %s15794_s13, 4096 }
  0x8a   :  { %s129_s27 = sshll.u32 %s12921_s24, 4  ;;  %p12849_p0 = scmp.ne.s32.totalorder %s15794_s13, %s12848_s0  ;;  %s130_s27 = int_to_ptr.vmem [resolvable:$true] %s129_s27 }
  0x8b   :  { %p12852_p1 = scmp.lt.u32.totalorder %s12848_s0, %s15794_s13 }
  0x8d   :  { %p12854_p2 = pnand %p12852_p1, %p12849_p0 }
  0x8f   :  { %12857 = shalt.err (!%p12854_p2)
}
  0x90   :  { %s12858_s6 = scalar_lea.vmem %s130_s27, 4096  ;;  %p12863_p4 = scmp.lt.s32.totalorder %s130_s27, %s130_s27 }
  0x91   :  { %p12859_p3 = scmp.ne.s32.totalorder %s130_s27, %s12858_s6  ;;  %p12864_p5 = scmp.lt.s32.totalorder %s12858_s6, %s12858_s6 }
  0x93   :  { %p12865_p6 = por %p12864_p5, %p12863_p4 }
  0x95   :  { %p12866_p7 = pnand %p12865_p6, %p12859_p3 }
  0x97   :  { %12869 = shalt.err (!%p12866_p7)
}
  0x98   :  { %135 = dma.hbm_to_vmem [thread:$0]  %s15794_s13, 4096, %s130_s27, [#allocation17], %s12909_s28, %s12909_s28, %s12910_s20  }
  0x99   :  { %12892 = dma.done.wait [#allocation5], 1536  }
  0x9a   :  { %12893 = vsyncadd [#allocation5], 4294965760 }
  0x9b   :  { %12894 = dma.done.wait [#allocation8], 20480  }
  0x9c   :  { %12895 = vsyncadd [#allocation8], 4294946816 }
  0x9d   :  { %12896 = dma.done.wait [#allocation11], 8192  }
  0x9e   :  { %12897 = vsyncadd [#allocation11], 4294959104 }
  0x9f   :  { %12898 = dma.done.wait [#allocation14], 4096  }
  0xa0   :  { %12899 = vsyncadd [#allocation14], 4294963200 }
  0xa1   :  { %12900 = dma.done.wait [#allocation17], 4096  }
  0xa2   :  { %12901 = vsyncadd [#allocation17], 4294963200  ;;  %v11753_v0 = vld [vmem:[#allocation7 + $0x4] ss:$8 sps:$4 sm:$0xff]   ;;  %v11755_v1 = vld [vmem:[#allocation7] ss:$8 sps:$4 sm:$0xff]  }
  0xa3   :  { %830 = vmatprep.subr.bf16.mxu0 %v11753_v0  ;;  %v11756_v2 = vld [vmem:[#allocation7 + $0x14] ss:$8 sps:$4 sm:$0xff]   ;;  %v11758_v3 = vld [vmem:[#allocation7 + $0x10] ss:$8 sps:$4 sm:$0xff]   ;;  %v11759_v4 = vld [vmem:[#allocation7 + $0x24] ss:$8 sps:$4 sm:$0xff]  }
  0xa4   :  { %831 = vmatpush1.bf16.msra.mxu0 %v11755_v1  ;;  %v11761_v5 = vld [vmem:[#allocation7 + $0x20] ss:$8 sps:$4 sm:$0xff]   ;;  %v11762_v6 = vld [vmem:[#allocation7 + $0x34] ss:$8 sps:$4 sm:$0xff]   ;;  %v11764_v7 = vld [vmem:[#allocation7 + $0x30] ss:$8 sps:$4 sm:$0xff]  }
  0xa5   :  { %832 = vmatprep.subr.bf16.mxu0 %v11756_v2  ;;  %v11765_v8 = vld [vmem:[#allocation7 + $0x44] ss:$8 sps:$4 sm:$0xff]   ;;  %v11767_v9 = vld [vmem:[#allocation7 + $0x40] ss:$8 sps:$4 sm:$0xff]   ;;  %v11768_v10 = vld [vmem:[#allocation7 + $0x54] ss:$8 sps:$4 sm:$0xff]  }
  0xa6   :  { %v11770_v11 = vld [vmem:[#allocation7 + $0x50] ss:$8 sps:$4 sm:$0xff]   ;;  %v11771_v12 = vld [vmem:[#allocation7 + $0x64] ss:$8 sps:$4 sm:$0xff]   ;;  %v11773_v16 = vld [vmem:[#allocation7 + $0x60] ss:$8 sps:$4 sm:$0xff]  }
  0xa7   :  { %v225_v13 = vld [vmem:[#allocation4 + $0x8] sm:$0xff]  ;;  %v231_v14 = vld [vmem:[#allocation4 + $0x38] sm:$0xff]  ;;  %v224_v36 = vld [vmem:[#allocation4] sm:$0xff]  ;;  %vm1470_vm2 = vcmask 1041409   ;;  %vm1829_vm5 = vcmask 516096   ;;  %vm1832_vm6 = vcmask 1040896  }
  0xa8   :  { %833 = vmatpush1.bf16.msra.mxu0 %v11758_v3  ;;  %v237_v15 = vpack.c.bf16 %v231_v14, %v225_v13  ;;  %v11774_v17 = vld [vmem:[#allocation7 + $0x74] ss:$8 sps:$4 sm:$0xff]   ;;  %v11776_v18 = vld [vmem:[#allocation7 + $0x70] ss:$8 sps:$4 sm:$0xff]   ;;  %v11777_v19 = vld [vmem:[#allocation7 + $0x84] ss:$8 sps:$4 sm:$0xff]  }
  0xa9   :  { %834 = vmatprep.subr.bf16.mxu0 %v11759_v4  ;;  %v11779_v20 = vld [vmem:[#allocation7 + $0x80] ss:$8 sps:$4 sm:$0xff]   ;;  %v11780_v21 = vld [vmem:[#allocation7 + $0x94] ss:$8 sps:$4 sm:$0xff]   ;;  %v11782_v22 = vld [vmem:[#allocation7 + $0x90] ss:$8 sps:$4 sm:$0xff]  }
  0xaa   :  { %862 = vmatprep.mubr.bf16.mxu0 %v237_v15  ;;  %v11783_v23 = vld [vmem:[#allocation7 + $0xa4] ss:$8 sps:$4 sm:$0xff]   ;;  %v11785_v24 = vld [vmem:[#allocation7 + $0xa0] ss:$8 sps:$4 sm:$0xff]   ;;  %v11786_v25 = vld [vmem:[#allocation7 + $0xb4] ss:$8 sps:$4 sm:$0xff]  }
  0xab   :  { %v11788_v26 = vld [vmem:[#allocation7 + $0xb0] ss:$8 sps:$4 sm:$0xff]   ;;  %v11789_v27 = vld [vmem:[#allocation7 + $0xc4] ss:$8 sps:$4 sm:$0xff]   ;;  %v11791_v28 = vld [vmem:[#allocation7 + $0xc0] ss:$8 sps:$4 sm:$0xff]  }
  0xac   :  { %835 = vmatpush1.bf16.msra.mxu0 %v11761_v5  ;;  %v11792_v29 = vld [vmem:[#allocation7 + $0xd4] ss:$8 sps:$4 sm:$0xff]   ;;  %v11794_v30 = vld [vmem:[#allocation7 + $0xd0] ss:$8 sps:$4 sm:$0xff]   ;;  %v11795_v31 = vld [vmem:[#allocation7 + $0xe4] ss:$8 sps:$4 sm:$0xff]  }
  0xad   :  { %836 = vmatprep.subr.bf16.mxu0 %v11762_v6  ;;  %v11797_v32 = vld [vmem:[#allocation7 + $0xe0] ss:$8 sps:$4 sm:$0xff]   ;;  %v11798_v33 = vld [vmem:[#allocation7 + $0xf4] ss:$8 sps:$4 sm:$0xff]   ;;  %v11800_v34 = vld [vmem:[#allocation7 + $0xf0] ss:$8 sps:$4 sm:$0xff]  }
  0xae   :  { %v11803_v35 = vld [vmem:[#allocation7 + $0x104] ss:$8 sps:$4 sm:$0xff]   ;;  %v230_v37 = vld [vmem:[#allocation4 + $0x30] sm:$0xff]  ;;  %v227_v38 = vld [vmem:[#allocation4 + $0x18] sm:$0xff]  ;;  %vm12925_vm7 = vmmov 0   ;;  %vm7825_vm8 = vcmask 130048  }
  0xaf   :  { %v233_v39 = vld [vmem:[#allocation4 + $0x48] sm:$0xff]  ;;  %v236_v40 = vpack.c.bf16 %v230_v37, %v224_v36  ;;  %v11806_v43 = vld [vmem:[#allocation7 + $0x114] ss:$8 sps:$4 sm:$0xff]   ;;  %v11804_v44 = vld [vmem:[#allocation7 + $0x110] ss:$8 sps:$4 sm:$0xff]   ;;  %s12926_s1 = smov 96  }
  0xb0   :  { %837 = vmatpush1.bf16.msra.mxu0 %v11764_v7  ;;  %v11801_v41 = vld [vmem:[#allocation7 + $0x100] ss:$8 sps:$4 sm:$0xff]   ;;  %v239_v42 = vpack.c.bf16 %v233_v39, %v227_v38  ;;  %v11809_v45 = vld [vmem:[#allocation7 + $0x124] ss:$8 sps:$4 sm:$0xff]   ;;  %v11812_v50 = vld [vmem:[#allocation7 + $0x134] ss:$8 sps:$4 sm:$0xff]  }
  0xb1   :  { %838 = vmatprep.subr.bf16.mxu0 %v11765_v8  ;;  %v11897_v46 = vld [vmem:[#allocation9 + $0x4] ss:$16 sps:$4 sm:$0xff]   ;;  %v11899_v47 = vld [vmem:[#allocation9] ss:$16 sps:$4 sm:$0xff]   ;;  %s12927_s0 = smov 112   ;;  %s12929_s18 = smov 32  }
  0xb2   :  { %v11807_v48 = vld [vmem:[#allocation7 + $0x120] ss:$8 sps:$4 sm:$0xff]   ;;  %1367 = vmatprep.subr.bf16.mxu1 %v11897_v46  ;;  %v11900_v49 = vld [vmem:[#allocation9 + $0x24] ss:$16 sps:$4 sm:$0xff]   ;;  %v11810_v53 = vld [vmem:[#allocation7 + $0x130] ss:$8 sps:$4 sm:$0xff]  }
  0xb3   :  { %1368 = vmatpush1.bf16.msra.mxu1 %v11899_v47  ;;  %v11902_v51 = vld [vmem:[#allocation9 + $0x20] ss:$16 sps:$4 sm:$0xff]   ;;  %v11903_v52 = vld [vmem:[#allocation9 + $0x44] ss:$16 sps:$4 sm:$0xff]   ;;  %vm8790_vm9 = vcmask 1043456   ;;  %vm8578_vm10 = vcmask 64512  }
  0xb4   :  { %839 = vmatpush1.bf16.msra.mxu0 %v11767_v9  ;;  %1369 = vmatprep.subr.bf16.mxu1 %v11900_v49  ;;  %v11815_v54 = vld [vmem:[#allocation7 + $0x144] ss:$8 sps:$4 sm:$0xff]   ;;  %v11905_v55 = vld [vmem:[#allocation9 + $0x40] ss:$16 sps:$4 sm:$0xff]   ;;  %v11818_v58 = vld [vmem:[#allocation7 + $0x154] ss:$8 sps:$4 sm:$0xff]  }
  0xb5   :  { %840 = vmatprep.subr.bf16.mxu0 %v11768_v10  ;;  %v11906_v56 = vld [vmem:[#allocation9 + $0x64] ss:$16 sps:$4 sm:$0xff]   ;;  %v11813_v57 = vld [vmem:[#allocation7 + $0x140] ss:$8 sps:$4 sm:$0xff]   ;;  %v11816_v61 = vld [vmem:[#allocation7 + $0x150] ss:$8 sps:$4 sm:$0xff]  }
  0xb6   :  { %v11908_v59 = vld [vmem:[#allocation9 + $0x60] ss:$16 sps:$4 sm:$0xff]   ;;  %v11909_v60 = vld [vmem:[#allocation9 + $0x84] ss:$16 sps:$4 sm:$0xff]   ;;  %vm9553_vm11 = vcmask 261120   ;;  %vm9555_vm12 = vcmask 392192  }
  0xb7   :  { %1370 = vmatpush1.bf16.msra.mxu1 %v11902_v51  ;;  %v11821_v62 = vld [vmem:[#allocation7 + $0x164] ss:$8 sps:$4 sm:$0xff]   ;;  %v11911_v63 = vld [vmem:[#allocation9 + $0x80] ss:$16 sps:$4 sm:$0xff]   ;;  %v11824_v2 = vld [vmem:[#allocation7 + $0x174] ss:$8 sps:$4 sm:$0xff]  }
  0xb8   :  { %841 = vmatpush1.bf16.msra.mxu0 %v11770_v11  ;;  %1371 = vmatprep.subr.bf16.mxu1 %v11903_v52  ;;  %v11912_v0 = vld [vmem:[#allocation9 + $0xa4] ss:$16 sps:$4 sm:$0xff]   ;;  %v11819_v1 = vld [vmem:[#allocation7 + $0x160] ss:$8 sps:$4 sm:$0xff]   ;;  %v11822_v5 = vld [vmem:[#allocation7 + $0x170] ss:$8 sps:$4 sm:$0xff]  }
  0xb9   :  { %842 = vmatprep.subr.bf16.mxu0 %v11771_v12  ;;  %v11914_v3 = vld [vmem:[#allocation9 + $0xa0] ss:$16 sps:$4 sm:$0xff]   ;;  %v11915_v4 = vld [vmem:[#allocation9 + $0xc4] ss:$16 sps:$4 sm:$0xff]   ;;  %vm9557_vm13 = vcmask 523264   ;;  %vm9559_vm14 = vcmask 654336  }
  0xba   :  { %v11917_v6 = vld [vmem:[#allocation9 + $0xc0] ss:$16 sps:$4 sm:$0xff]   ;;  %v11827_v7 = vld [vmem:[#allocation7 + $0x184] ss:$8 sps:$4 sm:$0xff]   ;;  %v11830_v11 = vld [vmem:[#allocation7 + $0x194] ss:$8 sps:$4 sm:$0xff]  }
  0xbb   :  { %1372 = vmatpush1.bf16.msra.mxu1 %v11905_v55  ;;  %v11918_v8 = vld [vmem:[#allocation9 + $0xe4] ss:$16 sps:$4 sm:$0xff]   ;;  %v11825_v9 = vld [vmem:[#allocation7 + $0x180] ss:$8 sps:$4 sm:$0xff]   ;;  %v11828_v13 = vld [vmem:[#allocation7 + $0x190] ss:$8 sps:$4 sm:$0xff]  }
  0xbc   :  { %843 = vmatpush1.bf16.msra.mxu0 %v11773_v16  ;;  %1373 = vmatprep.subr.bf16.mxu1 %v11906_v56  ;;  %v11920_v10 = vld [vmem:[#allocation9 + $0xe0] ss:$16 sps:$4 sm:$0xff]   ;;  %v11921_v12 = vld [vmem:[#allocation9 + $0x104] ss:$16 sps:$4 sm:$0xff]   ;;  %vm9561_vm15 = vcmask 785408   ;;  %s16149_s26 = sld [smem:[#allocation79_spill]] }
  0xbd   :  { %844 = vmatprep.subr.bf16.mxu0 %v11774_v17  ;;  %v11923_v14 = vld [vmem:[#allocation9 + $0x100] ss:$16 sps:$4 sm:$0xff]   ;;  %v11833_v15 = vld [vmem:[#allocation7 + $0x1a4] ss:$8 sps:$4 sm:$0xff]   ;;  %v11860_v49 = vld [vmem:[#allocation7 + $0x234] ss:$8 sps:$4 sm:$0xff]  }
  0xbe   :  { %v11924_v16 = vld [vmem:[#allocation9 + $0x124] ss:$16 sps:$4 sm:$0xff]   ;;  %v11831_v17 = vld [vmem:[#allocation7 + $0x1a0] ss:$8 sps:$4 sm:$0xff]   ;;  %v11846_v36 = vld [vmem:[#allocation7 + $0x1f0] ss:$8 sps:$4 sm:$0xff]  }
  0xbf   :  { %1374 = vmatpush1.bf16.msra.mxu1 %v11908_v59  ;;  %v226_v37 = vld [vmem:[#allocation4 + $0x10] sm:$0xff]  ;;  %v232_v38 = vld [vmem:[#allocation4 + $0x40] sm:$0xff]  ;;  %s12930_s19 = smov [#allocation18]  }
  0xc0   :  { %845 = vmatpush1.bf16.msra.mxu0 %v11776_v18  ;;  %1375 = vmatprep.subr.bf16.mxu1 %v11909_v60  ;;  %v11926_v18 = vld [vmem:[#allocation9 + $0x120] ss:$16 sps:$4 sm:$0xff]   ;;  %v11851_v39 = vld [vmem:[#allocation7 + $0x204] ss:$8 sps:$4 sm:$0xff]   ;;  %s10417_s25 = sshll.u32 %s12930_s19, 4  ;;  %s10418_s25 = int_to_ptr.vmem [resolvable:$true] %s10417_s25 }
  0xc1   :  { %846 = vmatprep.subr.bf16.mxu0 %v11777_v19  ;;  %v11836_v19 = vld [vmem:[#allocation7 + $0x1b4] ss:$8 sps:$4 sm:$0xff]   ;;  %v11852_v46 = vld [vmem:[#allocation7 + $0x210] ss:$8 sps:$4 sm:$0xff]   ;;  %v11857_v47 = vld [vmem:[#allocation7 + $0x224] ss:$8 sps:$4 sm:$0xff]   ;;  %p12875_p9 = scmp.lt.s32.totalorder %s10418_s25, %s10418_s25 }
  0xc2   :  { %v11863_v51 = vld [vmem:[#allocation7 + $0x244] ss:$8 sps:$4 sm:$0xff]   ;;  %v11861_v52 = vld [vmem:[#allocation7 + $0x240] ss:$8 sps:$4 sm:$0xff]   ;;  %s12870_s22 = scalar_lea.vmem %s10418_s25, 32 }
  0xc3   :  { %1376 = vmatpush1.bf16.msra.mxu1 %v11911_v63  ;;  %v11869_v55 = vld [vmem:[#allocation7 + $0x264] ss:$8 sps:$4 sm:$0xff]   ;;  %v11867_v56 = vld [vmem:[#allocation7 + $0x260] ss:$8 sps:$4 sm:$0xff]   ;;  %p12871_p8 = scmp.ne.s32.totalorder %s10418_s25, %s12870_s22  ;;  %p12876_p10 = scmp.lt.s32.totalorder %s12870_s22, %s12870_s22 }
  0xc4   :  { %847 = vmatpush1.bf16.msra.mxu0 %v11779_v20  ;;  %1377 = vmatprep.subr.bf16.mxu1 %v11912_v0  ;;  %v11927_v20 = vld [vmem:[#allocation9 + $0x144] ss:$16 sps:$4 sm:$0xff]   ;;  %v11873_v60 = vld [vmem:[#allocation7 + $0x280] ss:$8 sps:$4 sm:$0xff]  }
  0xc5   :  { %848 = vmatprep.subr.bf16.mxu0 %v11780_v21  ;;  %v11834_v21 = vld [vmem:[#allocation7 + $0x1b0] ss:$8 sps:$4 sm:$0xff]   ;;  %v11875_v59 = vld [vmem:[#allocation7 + $0x284] ss:$8 sps:$4 sm:$0xff]   ;;  %v11879_v0 = vld [vmem:[#allocation7 + $0x2a0] ss:$8 sps:$4 sm:$0xff]   ;;  %p12877_p11 = por %p12876_p10, %p12875_p9 }
  0xc6   :  { %v11881_v63 = vld [vmem:[#allocation7 + $0x2a4] ss:$8 sps:$4 sm:$0xff]  }
  0xc7   :  { %1378 = vmatpush1.bf16.msra.mxu1 %v11914_v3  ;;  %v11887_v3 = vld [vmem:[#allocation7 + $0x2c4] ss:$8 sps:$4 sm:$0xff]   ;;  %p12878_p12 = pnand %p12877_p11, %p12871_p8 }
  0xc8   :  { %849 = vmatpush1.bf16.msra.mxu0 %v11782_v22  ;;  %1379 = vmatprep.subr.bf16.mxu1 %v11915_v4  ;;  %v11929_v22 = vld [vmem:[#allocation9 + $0x140] ss:$16 sps:$4 sm:$0xff]  }
  0xc9   :  { %850 = vmatprep.subr.bf16.mxu0 %v11783_v23  ;;  %v11839_v23 = vld [vmem:[#allocation7 + $0x1c4] ss:$8 sps:$4 sm:$0xff]   ;;  %v11885_v4 = vld [vmem:[#allocation7 + $0x2c0] ss:$8 sps:$4 sm:$0xff]  }
  0xcb   :  { %1380 = vmatpush1.bf16.msra.mxu1 %v11917_v6  ;;  %v11888_v6 = vld [vmem:[#allocation7 + $0x2d0] ss:$8 sps:$4 sm:$0xff]  }
  0xcc   :  { %851 = vmatpush1.bf16.msra.mxu0 %v11785_v24  ;;  %1381 = vmatprep.subr.bf16.mxu1 %v11918_v8  ;;  %v11930_v24 = vld [vmem:[#allocation9 + $0x164] ss:$16 sps:$4 sm:$0xff]   ;;  %v11891_v8 = vld [vmem:[#allocation7 + $0x2e0] ss:$8 sps:$4 sm:$0xff]  }
  0xcd   :  { %852 = vmatprep.subr.bf16.mxu0 %v11786_v25  ;;  %v11837_v25 = vld [vmem:[#allocation7 + $0x1c0] ss:$8 sps:$4 sm:$0xff]  }
  0xcf   :  { %1382 = vmatpush1.bf16.msra.mxu1 %v11920_v10  ;;  %v11894_v10 = vld [vmem:[#allocation7 + $0x2f0] ss:$8 sps:$4 sm:$0xff]  }
  0xd0   :  { %853 = vmatpush1.bf16.msra.mxu0 %v11788_v26  ;;  %1383 = vmatprep.subr.bf16.mxu1 %v11921_v12  ;;  %v11932_v26 = vld [vmem:[#allocation9 + $0x160] ss:$16 sps:$4 sm:$0xff]  }
  0xd1   :  { %854 = vmatprep.subr.bf16.mxu0 %v11789_v27  ;;  %v11842_v27 = vld [vmem:[#allocation7 + $0x1d4] ss:$8 sps:$4 sm:$0xff]  }
  0xd2   :  { %v234_v12 = vld [vmem:[#allocation4 + $0x50] sm:$0xff] }
  0xd3   :  { %1384 = vmatpush1.bf16.msra.mxu1 %v11923_v14  ;;  %v11939_v14 = vld [vmem:[#allocation9 + $0x1c4] ss:$16 sps:$4 sm:$0xff]  }
  0xd4   :  { %855 = vmatpush1.bf16.msra.mxu0 %v11791_v28  ;;  %1385 = vmatprep.subr.bf16.mxu1 %v11924_v16  ;;  %v11933_v28 = vld [vmem:[#allocation9 + $0x184] ss:$16 sps:$4 sm:$0xff]  }
  0xd5   :  { %856 = vmatprep.subr.bf16.mxu0 %v11792_v29  ;;  %v11840_v29 = vld [vmem:[#allocation7 + $0x1d0] ss:$8 sps:$4 sm:$0xff]   ;;  %v11942_v16 = vld [vmem:[#allocation9 + $0x1e4] ss:$16 sps:$4 sm:$0xff]  }
  0xd7   :  { %1386 = vmatpush1.bf16.msra.mxu1 %v11926_v18  ;;  %v11947_v18 = vld [vmem:[#allocation9 + $0xc] ss:$16 sps:$4 sm:$0xff]  }
  0xd8   :  { %857 = vmatpush1.bf16.msra.mxu0 %v11794_v30  ;;  %1387 = vmatprep.subr.bf16.mxu1 %v11927_v20  ;;  %v11935_v30 = vld [vmem:[#allocation9 + $0x180] ss:$16 sps:$4 sm:$0xff]  }
  0xd9   :  { %858 = vmatprep.subr.bf16.mxu0 %v11795_v31  ;;  %v11845_v31 = vld [vmem:[#allocation7 + $0x1e4] ss:$8 sps:$4 sm:$0xff]   ;;  %v13148_v20 = vld [vmem:[%s15785_s4] ss:$16 sps:$4 sm:$0xff]  }
  0xdb   :  { %1388 = vmatpush1.bf16.msra.mxu1 %v11929_v22  ;;  %v13160_v22 = vld [vmem:[%s15785_s4 + $0x20] ss:$16 sps:$4 sm:$0xff]  }
  0xdc   :  { %859 = vmatpush1.bf16.msra.mxu0 %v11797_v32  ;;  %1389 = vmatprep.subr.bf16.mxu1 %v11930_v24  ;;  %v11936_v32 = vld [vmem:[#allocation9 + $0x1a4] ss:$16 sps:$4 sm:$0xff]   ;;  %v13172_v24 = vld [vmem:[%s15785_s4 + $0x40] ss:$16 sps:$4 sm:$0xff]  }
  0xdd   :  { %860 = vmatprep.subr.bf16.mxu0 %v11798_v33  ;;  %v11843_v33 = vld [vmem:[#allocation7 + $0x1e0] ss:$8 sps:$4 sm:$0xff]  }
  0xdf   :  { %1390 = vmatpush1.bf16.msra.mxu1 %v11932_v26  ;;  %v13184_v26 = vld [vmem:[%s15785_s4 + $0x60] ss:$16 sps:$4 sm:$0xff]  }
  0xe0   :  { %861 = vmatpush1.bf16.msra.mxu0 %v11800_v34  ;;  %1391 = vmatprep.subr.bf16.mxu1 %v11933_v28  ;;  %v11938_v34 = vld [vmem:[#allocation9 + $0x1a0] ss:$16 sps:$4 sm:$0xff]  }
  0xe1   :  { %873 = vmatprep.subr.bf16.mxu0 %v11803_v35  ;;  %v11848_v35 = vld [vmem:[#allocation7 + $0x1f4] ss:$8 sps:$4 sm:$0xff]   ;;  %v13196_v28 = vld [vmem:[%s15785_s4 + $0x80] ss:$16 sps:$4 sm:$0xff]  }
  0xe3   :  { %863 = vmatmul.mubr.bf16.vlgmr.msra.gmra.mrb[0].mxu0 %v236_v40  ;;  %1392 = vmatpush1.bf16.msra.mxu1 %v11935_v30  ;;  %v229_v40 = vld [vmem:[#allocation4 + $0x28] sm:$0xff]  ;;  %v13208_v30 = vld [vmem:[%s15785_s4 + $0xa0] ss:$16 sps:$4 sm:$0xff]  }
  0xe4   :  { %874 = vmatpush1.bf16.msra.mxu0 %v11801_v41  ;;  %905 = vmatprep.mubr.bf16.mxu0 %v239_v42  ;;  %v235_v41 = vld [vmem:[#allocation4 + $0x58] sm:$0xff]  ;;  %v11849_v42 = vld [vmem:[#allocation7 + $0x200] ss:$8 sps:$4 sm:$0xff]  }
  0xe5   :  { %875 = vmatprep.subr.bf16.mxu0 %v11806_v43  ;;  %1393 = vmatprep.subr.bf16.mxu1 %v11936_v32  ;;  %v238_v43 = vpack.c.bf16 %v232_v38, %v226_v37  ;;  %v13220_v32 = vld [vmem:[%s15785_s4 + $0xc0] ss:$16 sps:$4 sm:$0xff]  }
  0xe7   :  { %1394 = vmatpush1.bf16.msra.mxu1 %v11938_v34  ;;  %v13232_v34 = vld [vmem:[%s15785_s4 + $0xe0] ss:$16 sps:$4 sm:$0xff]  }
  0xe8   :  { %876 = vmatpush1.bf16.msra.mxu0 %v11804_v44  ;;  %v11854_v44 = vld [vmem:[#allocation7 + $0x214] ss:$8 sps:$4 sm:$0xff]   ;;  %1395 = vmatprep.subr.bf16.mxu1 %v11939_v14  ;;  %15920 = vst [vmem:[#allocation27_spill] sm:$0xff] %v13232_v34 }
  0xe9   :  { %877 = vmatprep.subr.bf16.mxu0 %v11809_v45  ;;  %v241_v45 = vpack.c.bf16 %v235_v41, %v229_v40  ;;  %v11986_v14 = vld [vmem:[#allocation9 + $0x1ac] ss:$16 sps:$4 sm:$0xff]  }
  0xec   :  { %878 = vmatpush1.bf16.msra.mxu0 %v11807_v48  ;;  %v11855_v48 = vld [vmem:[#allocation7 + $0x220] ss:$8 sps:$4 sm:$0xff]  }
  0xed   :  { %879 = vmatprep.subr.bf16.mxu0 %v11812_v50  ;;  %v11858_v50 = vld [vmem:[#allocation7 + $0x230] ss:$8 sps:$4 sm:$0xff]  }
  0xf0   :  { %880 = vmatpush1.bf16.msra.mxu0 %v11810_v53  ;;  %v11866_v53 = vld [vmem:[#allocation7 + $0x254] ss:$8 sps:$4 sm:$0xff]  }
  0xf1   :  { %881 = vmatprep.subr.bf16.mxu0 %v11815_v54  ;;  %v11864_v54 = vld [vmem:[#allocation7 + $0x250] ss:$8 sps:$4 sm:$0xff]  }
  0xf4   :  { %882 = vmatpush1.bf16.msra.mxu0 %v11813_v57  ;;  %v11872_v57 = vld [vmem:[#allocation7 + $0x274] ss:$8 sps:$4 sm:$0xff]  }
  0xf5   :  { %883 = vmatprep.subr.bf16.mxu0 %v11818_v58  ;;  %v11870_v58 = vld [vmem:[#allocation7 + $0x270] ss:$8 sps:$4 sm:$0xff]  }
  0xf8   :  { %884 = vmatpush1.bf16.msra.mxu0 %v11816_v61  ;;  %v11878_v61 = vld [vmem:[#allocation7 + $0x294] ss:$8 sps:$4 sm:$0xff]  }
  0xf9   :  { %885 = vmatprep.subr.bf16.mxu0 %v11821_v62  ;;  %v11876_v62 = vld [vmem:[#allocation7 + $0x290] ss:$8 sps:$4 sm:$0xff]  }
  0xfc   :  { %886 = vmatpush1.bf16.msra.mxu0 %v11819_v1  ;;  %v11884_v1 = vld [vmem:[#allocation7 + $0x2b4] ss:$8 sps:$4 sm:$0xff]  }
  0xfd   :  { %887 = vmatprep.subr.bf16.mxu0 %v11824_v2  ;;  %v11882_v2 = vld [vmem:[#allocation7 + $0x2b0] ss:$8 sps:$4 sm:$0xff]  }
 0x100   :  { %888 = vmatpush1.bf16.msra.mxu0 %v11822_v5  ;;  %v11890_v5 = vld [vmem:[#allocation7 + $0x2d4] ss:$8 sps:$4 sm:$0xff]  }
 0x101   :  { %889 = vmatprep.subr.bf16.mxu0 %v11827_v7  ;;  %v11893_v7 = vld [vmem:[#allocation7 + $0x2e4] ss:$8 sps:$4 sm:$0xff]  }
 0x104   :  { %890 = vmatpush1.bf16.msra.mxu0 %v11825_v9  ;;  %v11896_v9 = vld [vmem:[#allocation7 + $0x2f4] ss:$8 sps:$4 sm:$0xff]  }
 0x105   :  { %891 = vmatprep.subr.bf16.mxu0 %v11830_v11  ;;  %v228_v11 = vld [vmem:[#allocation4 + $0x20] sm:$0xff] }
 0x108   :  { %892 = vmatpush1.bf16.msra.mxu0 %v11828_v13  ;;  %v240_v13 = vpack.c.bf16 %v234_v12, %v228_v11  ;;  %v11978_v11 = vld [vmem:[#allocation9 + $0x168] ss:$16 sps:$4 sm:$0xff]   ;;  %v11983_v12 = vld [vmem:[#allocation9 + $0x18c] ss:$16 sps:$4 sm:$0xff]  }
 0x109   :  { %893 = vmatprep.subr.bf16.mxu0 %v11833_v15  ;;  %v11941_v15 = vld [vmem:[#allocation9 + $0x1c0] ss:$16 sps:$4 sm:$0xff]  }
 0x10a   :  { %1396 = vmatpush1.bf16.msra.mxu1 %v11941_v15  ;;  %v11984_v15 = vld [vmem:[#allocation9 + $0x1a8] ss:$16 sps:$4 sm:$0xff]  }
 0x10b   :  { %1397 = vmatprep.subr.bf16.mxu1 %v11942_v16  ;;  %v11989_v16 = vld [vmem:[#allocation9 + $0x1cc] ss:$16 sps:$4 sm:$0xff]  }
 0x10c   :  { %894 = vmatpush1.bf16.msra.mxu0 %v11831_v17  ;;  %v11944_v17 = vld [vmem:[#allocation9 + $0x1e0] ss:$16 sps:$4 sm:$0xff]  }
 0x10d   :  { %895 = vmatprep.subr.bf16.mxu0 %v11836_v19  ;;  %v13143_v19 = vld [vmem:[%s15785_s4 + $0x4] ss:$16 sps:$4 sm:$0xff]  }
 0x10e   :  { %1398 = vmatpush1.bf16.msra.mxu1 %v11944_v17  ;;  %15918 = vst [vmem:[#allocation25_spill] sm:$0xff] %v13143_v19  ;;  %v11987_v17 = vld [vmem:[#allocation9 + $0x1c8] ss:$16 sps:$4 sm:$0xff]  }
 0x10f   :  { %1410 = vmatprep.subr.bf16.mxu1 %v11947_v18  ;;  %v11992_v18 = vld [vmem:[#allocation9 + $0x1ec] ss:$16 sps:$4 sm:$0xff]  }
 0x110   :  { %896 = vmatpush1.bf16.msra.mxu0 %v11834_v21  ;;  %v13154_v21 = vld [vmem:[%s15785_s4 + $0x24] ss:$16 sps:$4 sm:$0xff]  }
 0x111   :  { %897 = vmatprep.subr.bf16.mxu0 %v11839_v23  ;;  %v13166_v23 = vld [vmem:[%s15785_s4 + $0x44] ss:$16 sps:$4 sm:$0xff]  }
 0x114   :  { %898 = vmatpush1.bf16.msra.mxu0 %v11837_v25  ;;  %v13178_v25 = vld [vmem:[%s15785_s4 + $0x64] ss:$16 sps:$4 sm:$0xff]  }
 0x115   :  { %899 = vmatprep.subr.bf16.mxu0 %v11842_v27  ;;  %v13190_v27 = vld [vmem:[%s15785_s4 + $0x84] ss:$16 sps:$4 sm:$0xff]  }
 0x118   :  { %900 = vmatpush1.bf16.msra.mxu0 %v11840_v29  ;;  %v13202_v29 = vld [vmem:[%s15785_s4 + $0xa4] ss:$16 sps:$4 sm:$0xff]  }
 0x119   :  { %901 = vmatprep.subr.bf16.mxu0 %v11845_v31  ;;  %v13214_v31 = vld [vmem:[%s15785_s4 + $0xc4] ss:$16 sps:$4 sm:$0xff]  }
 0x11c   :  { %902 = vmatpush1.bf16.msra.mxu0 %v11843_v33  ;;  %v13226_v33 = vld [vmem:[%s15785_s4 + $0xe4] ss:$16 sps:$4 sm:$0xff]  }
 0x11d   :  { %903 = vmatprep.subr.bf16.mxu0 %v11848_v35  ;;  %15919 = vst [vmem:[#allocation26_spill] sm:$0xff] %v13226_v33  ;;  %v15802_v35 = vmov 0  }
 0x120   :  { %904 = vmatpush1.bf16.msra.mxu0 %v11846_v36  ;;  %v167_v36 = vlaneseq }
 0x121   :  { %916 = vmatprep.subr.bf16.mxu0 %v11851_v39  ;;  %v338_v39 = vld [vmem:[%s15783_s2] sm:$0x3] }
 0x122   :  { %v13239_v37 = vshrl.u32 %v167_v36, 7 }
 0x123   :  { %906 = vmatmul.mubr.bf16.vlgmr.msra.gmra.mrb[0].mxu0 %v238_v43 }
 0x124   :  { %917 = vmatpush1.bf16.msra.mxu0 %v11849_v42  ;;  %948 = vmatprep.mubr.bf16.mxu0 %v241_v45  ;;  %v13242_v38 = vsub.s32 0, %v13239_v37  ;;  %v13248_v40 = vsub.s32 1, %v13239_v37 }
 0x125   :  { %918 = vmatprep.subr.bf16.mxu0 %v11854_v44 }
 0x126   :  { %15921 = vst [vmem:[#allocation28_spill] sm:$0xff] %v13242_v38  ;;  %15922 = vst [vmem:[#allocation29_spill] sm:$0xff] %v13248_v40  ;;  %v343_v41 = vrot.slane %v338_v39, %v13242_v38  ;;  %v347_v43 = vrot.slane %v338_v39, %v13248_v40  ;;  %v11990_v39 = vld [vmem:[#allocation9 + $0x1e8] ss:$16 sps:$4 sm:$0xff]  }
 0x128   :  { %919 = vmatpush1.bf16.msra.mxu0 %v11852_v46 }
 0x129   :  { %920 = vmatprep.subr.bf16.mxu0 %v11857_v47 }
 0x12c   :  { %921 = vmatpush1.bf16.msra.mxu0 %v11855_v48 }
 0x12d   :  { %922 = vmatprep.subr.bf16.mxu0 %v11860_v49 }
 0x130   :  { %923 = vmatpush1.bf16.msra.mxu0 %v11858_v50 }
 0x131   :  { %924 = vmatprep.subr.bf16.mxu0 %v11863_v51 }
 0x134   :  { %925 = vmatpush1.bf16.msra.mxu0 %v11861_v52 }
 0x135   :  { %926 = vmatprep.subr.bf16.mxu0 %v11866_v53  ;;  %v11945_v53 = vld [vmem:[#allocation9 + $0x8] ss:$16 sps:$4 sm:$0xff]  }
 0x138   :  { %927 = vmatpush1.bf16.msra.mxu0 %v11864_v54  ;;  %v11950_v54 = vld [vmem:[#allocation9 + $0x2c] ss:$16 sps:$4 sm:$0xff]  }
 0x139   :  { %928 = vmatprep.subr.bf16.mxu0 %v11869_v55  ;;  %v11948_v55 = vld [vmem:[#allocation9 + $0x28] ss:$16 sps:$4 sm:$0xff]  }
 0x13c   :  { %929 = vmatpush1.bf16.msra.mxu0 %v11867_v56  ;;  %v11953_v56 = vld [vmem:[#allocation9 + $0x4c] ss:$16 sps:$4 sm:$0xff]  }
 0x13d   :  { %930 = vmatprep.subr.bf16.mxu0 %v11872_v57  ;;  %v11951_v57 = vld [vmem:[#allocation9 + $0x48] ss:$16 sps:$4 sm:$0xff]  }
 0x140   :  { %931 = vmatpush1.bf16.msra.mxu0 %v11870_v58  ;;  %v11956_v58 = vld [vmem:[#allocation9 + $0x6c] ss:$16 sps:$4 sm:$0xff]  }
 0x141   :  { %932 = vmatprep.subr.bf16.mxu0 %v11875_v59  ;;  %v11954_v59 = vld [vmem:[#allocation9 + $0x68] ss:$16 sps:$4 sm:$0xff]  }
 0x144   :  { %933 = vmatpush1.bf16.msra.mxu0 %v11873_v60  ;;  %v11959_v60 = vld [vmem:[#allocation9 + $0x8c] ss:$16 sps:$4 sm:$0xff]  }
 0x145   :  { %934 = vmatprep.subr.bf16.mxu0 %v11878_v61  ;;  %v11957_v61 = vld [vmem:[#allocation9 + $0x88] ss:$16 sps:$4 sm:$0xff]  }
 0x148   :  { %935 = vmatpush1.bf16.msra.mxu0 %v11876_v62  ;;  %v11962_v62 = vld [vmem:[#allocation9 + $0xac] ss:$16 sps:$4 sm:$0xff]  }
 0x149   :  { %936 = vmatprep.subr.bf16.mxu0 %v11881_v63  ;;  %v11960_v63 = vld [vmem:[#allocation9 + $0xa8] ss:$16 sps:$4 sm:$0xff]  }
 0x14c   :  { %937 = vmatpush1.bf16.msra.mxu0 %v11879_v0  ;;  %v11965_v0 = vld [vmem:[#allocation9 + $0xcc] ss:$16 sps:$4 sm:$0xff]  }
 0x14d   :  { %938 = vmatprep.subr.bf16.mxu0 %v11884_v1  ;;  %v11963_v1 = vld [vmem:[#allocation9 + $0xc8] ss:$16 sps:$4 sm:$0xff]  }
 0x150   :  { %939 = vmatpush1.bf16.msra.mxu0 %v11882_v2  ;;  %v11968_v2 = vld [vmem:[#allocation9 + $0xec] ss:$16 sps:$4 sm:$0xff]  }
 0x151   :  { %940 = vmatprep.subr.bf16.mxu0 %v11887_v3  ;;  %v11966_v3 = vld [vmem:[#allocation9 + $0xe8] ss:$16 sps:$4 sm:$0xff]  }
 0x154   :  { %941 = vmatpush1.bf16.msra.mxu0 %v11885_v4  ;;  %v11971_v4 = vld [vmem:[#allocation9 + $0x10c] ss:$16 sps:$4 sm:$0xff]  }
 0x155   :  { %942 = vmatprep.subr.bf16.mxu0 %v11890_v5  ;;  %v11969_v5 = vld [vmem:[#allocation9 + $0x108] ss:$16 sps:$4 sm:$0xff]  }
 0x158   :  { %943 = vmatpush1.bf16.msra.mxu0 %v11888_v6  ;;  %v11974_v6 = vld [vmem:[#allocation9 + $0x12c] ss:$16 sps:$4 sm:$0xff]  }
 0x159   :  { %944 = vmatprep.subr.bf16.mxu0 %v11893_v7  ;;  %v11972_v7 = vld [vmem:[#allocation9 + $0x128] ss:$16 sps:$4 sm:$0xff]  }
 0x15c   :  { %945 = vmatpush1.bf16.msra.mxu0 %v11891_v8  ;;  %v11977_v8 = vld [vmem:[#allocation9 + $0x14c] ss:$16 sps:$4 sm:$0xff]  }
 0x15d   :  { %946 = vmatprep.subr.bf16.mxu0 %v11896_v9  ;;  %v11975_v9 = vld [vmem:[#allocation9 + $0x148] ss:$16 sps:$4 sm:$0xff]  }
 0x160   :  { %947 = vmatpush1.bf16.msra.mxu0 %v11894_v10  ;;  %v11980_v10 = vld [vmem:[#allocation9 + $0x16c] ss:$16 sps:$4 sm:$0xff]  }
 0x161   :  { %2060 = vmatprep.subr.bf16.mxu0 %v13143_v19 }
 0x163   :  { %949 = vmatmul.mubr.bf16.vlgmr.msra.gmra.mrb[0].mxu0 %v240_v13  ;;  %v11981_v13 = vld [vmem:[#allocation9 + $0x188] ss:$16 sps:$4 sm:$0xff]  }
 0x164   :  { %2061 = vmatpush1.bf16.msra.mxu0 %v13148_v20  ;;  %2092 = vmatprep.mubr.bf16.mxu0 %v15802_v35 }
 0x165   :  { %2062 = vmatprep.subr.bf16.mxu0 %v13154_v21 }
 0x168   :  { %2063 = vmatpush1.bf16.msra.mxu0 %v13160_v22 }
 0x169   :  { %2064 = vmatprep.subr.bf16.mxu0 %v13166_v23 }
 0x16c   :  { %2065 = vmatpush1.bf16.msra.mxu0 %v13172_v24 }
 0x16d   :  { %2066 = vmatprep.subr.bf16.mxu0 %v13178_v25 }
 0x170   :  { %2067 = vmatpush1.bf16.msra.mxu0 %v13184_v26 }
 0x171   :  { %2068 = vmatprep.subr.bf16.mxu0 %v13190_v27 }
 0x174   :  { %2069 = vmatpush1.bf16.msra.mxu0 %v13196_v28 }
 0x175   :  { %2070 = vmatprep.subr.bf16.mxu0 %v13202_v29 }
 0x178   :  { %2071 = vmatpush1.bf16.msra.mxu0 %v13208_v30 }
 0x179   :  { %2072 = vmatprep.subr.bf16.mxu0 %v13214_v31 }
 0x17c   :  { %2073 = vmatpush1.bf16.msra.mxu0 %v13220_v32 }
 0x17d   :  { %2074 = vmatprep.subr.bf16.mxu0 %v13226_v33 }
 0x180   :  { %2075 = vmatpush1.bf16.msra.mxu0 %v13232_v34 }
 0x181   :  { %2428 = vmatprep.subr.bf16.mxu0 %v13143_v19 }
 0x236   :  { %v950_v42 = vpop.f32.mrb[0].mxu0 }
 0x237   :  { %v952_v44 = vpop.f32.mrb[1].mxu0  ;;  %v11673_v46 = vadd.f32 %v950_v42, %v343_v41  ;;  %v13281_v42 = vld [vmem:[%s15785_s4 + $0x8] ss:$16 sps:$4 sm:$0xff]  }
 0x238   :  { %v954_v45 = vpop.f32.mrb[2].mxu0  ;;  %v11674_v49 = vadd.f32 %v952_v44, %v347_v43  ;;  %v13294_v44 = vld [vmem:[%s15785_s4 + $0x28] ss:$16 sps:$4 sm:$0xff]  }
 0x239   :  { %v11675_v47 = vadd.f32 %v954_v45, %v343_v41  ;;  %v956_v48 = vpop.f32.mrb[3].mxu0  ;;  %v13275_v41 = vld [vmem:[%s15785_s4 + $0xc] ss:$16 sps:$4 sm:$0xff]  }
 0x23a   :  { %v11676_v50 = vadd.f32 %v956_v48, %v347_v43  ;;  %15923 = vst [vmem:[#allocation30_spill] sm:$0xff] %v13275_v41  ;;  %v13287_v43 = vld [vmem:[%s15785_s4 + $0x2c] ss:$16 sps:$4 sm:$0xff]   ;;  %v13319_v48 = vld [vmem:[%s15785_s4 + $0x68] ss:$16 sps:$4 sm:$0xff]  }
 0x23b   :  { %v13252_v51 = vpack.c.bf16 %v11675_v47, %v11673_v46  ;;  %v13301_v45 = vld [vmem:[%s15785_s4 + $0x4c] ss:$16 sps:$4 sm:$0xff]   ;;  %v13307_v46 = vld [vmem:[%s15785_s4 + $0x48] ss:$16 sps:$4 sm:$0xff]  }
 0x23c   :  { %v960_v52 = vpack.c.bf16 %v11676_v50, %v11674_v49  ;;  %v13313_v47 = vld [vmem:[%s15785_s4 + $0x6c] ss:$16 sps:$4 sm:$0xff]   ;;  %v13331_v50 = vld [vmem:[%s15785_s4 + $0x88] ss:$16 sps:$4 sm:$0xff]  }
 0x23d   :  { %v13325_v49 = vld [vmem:[%s15785_s4 + $0x8c] ss:$16 sps:$4 sm:$0xff]  }
 0x23e   :  { %1399 = vmatprep.mubr.bf16.mxu1 %v960_v52 }
 0x23f   :  { %1400 = vmatmul.mubr.bf16.vlgmr.msra.gmra.mrb[0].mxu1 %v13252_v51 }
 0x240   :  { %1411 = vmatpush1.bf16.msra.mxu1 %v11945_v53  ;;  %1442 = vmatprep.mubr.bf16.mxu1 %v960_v52  ;;  %v13343_v52 = vld [vmem:[%s15785_s4 + $0xa8] ss:$16 sps:$4 sm:$0xff]   ;;  %v13349_v53 = vld [vmem:[%s15785_s4 + $0xcc] ss:$16 sps:$4 sm:$0xff]  }
 0x241   :  { %1412 = vmatprep.subr.bf16.mxu1 %v11950_v54  ;;  %v13355_v54 = vld [vmem:[%s15785_s4 + $0xc8] ss:$16 sps:$4 sm:$0xff]  }
 0x244   :  { %1413 = vmatpush1.bf16.msra.mxu1 %v11948_v55  ;;  %v13361_v55 = vld [vmem:[%s15785_s4 + $0xec] ss:$16 sps:$4 sm:$0xff]  }
 0x245   :  { %1414 = vmatprep.subr.bf16.mxu1 %v11953_v56  ;;  %15924 = vst [vmem:[#allocation31_spill] sm:$0xff] %v13361_v55  ;;  %v13367_v56 = vld [vmem:[%s15785_s4 + $0xe8] ss:$16 sps:$4 sm:$0xff]  }
 0x246   :  { %15925 = vst [vmem:[#allocation32_spill] sm:$0xff] %v13367_v56 }
 0x248   :  { %1415 = vmatpush1.bf16.msra.mxu1 %v11951_v57  ;;  %v13391_v57 = vand.u32 127, %v167_v36 }
 0x249   :  { %1416 = vmatprep.subr.bf16.mxu1 %v11956_v58 }
 0x24a   :  { %15926 = vst [vmem:[#allocation33_spill] sm:$0xff] %v13391_v57  ;;  %v169_v58 = vadd.s32 128, %v13391_v57  ;;  %vm220_vm0 = vcmp.lt.s32.totalorder %v13391_v57, 64 }
 0x24c   :  { %1417 = vmatpush1.bf16.msra.mxu1 %v11954_v59  ;;  %v13397_v59 = vld [vmem:[%s15786_s5] sm:$0xf] }
 0x24d   :  { %1418 = vmatprep.subr.bf16.mxu1 %v11959_v60  ;;  %v1030_v60 = vrot.slane %v13397_v59, %v13242_v38 }
 0x250   :  { %1419 = vmatpush1.bf16.msra.mxu1 %v11957_v61  ;;  %v183_v61 = vand.u32 127, %v169_v58 }
 0x251   :  { %1420 = vmatprep.subr.bf16.mxu1 %v11962_v62  ;;  %v1034_v62 = vrot.slane %v13397_v59, %v13248_v40 }
 0x252   :  { %vm13404_vm1 = vcmp.lt.s32.totalorder %v183_v61, 64 }
 0x254   :  { %1421 = vmatpush1.bf16.msra.mxu1 %v11960_v63 }
 0x255   :  { %1422 = vmatprep.subr.bf16.mxu1 %v11965_v0 }
 0x258   :  { %1423 = vmatpush1.bf16.msra.mxu1 %v11963_v1 }
 0x259   :  { %1424 = vmatprep.subr.bf16.mxu1 %v11968_v2 }
 0x25c   :  { %1425 = vmatpush1.bf16.msra.mxu1 %v11966_v3 }
 0x25d   :  { %1426 = vmatprep.subr.bf16.mxu1 %v11971_v4 }
 0x260   :  { %1427 = vmatpush1.bf16.msra.mxu1 %v11969_v5 }
 0x261   :  { %1428 = vmatprep.subr.bf16.mxu1 %v11974_v6 }
 0x264   :  { %1429 = vmatpush1.bf16.msra.mxu1 %v11972_v7 }
 0x265   :  { %1430 = vmatprep.subr.bf16.mxu1 %v11977_v8 }
 0x268   :  { %1431 = vmatpush1.bf16.msra.mxu1 %v11975_v9 }
 0x269   :  { %1432 = vmatprep.subr.bf16.mxu1 %v11980_v10 }
 0x26c   :  { %1433 = vmatpush1.bf16.msra.mxu1 %v11978_v11 }
 0x26d   :  { %1434 = vmatprep.subr.bf16.mxu1 %v11983_v12 }
 0x270   :  { %1435 = vmatpush1.bf16.msra.mxu1 %v11981_v13 }
 0x271   :  { %1436 = vmatprep.subr.bf16.mxu1 %v11986_v14 }
 0x274   :  { %1437 = vmatpush1.bf16.msra.mxu1 %v11984_v15 }
 0x275   :  { %1438 = vmatprep.subr.bf16.mxu1 %v11989_v16 }
 0x278   :  { %1439 = vmatpush1.bf16.msra.mxu1 %v11987_v17 }
 0x279   :  { %1440 = vmatprep.subr.bf16.mxu1 %v11992_v18 }
 0x27c   :  { %1441 = vmatpush1.bf16.msra.mxu1 %v11990_v39 }
 0x27d   :  { %1694 = vmatprep.subr.bf16.mxu1 %v13143_v19 }
 0x27f   :  { %1443 = vmatmul.mubr.bf16.vlgmr.msra.gmra.mrb[4].mxu1 %v13252_v51  ;;  %v13337_v51 = vld [vmem:[%s15785_s4 + $0xac] ss:$16 sps:$4 sm:$0xff]  }
 0x280   :  { %1695 = vmatpush1.bf16.msra.mxu1 %v13148_v20  ;;  %1726 = vmatprep.mubr.bf16.mxu1 %v15802_v35 }
 0x281   :  { %1696 = vmatprep.subr.bf16.mxu1 %v13154_v21 }
 0x284   :  { %1697 = vmatpush1.bf16.msra.mxu1 %v13160_v22 }
 0x285   :  { %1698 = vmatprep.subr.bf16.mxu1 %v13166_v23 }
 0x288   :  { %1699 = vmatpush1.bf16.msra.mxu1 %v13172_v24 }
 0x289   :  { %1700 = vmatprep.subr.bf16.mxu1 %v13178_v25 }
 0x28c   :  { %1701 = vmatpush1.bf16.msra.mxu1 %v13184_v26 }
 0x28d   :  { %1702 = vmatprep.subr.bf16.mxu1 %v13190_v27 }
 0x290   :  { %1703 = vmatpush1.bf16.msra.mxu1 %v13196_v28 }
 0x291   :  { %1704 = vmatprep.subr.bf16.mxu1 %v13202_v29 }
 0x294   :  { %1705 = vmatpush1.bf16.msra.mxu1 %v13208_v30 }
 0x295   :  { %1706 = vmatprep.subr.bf16.mxu1 %v13214_v31 }
 0x298   :  { %1707 = vmatpush1.bf16.msra.mxu1 %v13220_v32 }
 0x299   :  { %1708 = vmatprep.subr.bf16.mxu1 %v13226_v33 }
 0x29c   :  { %1709 = vmatpush1.bf16.msra.mxu1 %v13232_v34 }
 0x29d   :  { %1735 = vmatprep.subr.bf16.mxu1 %v13275_v41 }
 0x29f   :  { %1727 = vmatmul.mubr.bf16.vlgmr.msra.gmra.mrb[8].mxu1 %v15802_v35 }
 0x2a0   :  { %1736 = vmatpush1.bf16.msra.mxu1 %v13281_v42  ;;  %1767 = vmatprep.mubr.bf16.mxu1 %v15802_v35 }
 0x2a1   :  { %1737 = vmatprep.subr.bf16.mxu1 %v13287_v43 }
 0x2a4   :  { %1738 = vmatpush1.bf16.msra.mxu1 %v13294_v44 }
 0x2a5   :  { %1739 = vmatprep.subr.bf16.mxu1 %v13301_v45 }
 0x2a8   :  { %1740 = vmatpush1.bf16.msra.mxu1 %v13307_v46 }
 0x2a9   :  { %1741 = vmatprep.subr.bf16.mxu1 %v13313_v47 }
 0x2ac   :  { %1742 = vmatpush1.bf16.msra.mxu1 %v13319_v48 }
 0x2ad   :  { %1743 = vmatprep.subr.bf16.mxu1 %v13325_v49 }
 0x2b0   :  { %1744 = vmatpush1.bf16.msra.mxu1 %v13331_v50 }
 0x2b1   :  { %1745 = vmatprep.subr.bf16.mxu1 %v13337_v51 }
 0x2b4   :  { %1746 = vmatpush1.bf16.msra.mxu1 %v13343_v52 }
 0x2b5   :  { %1747 = vmatprep.subr.bf16.mxu1 %v13349_v53 }
 0x2b8   :  { %1748 = vmatpush1.bf16.msra.mxu1 %v13355_v54 }
 0x2b9   :  { %1749 = vmatprep.subr.bf16.mxu1 %v13361_v55 }
 0x2bc   :  { %1750 = vmatpush1.bf16.msra.mxu1 %v13367_v56 }
 0x2bd   :  { %2101 = vmatprep.subr.bf16.mxu1 %v13275_v41 }
 0x2bf   :  { %1768 = vmatmul.mubr.bf16.vlgmr.msra.gmra.mrb[12].mxu1 %v15802_v35 }
 0x2c0   :  { %2102 = vmatpush1.bf16.msra.mxu1 %v13281_v42  ;;  %2133 = vmatprep.mubr.bf16.mxu1 %v15802_v35 }
 0x2c1   :  { %2103 = vmatprep.subr.bf16.mxu1 %v13287_v43 }
 0x2c4   :  { %2104 = vmatpush1.bf16.msra.mxu1 %v13294_v44 }
 0x2c5   :  { %2105 = vmatprep.subr.bf16.mxu1 %v13301_v45 }
 0x2c8   :  { %2106 = vmatpush1.bf16.msra.mxu1 %v13307_v46 }
 0x2c9   :  { %2107 = vmatprep.subr.bf16.mxu1 %v13313_v47 }
 0x2cc   :  { %2108 = vmatpush1.bf16.msra.mxu1 %v13319_v48 }
 0x2cd   :  { %2109 = vmatprep.subr.bf16.mxu1 %v13325_v49 }
 0x2d0   :  { %2110 = vmatpush1.bf16.msra.mxu1 %v13331_v50 }
 0x2d1   :  { %2111 = vmatprep.subr.bf16.mxu1 %v13337_v51 }
 0x2d4   :  { %2112 = vmatpush1.bf16.msra.mxu1 %v13343_v52 }
 0x2d5   :  { %2113 = vmatprep.subr.bf16.mxu1 %v13349_v53 }
 0x2d8   :  { %2114 = vmatpush1.bf16.msra.mxu1 %v13355_v54 }
 0x2d9   :  { %2115 = vmatprep.subr.bf16.mxu1 %v13361_v55 }
 0x2dc   :  { %2116 = vmatpush1.bf16.msra.mxu1 %v13367_v56 }
 0x2dd   :  { %2469 = vmatprep.subr.bf16.mxu1 %v13275_v41 }
 0x312   :  { %v1401_v63 = vpop.f32.mrb[0].mxu1 }
 0x313   :  { %v1402_v0 = vadd.f32 %v1401_v63, %v1030_v60  ;;  %v1403_v1 = vpop.f32.mrb[1].mxu1 }
 0x314   :  { %v1404_v2 = vadd.f32 %v1403_v1, %v1034_v62  ;;  %v1405_v3 = vpop.f32.mrb[2].mxu1 }
 0x315   :  { %v1406_v4 = vadd.f32 %v1405_v3, %v1030_v60  ;;  %v1407_v5 = vpop.f32.mrb[3].mxu1  ;;  %v1482_v6 = vrot.slane %v1402_v0, 7  ;;  %v1835_v7 = vrot.slane %v1402_v0, 1  ;;  %v1847_v8 = vrot.slane %v1402_v0, 6 }
 0x316   :  { %v1408_v9 = vadd.f32 %v1407_v5, %v1034_v62  ;;  %v1485_v10 = vrot.slane %v1404_v2, 7  ;;  %v1837_v11 = vrot.slane %v1404_v2, 1  ;;  %v1850_v12 = vrot.slane %v1404_v2, 6 }
 0x317   :  { %v1469_v13 = vrot.slane %v1406_v4, 7  ;;  %v1483_v14 = vrot.slane %v1406_v4, 6  ;;  %v1836_v15 = vsel %vm1470_vm2, %v1406_v4, %v1835_v7  ;;  %v1848_v16 = vrot.slane %v1406_v4, 5 }
 0x318   :  { %v1472_v17 = vrot.slane %v1408_v9, 7  ;;  %v1486_v18 = vrot.slane %v1408_v9, 6  ;;  %v13410_v39 = vsel %vm1470_vm2, %v1408_v9, %v1837_v11  ;;  %v1851_v58 = vrot.slane %v1408_v9, 5 }
 0x319   :  { %15929 = vst [vmem:[#allocation34_spill] sm:$0xff] %v13410_v39  ;;  %v1471_v60 = vsel %vm1470_vm2, %v1469_v13, %v1402_v0  ;;  %v1484_v61 = vsel %vm1470_vm2, %v1483_v14, %v1482_v6  ;;  %v1849_v62 = vsel %vm1470_vm2, %v1848_v16, %v1847_v8  ;;  %v2199_v63 = vrot.slane %v1402_v0, 2 }
 0x31a   :  { %v13417_v1 = vsel %vm220_vm0, %v1471_v60, %v1484_v61  ;;  %v13420_v3 = vsel %vm1470_vm2, %v1472_v17, %v1404_v2  ;;  %v13423_v5 = vsel %vm1470_vm2, %v1486_v18, %v1485_v10  ;;  %v13427_v7 = vsel %vm220_vm0, %v1836_v15, %v1849_v62 }
 0x31b   :  { %15930 = vst [vmem:[#allocation35_spill] sm:$0xff] %v13420_v3  ;;  %15931 = vst [vmem:[#allocation36_spill] sm:$0xff] %v13423_v5  ;;  %v13434_v8 = vsel %vm1470_vm2, %v1851_v58, %v1850_v12  ;;  %v2200_v11 = vrot.slane %v1406_v4, 1  ;;  %v2215_v13 = vrot.slane %v1402_v0, 5  ;;  %v2216_v14 = vrot.slane %v1406_v4, 4 }
 0x31c   :  { %15932 = vst [vmem:[#allocation37_spill] sm:$0xff] %v13427_v7  ;;  %15933 = vst [vmem:[#allocation38_spill] sm:$0xff] %v13434_v8  ;;  %v2202_v16 = vrot.slane %v1404_v2, 2  ;;  %v2203_v17 = vrot.slane %v1408_v9, 1  ;;  %v2218_v35 = vrot.slane %v1404_v2, 5  ;;  %v2219_v40 = vrot.slane %v1408_v9, 4 }
 0x31d   :  { %v2201_v18 = vsel %vm1470_vm2, %v2200_v11, %v2199_v63  ;;  %v2567_v38 = vrot.slane %v1402_v0, 3  ;;  %v2217_v6 = vsel %vm1470_vm2, %v2216_v14, %v2215_v13  ;;  %v2568_v58 = vrot.slane %v1406_v4, 2 }
 0x31e   :  { %v13443_v12 = vsel %vm1470_vm2, %v2203_v17, %v2202_v16  ;;  %v2583_v7 = vrot.slane %v1402_v0, 4  ;;  %v13447_v41 = vsel %vm220_vm0, %v2201_v18, %v2217_v6  ;;  %v13450_v10 = vsel %vm1470_vm2, %v2219_v40, %v2218_v35 }
 0x31f   :  { %15934 = vst [vmem:[#allocation39_spill] sm:$0xff] %v13443_v12  ;;  %15935 = vst [vmem:[#allocation40_spill] sm:$0xff] %v13447_v41  ;;  %v2584_v19 = vrot.slane %v1406_v4, 3  ;;  %v2570_v56 = vrot.slane %v1404_v2, 3  ;;  %v2569_v11 = vsel %vm1470_vm2, %v2568_v58, %v2567_v38  ;;  %v2571_v13 = vrot.slane %v1408_v9, 2 }
 0x320   :  { %15936 = vst [vmem:[#allocation41_spill] sm:$0xff] %v13450_v10  ;;  %v2586_v14 = vrot.slane %v1404_v2, 4  ;;  %v2587_v16 = vrot.slane %v1408_v9, 3  ;;  %v13460_v17 = vsel %vm220_vm0, %v2217_v6, %v2201_v18  ;;  %v13479_v2 = vsel %vm220_vm0, %v1849_v62, %v1836_v15 }
 0x321   :  { %v2585_v0 = vsel %vm1470_vm2, %v2584_v19, %v2583_v7  ;;  %15937 = vst [vmem:[#allocation42_spill] sm:$0xff] %v13460_v17  ;;  %v13471_v38 = vsel %vm1470_vm2, %v2571_v13, %v2570_v56  ;;  %15941 = vst [vmem:[#allocation46_spill] sm:$0xff] %v13479_v2  ;;  %v13490_v56 = vsel %vm220_vm0, %v1484_v61, %v1471_v60  ;;  %v13505_v6 = vsub.s32 2, %v13239_v37 }
 0x322   :  { %v13468_v40 = vsel %vm220_vm0, %v2569_v11, %v2585_v0  ;;  %15939 = vst [vmem:[#allocation44_spill] sm:$0xff] %v13471_v38  ;;  %v13475_v19 = vsel %vm220_vm0, %v2585_v0, %v2569_v11  ;;  %v13482_v4 = vsel %vm1470_vm2, %v2587_v16, %v2586_v14  ;;  %15943 = vst [vmem:[#allocation48_spill] sm:$0xff] %v13490_v56  ;;  %v170_v60 = vadd.s32 256, %v13391_v57 }
 0x323   :  { %15938 = vst [vmem:[#allocation43_spill] sm:$0xff] %v13468_v40  ;;  %15940 = vst [vmem:[#allocation45_spill] sm:$0xff] %v13475_v19  ;;  %v171_v61 = vadd.s32 384, %v13391_v57  ;;  %v13510_v18 = vsub.s32 3, %v13239_v37  ;;  %v1038_v58 = vrot.slane %v13397_v59, %v13505_v6 }
 0x324   :  { %15942 = vst [vmem:[#allocation47_spill] sm:$0xff] %v13482_v4  ;;  %15944 = vst [vmem:[#allocation49_spill] sm:$0xff] %v13505_v6  ;;  %v190_v11 = vand.u32 127, %v170_v60 }
 0x325   :  { %15945 = vst [vmem:[#allocation50_spill] sm:$0xff] %v13510_v18  ;;  %v197_v13 = vand.u32 127, %v171_v61  ;;  %v1042_v14 = vrot.slane %v13397_v59, %v13510_v18 }
 0x326   :  { %vm13516_vm3 = vcmp.lt.s32.totalorder %v190_v11, 64 }
 0x327   :  { %vm13520_vm4 = vcmp.lt.s32.totalorder %v197_v13, 64 }
 0x352   :  { %v1444_v0 = vpop.f32.mrb[4].mxu1 }
 0x353   :  { %v1445_v16 = vadd.f32 %v1444_v0, %v1038_v58  ;;  %v1446_v7 = vpop.f32.mrb[5].mxu1 }
 0x354   :  { %v1447_v62 = vadd.f32 %v1446_v7, %v1042_v14  ;;  %v1448_v15 = vpop.f32.mrb[6].mxu1 }
 0x355   :  { %v1449_v63 = vadd.f32 %v1448_v15, %v1038_v58  ;;  %v1450_v57 = vpop.f32.mrb[7].mxu1  ;;  %v1488_v60 = vrot.slane %v1445_v16, 7  ;;  %v1839_v61 = vrot.slane %v1445_v16, 1  ;;  %v1853_v6 = vrot.slane %v1445_v16, 6 }
 0x356   :  { %v1451_v56 = vadd.f32 %v1450_v57, %v1042_v14  ;;  %v1491_v59 = vrot.slane %v1447_v62, 7  ;;  %v1841_v18 = vrot.slane %v1447_v62, 1  ;;  %v1856_v0 = vrot.slane %v1447_v62, 6 }
 0x357   :  { %v1474_v2 = vrot.slane %v1449_v63, 7  ;;  %v1489_v11 = vrot.slane %v1449_v63, 6  ;;  %v13525_v17 = vsel %vm1470_vm2, %v1449_v63, %v1839_v61  ;;  %v1854_v13 = vrot.slane %v1449_v63, 5 }
 0x358   :  { %15950 = vst [vmem:[#allocation51_spill] sm:$0xff] %v13525_v17  ;;  %v1476_v19 = vrot.slane %v1451_v56, 7  ;;  %v1492_v4 = vrot.slane %v1451_v56, 6  ;;  %v13528_v7 = vsel %vm1470_vm2, %v1451_v56, %v1841_v18  ;;  %v1857_v15 = vrot.slane %v1451_v56, 5 }
 0x359   :  { %15951 = vst [vmem:[#allocation52_spill] sm:$0xff] %v13528_v7  ;;  %v13531_v58 = vsel %vm1470_vm2, %v1474_v2, %v1445_v16  ;;  %v13534_v57 = vsel %vm1470_vm2, %v1489_v11, %v1488_v60  ;;  %v13537_v14 = vsel %vm1470_vm2, %v1854_v13, %v1853_v6  ;;  %v2205_v38 = vrot.slane %v1445_v16, 2 }
 0x35a   :  { %15952 = vst [vmem:[#allocation53_spill] sm:$0xff] %v13531_v58  ;;  %15953 = vst [vmem:[#allocation54_spill] sm:$0xff] %v13534_v57  ;;  %v1500_v61 = vsel %vm13516_vm3, %v13531_v58, %v13534_v57  ;;  %v13544_v40 = vsel %vm1470_vm2, %v1476_v19, %v1447_v62  ;;  %v13547_v18 = vsel %vm1470_vm2, %v1492_v4, %v1491_v59  ;;  %v2206_v11 = vrot.slane %v1449_v63, 1 }
 0x35b   :  { %15954 = vst [vmem:[#allocation55_spill] sm:$0xff] %v13537_v14  ;;  %15955 = vst [vmem:[#allocation56_spill] sm:$0xff] %v13544_v40  ;;  %v1501_v6 = vsel %vm13520_vm4, %v13544_v40, %v13547_v18  ;;  %v13558_v60 = vsel %vm1470_vm2, %v1857_v15, %v1856_v0  ;;  %v2221_v13 = vrot.slane %v1445_v16, 5  ;;  %v2222_v4 = vrot.slane %v1449_v63, 4 }
 0x35c   :  { %15956 = vst [vmem:[#allocation57_spill] sm:$0xff] %v13547_v18  ;;  %15957 = vst [vmem:[#allocation58_spill] sm:$0xff] %v13558_v60  ;;  %v2208_v59 = vrot.slane %v1447_v62, 2  ;;  %v2209_v10 = vrot.slane %v1451_v56, 1  ;;  %v13565_v2 = vsel %vm1470_vm2, %v2206_v11, %v2205_v38  ;;  %v2224_v12 = vrot.slane %v1447_v62, 5 }
 0x35d   :  { %15958 = vst [vmem:[#allocation59_spill] sm:$0xff] %v13565_v2  ;;  %v2225_v41 = vrot.slane %v1451_v56, 4  ;;  %v2573_v8 = vrot.slane %v1445_v16, 3  ;;  %v13568_v39 = vsel %vm1470_vm2, %v2222_v4, %v2221_v13  ;;  %v2574_v15 = vrot.slane %v1449_v63, 2 }
 0x35e   :  { %v13571_v0 = vsel %vm1470_vm2, %v2209_v10, %v2208_v59  ;;  %v2589_v34 = vrot.slane %v1445_v16, 4  ;;  %v2590_v38 = vrot.slane %v1449_v63, 3  ;;  %v2576_v11 = vrot.slane %v1447_v62, 3 }
 0x35f   :  { %15959 = vst [vmem:[#allocation60_spill] sm:$0xff] %v13571_v0  ;;  %v13578_v55 = vsel %vm1470_vm2, %v2225_v41, %v2224_v12  ;;  %v13585_v10 = vsel %vm1470_vm2, %v2574_v15, %v2573_v8  ;;  %v2577_v4 = vrot.slane %v1451_v56, 2  ;;  %v2592_v16 = vrot.slane %v1447_v62, 4 }
 0x360   :  { %15960 = vst [vmem:[#allocation61_spill] sm:$0xff] %v13578_v55  ;;  %v13588_v59 = vsel %vm1470_vm2, %v2590_v38, %v2589_v34  ;;  %v2593_v33 = vrot.slane %v1451_v56, 3  ;;  %v15961_v38 = vsel %vm13404_vm1, %v13420_v3, %v13423_v5  ;;  %v15984_v5 = vld [vmem:[#allocation47_spill] sm:$0xff] }
 0x361   :  { %v13603_v63 = vsel %vm1470_vm2, %v2577_v4, %v2576_v11 }
 0x362   :  { %v13614_v62 = vsel %vm1470_vm2, %v2593_v33, %v2592_v16 }
 0x372   :  { %v1728_v16 = vpop.f32.mrb[8].mxu1 }
 0x373   :  { %v1776_v15 = vadd.f32 %v1728_v16, %v13417_v1  ;;  %v1730_v56 = vpop.f32.mrb[9].mxu1 }
 0x374   :  { %v1777_v11 = vadd.f32 %v1730_v56, %v15961_v38  ;;  %v1732_v12 = vpop.f32.mrb[10].mxu1 }
 0x375   :  { %v1733_v41 = vpop.f32.mrb[11].mxu1  ;;  %v10625_v8 = vmul.f32 -1.442695, %v1776_v15 }
 0x376   :  { %v10626_v34 = vmul.f32 -1.442695, %v1777_v11 }
 0x378   :  { %12374 = vpow2.f32 %v10626_v34 }
 0x379   :  { %12376 = vpow2.f32 %v10625_v8 }
 0x382   :  { %v12375_v33 = vpop.eup %12374 }
 0x383   :  { %v12377_v13 = vpop.eup %12376  ;;  %v1790_v19 = vadd.f32 1.0, %v12375_v33 }
 0x384   :  { %v1789_v4 = vadd.f32 1.0, %v12377_v13 }
 0x385   :  { %12378 = vrcp.f32 %v1790_v19 }
 0x386   :  { %12380 = vrcp.f32 %v1789_v4 }
 0x38f   :  { %v12379_v41 = vpop.eup %12378 }
 0x390   :  { %v12381_v12 = vpop.eup %12380  ;;  %v1799_v8 = vmul.f32 0.0, %v12379_v41 }
 0x392   :  { %v1769_v40 = vpop.f32.mrb[12].mxu1 }
 0x393   :  { %v1778_v18 = vadd.f32 %v1769_v40, %v1500_v61  ;;  %v1771_v1 = vpop.f32.mrb[13].mxu1  ;;  %v12923_v40 = vmov 1966171168  }
 0x394   :  { %v1779_v16 = vadd.f32 %v1771_v1, %v1501_v6  ;;  %v1773_v58 = vpop.f32.mrb[14].mxu1  ;;  %v1806_v61 = vunpack.c.l.s4 %v12923_v40 }
 0x395   :  { %v10627_v57 = vmul.f32 -1.442695, %v1778_v18  ;;  %v1774_v3 = vpop.f32.mrb[15].mxu1 }
 0x396   :  { %12382 = vtanh.f32 %v1779_v16  ;;  %v1807_v58 = vunpack.c.0.s8 %v1806_v61 }
 0x397   :  { %12384 = vpow2.f32 %v10627_v57 }
 0x398   :  { %v13646_v3 = vsub.s32 %v1807_v58, %v13239_v37  ;;  %v15962_v37 = vmov 0  }
 0x3a0   :  { %v12383_v56 = vpop.eup %12382 }
 0x3a1   :  { %v12385_v34 = vpop.eup %12384  ;;  %v1800_v15 = vmul.f32 %v12383_v56, %v12381_v12  ;;  %v15971_v12 = vld [vmem:[#allocation34_spill] sm:$0xff] }
 0x3a2   :  { %v1791_v38 = vadd.f32 1.0, %v12385_v34  ;;  %v15972_v56 = vld [vmem:[#allocation38_spill] sm:$0xff] }
 0x3a3   :  { %v13642_v11 = vadd.f32 %v1800_v15, %v1799_v8  ;;  %v15973_v34 = vsel %vm13404_vm1, %v15971_v12, %v15972_v56  ;;  %v15974_v15 = vsel %vm13520_vm4, %v13528_v7, %v13558_v60  ;;  %v15986_v12 = vsel %vm13520_vm4, %v13603_v63, %v13614_v62 }
 0x3a4   :  { %12386 = vrcp.f32 %v1791_v38 }
 0x3a5   :  { %12388 = vtanh.f32 %v13642_v11 }
 0x3ae   :  { %v12387_v6 = vpop.eup %12386 }
 0x3af   :  { %v12389_v57 = vpop.eup %12388 }
 0x3b0   :  { %v1803_v18 = vmul.f32 %v12389_v57, %v12387_v6 }
 0x3b2   :  { %v1811_v19 = vrot.slane %v1803_v18, %v13646_v3  ;;  %v1867_v13 = vpack.c.bf16 %v1803_v18, %v1803_v18 }
 0x3b4   :  { %v1812_v33 = vcombine.high %v1811_v19, %v1811_v19  ;;  %v1819_v4 = vrot.slane %v1811_v19, %v13646_v3  ;;  %2093 = vmatmul.mubr.bf16.vlgmr.msra.gmra.mrb[4].mxu0 %v1867_v13  ;;  %2134 = vmatmul.mubr.bf16.vlgmr.msra.gmra.mrb[16].mxu1 %v1867_v13 }
 0x3b5   :  { %2429 = vmatpush1.bf16.msra.mxu0 %v13148_v20  ;;  %2470 = vmatpush1.bf16.msra.mxu1 %v13281_v42 }
 0x3b6   :  { %v1826_v1 = vrot.slane %v1812_v33, %v13646_v3  ;;  %1830 = vst.msk [vmem:[#allocation2] sm:$0x1] %vm1829_vm5, %v1819_v4  ;;  %2430 = vmatprep.subr.bf16.mxu0 %v13154_v21  ;;  %2471 = vmatprep.subr.bf16.mxu1 %v13287_v43  ;;  %v15963_v21 = vld [vmem:[#allocation26_spill] sm:$0xff] }
 0x3b7   :  { %1833 = vst.msk [vmem:[#allocation2 + $0x7] sm:$0x1] %vm1832_vm6, %v1819_v4  ;;  %2460 = vmatprep.mubr.bf16.mxu0 %v15962_v37  ;;  %2501 = vmatprep.mubr.bf16.mxu1 %v15962_v37 }
 0x3b8   :  { %1831 = vst.msk [vmem:[#allocation2 + $0x8] sm:$0x1] %vm1829_vm5, %v1826_v1 }
 0x3b9   :  { %1834 = vst.msk [vmem:[#allocation2 + $0xf] sm:$0x1] %vm1832_vm6, %v1826_v1  ;;  %2431 = vmatpush1.bf16.msra.mxu0 %v13160_v22  ;;  %2472 = vmatpush1.bf16.msra.mxu1 %v13294_v44  ;;  %v15964_v22 = vld [vmem:[#allocation31_spill] sm:$0xff] }
 0x3ba   :  { %2432 = vmatprep.subr.bf16.mxu0 %v13166_v23  ;;  %2473 = vmatprep.subr.bf16.mxu1 %v13301_v45  ;;  %v15965_v23 = vld [vmem:[#allocation27_spill] sm:$0xff] }
 0x3bd   :  { %2433 = vmatpush1.bf16.msra.mxu0 %v13172_v24  ;;  %2474 = vmatpush1.bf16.msra.mxu1 %v13307_v46  ;;  %v15966_v24 = vld [vmem:[#allocation32_spill] sm:$0xff] }
 0x3be   :  { %2434 = vmatprep.subr.bf16.mxu0 %v13178_v25  ;;  %2475 = vmatprep.subr.bf16.mxu1 %v13313_v47  ;;  %v15967_v25 = vld [vmem:[#allocation25_spill] sm:$0xff] }
 0x3c1   :  { %2435 = vmatpush1.bf16.msra.mxu0 %v13184_v26  ;;  %2476 = vmatpush1.bf16.msra.mxu1 %v13319_v48  ;;  %v15968_v26 = vld [vmem:[#allocation30_spill] sm:$0xff] }
 0x3c2   :  { %2436 = vmatprep.subr.bf16.mxu0 %v13190_v27  ;;  %2477 = vmatprep.subr.bf16.mxu1 %v13325_v49 }
 0x3c5   :  { %2437 = vmatpush1.bf16.msra.mxu0 %v13196_v28  ;;  %2478 = vmatpush1.bf16.msra.mxu1 %v13331_v50 }
 0x3c6   :  { %2438 = vmatprep.subr.bf16.mxu0 %v13202_v29  ;;  %2479 = vmatprep.subr.bf16.mxu1 %v13337_v51  ;;  %v15969_v29 = vld [vmem:[#allocation37_spill] sm:$0xff] }
 0x3c9   :  { %2439 = vmatpush1.bf16.msra.mxu0 %v13208_v30  ;;  %2480 = vmatpush1.bf16.msra.mxu1 %v13343_v52 }
 0x3ca   :  { %2440 = vmatprep.subr.bf16.mxu0 %v13214_v31  ;;  %2481 = vmatprep.subr.bf16.mxu1 %v13349_v53  ;;  %v15970_v31 = vsel %vm13516_vm3, %v13525_v17, %v13537_v14 }
 0x3cd   :  { %2441 = vmatpush1.bf16.msra.mxu0 %v13220_v32  ;;  %2482 = vmatpush1.bf16.msra.mxu1 %v13355_v54 }
 0x3ce   :  { %2442 = vmatprep.subr.bf16.mxu0 %v15963_v21  ;;  %2483 = vmatprep.subr.bf16.mxu1 %v15964_v22 }
 0x3d1   :  { %2443 = vmatpush1.bf16.msra.mxu0 %v15965_v23  ;;  %2484 = vmatpush1.bf16.msra.mxu1 %v15966_v24 }
 0x3d2   :  { %2796 = vmatprep.subr.bf16.mxu0 %v15967_v25  ;;  %2837 = vmatprep.subr.bf16.mxu1 %v15968_v26 }
 0x487   :  { %v2094_v27 = vpop.f32.mrb[4].mxu0  ;;  %v2135_v28 = vpop.f32.mrb[16].mxu1 }
 0x488   :  { %v2142_v30 = vadd.f32 %v2094_v27, %v15969_v29  ;;  %v2144_v32 = vadd.f32 %v2135_v28, %v15970_v31  ;;  %v2096_v16 = vpop.f32.mrb[5].mxu0  ;;  %v2137_v41 = vpop.f32.mrb[17].mxu1 }
 0x489   :  { %v2143_v8 = vadd.f32 %v2096_v16, %v15973_v34  ;;  %v2145_v38 = vadd.f32 %v2137_v41, %v15974_v15  ;;  %v2098_v40 = vpop.f32.mrb[6].mxu0  ;;  %v2139_v61 = vpop.f32.mrb[18].mxu1 }
 0x48a   :  { %v10660_v58 = vmul.f32 -1.442695, %v2142_v30  ;;  %v2099_v6 = vpop.f32.mrb[7].mxu0  ;;  %v2140_v57 = vpop.f32.mrb[19].mxu1  ;;  %v10662_v19 = vmul.f32 -1.442695, %v2144_v32  ;;  %v15976_v61 = vsel %vm13516_vm3, %v13565_v2, %v13568_v39 }
 0x48b   :  { %v10661_v18 = vmul.f32 -1.442695, %v2143_v8 }
 0x48c   :  { %12390 = vpow2.f32 %v10660_v58 }
 0x48d   :  { %12392 = vpow2.f32 %v10661_v18  ;;  %v15977_v18 = vld [vmem:[#allocation39_spill] sm:$0xff] }
 0x48e   :  { %12394 = vtanh.f32 %v2145_v38  ;;  %v15975_v38 = vld [vmem:[#allocation40_spill] sm:$0xff] }
 0x48f   :  { %12396 = vpow2.f32 %v10662_v19  ;;  %v15978_v19 = vld [vmem:[#allocation41_spill] sm:$0xff] }
 0x496   :  { %v12391_v13 = vpop.eup %12390 }
 0x497   :  { %v2155_v33 = vadd.f32 1.0, %v12391_v13  ;;  %v12393_v4 = vpop.eup %12392  ;;  %v15979_v13 = vsel %vm13404_vm1, %v15977_v18, %v15978_v19 }
 0x498   :  { %v2156_v1 = vadd.f32 1.0, %v12393_v4  ;;  %v12395_v21 = vpop.eup %12394  ;;  %v15980_v4 = vsel %vm13520_vm4, %v13571_v0, %v13578_v55 }
 0x499   :  { %12398 = vrcp.f32 %v2155_v33  ;;  %v12397_v23 = vpop.eup %12396 }
 0x49a   :  { %12400 = vrcp.f32 %v2156_v1  ;;  %v2157_v28 = vadd.f32 1.0, %v12397_v23 }
 0x49c   :  { %12402 = vrcp.f32 %v2157_v28 }
 0x4a3   :  { %v12399_v25 = vpop.eup %12398 }
 0x4a4   :  { %v2166_v26 = vmul.f32 %v12399_v25, %v12395_v21  ;;  %v12401_v27 = vpop.eup %12400 }
 0x4a5   :  { %v2165_v29 = vmul.f32 %v12401_v27, %v13642_v11 }
 0x4a6   :  { %v12403_v31 = vpop.eup %12402 }
 0x4a7   :  { %v13706_v30 = vadd.f32 %v2166_v26, %v2165_v29 }
 0x4a9   :  { %12404 = vtanh.f32 %v13706_v30 }
 0x4b3   :  { %v12405_v32 = vpop.eup %12404 }
 0x4b4   :  { %v2169_v16 = vmul.f32 %v12405_v32, %v12403_v31 }
 0x4b6   :  { %v2177_v41 = vrot.slane %v2169_v16, %v13646_v3  ;;  %v2235_v34 = vpack.c.bf16 %v2169_v16, %v2169_v16 }
 0x4b8   :  { %v2178_v8 = vcombine.high %v2177_v41, %v2177_v41  ;;  %v2185_v15 = vrot.slane %v2177_v41, %v13646_v3  ;;  %2461 = vmatmul.mubr.bf16.vlgmr.msra.gmra.mrb[8].mxu0 %v2235_v34  ;;  %2502 = vmatmul.mubr.bf16.vlgmr.msra.gmra.mrb[20].mxu1 %v2235_v34 }
 0x4b9   :  { %2797 = vmatpush1.bf16.msra.mxu0 %v13148_v20  ;;  %2838 = vmatpush1.bf16.msra.mxu1 %v13281_v42  ;;  %v13737_v20 = vld [vmem:[%s15785_s4 + $0x24] ss:$16 sps:$4 sm:$0xff]   ;;  %v13742_v42 = vld [vmem:[%s15785_s4 + $0x20] ss:$16 sps:$4 sm:$0xff]  }
 0x4ba   :  { %v2192_v11 = vrot.slane %v2178_v8, %v13646_v3  ;;  %2195 = vst.msk [vmem:[#allocation2 + $0x1] sm:$0x1] %vm1829_vm5, %v2185_v15  ;;  %2839 = vmatprep.subr.bf16.mxu1 %v13287_v43  ;;  %2828 = vmatprep.mubr.bf16.mxu0 %v15962_v37  ;;  %v13749_v43 = vld [vmem:[%s15785_s4 + $0x44] ss:$16 sps:$4 sm:$0xff]  }
 0x4bb   :  { %2197 = vst.msk [vmem:[#allocation2 + $0x6] sm:$0x1] %vm1832_vm6, %v2185_v15  ;;  %2869 = vmatprep.mubr.bf16.mxu1 %v15962_v37  ;;  %2798 = vmatprep.subr.bf16.mxu0 %v13737_v20 }
 0x4bc   :  { %2196 = vst.msk [vmem:[#allocation2 + $0x9] sm:$0x1] %vm1829_vm5, %v2192_v11 }
 0x4bd   :  { %2198 = vst.msk [vmem:[#allocation2 + $0xe] sm:$0x1] %vm1832_vm6, %v2192_v11  ;;  %2840 = vmatpush1.bf16.msra.mxu1 %v13294_v44  ;;  %2799 = vmatpush1.bf16.msra.mxu0 %v13742_v42  ;;  %v13754_v44 = vld [vmem:[%s15785_s4 + $0x40] ss:$16 sps:$4 sm:$0xff]  }
 0x4be   :  { %2841 = vmatprep.subr.bf16.mxu1 %v13301_v45  ;;  %2800 = vmatprep.subr.bf16.mxu0 %v13749_v43  ;;  %v13761_v45 = vld [vmem:[%s15785_s4 + $0x64] ss:$16 sps:$4 sm:$0xff]  }
 0x4c1   :  { %2842 = vmatpush1.bf16.msra.mxu1 %v13307_v46  ;;  %2801 = vmatpush1.bf16.msra.mxu0 %v13754_v44  ;;  %v13766_v46 = vld [vmem:[%s15785_s4 + $0x60] ss:$16 sps:$4 sm:$0xff]  }
 0x4c2   :  { %2843 = vmatprep.subr.bf16.mxu1 %v13313_v47  ;;  %2802 = vmatprep.subr.bf16.mxu0 %v13761_v45  ;;  %v13772_v47 = vld [vmem:[%s15785_s4 + $0x84] ss:$16 sps:$4 sm:$0xff]  }
 0x4c5   :  { %2844 = vmatpush1.bf16.msra.mxu1 %v13319_v48  ;;  %2803 = vmatpush1.bf16.msra.mxu0 %v13766_v46  ;;  %v13778_v48 = vld [vmem:[%s15785_s4 + $0x80] ss:$16 sps:$4 sm:$0xff]  }
 0x4c6   :  { %2845 = vmatprep.subr.bf16.mxu1 %v13325_v49  ;;  %2804 = vmatprep.subr.bf16.mxu0 %v13772_v47  ;;  %v13784_v49 = vld [vmem:[%s15785_s4 + $0xa4] ss:$16 sps:$4 sm:$0xff]  }
 0x4c9   :  { %2846 = vmatpush1.bf16.msra.mxu1 %v13331_v50  ;;  %2805 = vmatpush1.bf16.msra.mxu0 %v13778_v48  ;;  %v13790_v50 = vld [vmem:[%s15785_s4 + $0xa0] ss:$16 sps:$4 sm:$0xff]  }
 0x4ca   :  { %2847 = vmatprep.subr.bf16.mxu1 %v13337_v51  ;;  %2806 = vmatprep.subr.bf16.mxu0 %v13784_v49  ;;  %v13796_v51 = vld [vmem:[%s15785_s4 + $0xc4] ss:$16 sps:$4 sm:$0xff]  }
 0x4cd   :  { %2848 = vmatpush1.bf16.msra.mxu1 %v13343_v52  ;;  %2807 = vmatpush1.bf16.msra.mxu0 %v13790_v50  ;;  %v13802_v52 = vld [vmem:[%s15785_s4 + $0xc0] ss:$16 sps:$4 sm:$0xff]  }
 0x4ce   :  { %2849 = vmatprep.subr.bf16.mxu1 %v13349_v53  ;;  %2808 = vmatprep.subr.bf16.mxu0 %v13796_v51  ;;  %v13808_v53 = vld [vmem:[%s15785_s4 + $0xe4] ss:$16 sps:$4 sm:$0xff]  }
 0x4d1   :  { %2850 = vmatpush1.bf16.msra.mxu1 %v13355_v54  ;;  %2809 = vmatpush1.bf16.msra.mxu0 %v13802_v52  ;;  %v13814_v54 = vld [vmem:[%s15785_s4 + $0xe0] ss:$16 sps:$4 sm:$0xff]  }
 0x4d2   :  { %2851 = vmatprep.subr.bf16.mxu1 %v15964_v22  ;;  %2810 = vmatprep.subr.bf16.mxu0 %v13808_v53 }
 0x4d5   :  { %2852 = vmatpush1.bf16.msra.mxu1 %v15966_v24  ;;  %2811 = vmatpush1.bf16.msra.mxu0 %v13814_v54 }
 0x58b   :  { %v2462_v22 = vpop.f32.mrb[8].mxu0  ;;  %v2503_v24 = vpop.f32.mrb[20].mxu1 }
 0x58c   :  { %v2510_v40 = vadd.f32 %v2462_v22, %v15975_v38  ;;  %v2512_v58 = vadd.f32 %v2503_v24, %v15976_v61  ;;  %v2464_v6 = vpop.f32.mrb[9].mxu0  ;;  %v2505_v57 = vpop.f32.mrb[21].mxu1 }
 0x58d   :  { %v2511_v33 = vadd.f32 %v2464_v6, %v15979_v13  ;;  %v2513_v1 = vadd.f32 %v2505_v57, %v15980_v4  ;;  %v2466_v21 = vpop.f32.mrb[10].mxu0  ;;  %v2507_v23 = vpop.f32.mrb[22].mxu1 }
 0x58e   :  { %v10695_v25 = vmul.f32 -1.442695, %v2510_v40  ;;  %v2467_v26 = vpop.f32.mrb[11].mxu0  ;;  %v2508_v27 = vpop.f32.mrb[23].mxu1  ;;  %v10697_v29 = vmul.f32 -1.442695, %v2512_v58 }
 0x58f   :  { %v10696_v28 = vmul.f32 -1.442695, %v2511_v33  ;;  %v13855_v21 = vld [vmem:[%s15785_s4 + $0xc] ss:$16 sps:$4 sm:$0xff]   ;;  %v13860_v23 = vld [vmem:[%s15785_s4] ss:$16 sps:$4 sm:$0xff]  }
 0x590   :  { %12406 = vpow2.f32 %v10695_v25  ;;  %v13865_v25 = vld [vmem:[%s15785_s4 + $0x8] ss:$16 sps:$4 sm:$0xff]   ;;  %3173 = vmatprep.subr.bf16.mxu1 %v13855_v21  ;;  %v13875_v26 = vld [vmem:[%s15785_s4 + $0x2c] ss:$16 sps:$4 sm:$0xff]  }
 0x591   :  { %12408 = vpow2.f32 %v10696_v28  ;;  %v13880_v27 = vld [vmem:[%s15785_s4 + $0x28] ss:$16 sps:$4 sm:$0xff]   ;;  %v13889_v28 = vld [vmem:[%s15785_s4 + $0x4c] ss:$16 sps:$4 sm:$0xff]  }
 0x592   :  { %12410 = vtanh.f32 %v2513_v1  ;;  %v13850_v1 = vld [vmem:[%s15785_s4 + $0x4] ss:$16 sps:$4 sm:$0xff]  }
 0x593   :  { %12412 = vpow2.f32 %v10697_v29  ;;  %3132 = vmatprep.subr.bf16.mxu0 %v13850_v1  ;;  %v13894_v29 = vld [vmem:[%s15785_s4 + $0x48] ss:$16 sps:$4 sm:$0xff]  }
 0x59a   :  { %v12407_v31 = vpop.eup %12406 }
 0x59b   :  { %v2523_v32 = vadd.f32 1.0, %v12407_v31  ;;  %v12409_v16 = vpop.eup %12408  ;;  %v13903_v31 = vld [vmem:[%s15785_s4 + $0x68] ss:$16 sps:$4 sm:$0xff]  }
 0x59c   :  { %v2524_v41 = vadd.f32 1.0, %v12409_v16  ;;  %v12411_v34 = vpop.eup %12410  ;;  %v13913_v16 = vld [vmem:[%s15785_s4 + $0x8c] ss:$16 sps:$4 sm:$0xff]  }
 0x59d   :  { %12414 = vrcp.f32 %v2523_v32  ;;  %v12413_v8 = vpop.eup %12412  ;;  %v13908_v32 = vld [vmem:[%s15785_s4 + $0x6c] ss:$16 sps:$4 sm:$0xff]  }
 0x59e   :  { %12416 = vrcp.f32 %v2524_v41  ;;  %v2525_v24 = vadd.f32 1.0, %v12413_v8  ;;  %v13921_v41 = vld [vmem:[%s15785_s4 + $0x88] ss:$16 sps:$4 sm:$0xff]  }
 0x59f   :  { %v13935_v8 = vld [vmem:[%s15785_s4 + $0xa8] ss:$16 sps:$4 sm:$0xff]  }
 0x5a0   :  { %12418 = vrcp.f32 %v2525_v24  ;;  %v13963_v24 = vld [vmem:[%s15785_s4 + $0xe8] ss:$16 sps:$4 sm:$0xff]  }
 0x5a7   :  { %v12415_v15 = vpop.eup %12414 }
 0x5a8   :  { %v2534_v11 = vmul.f32 %v12415_v15, %v12411_v34  ;;  %v12417_v22 = vpop.eup %12416  ;;  %v13928_v34 = vld [vmem:[%s15785_s4 + $0xac] ss:$16 sps:$4 sm:$0xff]  }
 0x5a9   :  { %v2533_v38 = vmul.f32 %v12417_v22, %v13706_v30  ;;  %v13942_v15 = vld [vmem:[%s15785_s4 + $0xcc] ss:$16 sps:$4 sm:$0xff]  }
 0x5aa   :  { %v12419_v61 = vpop.eup %12418  ;;  %v13956_v22 = vld [vmem:[%s15785_s4 + $0xec] ss:$16 sps:$4 sm:$0xff]  }
 0x5ab   :  { %v13835_v40 = vadd.f32 %v2534_v11, %v2533_v38  ;;  %v13949_v11 = vld [vmem:[%s15785_s4 + $0xc8] ss:$16 sps:$4 sm:$0xff]  }
 0x5ad   :  { %12420 = vtanh.f32 %v13835_v40 }
 0x5b7   :  { %v12421_v58 = vpop.eup %12420 }
 0x5b8   :  { %v2537_v6 = vmul.f32 %v12421_v58, %v12419_v61  ;;  %v15981_v58 = vld [vmem:[#allocation43_spill] sm:$0xff] }
 0x5ba   :  { %v2545_v57 = vrot.slane %v2537_v6, %v13646_v3  ;;  %v2603_v13 = vpack.c.bf16 %v2537_v6, %v2537_v6 }
 0x5bc   :  { %v2546_v33 = vcombine.high %v2545_v57, %v2545_v57  ;;  %v2553_v4 = vrot.slane %v2545_v57, %v13646_v3  ;;  %2829 = vmatmul.mubr.bf16.vlgmr.msra.gmra.mrb[12].mxu0 %v2603_v13  ;;  %2870 = vmatmul.mubr.bf16.vlgmr.msra.gmra.mrb[24].mxu1 %v2603_v13  ;;  %v15982_v57 = vsel %vm13516_vm3, %v13585_v10, %v13588_v59 }
 0x5bd   :  { %3164 = vmatprep.mubr.bf16.mxu0 %v15962_v37  ;;  %3205 = vmatprep.mubr.bf16.mxu1 %v15962_v37 }
 0x5be   :  { %v2560_v30 = vrot.slane %v2546_v33, %v13646_v3  ;;  %2563 = vst.msk [vmem:[#allocation2 + $0x2] sm:$0x1] %vm1829_vm5, %v2553_v4  ;;  %3133 = vmatpush1.bf16.msra.mxu0 %v13860_v23  ;;  %3174 = vmatpush1.bf16.msra.mxu1 %v13865_v25 }
 0x5bf   :  { %2565 = vst.msk [vmem:[#allocation2 + $0x5] sm:$0x1] %vm1832_vm6, %v2553_v4  ;;  %3134 = vmatprep.subr.bf16.mxu0 %v13737_v20  ;;  %3175 = vmatprep.subr.bf16.mxu1 %v13875_v26 }
 0x5c0   :  { %2564 = vst.msk [vmem:[#allocation2 + $0xa] sm:$0x1] %vm1829_vm5, %v2560_v30 }
 0x5c1   :  { %2566 = vst.msk [vmem:[#allocation2 + $0xd] sm:$0x1] %vm1832_vm6, %v2560_v30  ;;  %v15983_v30 = vld [vmem:[#allocation44_spill] sm:$0xff] }
 0x5c2   :  { %3135 = vmatpush1.bf16.msra.mxu0 %v13742_v42  ;;  %3176 = vmatpush1.bf16.msra.mxu1 %v13880_v27  ;;  %v15985_v7 = vsel %vm13404_vm1, %v15983_v30, %v15984_v5 }
 0x5c3   :  { %3136 = vmatprep.subr.bf16.mxu0 %v13749_v43  ;;  %3177 = vmatprep.subr.bf16.mxu1 %v13889_v28 }
 0x5c6   :  { %3137 = vmatpush1.bf16.msra.mxu0 %v13754_v44  ;;  %3178 = vmatpush1.bf16.msra.mxu1 %v13894_v29 }
 0x5c7   :  { %3138 = vmatprep.subr.bf16.mxu0 %v13761_v45  ;;  %3179 = vmatprep.subr.bf16.mxu1 %v13908_v32 }
 0x5ca   :  { %3139 = vmatpush1.bf16.msra.mxu0 %v13766_v46  ;;  %3180 = vmatpush1.bf16.msra.mxu1 %v13903_v31 }
 0x5cb   :  { %3140 = vmatprep.subr.bf16.mxu0 %v13772_v47  ;;  %3181 = vmatprep.subr.bf16.mxu1 %v13913_v16 }
 0x5ce   :  { %3141 = vmatpush1.bf16.msra.mxu0 %v13778_v48  ;;  %3182 = vmatpush1.bf16.msra.mxu1 %v13921_v41 }
 0x5cf   :  { %3142 = vmatprep.subr.bf16.mxu0 %v13784_v49  ;;  %3183 = vmatprep.subr.bf16.mxu1 %v13928_v34 }
 0x5d2   :  { %3143 = vmatpush1.bf16.msra.mxu0 %v13790_v50  ;;  %3184 = vmatpush1.bf16.msra.mxu1 %v13935_v8 }
 0x5d3   :  { %3144 = vmatprep.subr.bf16.mxu0 %v13796_v51  ;;  %3185 = vmatprep.subr.bf16.mxu1 %v13942_v15 }
 0x5d6   :  { %3145 = vmatpush1.bf16.msra.mxu0 %v13802_v52  ;;  %3186 = vmatpush1.bf16.msra.mxu1 %v13949_v11 }
 0x5d7   :  { %3146 = vmatprep.subr.bf16.mxu0 %v13808_v53  ;;  %3187 = vmatprep.subr.bf16.mxu1 %v13956_v22 }
 0x5da   :  { %3147 = vmatpush1.bf16.msra.mxu0 %v13814_v54  ;;  %3188 = vmatpush1.bf16.msra.mxu1 %v13963_v24 }
 0x5db   :  { %3468 = vmatprep.subr.bf16.mxu0 %v13850_v1  ;;  %3509 = vmatprep.subr.bf16.mxu1 %v13855_v21 }
 0x68f   :  { %v2830_v38 = vpop.f32.mrb[12].mxu0  ;;  %v2871_v61 = vpop.f32.mrb[24].mxu1 }
 0x690   :  { %v2878_v6 = vadd.f32 %v2830_v38, %v15981_v58  ;;  %v2880_v13 = vadd.f32 %v2871_v61, %v15982_v57  ;;  %v2832_v33 = vpop.f32.mrb[13].mxu0  ;;  %v2873_v4 = vpop.f32.mrb[25].mxu1 }
 0x691   :  { %v2879_v60 = vadd.f32 %v2832_v33, %v15985_v7  ;;  %v2881_v38 = vadd.f32 %v2873_v4, %v15986_v12  ;;  %v2834_v58 = vpop.f32.mrb[14].mxu0  ;;  %v2875_v56 = vpop.f32.mrb[26].mxu1 }
 0x692   :  { %v10730_v17 = vmul.f32 -1.442695, %v2878_v6  ;;  %v2835_v14 = vpop.f32.mrb[15].mxu0  ;;  %v2876_v0 = vpop.f32.mrb[27].mxu1  ;;  %v10732_v57 = vmul.f32 -1.442695, %v2880_v13 }
 0x693   :  { %v10731_v61 = vmul.f32 -1.442695, %v2879_v60 }
 0x694   :  { %12422 = vpow2.f32 %v10730_v17 }
 0x695   :  { %12424 = vpow2.f32 %v10731_v61  ;;  %v15987_v61 = vld [vmem:[#allocation45_spill] sm:$0xff] }
 0x696   :  { %12426 = vtanh.f32 %v2881_v38 }
 0x697   :  { %12428 = vpow2.f32 %v10732_v57 }
 0x69e   :  { %v12423_v55 = vpop.eup %12422 }
 0x69f   :  { %v2891_v18 = vadd.f32 1.0, %v12423_v55  ;;  %v12425_v19 = vpop.eup %12424 }
 0x6a0   :  { %v2892_v7 = vadd.f32 1.0, %v12425_v19  ;;  %v12427_v33 = vpop.eup %12426 }
 0x6a1   :  { %12430 = vrcp.f32 %v2891_v18  ;;  %v12429_v2 = vpop.eup %12428 }
 0x6a2   :  { %12432 = vrcp.f32 %v2892_v7  ;;  %v2893_v6 = vadd.f32 1.0, %v12429_v2  ;;  %v15988_v7 = vsel %vm13516_vm3, %v13588_v59, %v13585_v10 }
 0x6a4   :  { %12434 = vrcp.f32 %v2893_v6 }
 0x6ab   :  { %v12431_v12 = vpop.eup %12430 }
 0x6ac   :  { %v2902_v4 = vmul.f32 %v12431_v12, %v12427_v33  ;;  %v12433_v56 = vpop.eup %12432 }
 0x6ad   :  { %v2901_v14 = vmul.f32 %v12433_v56, %v13835_v40  ;;  %v15989_v56 = vsel %vm13404_vm1, %v15984_v5, %v15983_v30 }
 0x6ae   :  { %v12435_v55 = vpop.eup %12434 }
 0x6af   :  { %v13988_v60 = vadd.f32 %v2902_v4, %v2901_v14  ;;  %v15990_v14 = vsel %vm13520_vm4, %v13614_v62, %v13603_v63 }
 0x6b1   :  { %12436 = vtanh.f32 %v13988_v60 }
 0x6bb   :  { %v12437_v17 = vpop.eup %12436 }
 0x6bc   :  { %v2905_v0 = vmul.f32 %v12437_v17, %v12435_v55 }
 0x6be   :  { %v2913_v18 = vrot.slane %v2905_v0, %v13646_v3  ;;  %v2939_v19 = vpack.c.bf16 %v2905_v0, %v2905_v0 }
 0x6c0   :  { %v2914_v13 = vcombine.high %v2913_v18, %v2913_v18  ;;  %v2921_v38 = vrot.slane %v2913_v18, %v13646_v3  ;;  %3165 = vmatmul.mubr.bf16.vlgmr.msra.gmra.mrb[16].mxu0 %v2939_v19  ;;  %3206 = vmatmul.mubr.bf16.vlgmr.msra.gmra.mrb[28].mxu1 %v2939_v19 }
 0x6c1   :  { %3469 = vmatpush1.bf16.msra.mxu0 %v13860_v23  ;;  %3510 = vmatpush1.bf16.msra.mxu1 %v13865_v25 }
 0x6c2   :  { %v2928_v2 = vrot.slane %v2914_v13, %v13646_v3  ;;  %2931 = vst.msk [vmem:[#allocation2 + $0x3] sm:$0x1] %vm1829_vm5, %v2921_v38  ;;  %3470 = vmatprep.subr.bf16.mxu0 %v13737_v20  ;;  %3511 = vmatprep.subr.bf16.mxu1 %v13875_v26 }
 0x6c3   :  { %2933 = vst.msk [vmem:[#allocation2 + $0x4] sm:$0x1] %vm1832_vm6, %v2921_v38  ;;  %3500 = vmatprep.mubr.bf16.mxu0 %v15962_v37  ;;  %3541 = vmatprep.mubr.bf16.mxu1 %v15962_v37 }
 0x6c4   :  { %2932 = vst.msk [vmem:[#allocation2 + $0xb] sm:$0x1] %vm1829_vm5, %v2928_v2 }
 0x6c5   :  { %2934 = vst.msk [vmem:[#allocation2 + $0xc] sm:$0x1] %vm1832_vm6, %v2928_v2  ;;  %3471 = vmatpush1.bf16.msra.mxu0 %v13742_v42  ;;  %3512 = vmatpush1.bf16.msra.mxu1 %v13880_v27 }
 0x6c6   :  { %3472 = vmatprep.subr.bf16.mxu0 %v13749_v43  ;;  %3513 = vmatprep.subr.bf16.mxu1 %v13889_v28 }
 0x6c9   :  { %3473 = vmatpush1.bf16.msra.mxu0 %v13754_v44  ;;  %3514 = vmatpush1.bf16.msra.mxu1 %v13894_v29 }
 0x6ca   :  { %3474 = vmatprep.subr.bf16.mxu0 %v13761_v45  ;;  %3515 = vmatprep.subr.bf16.mxu1 %v13908_v32 }
 0x6cd   :  { %3475 = vmatpush1.bf16.msra.mxu0 %v13766_v46  ;;  %3516 = vmatpush1.bf16.msra.mxu1 %v13903_v31 }
 0x6ce   :  { %3476 = vmatprep.subr.bf16.mxu0 %v13772_v47  ;;  %3517 = vmatprep.subr.bf16.mxu1 %v13913_v16 }
 0x6d1   :  { %3477 = vmatpush1.bf16.msra.mxu0 %v13778_v48  ;;  %3518 = vmatpush1.bf16.msra.mxu1 %v13921_v41 }
 0x6d2   :  { %3478 = vmatprep.subr.bf16.mxu0 %v13784_v49  ;;  %3519 = vmatprep.subr.bf16.mxu1 %v13928_v34 }
 0x6d5   :  { %3479 = vmatpush1.bf16.msra.mxu0 %v13790_v50  ;;  %3520 = vmatpush1.bf16.msra.mxu1 %v13935_v8 }
 0x6d6   :  { %3480 = vmatprep.subr.bf16.mxu0 %v13796_v51  ;;  %3521 = vmatprep.subr.bf16.mxu1 %v13942_v15 }
 0x6d9   :  { %3481 = vmatpush1.bf16.msra.mxu0 %v13802_v52  ;;  %3522 = vmatpush1.bf16.msra.mxu1 %v13949_v11 }
 0x6da   :  { %3482 = vmatprep.subr.bf16.mxu0 %v13808_v53  ;;  %3523 = vmatprep.subr.bf16.mxu1 %v13956_v22 }
 0x6dd   :  { %3483 = vmatpush1.bf16.msra.mxu0 %v13814_v54  ;;  %3524 = vmatpush1.bf16.msra.mxu1 %v13963_v24 }
 0x6de   :  { %3804 = vmatprep.subr.bf16.mxu0 %v13850_v1  ;;  %3845 = vmatprep.subr.bf16.mxu1 %v13855_v21 }
 0x793   :  { %v3166_v40 = vpop.f32.mrb[16].mxu0  ;;  %v3207_v58 = vpop.f32.mrb[28].mxu1 }
 0x794   :  { %v3214_v57 = vadd.f32 %v3166_v40, %v15987_v61  ;;  %v3216_v33 = vadd.f32 %v3207_v58, %v15988_v7  ;;  %v3168_v12 = vpop.f32.mrb[17].mxu0  ;;  %v3209_v4 = vpop.f32.mrb[29].mxu1 }
 0x795   :  { %v3215_v6 = vadd.f32 %v3168_v12, %v15989_v56  ;;  %v3217_v55 = vadd.f32 %v3209_v4, %v15990_v14  ;;  %v3170_v17 = vpop.f32.mrb[18].mxu0  ;;  %v3211_v0 = vpop.f32.mrb[30].mxu1 }
 0x796   :  { %v10765_v18 = vmul.f32 -1.442695, %v3214_v57  ;;  %v3171_v19 = vpop.f32.mrb[19].mxu0  ;;  %v3212_v10 = vpop.f32.mrb[31].mxu1  ;;  %v10767_v13 = vmul.f32 -1.442695, %v3216_v33 }
 0x797   :  { %v10766_v59 = vmul.f32 -1.442695, %v3215_v6 }
 0x798   :  { %12438 = vpow2.f32 %v10765_v18 }
 0x799   :  { %12440 = vpow2.f32 %v10766_v59 }
 0x79a   :  { %12442 = vtanh.f32 %v3217_v55 }
 0x79b   :  { %12444 = vpow2.f32 %v10767_v13 }
 0x7a2   :  { %v12439_v38 = vpop.eup %12438 }
 0x7a3   :  { %v3227_v2 = vadd.f32 1.0, %v12439_v38  ;;  %v12441_v5 = vpop.eup %12440 }
 0x7a4   :  { %v3228_v30 = vadd.f32 1.0, %v12441_v5  ;;  %v12443_v40 = vpop.eup %12442 }
 0x7a5   :  { %12446 = vrcp.f32 %v3227_v2  ;;  %v12445_v63 = vpop.eup %12444 }
 0x7a6   :  { %12448 = vrcp.f32 %v3228_v30  ;;  %v3229_v57 = vadd.f32 1.0, %v12445_v63 }
 0x7a8   :  { %12450 = vrcp.f32 %v3229_v57 }
 0x7af   :  { %v12447_v62 = vpop.eup %12446 }
 0x7b0   :  { %v3238_v58 = vmul.f32 %v12447_v62, %v12443_v40  ;;  %v12449_v61 = vpop.eup %12448 }
 0x7b1   :  { %v3237_v7 = vmul.f32 %v12449_v61, %v13988_v60 }
 0x7b2   :  { %v12451_v33 = vpop.eup %12450 }
 0x7b3   :  { %v14049_v12 = vadd.f32 %v3238_v58, %v3237_v7 }
 0x7b5   :  { %12452 = vtanh.f32 %v14049_v12 }
 0x7bf   :  { %v12453_v4 = vpop.eup %12452 }
 0x7c0   :  { %v3241_v56 = vmul.f32 %v12453_v4, %v12451_v33 }
 0x7c2   :  { %v3249_v6 = vrot.slane %v3241_v56, %v13646_v3  ;;  %v3275_v14 = vpack.c.bf16 %v3241_v56, %v3241_v56 }
 0x7c4   :  { %v3250_v55 = vcombine.high %v3249_v6, %v3249_v6  ;;  %v3257_v17 = vrot.slane %v3249_v6, %v13646_v3  ;;  %3501 = vmatmul.mubr.bf16.vlgmr.msra.gmra.mrb[20].mxu0 %v3275_v14  ;;  %3542 = vmatmul.mubr.bf16.vlgmr.msra.gmra.mrb[32].mxu1 %v3275_v14 }
 0x7c5   :  { %3805 = vmatpush1.bf16.msra.mxu0 %v13860_v23  ;;  %3846 = vmatpush1.bf16.msra.mxu1 %v13865_v25 }
 0x7c6   :  { %v3264_v60 = vrot.slane %v3250_v55, %v13646_v3  ;;  %3267 = vst.msk [vmem:[#allocation2 + $0x4] sm:$0x1] %vm1829_vm5, %v3257_v17  ;;  %3806 = vmatprep.subr.bf16.mxu0 %v13737_v20  ;;  %3847 = vmatprep.subr.bf16.mxu1 %v13875_v26 }
 0x7c7   :  { %3269 = vst.msk [vmem:[#allocation2 + $0x3] sm:$0x1] %vm1832_vm6, %v3257_v17  ;;  %3836 = vmatprep.mubr.bf16.mxu0 %v15962_v37  ;;  %3877 = vmatprep.mubr.bf16.mxu1 %v15962_v37 }
 0x7c8   :  { %3268 = vst.msk [vmem:[#allocation2 + $0xc] sm:$0x1] %vm1829_vm5, %v3264_v60 }
 0x7c9   :  { %3270 = vst.msk [vmem:[#allocation2 + $0xb] sm:$0x1] %vm1832_vm6, %v3264_v60  ;;  %3807 = vmatpush1.bf16.msra.mxu0 %v13742_v42  ;;  %3848 = vmatpush1.bf16.msra.mxu1 %v13880_v27 }
 0x7ca   :  { %3808 = vmatprep.subr.bf16.mxu0 %v13749_v43  ;;  %3849 = vmatprep.subr.bf16.mxu1 %v13889_v28  ;;  %v15991_v43 = vld [vmem:[#allocation42_spill] sm:$0xff] }
 0x7cd   :  { %3809 = vmatpush1.bf16.msra.mxu0 %v13754_v44  ;;  %3850 = vmatpush1.bf16.msra.mxu1 %v13894_v29 }
 0x7ce   :  { %3810 = vmatprep.subr.bf16.mxu0 %v13761_v45  ;;  %3851 = vmatprep.subr.bf16.mxu1 %v13908_v32  ;;  %v15992_v45 = vld [vmem:[#allocation59_spill] sm:$0xff] }
 0x7d1   :  { %3811 = vmatpush1.bf16.msra.mxu0 %v13766_v46  ;;  %3852 = vmatpush1.bf16.msra.mxu1 %v13903_v31  ;;  %v15993_v46 = vsel %vm13516_vm3, %v13568_v39, %v15992_v45  ;;  %v16002_v45 = vld [vmem:[#allocation51_spill] sm:$0xff] }
 0x7d2   :  { %3812 = vmatprep.subr.bf16.mxu0 %v13772_v47  ;;  %3853 = vmatprep.subr.bf16.mxu1 %v13913_v16 }
 0x7d5   :  { %3813 = vmatpush1.bf16.msra.mxu0 %v13778_v48  ;;  %3854 = vmatpush1.bf16.msra.mxu1 %v13921_v41 }
 0x7d6   :  { %3814 = vmatprep.subr.bf16.mxu0 %v13784_v49  ;;  %3855 = vmatprep.subr.bf16.mxu1 %v13928_v34 }
 0x7d9   :  { %3815 = vmatpush1.bf16.msra.mxu0 %v13790_v50  ;;  %3856 = vmatpush1.bf16.msra.mxu1 %v13935_v8  ;;  %v15994_v50 = vld [vmem:[#allocation41_spill] sm:$0xff] }
 0x7da   :  { %3816 = vmatprep.subr.bf16.mxu0 %v13796_v51  ;;  %3857 = vmatprep.subr.bf16.mxu1 %v13942_v15  ;;  %v15995_v51 = vld [vmem:[#allocation39_spill] sm:$0xff] }
 0x7dd   :  { %3817 = vmatpush1.bf16.msra.mxu0 %v13802_v52  ;;  %3858 = vmatpush1.bf16.msra.mxu1 %v13949_v11  ;;  %v15996_v52 = vsel %vm13404_vm1, %v15994_v50, %v15995_v51  ;;  %v16004_v50 = vld [vmem:[#allocation38_spill] sm:$0xff] }
 0x7de   :  { %3818 = vmatprep.subr.bf16.mxu0 %v13808_v53  ;;  %3859 = vmatprep.subr.bf16.mxu1 %v13956_v22  ;;  %v16005_v51 = vld [vmem:[#allocation34_spill] sm:$0xff] }
 0x7e1   :  { %3819 = vmatpush1.bf16.msra.mxu0 %v13814_v54  ;;  %3860 = vmatpush1.bf16.msra.mxu1 %v13963_v24  ;;  %v15997_v54 = vld [vmem:[#allocation61_spill] sm:$0xff] }
 0x7e2   :  { %4140 = vmatprep.subr.bf16.mxu0 %v13850_v1  ;;  %4181 = vmatprep.subr.bf16.mxu1 %v13855_v21  ;;  %v15998_v1 = vld [vmem:[#allocation60_spill] sm:$0xff] }
 0x7e3   :  { %v15999_v21 = vsel %vm13520_vm4, %v15997_v54, %v15998_v1  ;;  %v16007_v54 = vld [vmem:[#allocation58_spill] sm:$0xff]  ;;  %v16008_v1 = vld [vmem:[#allocation52_spill] sm:$0xff] }
 0x897   :  { %v3502_v20 = vpop.f32.mrb[20].mxu0  ;;  %v3543_v42 = vpop.f32.mrb[32].mxu1 }
 0x898   :  { %v3550_v44 = vadd.f32 %v3502_v20, %v15991_v43  ;;  %v3552_v47 = vadd.f32 %v3543_v42, %v15993_v46  ;;  %v3504_v48 = vpop.f32.mrb[21].mxu0  ;;  %v3545_v49 = vpop.f32.mrb[33].mxu1  ;;  %v16000_v42 = vld [vmem:[#allocation46_spill] sm:$0xff] }
 0x899   :  { %v3551_v53 = vadd.f32 %v3504_v48, %v15996_v52  ;;  %v3553_v0 = vadd.f32 %v3545_v49, %v15999_v21  ;;  %v3506_v18 = vpop.f32.mrb[22].mxu0  ;;  %v3547_v19 = vpop.f32.mrb[34].mxu1  ;;  %v16006_v52 = vsel %vm13404_vm1, %v16004_v50, %v16005_v51  ;;  %v16009_v21 = vsel %vm13520_vm4, %v16007_v54, %v16008_v1  ;;  %v12148_v50 = vld [vmem:[#allocation10 + $0xc4] ss:$16 sps:$4 sm:$0xff]   ;;  %v12146_v51 = vld [vmem:[#allocation10 + $0xc0] ss:$16 sps:$4 sm:$0xff]  }
 0x89a   :  { %v10800_v10 = vmul.f32 -1.442695, %v3550_v44  ;;  %v3507_v59 = vpop.f32.mrb[23].mxu0  ;;  %v3548_v39 = vpop.f32.mrb[35].mxu1  ;;  %v10802_v38 = vmul.f32 -1.442695, %v3552_v47 }
 0x89b   :  { %v10801_v13 = vmul.f32 -1.442695, %v3551_v53  ;;  %v16001_v44 = vld [vmem:[#allocation55_spill] sm:$0xff]  ;;  %v12157_v1 = vld [vmem:[#allocation10 + $0xec] ss:$16 sps:$4 sm:$0xff]  }
 0x89c   :  { %12454 = vpow2.f32 %v10800_v10  ;;  %v16003_v46 = vsel %vm13516_vm3, %v16001_v44, %v16002_v45  ;;  %v12134_v44 = vld [vmem:[#allocation10 + $0x80] ss:$16 sps:$4 sm:$0xff]   ;;  %v12137_v45 = vld [vmem:[#allocation10 + $0x88] ss:$16 sps:$4 sm:$0xff]   ;;  %v12154_v54 = vld [vmem:[#allocation10 + $0xe4] ss:$16 sps:$4 sm:$0xff]  }
 0x89d   :  { %12456 = vpow2.f32 %v10801_v13 }
 0x89e   :  { %12458 = vtanh.f32 %v3553_v0 }
 0x89f   :  { %12460 = vpow2.f32 %v10802_v38 }
 0x8a6   :  { %v12455_v2 = vpop.eup %12454 }
 0x8a7   :  { %v3563_v5 = vadd.f32 1.0, %v12455_v2  ;;  %v12457_v30 = vpop.eup %12456 }
 0x8a8   :  { %v3564_v40 = vadd.f32 1.0, %v12457_v30  ;;  %v12459_v63 = vpop.eup %12458 }
 0x8a9   :  { %12462 = vrcp.f32 %v3563_v5  ;;  %v12461_v62 = vpop.eup %12460 }
 0x8aa   :  { %12464 = vrcp.f32 %v3564_v40  ;;  %v3565_v7 = vadd.f32 1.0, %v12461_v62 }
 0x8ac   :  { %12466 = vrcp.f32 %v3565_v7 }
 0x8b3   :  { %v12463_v58 = vpop.eup %12462 }
 0x8b4   :  { %v3574_v61 = vmul.f32 %v12463_v58, %v12459_v63  ;;  %v12465_v57 = vpop.eup %12464 }
 0x8b5   :  { %v3573_v33 = vmul.f32 %v12465_v57, %v14049_v12 }
 0x8b6   :  { %v12467_v56 = vpop.eup %12466 }
 0x8b7   :  { %v14110_v4 = vadd.f32 %v3574_v61, %v3573_v33 }
 0x8b9   :  { %12468 = vtanh.f32 %v14110_v4 }
 0x8c3   :  { %v12469_v6 = vpop.eup %12468 }
 0x8c4   :  { %v3577_v14 = vmul.f32 %v12469_v6, %v12467_v56 }
 0x8c6   :  { %v3585_v55 = vrot.slane %v3577_v14, %v13646_v3  ;;  %v3611_v17 = vpack.c.bf16 %v3577_v14, %v3577_v14 }
 0x8c8   :  { %v3586_v60 = vcombine.high %v3585_v55, %v3585_v55  ;;  %v3593_v20 = vrot.slane %v3585_v55, %v13646_v3  ;;  %3837 = vmatmul.mubr.bf16.vlgmr.msra.gmra.mrb[24].mxu0 %v3611_v17  ;;  %3878 = vmatmul.mubr.bf16.vlgmr.msra.gmra.mrb[36].mxu1 %v3611_v17 }
 0x8c9   :  { %4141 = vmatpush1.bf16.msra.mxu0 %v13860_v23  ;;  %4182 = vmatpush1.bf16.msra.mxu1 %v13865_v25  ;;  %v12091_v23 = vld [vmem:[%s15785_s4 + $0x24] ss:$16 sps:$4 sm:$0xff]   ;;  %v12089_v25 = vld [vmem:[%s15785_s4 + $0x20] ss:$16 sps:$4 sm:$0xff]  }
 0x8ca   :  { %v3600_v12 = vrot.slane %v3586_v60, %v13646_v3  ;;  %3603 = vst.msk [vmem:[#allocation2 + $0x5] sm:$0x1] %vm1829_vm5, %v3593_v20  ;;  %4183 = vmatprep.subr.bf16.mxu1 %v13875_v26  ;;  %4172 = vmatprep.mubr.bf16.mxu0 %v15962_v37  ;;  %v12094_v26 = vld [vmem:[%s15785_s4 + $0x44] ss:$16 sps:$4 sm:$0xff]  }
 0x8cb   :  { %3605 = vst.msk [vmem:[#allocation2 + $0x2] sm:$0x1] %vm1832_vm6, %v3593_v20  ;;  %4213 = vmatprep.mubr.bf16.mxu1 %v15962_v37  ;;  %4142 = vmatprep.subr.bf16.mxu0 %v12091_v23  ;;  %v12112_v23 = vld [vmem:[#allocation10 + $0x4] ss:$16 sps:$4 sm:$0xff]  }
 0x8cc   :  { %3604 = vst.msk [vmem:[#allocation2 + $0xd] sm:$0x1] %vm1829_vm5, %v3600_v12 }
 0x8cd   :  { %3606 = vst.msk [vmem:[#allocation2 + $0xa] sm:$0x1] %vm1832_vm6, %v3600_v12  ;;  %4184 = vmatpush1.bf16.msra.mxu1 %v13880_v27  ;;  %4143 = vmatpush1.bf16.msra.mxu0 %v12089_v25  ;;  %v12092_v27 = vld [vmem:[%s15785_s4 + $0x40] ss:$16 sps:$4 sm:$0xff]   ;;  %v12115_v25 = vld [vmem:[#allocation10 + $0xc] ss:$16 sps:$4 sm:$0xff]  }
 0x8ce   :  { %4185 = vmatprep.subr.bf16.mxu1 %v13889_v28  ;;  %4144 = vmatprep.subr.bf16.mxu0 %v12094_v26  ;;  %v12097_v28 = vld [vmem:[%s15785_s4 + $0x64] ss:$16 sps:$4 sm:$0xff]   ;;  %v12110_v26 = vld [vmem:[#allocation10] ss:$16 sps:$4 sm:$0xff]  }
 0x8d1   :  { %4186 = vmatpush1.bf16.msra.mxu1 %v13894_v29  ;;  %4145 = vmatpush1.bf16.msra.mxu0 %v12092_v27  ;;  %v12095_v29 = vld [vmem:[%s15785_s4 + $0x60] ss:$16 sps:$4 sm:$0xff]   ;;  %v12113_v27 = vld [vmem:[#allocation10 + $0x8] ss:$16 sps:$4 sm:$0xff]  }
 0x8d2   :  { %4187 = vmatprep.subr.bf16.mxu1 %v13908_v32  ;;  %4146 = vmatprep.subr.bf16.mxu0 %v12097_v28  ;;  %v12100_v32 = vld [vmem:[%s15785_s4 + $0x84] ss:$16 sps:$4 sm:$0xff]  }
 0x8d3   :  { %v12118_v28 = vld [vmem:[#allocation10 + $0x24] ss:$16 sps:$4 sm:$0xff]  }
 0x8d5   :  { %4188 = vmatpush1.bf16.msra.mxu1 %v13903_v31  ;;  %4147 = vmatpush1.bf16.msra.mxu0 %v12095_v29  ;;  %v12098_v31 = vld [vmem:[%s15785_s4 + $0x80] ss:$16 sps:$4 sm:$0xff]   ;;  %v12121_v29 = vld [vmem:[#allocation10 + $0x2c] ss:$16 sps:$4 sm:$0xff]  }
 0x8d6   :  { %4189 = vmatprep.subr.bf16.mxu1 %v13913_v16  ;;  %v12103_v16 = vld [vmem:[%s15785_s4 + $0xa4] ss:$16 sps:$4 sm:$0xff]   ;;  %4148 = vmatprep.subr.bf16.mxu0 %v12100_v32  ;;  %v12119_v32 = vld [vmem:[#allocation10 + $0x28] ss:$16 sps:$4 sm:$0xff]  }
 0x8d9   :  { %4190 = vmatpush1.bf16.msra.mxu1 %v13921_v41  ;;  %4149 = vmatpush1.bf16.msra.mxu0 %v12098_v31  ;;  %v12101_v41 = vld [vmem:[%s15785_s4 + $0xa0] ss:$16 sps:$4 sm:$0xff]  }
 0x8da   :  { %4191 = vmatprep.subr.bf16.mxu1 %v13928_v34  ;;  %4150 = vmatprep.subr.bf16.mxu0 %v12103_v16  ;;  %v12106_v34 = vld [vmem:[%s15785_s4 + $0xc4] ss:$16 sps:$4 sm:$0xff]   ;;  %v12116_v31 = vld [vmem:[#allocation10 + $0x20] ss:$16 sps:$4 sm:$0xff]  }
 0x8db   :  { %v12124_v16 = vld [vmem:[#allocation10 + $0x44] ss:$16 sps:$4 sm:$0xff]  }
 0x8dd   :  { %4192 = vmatpush1.bf16.msra.mxu1 %v13935_v8  ;;  %4151 = vmatpush1.bf16.msra.mxu0 %v12101_v41  ;;  %v12104_v8 = vld [vmem:[%s15785_s4 + $0xc0] ss:$16 sps:$4 sm:$0xff]   ;;  %v12127_v41 = vld [vmem:[#allocation10 + $0x4c] ss:$16 sps:$4 sm:$0xff]  }
 0x8de   :  { %4193 = vmatprep.subr.bf16.mxu1 %v13942_v15  ;;  %4152 = vmatprep.subr.bf16.mxu0 %v12106_v34  ;;  %v12109_v15 = vld [vmem:[%s15785_s4 + $0xe4] ss:$16 sps:$4 sm:$0xff]   ;;  %v12122_v34 = vld [vmem:[#allocation10 + $0x40] ss:$16 sps:$4 sm:$0xff]  }
 0x8e1   :  { %4194 = vmatpush1.bf16.msra.mxu1 %v13949_v11  ;;  %4153 = vmatpush1.bf16.msra.mxu0 %v12104_v8  ;;  %v12107_v11 = vld [vmem:[%s15785_s4 + $0xe0] ss:$16 sps:$4 sm:$0xff]   ;;  %v12125_v8 = vld [vmem:[#allocation10 + $0x48] ss:$16 sps:$4 sm:$0xff]  }
 0x8e2   :  { %4195 = vmatprep.subr.bf16.mxu1 %v13956_v22  ;;  %4154 = vmatprep.subr.bf16.mxu0 %v12109_v15  ;;  %v12130_v15 = vld [vmem:[#allocation10 + $0x64] ss:$16 sps:$4 sm:$0xff]  }
 0x8e5   :  { %4196 = vmatpush1.bf16.msra.mxu1 %v13963_v24  ;;  %4155 = vmatpush1.bf16.msra.mxu0 %v12107_v11  ;;  %v12133_v11 = vld [vmem:[#allocation10 + $0x6c] ss:$16 sps:$4 sm:$0xff]  }
 0x8e6   :  { %4496 = vmatprep.subr.bf16.mxu0 %v12112_v23  ;;  %4539 = vmatprep.subr.bf16.mxu1 %v12115_v25 }
 0x99b   :  { %v3838_v22 = vpop.f32.mrb[24].mxu0  ;;  %v3879_v24 = vpop.f32.mrb[36].mxu1 }
 0x99c   :  { %v3886_v43 = vadd.f32 %v3838_v22, %v16000_v42  ;;  %v3888_v47 = vadd.f32 %v3879_v24, %v16003_v46  ;;  %v3840_v48 = vpop.f32.mrb[25].mxu0  ;;  %v3881_v49 = vpop.f32.mrb[37].mxu1  ;;  %v12128_v22 = vld [vmem:[#allocation10 + $0x60] ss:$16 sps:$4 sm:$0xff]   ;;  %v12131_v24 = vld [vmem:[#allocation10 + $0x68] ss:$16 sps:$4 sm:$0xff]  }
 0x99d   :  { %v3887_v53 = vadd.f32 %v3840_v48, %v16006_v52  ;;  %v3889_v0 = vadd.f32 %v3881_v49, %v16009_v21  ;;  %v3842_v18 = vpop.f32.mrb[26].mxu0  ;;  %v3883_v19 = vpop.f32.mrb[38].mxu1  ;;  %v12136_v42 = vld [vmem:[#allocation10 + $0x84] ss:$16 sps:$4 sm:$0xff]   ;;  %v12140_v48 = vld [vmem:[#allocation10 + $0xa0] ss:$16 sps:$4 sm:$0xff]  }
 0x99e   :  { %v10835_v10 = vmul.f32 -1.442695, %v3886_v43  ;;  %v3843_v59 = vpop.f32.mrb[27].mxu0  ;;  %v3884_v39 = vpop.f32.mrb[39].mxu1  ;;  %v10837_v38 = vmul.f32 -1.442695, %v3888_v47 }
 0x99f   :  { %v10836_v13 = vmul.f32 -1.442695, %v3887_v53  ;;  %v12139_v43 = vld [vmem:[#allocation10 + $0x8c] ss:$16 sps:$4 sm:$0xff]   ;;  %v12142_v46 = vld [vmem:[#allocation10 + $0xa4] ss:$16 sps:$4 sm:$0xff]  }
 0x9a0   :  { %12470 = vpow2.f32 %v10835_v10  ;;  %v12145_v47 = vld [vmem:[#allocation10 + $0xac] ss:$16 sps:$4 sm:$0xff]   ;;  %v12143_v49 = vld [vmem:[#allocation10 + $0xa8] ss:$16 sps:$4 sm:$0xff]   ;;  %v12152_v21 = vld [vmem:[#allocation10 + $0xe0] ss:$16 sps:$4 sm:$0xff]  }
 0x9a1   :  { %12472 = vpow2.f32 %v10836_v13  ;;  %v12149_v52 = vld [vmem:[#allocation10 + $0xc8] ss:$16 sps:$4 sm:$0xff]   ;;  %v12151_v53 = vld [vmem:[#allocation10 + $0xcc] ss:$16 sps:$4 sm:$0xff]   ;;  %v14209_v18 = vld [vmem:[#allocation12 + $0x4] ss:$16 sps:$4 sm:$0xff]  }
 0x9a2   :  { %12474 = vtanh.f32 %v3889_v0  ;;  %v12155_v0 = vld [vmem:[#allocation10 + $0xe8] ss:$16 sps:$4 sm:$0xff]   ;;  %16010 = vst [vmem:[#allocation26_spill] sm:$0xff] %v14209_v18  ;;  %v14211_v19 = vld [vmem:[#allocation12 + $0xc] ss:$16 sps:$4 sm:$0xff]  }
 0x9a3   :  { %12476 = vpow2.f32 %v10837_v38  ;;  %16011 = vst [vmem:[#allocation31_spill] sm:$0xff] %v14211_v19  ;;  %v16012_v39 = vld [vmem:[#allocation48_spill] sm:$0xff]  ;;  %v16013_v38 = vld [vmem:[#allocation54_spill] sm:$0xff] }
 0x9aa   :  { %v12471_v2 = vpop.eup %12470 }
 0x9ab   :  { %v3899_v5 = vadd.f32 1.0, %v12471_v2  ;;  %v12473_v30 = vpop.eup %12472  ;;  %v16014_v2 = vld [vmem:[#allocation53_spill] sm:$0xff] }
 0x9ac   :  { %v3900_v40 = vadd.f32 1.0, %v12473_v30  ;;  %v12475_v63 = vpop.eup %12474 }
 0x9ad   :  { %12478 = vrcp.f32 %v3899_v5  ;;  %v12477_v62 = vpop.eup %12476  ;;  %v16015_v5 = vsel %vm13516_vm3, %v16013_v38, %v16014_v2  ;;  %v14281_v38 = vld [vmem:[#allocation12 + $0x84] ss:$16 sps:$4 sm:$0xff]   ;;  %v14283_v2 = vld [vmem:[#allocation12 + $0x8c] ss:$16 sps:$4 sm:$0xff]  }
 0x9ae   :  { %12480 = vrcp.f32 %v3900_v40  ;;  %v3901_v7 = vadd.f32 1.0, %v12477_v62  ;;  %v16016_v62 = vld [vmem:[#allocation36_spill] sm:$0xff]  ;;  %16023 = vst [vmem:[#allocation32_spill] sm:$0xff] %v14281_v38  ;;  %16024 = vst [vmem:[#allocation25_spill] sm:$0xff] %v14283_v2 }
 0x9b0   :  { %12482 = vrcp.f32 %v3901_v7  ;;  %v16019_v7 = vld [vmem:[#allocation57_spill] sm:$0xff] }
 0x9b7   :  { %v12479_v58 = vpop.eup %12478 }
 0x9b8   :  { %v3910_v61 = vmul.f32 %v12479_v58, %v12475_v63  ;;  %v12481_v57 = vpop.eup %12480  ;;  %v16017_v58 = vld [vmem:[#allocation35_spill] sm:$0xff] }
 0x9b9   :  { %v3909_v33 = vmul.f32 %v12481_v57, %v14110_v4 }
 0x9ba   :  { %v12483_v6 = vpop.eup %12482 }
 0x9bb   :  { %v14197_v56 = vadd.f32 %v3910_v61, %v3909_v33  ;;  %v16018_v61 = vsel %vm13404_vm1, %v16016_v62, %v16017_v58  ;;  %v16020_v33 = vld [vmem:[#allocation56_spill] sm:$0xff] }
 0x9bc   :  { %v14299_v62 = vld [vmem:[#allocation12 + $0xa0] ss:$16 sps:$4 sm:$0xff]   ;;  %v14301_v58 = vld [vmem:[#allocation12 + $0xa8] ss:$16 sps:$4 sm:$0xff]  }
 0x9bd   :  { %12484 = vtanh.f32 %v14197_v56  ;;  %16029 = vst [vmem:[#allocation44_spill] sm:$0xff] %v14299_v62  ;;  %16030 = vst [vmem:[#allocation47_spill] sm:$0xff] %v14301_v58 }
 0x9c7   :  { %v12485_v14 = vpop.eup %12484 }
 0x9c8   :  { %v3913_v55 = vmul.f32 %v12485_v14, %v12483_v6  ;;  %v16021_v6 = vsel %vm13520_vm4, %v16019_v7, %v16020_v33  ;;  %v14311_v7 = vld [vmem:[#allocation12 + $0xc0] ss:$16 sps:$4 sm:$0xff]   ;;  %v14313_v33 = vld [vmem:[#allocation12 + $0xc8] ss:$16 sps:$4 sm:$0xff]  }
 0x9c9   :  { %16033 = vst [vmem:[#allocation59_spill] sm:$0xff] %v14311_v7  ;;  %16034 = vst [vmem:[#allocation41_spill] sm:$0xff] %v14313_v33 }
 0x9ca   :  { %v3921_v17 = vrot.slane %v3913_v55, %v13646_v3  ;;  %v3947_v60 = vpack.c.bf16 %v3913_v55, %v3913_v55 }
 0x9cc   :  { %v3922_v20 = vcombine.high %v3921_v17, %v3921_v17  ;;  %v3929_v12 = vrot.slane %v3921_v17, %v13646_v3  ;;  %4173 = vmatmul.mubr.bf16.vlgmr.msra.gmra.mrb[28].mxu0 %v3947_v60  ;;  %4214 = vmatmul.mubr.bf16.vlgmr.msra.gmra.mrb[40].mxu1 %v3947_v60 }
 0x9cd   :  { %4528 = vmatprep.mubr.bf16.mxu0 %v15962_v37  ;;  %4571 = vmatprep.mubr.bf16.mxu1 %v15962_v37 }
 0x9ce   :  { %v3936_v4 = vrot.slane %v3922_v20, %v13646_v3  ;;  %3939 = vst.msk [vmem:[#allocation2 + $0x6] sm:$0x1] %vm1829_vm5, %v3929_v12  ;;  %4497 = vmatpush1.bf16.msra.mxu0 %v12110_v26  ;;  %4540 = vmatpush1.bf16.msra.mxu1 %v12113_v27 }
 0x9cf   :  { %3941 = vst.msk [vmem:[#allocation2 + $0x1] sm:$0x1] %vm1832_vm6, %v3929_v12  ;;  %4498 = vmatprep.subr.bf16.mxu0 %v12118_v28  ;;  %4541 = vmatprep.subr.bf16.mxu1 %v12121_v29 }
 0x9d0   :  { %3940 = vst.msk [vmem:[#allocation2 + $0xe] sm:$0x1] %vm1829_vm5, %v3936_v4 }
 0x9d1   :  { %3942 = vst.msk [vmem:[#allocation2 + $0x9] sm:$0x1] %vm1832_vm6, %v3936_v4 }
 0x9d2   :  { %4499 = vmatpush1.bf16.msra.mxu0 %v12116_v31  ;;  %4542 = vmatpush1.bf16.msra.mxu1 %v12119_v32 }
 0x9d3   :  { %4500 = vmatprep.subr.bf16.mxu0 %v12124_v16  ;;  %4543 = vmatprep.subr.bf16.mxu1 %v12127_v41 }
 0x9d6   :  { %4501 = vmatpush1.bf16.msra.mxu0 %v12122_v34  ;;  %4544 = vmatpush1.bf16.msra.mxu1 %v12125_v8 }
 0x9d7   :  { %4502 = vmatprep.subr.bf16.mxu0 %v12130_v15  ;;  %4545 = vmatprep.subr.bf16.mxu1 %v12133_v11 }
 0x9da   :  { %4503 = vmatpush1.bf16.msra.mxu0 %v12128_v22  ;;  %4546 = vmatpush1.bf16.msra.mxu1 %v12131_v24 }
 0x9db   :  { %4504 = vmatprep.subr.bf16.mxu0 %v12136_v42  ;;  %4547 = vmatprep.subr.bf16.mxu1 %v12139_v43 }
 0x9de   :  { %4505 = vmatpush1.bf16.msra.mxu0 %v12134_v44  ;;  %4548 = vmatpush1.bf16.msra.mxu1 %v12137_v45 }
 0x9df   :  { %4506 = vmatprep.subr.bf16.mxu0 %v12142_v46  ;;  %4549 = vmatprep.subr.bf16.mxu1 %v12145_v47  ;;  %v14241_v46 = vld [vmem:[#allocation12 + $0x8] ss:$16 sps:$4 sm:$0xff]  }
 0x9e2   :  { %4507 = vmatpush1.bf16.msra.mxu0 %v12140_v48  ;;  %4550 = vmatpush1.bf16.msra.mxu1 %v12143_v49 }
 0x9e3   :  { %4508 = vmatprep.subr.bf16.mxu0 %v12148_v50  ;;  %4551 = vmatprep.subr.bf16.mxu1 %v12151_v53  ;;  %v14243_v50 = vld [vmem:[#allocation12 + $0x24] ss:$16 sps:$4 sm:$0xff]   ;;  %v14251_v53 = vld [vmem:[#allocation12 + $0x28] ss:$16 sps:$4 sm:$0xff]  }
 0x9e6   :  { %4509 = vmatpush1.bf16.msra.mxu0 %v12146_v51  ;;  %4552 = vmatpush1.bf16.msra.mxu1 %v12149_v52  ;;  %v14245_v51 = vld [vmem:[#allocation12 + $0x2c] ss:$16 sps:$4 sm:$0xff]   ;;  %v14249_v52 = vld [vmem:[#allocation12 + $0x20] ss:$16 sps:$4 sm:$0xff]  }
 0x9e7   :  { %4510 = vmatprep.subr.bf16.mxu0 %v12154_v54  ;;  %4553 = vmatprep.subr.bf16.mxu1 %v12157_v1  ;;  %v14255_v54 = vld [vmem:[#allocation12 + $0x44] ss:$16 sps:$4 sm:$0xff]   ;;  %v14257_v1 = vld [vmem:[#allocation12 + $0x4c] ss:$16 sps:$4 sm:$0xff]  }
 0x9ea   :  { %4511 = vmatpush1.bf16.msra.mxu0 %v12152_v21  ;;  %4554 = vmatpush1.bf16.msra.mxu1 %v12155_v0  ;;  %v14263_v21 = vld [vmem:[#allocation12 + $0x40] ss:$16 sps:$4 sm:$0xff]   ;;  %v14265_v0 = vld [vmem:[#allocation12 + $0x48] ss:$16 sps:$4 sm:$0xff]  }
 0x9eb   :  { %4814 = vmatprep.subr.bf16.mxu0 %v14209_v18  ;;  %4855 = vmatprep.subr.bf16.mxu1 %v14211_v19 }
 0xa9f   :  { %v4174_v10 = vpop.f32.mrb[28].mxu0  ;;  %v4215_v59 = vpop.f32.mrb[40].mxu1 }
 0xaa0   :  { %v4222_v13 = vadd.f32 %v4174_v10, %v16012_v39  ;;  %v4224_v30 = vadd.f32 %v4215_v59, %v16015_v5  ;;  %v4176_v40 = vpop.f32.mrb[29].mxu0  ;;  %v4217_v63 = vpop.f32.mrb[41].mxu1  ;;  %v14269_v10 = vld [vmem:[#allocation12 + $0x64] ss:$16 sps:$4 sm:$0xff]   ;;  %v14271_v59 = vld [vmem:[#allocation12 + $0x6c] ss:$16 sps:$4 sm:$0xff]  }
 0xaa1   :  { %v4223_v57 = vadd.f32 %v4176_v40, %v16018_v61  ;;  %v4225_v14 = vadd.f32 %v4217_v63, %v16021_v6  ;;  %v4178_v55 = vpop.f32.mrb[30].mxu0  ;;  %v4219_v17 = vpop.f32.mrb[42].mxu1  ;;  %v14275_v39 = vld [vmem:[#allocation12 + $0x60] ss:$16 sps:$4 sm:$0xff]   ;;  %v14293_v40 = vld [vmem:[#allocation12 + $0xa4] ss:$16 sps:$4 sm:$0xff]  }
 0xaa2   :  { %v10870_v60 = vmul.f32 -1.442695, %v4222_v13  ;;  %v4179_v20 = vpop.f32.mrb[31].mxu0  ;;  %v4220_v12 = vpop.f32.mrb[43].mxu1  ;;  %v10872_v23 = vmul.f32 -1.442695, %v4224_v30 }
 0xaa3   :  { %v10871_v4 = vmul.f32 -1.442695, %v4223_v57  ;;  %v14277_v13 = vld [vmem:[#allocation12 + $0x68] ss:$16 sps:$4 sm:$0xff]   ;;  %v14287_v5 = vld [vmem:[#allocation12 + $0x80] ss:$16 sps:$4 sm:$0xff]  }
 0xaa4   :  { %12486 = vpow2.f32 %v10870_v60  ;;  %16022 = vst [vmem:[#allocation27_spill] sm:$0xff] %v14277_v13  ;;  %16025 = vst [vmem:[#allocation30_spill] sm:$0xff] %v14287_v5  ;;  %v14289_v30 = vld [vmem:[#allocation12 + $0x88] ss:$16 sps:$4 sm:$0xff]   ;;  %v14295_v63 = vld [vmem:[#allocation12 + $0xac] ss:$16 sps:$4 sm:$0xff]  }
 0xaa5   :  { %12488 = vpow2.f32 %v10871_v4  ;;  %16026 = vst [vmem:[#allocation37_spill] sm:$0xff] %v14289_v30  ;;  %16027 = vst [vmem:[#allocation40_spill] sm:$0xff] %v14293_v40  ;;  %v14305_v61 = vld [vmem:[#allocation12 + $0xc4] ss:$16 sps:$4 sm:$0xff]   ;;  %v14307_v57 = vld [vmem:[#allocation12 + $0xcc] ss:$16 sps:$4 sm:$0xff]  }
 0xaa6   :  { %12490 = vtanh.f32 %v4225_v14  ;;  %16028 = vst [vmem:[#allocation43_spill] sm:$0xff] %v14295_v63  ;;  %16031 = vst [vmem:[#allocation45_spill] sm:$0xff] %v14305_v61  ;;  %v14317_v6 = vld [vmem:[#allocation12 + $0xe4] ss:$16 sps:$4 sm:$0xff]   ;;  %v14319_v14 = vld [vmem:[#allocation12 + $0xec] ss:$16 sps:$4 sm:$0xff]  }
 0xaa7   :  { %12492 = vpow2.f32 %v10872_v23  ;;  %16032 = vst [vmem:[#allocation42_spill] sm:$0xff] %v14307_v57  ;;  %16035 = vst [vmem:[#allocation39_spill] sm:$0xff] %v14317_v6  ;;  %v14323_v55 = vld [vmem:[#allocation12 + $0xe0] ss:$16 sps:$4 sm:$0xff]   ;;  %v14325_v17 = vld [vmem:[#allocation12 + $0xe8] ss:$16 sps:$4 sm:$0xff]  }
 0xaa8   :  { %16036 = vst [vmem:[#allocation61_spill] sm:$0xff] %v14319_v14  ;;  %16037 = vst [vmem:[#allocation60_spill] sm:$0xff] %v14323_v55  ;;  %v4314_v60 = vld [vmem:[%s15789_s8] sm:$0xf] }
 0xaa9   :  { %16038 = vst [vmem:[#allocation46_spill] sm:$0xff] %v14325_v17  ;;  %v16039_v20 = vld [vmem:[#allocation28_spill] sm:$0xff]  ;;  %v16040_v4 = vld [vmem:[#allocation49_spill] sm:$0xff] }
 0xaaa   :  { %v4319_v12 = vrot.slane %v4314_v60, %v16039_v20  ;;  %v4327_v23 = vrot.slane %v4314_v60, %v16040_v4 }
 0xaae   :  { %v12487_v25 = vpop.eup %12486 }
 0xaaf   :  { %v4235_v26 = vadd.f32 1.0, %v12487_v25  ;;  %v12489_v27 = vpop.eup %12488  ;;  %v16041_v25 = vld [vmem:[#allocation29_spill] sm:$0xff] }
 0xab0   :  { %v4236_v28 = vadd.f32 1.0, %v12489_v27  ;;  %v12491_v29 = vpop.eup %12490  ;;  %v16042_v27 = vld [vmem:[#allocation50_spill] sm:$0xff] }
 0xab1   :  { %12494 = vrcp.f32 %v4235_v26  ;;  %v12493_v31 = vpop.eup %12492  ;;  %v4323_v26 = vrot.slane %v4314_v60, %v16041_v25 }
 0xab2   :  { %12496 = vrcp.f32 %v4236_v28  ;;  %v4237_v34 = vadd.f32 1.0, %v12493_v31  ;;  %v4331_v28 = vrot.slane %v4314_v60, %v16042_v27 }
 0xab4   :  { %12498 = vrcp.f32 %v4237_v34 }
 0xabb   :  { %v12495_v32 = vpop.eup %12494 }
 0xabc   :  { %v4246_v16 = vmul.f32 %v12495_v32, %v12491_v29  ;;  %v12497_v41 = vpop.eup %12496 }
 0xabd   :  { %v4245_v8 = vmul.f32 %v12497_v41, %v14197_v56  ;;  %v14239_v56 = vld [vmem:[#allocation12] ss:$16 sps:$4 sm:$0xff]  }
 0xabe   :  { %v12499_v11 = vpop.eup %12498 }
 0xabf   :  { %v4247_v15 = vadd.f32 %v4246_v16, %v4245_v8 }
 0xac1   :  { %12500 = vtanh.f32 %v4247_v15 }
 0xacb   :  { %v12501_v22 = vpop.eup %12500 }
 0xacc   :  { %v4249_v24 = vmul.f32 %v12501_v22, %v12499_v11 }
 0xace   :  { %v4257_v42 = vrot.slane %v4249_v24, %v13646_v3 }
 0xad0   :  { %v4258_v43 = vcombine.high %v4257_v42, %v4257_v42  ;;  %v4265_v44 = vrot.slane %v4257_v42, %v13646_v3 }
 0xad2   :  { %v4272_v45 = vrot.slane %v4258_v43, %v13646_v3  ;;  %4275 = vst.msk [vmem:[#allocation2 + $0x7] sm:$0x1] %vm1829_vm5, %v4265_v44 }
 0xad3   :  { %4277 = vst.msk [vmem:[#allocation2] sm:$0x1] %vm1832_vm6, %v4265_v44 }
 0xad4   :  { %4276 = vst.msk [vmem:[#allocation2 + $0xf] sm:$0x1] %vm1829_vm5, %v4272_v45 }
 0xad5   :  { %4278 = vst.msk [vmem:[#allocation2 + $0x8] sm:$0x1] %vm1832_vm6, %v4272_v45 }
 0xada   :  { %v4279_v47 = vld [vmem:[#allocation2] sm:$0xff] }
 0xadc   :  { %v4280_v48 = vld [vmem:[#allocation2 + $0x8] sm:$0xff] }
 0xadd   :  { %v4281_v49 = vpack.c.bf16 %v4280_v48, %v4279_v47 }
 0xadf   :  { %4529 = vmatmul.mubr.bf16.vlgmr.msra.gmra.mrb[32].mxu0 %v4281_v49  ;;  %4572 = vmatmul.mubr.bf16.vlgmr.msra.gmra.mrb[44].mxu1 %v4281_v49 }
 0xae0   :  { %4815 = vmatpush1.bf16.msra.mxu0 %v14239_v56  ;;  %4856 = vmatpush1.bf16.msra.mxu1 %v14241_v46 }
 0xae1   :  { %4816 = vmatprep.subr.bf16.mxu0 %v14243_v50  ;;  %4857 = vmatprep.subr.bf16.mxu1 %v14245_v51 }
 0xae2   :  { %4846 = vmatprep.mubr.bf16.mxu0 %v15962_v37  ;;  %4887 = vmatprep.mubr.bf16.mxu1 %v15962_v37 }
 0xae4   :  { %4817 = vmatpush1.bf16.msra.mxu0 %v14249_v52  ;;  %4858 = vmatpush1.bf16.msra.mxu1 %v14251_v53 }
 0xae5   :  { %4818 = vmatprep.subr.bf16.mxu0 %v14255_v54  ;;  %4859 = vmatprep.subr.bf16.mxu1 %v14257_v1 }
 0xae8   :  { %4819 = vmatpush1.bf16.msra.mxu0 %v14263_v21  ;;  %4860 = vmatpush1.bf16.msra.mxu1 %v14265_v0 }
 0xae9   :  { %4820 = vmatprep.subr.bf16.mxu0 %v14269_v10  ;;  %4861 = vmatprep.subr.bf16.mxu1 %v14271_v59 }
 0xaec   :  { %4821 = vmatpush1.bf16.msra.mxu0 %v14275_v39  ;;  %4862 = vmatpush1.bf16.msra.mxu1 %v14277_v13 }
 0xaed   :  { %4822 = vmatprep.subr.bf16.mxu0 %v14281_v38  ;;  %4863 = vmatprep.subr.bf16.mxu1 %v14283_v2 }
 0xaf0   :  { %4823 = vmatpush1.bf16.msra.mxu0 %v14287_v5  ;;  %4864 = vmatpush1.bf16.msra.mxu1 %v14289_v30 }
 0xaf1   :  { %4824 = vmatprep.subr.bf16.mxu0 %v14293_v40  ;;  %4865 = vmatprep.subr.bf16.mxu1 %v14295_v63 }
 0xaf4   :  { %4825 = vmatpush1.bf16.msra.mxu0 %v14299_v62  ;;  %4866 = vmatpush1.bf16.msra.mxu1 %v14301_v58 }
 0xaf5   :  { %4826 = vmatprep.subr.bf16.mxu0 %v14305_v61  ;;  %4867 = vmatprep.subr.bf16.mxu1 %v14307_v57 }
 0xaf8   :  { %4827 = vmatpush1.bf16.msra.mxu0 %v14311_v7  ;;  %4868 = vmatpush1.bf16.msra.mxu1 %v14313_v33 }
 0xaf9   :  { %4828 = vmatprep.subr.bf16.mxu0 %v14317_v6  ;;  %4869 = vmatprep.subr.bf16.mxu1 %v14319_v14 }
 0xafc   :  { %4829 = vmatpush1.bf16.msra.mxu0 %v14323_v55  ;;  %4870 = vmatpush1.bf16.msra.mxu1 %v14325_v17 }
 0xafd   :  { %5178 = vmatprep.subr.bf16.mxu0 %v14209_v18  ;;  %5219 = vmatprep.subr.bf16.mxu1 %v14211_v19 }
 0xaff   :  { %4847 = vmatmul.mubr.bf16.vlgmr.msra.gmra.mrb[36].mxu0 %v15962_v37  ;;  %4888 = vmatmul.mubr.bf16.vlgmr.msra.gmra.mrb[48].mxu1 %v15962_v37 }
 0xb00   :  { %5179 = vmatpush1.bf16.msra.mxu0 %v14239_v56  ;;  %5220 = vmatpush1.bf16.msra.mxu1 %v14241_v46 }
 0xb01   :  { %5180 = vmatprep.subr.bf16.mxu0 %v14243_v50  ;;  %5221 = vmatprep.subr.bf16.mxu1 %v14245_v51 }
 0xb02   :  { %5210 = vmatprep.mubr.bf16.mxu0 %v15962_v37  ;;  %5251 = vmatprep.mubr.bf16.mxu1 %v15962_v37 }
 0xb04   :  { %5181 = vmatpush1.bf16.msra.mxu0 %v14249_v52  ;;  %5222 = vmatpush1.bf16.msra.mxu1 %v14251_v53 }
 0xb05   :  { %5182 = vmatprep.subr.bf16.mxu0 %v14255_v54  ;;  %5223 = vmatprep.subr.bf16.mxu1 %v14257_v1 }
 0xb08   :  { %5183 = vmatpush1.bf16.msra.mxu0 %v14263_v21  ;;  %5224 = vmatpush1.bf16.msra.mxu1 %v14265_v0 }
 0xb09   :  { %5184 = vmatprep.subr.bf16.mxu0 %v14269_v10  ;;  %5225 = vmatprep.subr.bf16.mxu1 %v14271_v59 }
 0xb0c   :  { %5185 = vmatpush1.bf16.msra.mxu0 %v14275_v39  ;;  %5226 = vmatpush1.bf16.msra.mxu1 %v14277_v13 }
 0xb0d   :  { %5186 = vmatprep.subr.bf16.mxu0 %v14281_v38  ;;  %5227 = vmatprep.subr.bf16.mxu1 %v14283_v2 }
 0xb10   :  { %5187 = vmatpush1.bf16.msra.mxu0 %v14287_v5  ;;  %5228 = vmatpush1.bf16.msra.mxu1 %v14289_v30 }
 0xb11   :  { %5188 = vmatprep.subr.bf16.mxu0 %v14293_v40  ;;  %5229 = vmatprep.subr.bf16.mxu1 %v14295_v63 }
 0xb14   :  { %5189 = vmatpush1.bf16.msra.mxu0 %v14299_v62  ;;  %5230 = vmatpush1.bf16.msra.mxu1 %v14301_v58 }
 0xb15   :  { %5190 = vmatprep.subr.bf16.mxu0 %v14305_v61  ;;  %5231 = vmatprep.subr.bf16.mxu1 %v14307_v57 }
 0xb18   :  { %5191 = vmatpush1.bf16.msra.mxu0 %v14311_v7  ;;  %5232 = vmatpush1.bf16.msra.mxu1 %v14313_v33 }
 0xb19   :  { %5192 = vmatprep.subr.bf16.mxu0 %v14317_v6  ;;  %5233 = vmatprep.subr.bf16.mxu1 %v14319_v14 }
 0xb1c   :  { %5193 = vmatpush1.bf16.msra.mxu0 %v14323_v55  ;;  %5234 = vmatpush1.bf16.msra.mxu1 %v14325_v17 }
 0xb1d   :  { %5546 = vmatprep.subr.bf16.mxu0 %v14209_v18  ;;  %5587 = vmatprep.subr.bf16.mxu1 %v14211_v19 }
 0xbb2   :  { %v4530_v29 = vpop.f32.mrb[32].mxu0  ;;  %v4573_v31 = vpop.f32.mrb[44].mxu1 }
 0xbb3   :  { %v14376_v32 = vadd.f32 %v4530_v29, %v4319_v12  ;;  %v14378_v16 = vadd.f32 %v4573_v31, %v4327_v23  ;;  %v4532_v41 = vpop.f32.mrb[33].mxu0  ;;  %v4575_v34 = vpop.f32.mrb[45].mxu1 }
 0xbb4   :  { %v14380_v8 = vadd.f32 %v4532_v41, %v4323_v26  ;;  %v14382_v15 = vadd.f32 %v4575_v34, %v4331_v28  ;;  %v4534_v11 = vpop.f32.mrb[34].mxu0  ;;  %v4577_v22 = vpop.f32.mrb[46].mxu1 }
 0xbb5   :  { %v14384_v24 = vadd.f32 %v4534_v11, %v4319_v12  ;;  %v14386_v42 = vadd.f32 %v4577_v22, %v4327_v23  ;;  %v4536_v43 = vpop.f32.mrb[35].mxu0  ;;  %v4579_v44 = vpop.f32.mrb[47].mxu1  ;;  %v4602_v45 = vrot.slane %v14376_v32, 7  ;;  %v4608_v47 = vrot.slane %v14378_v16, 7 }
 0xbb6   :  { %v14390_v48 = vadd.f32 %v4536_v43, %v4323_v26  ;;  %v14392_v49 = vadd.f32 %v4579_v44, %v4331_v28  ;;  %v4605_v60 = vrot.slane %v14380_v8, 7  ;;  %v4611_v29 = vrot.slane %v14382_v15, 7 }
 0xbb7   :  { %v4590_v31 = vrot.slane %v14384_v24, 7  ;;  %v4603_v12 = vrot.slane %v14384_v24, 6  ;;  %v4594_v23 = vrot.slane %v14386_v42, 7  ;;  %v4609_v41 = vrot.slane %v14386_v42, 6 }
 0xbb8   :  { %v4592_v34 = vrot.slane %v14390_v48, 7  ;;  %v4606_v11 = vrot.slane %v14390_v48, 6  ;;  %v4596_v26 = vrot.slane %v14392_v49, 7  ;;  %v4612_v28 = vrot.slane %v14392_v49, 6 }
 0xbb9   :  { %v14406_v22 = vsel %vm1470_vm2, %v4590_v31, %v14376_v32  ;;  %v14409_v43 = vsel %vm1470_vm2, %v4603_v12, %v4602_v45  ;;  %v14413_v44 = vsel %vm1470_vm2, %v4594_v23, %v14378_v16  ;;  %v14416_v27 = vsel %vm1470_vm2, %v4609_v41, %v4608_v47 }
 0xbba   :  { %16043 = vst [vmem:[#allocation55_spill] sm:$0xff] %v14413_v44  ;;  %16044 = vst [vmem:[#allocation51_spill] sm:$0xff] %v14416_v27  ;;  %v14422_v20 = vsel %vm220_vm0, %v14406_v22, %v14409_v43  ;;  %v14430_v45 = vsel %vm1470_vm2, %v4592_v34, %v14380_v8  ;;  %v14433_v12 = vsel %vm1470_vm2, %v4606_v11, %v4605_v60  ;;  %v4953_v31 = vrot.slane %v14376_v32, 1 }
 0xbbb   :  { %16046 = vst [vmem:[#allocation38_spill] sm:$0xff] %v14430_v45  ;;  %16047 = vst [vmem:[#allocation34_spill] sm:$0xff] %v14433_v12  ;;  %v14441_v23 = vsel %vm1470_vm2, %v4596_v26, %v14382_v15  ;;  %v14444_v41 = vsel %vm1470_vm2, %v4612_v28, %v4611_v29  ;;  %v4965_v34 = vrot.slane %v14376_v32, 6  ;;  %v4966_v11 = vrot.slane %v14384_v24, 5 }
 0xbbc   :  { %16048 = vst [vmem:[#allocation58_spill] sm:$0xff] %v14441_v23  ;;  %16049 = vst [vmem:[#allocation52_spill] sm:$0xff] %v14444_v41  ;;  %v4957_v47 = vrot.slane %v14378_v16, 1  ;;  %v14456_v26 = vsel %vm1470_vm2, %v14384_v24, %v4953_v31  ;;  %v4971_v29 = vrot.slane %v14378_v16, 6  ;;  %v4972_v28 = vrot.slane %v14386_v42, 5 }
 0xbbd   :  { %v4955_v25 = vrot.slane %v14380_v8, 1  ;;  %v14462_v19 = vsel %vm1470_vm2, %v4966_v11, %v4965_v34  ;;  %v4968_v18 = vrot.slane %v14380_v8, 6  ;;  %v4969_v17 = vrot.slane %v14390_v48, 5 }
 0xbbe   :  { %v14466_v60 = vsel %vm1470_vm2, %v14386_v42, %v4957_v47  ;;  %v14474_v31 = vsel %vm220_vm0, %v14456_v26, %v14462_v19  ;;  %v14477_v55 = vsel %vm1470_vm2, %v4972_v28, %v4971_v29  ;;  %v4959_v47 = vrot.slane %v14382_v15, 1 }
 0xbbf   :  { %16050 = vst [vmem:[#allocation48_spill] sm:$0xff] %v14466_v60  ;;  %16051 = vst [vmem:[#allocation54_spill] sm:$0xff] %v14474_v31  ;;  %v14481_v34 = vsel %vm1470_vm2, %v14390_v48, %v4955_v25  ;;  %v14489_v14 = vsel %vm1470_vm2, %v4969_v17, %v4968_v18  ;;  %v4974_v6 = vrot.slane %v14382_v15, 6  ;;  %v4975_v31 = vrot.slane %v14392_v49, 5 }
 0xbc0   :  { %16052 = vst [vmem:[#allocation53_spill] sm:$0xff] %v14477_v55  ;;  %16053 = vst [vmem:[#allocation36_spill] sm:$0xff] %v14481_v34  ;;  %v14499_v29 = vsel %vm1470_vm2, %v14392_v49, %v4959_v47  ;;  %v5317_v28 = vrot.slane %v14376_v32, 2  ;;  %v5318_v11 = vrot.slane %v14384_v24, 1  ;;  %v5333_v17 = vrot.slane %v14376_v32, 5 }
 0xbc1   :  { %16054 = vst [vmem:[#allocation35_spill] sm:$0xff] %v14489_v14  ;;  %16055 = vst [vmem:[#allocation57_spill] sm:$0xff] %v14499_v29  ;;  %v14504_v18 = vsel %vm1470_vm2, %v4975_v31, %v4974_v6  ;;  %v5334_v33 = vrot.slane %v14384_v24, 4  ;;  %v5323_v7 = vrot.slane %v14378_v16, 2  ;;  %v5324_v57 = vrot.slane %v14386_v42, 1 }
 0xbc2   :  { %16056 = vst [vmem:[#allocation56_spill] sm:$0xff] %v14504_v18  ;;  %v5319_v47 = vsel %vm1470_vm2, %v5318_v11, %v5317_v28  ;;  %v5339_v61 = vrot.slane %v14378_v16, 5  ;;  %v5340_v31 = vrot.slane %v14386_v42, 4  ;;  %v5320_v58 = vrot.slane %v14380_v8, 2 }
 0xbc3   :  { %v5335_v6 = vsel %vm1470_vm2, %v5334_v33, %v5333_v17  ;;  %v5321_v62 = vrot.slane %v14390_v48, 1  ;;  %v14525_v25 = vsel %vm1470_vm2, %v5324_v57, %v5323_v7  ;;  %v5336_v11 = vrot.slane %v14380_v8, 5 }
 0xbc4   :  { %v14522_v63 = vsel %vm220_vm0, %v5319_v47, %v5335_v6  ;;  %16058 = vst [vmem:[#allocation62_spill] sm:$0xff] %v14525_v25  ;;  %v5337_v28 = vrot.slane %v14390_v48, 4  ;;  %v14530_v40 = vsel %vm1470_vm2, %v5340_v31, %v5339_v61  ;;  %v5326_v17 = vrot.slane %v14382_v15, 2 }
 0xbc5   :  { %16057 = vst [vmem:[#allocation33_spill] sm:$0xff] %v14522_v63  ;;  %v14533_v33 = vsel %vm1470_vm2, %v5321_v62, %v5320_v58  ;;  %v5327_v30 = vrot.slane %v14392_v49, 1  ;;  %v5342_v63 = vrot.slane %v14382_v15, 5  ;;  %v5343_v61 = vrot.slane %v14392_v49, 4 }
 0xbc6   :  { %16059 = vst [vmem:[#allocation63_spill] sm:$0xff] %v14533_v33  ;;  %v14542_v7 = vsel %vm1470_vm2, %v5337_v28, %v5336_v11  ;;  %v5685_v31 = vrot.slane %v14376_v32, 3  ;;  %v5686_v5 = vrot.slane %v14384_v24, 2  ;;  %v5701_v11 = vrot.slane %v14376_v32, 4 }
 0xbc7   :  { %16060 = vst [vmem:[#allocation64_spill] sm:$0xff] %v14542_v7  ;;  %v14551_v58 = vsel %vm1470_vm2, %v5327_v30, %v5326_v17  ;;  %v14556_v57 = vsel %vm1470_vm2, %v5343_v61, %v5342_v63  ;;  %v5702_v28 = vrot.slane %v14384_v24, 3  ;;  %v5691_v2 = vrot.slane %v14378_v16, 3 }
 0xbc8   :  { %16061 = vst [vmem:[#allocation65_spill] sm:$0xff] %v14551_v58  ;;  %16062 = vst [vmem:[#allocation66_spill] sm:$0xff] %v14556_v57  ;;  %v5687_v30 = vsel %vm1470_vm2, %v5686_v5, %v5685_v31  ;;  %v5692_v17 = vrot.slane %v14386_v42, 2  ;;  %v5707_v38 = vrot.slane %v14378_v16, 4  ;;  %v5708_v61 = vrot.slane %v14386_v42, 3 }
 0xbc9   :  { %v5703_v63 = vsel %vm1470_vm2, %v5702_v28, %v5701_v11  ;;  %v5688_v32 = vrot.slane %v14380_v8, 3  ;;  %v5689_v24 = vrot.slane %v14390_v48, 2  ;;  %v5704_v5 = vrot.slane %v14380_v8, 4 }
 0xbca   :  { %v14574_v13 = vsel %vm220_vm0, %v5687_v30, %v5703_v63  ;;  %v14577_v62 = vsel %vm1470_vm2, %v5692_v17, %v5691_v2  ;;  %v5705_v31 = vrot.slane %v14390_v48, 3  ;;  %v14582_v16 = vsel %vm1470_vm2, %v5708_v61, %v5707_v38 }
 0xbcb   :  { %16063 = vst [vmem:[#allocation67_spill] sm:$0xff] %v14577_v62  ;;  %16064 = vst [vmem:[#allocation68_spill] sm:$0xff] %v14582_v16  ;;  %v14585_v42 = vsel %vm1470_vm2, %v5689_v24, %v5688_v32  ;;  %v5694_v11 = vrot.slane %v14382_v15, 3  ;;  %v5695_v28 = vrot.slane %v14392_v49, 2  ;;  %v5710_v8 = vrot.slane %v14382_v15, 4 }
 0xbcc   :  { %16065 = vst [vmem:[#allocation69_spill] sm:$0xff] %v14585_v42  ;;  %v14594_v17 = vsel %vm1470_vm2, %v5705_v31, %v5704_v5  ;;  %v5711_v38 = vrot.slane %v14392_v49, 3  ;;  %v14607_v32 = vsel %vm220_vm0, %v5703_v63, %v5687_v30  ;;  %v14622_v5 = vsel %vm220_vm0, %v5335_v6, %v5319_v47 }
 0xbcd   :  { %16066 = vst [vmem:[#allocation70_spill] sm:$0xff] %v14594_v17  ;;  %v14603_v61 = vsel %vm1470_vm2, %v5695_v28, %v5694_v11  ;;  %16068 = vst [vmem:[#allocation72_spill] sm:$0xff] %v14607_v32  ;;  %v14672_v47 = vsel %vm220_vm0, %v14409_v43, %v14406_v22 }
 0xbce   :  { %16067 = vst [vmem:[#allocation71_spill] sm:$0xff] %v14603_v61  ;;  %v14614_v15 = vsel %vm1470_vm2, %v5711_v38, %v5710_v8  ;;  %16070 = vst [vmem:[#allocation74_spill] sm:$0xff] %v14622_v5  ;;  %v14648_v8 = vsel %vm220_vm0, %v14462_v19, %v14456_v26  ;;  %v16072_v19 = vsel %vm13516_vm3, %v14413_v44, %v14416_v27  ;;  %v16095_v27 = vld [vmem:[#allocation54_spill] sm:$0xff]  ;;  %vm9563_vm0 = vcmask 916480  }
 0xbcf   :  { %16069 = vst [vmem:[#allocation73_spill] sm:$0xff] %v14614_v15  ;;  %16071 = vst [vmem:[#allocation75_spill] sm:$0xff] %v14648_v8  ;;  %v16096_v8 = vsel %vm13516_vm3, %v14466_v60, %v14477_v55  ;;  %v16097_v61 = vsel %vm13404_vm1, %v14481_v34, %v14489_v14 }
 0xbd0   :  { %16073 = vst [vmem:[#allocation76_spill] sm:$0xff] %v14672_v47 }
 0xbd2   :  { %v4848_v11 = vpop.f32.mrb[36].mxu0  ;;  %v4889_v28 = vpop.f32.mrb[48].mxu1 }
 0xbd3   :  { %v4896_v30 = vadd.f32 %v4848_v11, %v14422_v20  ;;  %v4898_v26 = vadd.f32 %v4889_v28, %v16072_v19  ;;  %v4850_v31 = vpop.f32.mrb[37].mxu0  ;;  %v4891_v38 = vpop.f32.mrb[49].mxu1  ;;  %v16074_v20 = vsel %vm13404_vm1, %v14430_v45, %v14433_v12  ;;  %v16075_v28 = vsel %vm13520_vm4, %v14441_v23, %v14444_v41  ;;  %v16093_v23 = vld [vmem:[#allocation26_spill] sm:$0xff]  ;;  %v16094_v41 = vld [vmem:[#allocation31_spill] sm:$0xff] }
 0xbd4   :  { %v4897_v11 = vadd.f32 %v4850_v31, %v16074_v20  ;;  %v4899_v19 = vadd.f32 %v4891_v38, %v16075_v28  ;;  %v4852_v4 = vpop.f32.mrb[38].mxu0  ;;  %v4893_v22 = vpop.f32.mrb[50].mxu1 }
 0xbd5   :  { %v10937_v49 = vmul.f32 -1.442695, %v4896_v30  ;;  %v4853_v31 = vpop.f32.mrb[39].mxu0  ;;  %v4894_v20 = vpop.f32.mrb[51].mxu1  ;;  %v10939_v63 = vmul.f32 -1.442695, %v4898_v26 }
 0xbd6   :  { %v10938_v24 = vmul.f32 -1.442695, %v4897_v11 }
 0xbd7   :  { %12502 = vpow2.f32 %v10937_v49 }
 0xbd8   :  { %12504 = vpow2.f32 %v10938_v24 }
 0xbd9   :  { %12506 = vtanh.f32 %v4899_v19 }
 0xbda   :  { %12508 = vpow2.f32 %v10939_v63 }
 0xbe1   :  { %v12503_v38 = vpop.eup %12502 }
 0xbe2   :  { %v4909_v28 = vadd.f32 1.0, %v12503_v38  ;;  %v12505_v4 = vpop.eup %12504 }
 0xbe3   :  { %v4910_v22 = vadd.f32 1.0, %v12505_v4  ;;  %v12507_v43 = vpop.eup %12506  ;;  %v16081_v4 = vld [vmem:[#allocation40_spill] sm:$0xff] }
 0xbe4   :  { %12510 = vrcp.f32 %v4909_v28  ;;  %v12509_v48 = vpop.eup %12508  ;;  %v16080_v28 = vld [vmem:[#allocation37_spill] sm:$0xff] }
 0xbe5   :  { %12512 = vrcp.f32 %v4910_v22  ;;  %v4911_v30 = vadd.f32 1.0, %v12509_v48  ;;  %v16077_v48 = vld [vmem:[#allocation32_spill] sm:$0xff]  ;;  %v16082_v22 = vld [vmem:[#allocation43_spill] sm:$0xff] }
 0xbe7   :  { %12514 = vrcp.f32 %v4911_v30  ;;  %v16083_v30 = vld [vmem:[#allocation44_spill] sm:$0xff] }
 0xbee   :  { %v12511_v2 = vpop.eup %12510 }
 0xbef   :  { %v4920_v45 = vmul.f32 %v12511_v2, %v12507_v43  ;;  %v12513_v6 = vpop.eup %12512  ;;  %v16076_v2 = vld [vmem:[#allocation27_spill] sm:$0xff]  ;;  %v16079_v43 = vld [vmem:[#allocation30_spill] sm:$0xff] }
 0xbf0   :  { %v4919_v31 = vmul.f32 0.0, %v12513_v6  ;;  %v16078_v6 = vld [vmem:[#allocation25_spill] sm:$0xff] }
 0xbf1   :  { %v12515_v24 = vpop.eup %12514 }
 0xbf2   :  { %v14696_v20 = vadd.f32 %v4920_v45, %v4919_v31  ;;  %v16084_v31 = vld [vmem:[#allocation47_spill] sm:$0xff] }
 0xbf4   :  { %12516 = vtanh.f32 %v14696_v20 }
 0xbfe   :  { %v12517_v49 = vpop.eup %12516 }
 0xbff   :  { %v4923_v26 = vmul.f32 %v12517_v49, %v12515_v24  ;;  %v16085_v24 = vld [vmem:[#allocation45_spill] sm:$0xff]  ;;  %v16086_v49 = vld [vmem:[#allocation42_spill] sm:$0xff] }
 0xc01   :  { %v4931_v63 = vrot.slane %v4923_v26, %v13646_v3  ;;  %v4985_v11 = vpack.c.bf16 %v4923_v26, %v4923_v26  ;;  %v16087_v26 = vld [vmem:[#allocation59_spill] sm:$0xff] }
 0xc03   :  { %v4932_v19 = vcombine.high %v4931_v63, %v4931_v63  ;;  %v4939_v38 = vrot.slane %v4931_v63, %v13646_v3  ;;  %5211 = vmatmul.mubr.bf16.vlgmr.msra.gmra.mrb[40].mxu0 %v4985_v11  ;;  %5252 = vmatmul.mubr.bf16.vlgmr.msra.gmra.mrb[52].mxu1 %v4985_v11  ;;  %v16088_v63 = vld [vmem:[#allocation41_spill] sm:$0xff]  ;;  %v16089_v11 = vld [vmem:[#allocation39_spill] sm:$0xff] }
 0xc04   :  { %5547 = vmatpush1.bf16.msra.mxu0 %v14239_v56  ;;  %5588 = vmatpush1.bf16.msra.mxu1 %v14241_v46 }
 0xc05   :  { %v4946_v45 = vrot.slane %v4932_v19, %v13646_v3  ;;  %4949 = vst.msk [vmem:[#allocation3] sm:$0x1] %vm1829_vm5, %v4939_v38  ;;  %5548 = vmatprep.subr.bf16.mxu0 %v14243_v50  ;;  %5589 = vmatprep.subr.bf16.mxu1 %v14245_v51  ;;  %v16090_v19 = vld [vmem:[#allocation61_spill] sm:$0xff] }
 0xc06   :  { %4951 = vst.msk [vmem:[#allocation3 + $0x7] sm:$0x1] %vm1832_vm6, %v4939_v38  ;;  %5578 = vmatprep.mubr.bf16.mxu0 %v15962_v37  ;;  %5619 = vmatprep.mubr.bf16.mxu1 %v15962_v37  ;;  %v16091_v38 = vld [vmem:[#allocation60_spill] sm:$0xff] }
 0xc07   :  { %4950 = vst.msk [vmem:[#allocation3 + $0x8] sm:$0x1] %vm1829_vm5, %v4946_v45 }
 0xc08   :  { %4952 = vst.msk [vmem:[#allocation3 + $0xf] sm:$0x1] %vm1832_vm6, %v4946_v45  ;;  %5549 = vmatpush1.bf16.msra.mxu0 %v14249_v52  ;;  %5590 = vmatpush1.bf16.msra.mxu1 %v14251_v53  ;;  %v16092_v45 = vld [vmem:[#allocation46_spill] sm:$0xff] }
 0xc09   :  { %5550 = vmatprep.subr.bf16.mxu0 %v14255_v54  ;;  %5591 = vmatprep.subr.bf16.mxu1 %v14257_v1 }
 0xc0c   :  { %5551 = vmatpush1.bf16.msra.mxu0 %v14263_v21  ;;  %5592 = vmatpush1.bf16.msra.mxu1 %v14265_v0 }
 0xc0d   :  { %5552 = vmatprep.subr.bf16.mxu0 %v14269_v10  ;;  %5593 = vmatprep.subr.bf16.mxu1 %v14271_v59 }
 0xc10   :  { %5553 = vmatpush1.bf16.msra.mxu0 %v14275_v39  ;;  %5594 = vmatpush1.bf16.msra.mxu1 %v16076_v2 }
 0xc11   :  { %5554 = vmatprep.subr.bf16.mxu0 %v16077_v48  ;;  %5595 = vmatprep.subr.bf16.mxu1 %v16078_v6 }
 0xc14   :  { %5555 = vmatpush1.bf16.msra.mxu0 %v16079_v43  ;;  %5596 = vmatpush1.bf16.msra.mxu1 %v16080_v28 }
 0xc15   :  { %5556 = vmatprep.subr.bf16.mxu0 %v16081_v4  ;;  %5597 = vmatprep.subr.bf16.mxu1 %v16082_v22 }
 0xc18   :  { %5557 = vmatpush1.bf16.msra.mxu0 %v16083_v30  ;;  %5598 = vmatpush1.bf16.msra.mxu1 %v16084_v31 }
 0xc19   :  { %5558 = vmatprep.subr.bf16.mxu0 %v16085_v24  ;;  %5599 = vmatprep.subr.bf16.mxu1 %v16086_v49 }
 0xc1c   :  { %5559 = vmatpush1.bf16.msra.mxu0 %v16087_v26  ;;  %5600 = vmatpush1.bf16.msra.mxu1 %v16088_v63 }
 0xc1d   :  { %5560 = vmatprep.subr.bf16.mxu0 %v16089_v11  ;;  %5601 = vmatprep.subr.bf16.mxu1 %v16090_v19 }
 0xc20   :  { %5561 = vmatpush1.bf16.msra.mxu0 %v16091_v38  ;;  %5602 = vmatpush1.bf16.msra.mxu1 %v16092_v45 }
 0xc21   :  { %5914 = vmatprep.subr.bf16.mxu0 %v16093_v23  ;;  %5955 = vmatprep.subr.bf16.mxu1 %v16094_v41  ;;  %v16098_v41 = vsel %vm13520_vm4, %v14499_v29, %v14504_v18 }
 0xcd6   :  { %v5212_v12 = vpop.f32.mrb[40].mxu0  ;;  %v5253_v44 = vpop.f32.mrb[52].mxu1 }
 0xcd7   :  { %v5260_v47 = vadd.f32 %v5212_v12, %v16095_v27  ;;  %v5262_v5 = vadd.f32 %v5253_v44, %v16096_v8  ;;  %v5214_v32 = vpop.f32.mrb[41].mxu0  ;;  %v5255_v15 = vpop.f32.mrb[53].mxu1 }
 0xcd8   :  { %v5261_v23 = vadd.f32 %v5214_v32, %v16097_v61  ;;  %v5263_v27 = vadd.f32 %v5255_v15, %v16098_v41  ;;  %v5216_v12 = vpop.f32.mrb[42].mxu0  ;;  %v5257_v17 = vpop.f32.mrb[54].mxu1 }
 0xcd9   :  { %v10972_v42 = vmul.f32 -1.442695, %v5260_v47  ;;  %v5217_v16 = vpop.f32.mrb[43].mxu0  ;;  %v5258_v60 = vpop.f32.mrb[55].mxu1  ;;  %v10974_v8 = vmul.f32 -1.442695, %v5262_v5 }
 0xcda   :  { %v10973_v44 = vmul.f32 -1.442695, %v5261_v23 }
 0xcdb   :  { %12518 = vpow2.f32 %v10972_v42 }
 0xcdc   :  { %12520 = vpow2.f32 %v10973_v44 }
 0xcdd   :  { %12522 = vtanh.f32 %v5263_v27 }
 0xcde   :  { %12524 = vpow2.f32 %v10974_v8 }
 0xce5   :  { %v12519_v55 = vpop.eup %12518 }
 0xce6   :  { %v5273_v62 = vadd.f32 1.0, %v12519_v55  ;;  %v12521_v34 = vpop.eup %12520 }
 0xce7   :  { %v5274_v61 = vadd.f32 1.0, %v12521_v34  ;;  %v12523_v32 = vpop.eup %12522 }
 0xce8   :  { %12526 = vrcp.f32 %v5273_v62  ;;  %v12525_v29 = vpop.eup %12524 }
 0xce9   :  { %12528 = vrcp.f32 %v5274_v61  ;;  %v5275_v47 = vadd.f32 1.0, %v12525_v29 }
 0xceb   :  { %12530 = vrcp.f32 %v5275_v47  ;;  %v14828_v47 = vld [vmem:[#allocation12] ss:$16 sps:$4 sm:$0xff]  }
 0xcf2   :  { %v12527_v15 = vpop.eup %12526 }
 0xcf3   :  { %v5284_v41 = vmul.f32 %v12527_v15, %v12523_v32  ;;  %v12529_v17 = vpop.eup %12528 }
 0xcf4   :  { %v5283_v60 = vmul.f32 %v12529_v17, %v14696_v20 }
 0xcf5   :  { %v12531_v55 = vpop.eup %12530 }
 0xcf6   :  { %v14757_v16 = vadd.f32 %v5284_v41, %v5283_v60  ;;  %v14830_v60 = vld [vmem:[#allocation12 + $0x4] ss:$16 sps:$4 sm:$0xff]  }
 0xcf8   :  { %12532 = vtanh.f32 %v14757_v16 }
 0xd02   :  { %v12533_v42 = vpop.eup %12532 }
 0xd03   :  { %v5287_v5 = vmul.f32 %v12533_v42, %v12531_v55  ;;  %v14834_v55 = vld [vmem:[#allocation12 + $0xc] ss:$16 sps:$4 sm:$0xff]   ;;  %v14836_v42 = vld [vmem:[#allocation12 + $0x24] ss:$16 sps:$4 sm:$0xff]  }
 0xd05   :  { %v5295_v62 = vrot.slane %v5287_v5, %v13646_v3  ;;  %v5353_v34 = vpack.c.bf16 %v5287_v5, %v5287_v5  ;;  %v14839_v5 = vld [vmem:[#allocation12 + $0x2c] ss:$16 sps:$4 sm:$0xff]  }
 0xd07   :  { %v5296_v23 = vcombine.high %v5295_v62, %v5295_v62  ;;  %v5303_v27 = vrot.slane %v5295_v62, %v13646_v3  ;;  %5579 = vmatmul.mubr.bf16.vlgmr.msra.gmra.mrb[44].mxu0 %v5353_v34  ;;  %5620 = vmatmul.mubr.bf16.vlgmr.msra.gmra.mrb[56].mxu1 %v5353_v34  ;;  %v14843_v62 = vld [vmem:[#allocation12 + $0x20] ss:$16 sps:$4 sm:$0xff]   ;;  %v14847_v34 = vld [vmem:[#allocation12 + $0x28] ss:$16 sps:$4 sm:$0xff]  }
 0xd08   :  { %5915 = vmatpush1.bf16.msra.mxu0 %v14239_v56  ;;  %5956 = vmatpush1.bf16.msra.mxu1 %v14241_v46 }
 0xd09   :  { %v5310_v29 = vrot.slane %v5296_v23, %v13646_v3  ;;  %5313 = vst.msk [vmem:[#allocation3 + $0x1] sm:$0x1] %vm1829_vm5, %v5303_v27  ;;  %5916 = vmatprep.subr.bf16.mxu0 %v14243_v50  ;;  %5957 = vmatprep.subr.bf16.mxu1 %v14245_v51  ;;  %v16099_v50 = vld [vmem:[#allocation33_spill] sm:$0xff] }
 0xd0a   :  { %5315 = vst.msk [vmem:[#allocation3 + $0x6] sm:$0x1] %vm1832_vm6, %v5303_v27  ;;  %5946 = vmatprep.mubr.bf16.mxu0 %v15962_v37  ;;  %5987 = vmatprep.mubr.bf16.mxu1 %v15962_v37  ;;  %v14849_v23 = vld [vmem:[#allocation12 + $0x44] ss:$16 sps:$4 sm:$0xff]   ;;  %v14852_v27 = vld [vmem:[#allocation12 + $0x4c] ss:$16 sps:$4 sm:$0xff]  }
 0xd0b   :  { %5314 = vst.msk [vmem:[#allocation3 + $0x9] sm:$0x1] %vm1829_vm5, %v5310_v29 }
 0xd0c   :  { %5316 = vst.msk [vmem:[#allocation3 + $0xe] sm:$0x1] %vm1832_vm6, %v5310_v29  ;;  %5917 = vmatpush1.bf16.msra.mxu0 %v14249_v52  ;;  %5958 = vmatpush1.bf16.msra.mxu1 %v14251_v53  ;;  %v16100_v52 = vsel %vm13516_vm3, %v14525_v25, %v14530_v40  ;;  %v14855_v29 = vld [vmem:[#allocation12 + $0x40] ss:$16 sps:$4 sm:$0xff]  }
 0xd0d   :  { %5918 = vmatprep.subr.bf16.mxu0 %v14255_v54  ;;  %5959 = vmatprep.subr.bf16.mxu1 %v14257_v1 }
 0xd10   :  { %5919 = vmatpush1.bf16.msra.mxu0 %v14263_v21  ;;  %5960 = vmatpush1.bf16.msra.mxu1 %v14265_v0  ;;  %v16101_v21 = vsel %vm13404_vm1, %v14533_v33, %v14542_v7 }
 0xd11   :  { %5920 = vmatprep.subr.bf16.mxu0 %v14269_v10  ;;  %5961 = vmatprep.subr.bf16.mxu1 %v14271_v59  ;;  %v16102_v10 = vsel %vm13520_vm4, %v14551_v58, %v14556_v57 }
 0xd14   :  { %5921 = vmatpush1.bf16.msra.mxu0 %v14275_v39  ;;  %5962 = vmatpush1.bf16.msra.mxu1 %v16076_v2 }
 0xd15   :  { %5922 = vmatprep.subr.bf16.mxu0 %v16077_v48  ;;  %5963 = vmatprep.subr.bf16.mxu1 %v16078_v6 }
 0xd18   :  { %5923 = vmatpush1.bf16.msra.mxu0 %v16079_v43  ;;  %5964 = vmatpush1.bf16.msra.mxu1 %v16080_v28 }
 0xd19   :  { %5924 = vmatprep.subr.bf16.mxu0 %v16081_v4  ;;  %5965 = vmatprep.subr.bf16.mxu1 %v16082_v22 }
 0xd1c   :  { %5925 = vmatpush1.bf16.msra.mxu0 %v16083_v30  ;;  %5966 = vmatpush1.bf16.msra.mxu1 %v16084_v31 }
 0xd1d   :  { %5926 = vmatprep.subr.bf16.mxu0 %v16085_v24  ;;  %5967 = vmatprep.subr.bf16.mxu1 %v16086_v49 }
 0xd20   :  { %5927 = vmatpush1.bf16.msra.mxu0 %v16087_v26  ;;  %5968 = vmatpush1.bf16.msra.mxu1 %v16088_v63 }
 0xd21   :  { %5928 = vmatprep.subr.bf16.mxu0 %v16089_v11  ;;  %5969 = vmatprep.subr.bf16.mxu1 %v16090_v19 }
 0xd24   :  { %5929 = vmatpush1.bf16.msra.mxu0 %v16091_v38  ;;  %5970 = vmatpush1.bf16.msra.mxu1 %v16092_v45 }
 0xd25   :  { %6250 = vmatprep.subr.bf16.mxu0 %v14830_v60  ;;  %6291 = vmatprep.subr.bf16.mxu1 %v14834_v55 }
 0xdda   :  { %v5580_v56 = vpop.f32.mrb[44].mxu0  ;;  %v5621_v46 = vpop.f32.mrb[56].mxu1 }
 0xddb   :  { %v5628_v51 = vadd.f32 %v5580_v56, %v16099_v50  ;;  %v5630_v53 = vadd.f32 %v5621_v46, %v16100_v52  ;;  %v5582_v54 = vpop.f32.mrb[45].mxu0  ;;  %v5623_v1 = vpop.f32.mrb[57].mxu1  ;;  %v14859_v56 = vld [vmem:[#allocation12 + $0x48] ss:$16 sps:$4 sm:$0xff]   ;;  %v14861_v46 = vld [vmem:[#allocation12 + $0x64] ss:$16 sps:$4 sm:$0xff]  }
 0xddc   :  { %v5629_v0 = vadd.f32 %v5582_v54, %v16101_v21  ;;  %v5631_v59 = vadd.f32 %v5623_v1, %v16102_v10  ;;  %v5584_v39 = vpop.f32.mrb[46].mxu0  ;;  %v5625_v20 = vpop.f32.mrb[58].mxu1  ;;  %v14864_v50 = vld [vmem:[#allocation12 + $0x6c] ss:$16 sps:$4 sm:$0xff]   ;;  %v14871_v52 = vld [vmem:[#allocation12 + $0x68] ss:$16 sps:$4 sm:$0xff]  }
 0xddd   :  { %v11007_v2 = vmul.f32 -1.442695, %v5628_v51  ;;  %v5585_v48 = vpop.f32.mrb[47].mxu0  ;;  %v5626_v6 = vpop.f32.mrb[59].mxu1  ;;  %v11009_v28 = vmul.f32 -1.442695, %v5630_v53 }
 0xdde   :  { %v11008_v43 = vmul.f32 -1.442695, %v5629_v0  ;;  %v14867_v51 = vld [vmem:[#allocation12 + $0x60] ss:$16 sps:$4 sm:$0xff]   ;;  %v14873_v53 = vld [vmem:[#allocation12 + $0x84] ss:$16 sps:$4 sm:$0xff]  }
 0xddf   :  { %12534 = vpow2.f32 %v11007_v2  ;;  %v14876_v54 = vld [vmem:[#allocation12 + $0x8c] ss:$16 sps:$4 sm:$0xff]   ;;  %v14879_v1 = vld [vmem:[#allocation12 + $0x80] ss:$16 sps:$4 sm:$0xff]   ;;  %v14883_v21 = vld [vmem:[#allocation12 + $0x88] ss:$16 sps:$4 sm:$0xff]  }
 0xde0   :  { %12536 = vpow2.f32 %v11008_v43  ;;  %v14885_v0 = vld [vmem:[#allocation12 + $0xa4] ss:$16 sps:$4 sm:$0xff]   ;;  %v14888_v10 = vld [vmem:[#allocation12 + $0xac] ss:$16 sps:$4 sm:$0xff]   ;;  %v14895_v39 = vld [vmem:[#allocation12 + $0xa8] ss:$16 sps:$4 sm:$0xff]  }
 0xde1   :  { %12538 = vtanh.f32 %v5631_v59  ;;  %v14891_v59 = vld [vmem:[#allocation12 + $0xa0] ss:$16 sps:$4 sm:$0xff]   ;;  %v14897_v20 = vld [vmem:[#allocation12 + $0xc4] ss:$16 sps:$4 sm:$0xff]   ;;  %v14900_v2 = vld [vmem:[#allocation12 + $0xcc] ss:$16 sps:$4 sm:$0xff]  }
 0xde2   :  { %12540 = vpow2.f32 %v11009_v28  ;;  %v14903_v48 = vld [vmem:[#allocation12 + $0xc0] ss:$16 sps:$4 sm:$0xff]   ;;  %v14907_v6 = vld [vmem:[#allocation12 + $0xc8] ss:$16 sps:$4 sm:$0xff]   ;;  %v14909_v43 = vld [vmem:[#allocation12 + $0xe4] ss:$16 sps:$4 sm:$0xff]  }
 0xde3   :  { %v14912_v28 = vld [vmem:[#allocation12 + $0xec] ss:$16 sps:$4 sm:$0xff]  }
 0xde9   :  { %v12535_v4 = vpop.eup %12534 }
 0xdea   :  { %v5641_v22 = vadd.f32 1.0, %v12535_v4  ;;  %v12537_v30 = vpop.eup %12536  ;;  %v14915_v4 = vld [vmem:[#allocation12 + $0xe0] ss:$16 sps:$4 sm:$0xff]  }
 0xdeb   :  { %v5642_v31 = vadd.f32 1.0, %v12537_v30  ;;  %v12539_v24 = vpop.eup %12538 }
 0xdec   :  { %12542 = vrcp.f32 %v5641_v22  ;;  %v12541_v49 = vpop.eup %12540  ;;  %v14919_v22 = vld [vmem:[#allocation12 + $0xe8] ss:$16 sps:$4 sm:$0xff]  }
 0xded   :  { %12544 = vrcp.f32 %v5642_v31  ;;  %v5643_v19 = vadd.f32 1.0, %v12541_v49  ;;  %v16103_v49 = vld [vmem:[#allocation67_spill] sm:$0xff] }
 0xdef   :  { %12546 = vrcp.f32 %v5643_v19 }
 0xdf6   :  { %v12543_v26 = vpop.eup %12542 }
 0xdf7   :  { %v5652_v63 = vmul.f32 %v12543_v26, %v12539_v24  ;;  %v12545_v11 = vpop.eup %12544  ;;  %v16104_v26 = vld [vmem:[#allocation68_spill] sm:$0xff] }
 0xdf8   :  { %v5651_v38 = vmul.f32 %v12545_v11, %v14757_v16  ;;  %v14832_v16 = vld [vmem:[#allocation12 + $0x8] ss:$16 sps:$4 sm:$0xff]  }
 0xdf9   :  { %v12547_v12 = vpop.eup %12546 }
 0xdfa   :  { %v14816_v45 = vadd.f32 %v5652_v63, %v5651_v38  ;;  %v16105_v63 = vsel %vm13516_vm3, %v16103_v49, %v16104_v26 }
 0xdfc   :  { %12548 = vtanh.f32 %v14816_v45 }
 0xe06   :  { %v12549_v44 = vpop.eup %12548 }
 0xe07   :  { %v5655_v8 = vmul.f32 %v12549_v44, %v12547_v12  ;;  %v16106_v12 = vld [vmem:[#allocation69_spill] sm:$0xff]  ;;  %v16107_v44 = vld [vmem:[#allocation70_spill] sm:$0xff] }
 0xe09   :  { %v5663_v61 = vrot.slane %v5655_v8, %v13646_v3  ;;  %v5721_v32 = vpack.c.bf16 %v5655_v8, %v5655_v8  ;;  %v16108_v8 = vsel %vm13404_vm1, %v16106_v12, %v16107_v44 }
 0xe0b   :  { %v5664_v15 = vcombine.high %v5663_v61, %v5663_v61  ;;  %v5671_v41 = vrot.slane %v5663_v61, %v13646_v3  ;;  %5947 = vmatmul.mubr.bf16.vlgmr.msra.gmra.mrb[48].mxu0 %v5721_v32  ;;  %5988 = vmatmul.mubr.bf16.vlgmr.msra.gmra.mrb[60].mxu1 %v5721_v32  ;;  %v16109_v32 = vld [vmem:[#allocation71_spill] sm:$0xff] }
 0xe0c   :  { %6282 = vmatprep.mubr.bf16.mxu0 %v15962_v37  ;;  %6323 = vmatprep.mubr.bf16.mxu1 %v15962_v37 }
 0xe0d   :  { %v5678_v17 = vrot.slane %v5664_v15, %v13646_v3  ;;  %5681 = vst.msk [vmem:[#allocation3 + $0x2] sm:$0x1] %vm1829_vm5, %v5671_v41  ;;  %6251 = vmatpush1.bf16.msra.mxu0 %v14828_v47  ;;  %6292 = vmatpush1.bf16.msra.mxu1 %v14832_v16  ;;  %v16110_v15 = vld [vmem:[#allocation73_spill] sm:$0xff] }
 0xe0e   :  { %5683 = vst.msk [vmem:[#allocation3 + $0x5] sm:$0x1] %vm1832_vm6, %v5671_v41  ;;  %6252 = vmatprep.subr.bf16.mxu0 %v14836_v42  ;;  %6293 = vmatprep.subr.bf16.mxu1 %v14839_v5  ;;  %v16111_v41 = vsel %vm13520_vm4, %v16109_v32, %v16110_v15 }
 0xe0f   :  { %5682 = vst.msk [vmem:[#allocation3 + $0xa] sm:$0x1] %vm1829_vm5, %v5678_v17 }
 0xe10   :  { %5684 = vst.msk [vmem:[#allocation3 + $0xd] sm:$0x1] %vm1832_vm6, %v5678_v17 }
 0xe11   :  { %6253 = vmatpush1.bf16.msra.mxu0 %v14843_v62  ;;  %6294 = vmatpush1.bf16.msra.mxu1 %v14847_v34 }
 0xe12   :  { %6254 = vmatprep.subr.bf16.mxu0 %v14849_v23  ;;  %6295 = vmatprep.subr.bf16.mxu1 %v14852_v27 }
 0xe15   :  { %6255 = vmatpush1.bf16.msra.mxu0 %v14855_v29  ;;  %6296 = vmatpush1.bf16.msra.mxu1 %v14859_v56 }
 0xe16   :  { %6256 = vmatprep.subr.bf16.mxu0 %v14861_v46  ;;  %6297 = vmatprep.subr.bf16.mxu1 %v14864_v50 }
 0xe19   :  { %6257 = vmatpush1.bf16.msra.mxu0 %v14867_v51  ;;  %6298 = vmatpush1.bf16.msra.mxu1 %v14871_v52 }
 0xe1a   :  { %6258 = vmatprep.subr.bf16.mxu0 %v14873_v53  ;;  %6299 = vmatprep.subr.bf16.mxu1 %v14876_v54 }
 0xe1d   :  { %6259 = vmatpush1.bf16.msra.mxu0 %v14879_v1  ;;  %6300 = vmatpush1.bf16.msra.mxu1 %v14883_v21 }
 0xe1e   :  { %6260 = vmatprep.subr.bf16.mxu0 %v14885_v0  ;;  %6301 = vmatprep.subr.bf16.mxu1 %v14888_v10 }
 0xe21   :  { %6261 = vmatpush1.bf16.msra.mxu0 %v14891_v59  ;;  %6302 = vmatpush1.bf16.msra.mxu1 %v14895_v39 }
 0xe22   :  { %6262 = vmatprep.subr.bf16.mxu0 %v14897_v20  ;;  %6303 = vmatprep.subr.bf16.mxu1 %v14900_v2 }
 0xe25   :  { %6263 = vmatpush1.bf16.msra.mxu0 %v14903_v48  ;;  %6304 = vmatpush1.bf16.msra.mxu1 %v14907_v6 }
 0xe26   :  { %6264 = vmatprep.subr.bf16.mxu0 %v14909_v43  ;;  %6305 = vmatprep.subr.bf16.mxu1 %v14912_v28 }
 0xe29   :  { %6265 = vmatpush1.bf16.msra.mxu0 %v14915_v4  ;;  %6306 = vmatpush1.bf16.msra.mxu1 %v14919_v22 }
 0xe2a   :  { %6586 = vmatprep.subr.bf16.mxu0 %v14830_v60  ;;  %6627 = vmatprep.subr.bf16.mxu1 %v14834_v55 }
 0xede   :  { %v5948_v30 = vpop.f32.mrb[48].mxu0  ;;  %v5989_v31 = vpop.f32.mrb[60].mxu1 }
 0xedf   :  { %v5996_v24 = vadd.f32 %v5948_v30, %v14574_v13  ;;  %v5998_v11 = vadd.f32 %v5989_v31, %v16105_v63  ;;  %v5950_v19 = vpop.f32.mrb[49].mxu0  ;;  %v5991_v38 = vpop.f32.mrb[61].mxu1 }
 0xee0   :  { %v5997_v61 = vadd.f32 %v5950_v19, %v16108_v8  ;;  %v5999_v13 = vadd.f32 %v5991_v38, %v16111_v41  ;;  %v5952_v17 = vpop.f32.mrb[50].mxu0  ;;  %v5993_v30 = vpop.f32.mrb[62].mxu1 }
 0xee1   :  { %v11042_v18 = vmul.f32 -1.442695, %v5996_v24  ;;  %v5953_v14 = vpop.f32.mrb[51].mxu0  ;;  %v5994_v58 = vpop.f32.mrb[63].mxu1  ;;  %v11044_v63 = vmul.f32 -1.442695, %v5998_v11 }
 0xee2   :  { %v11043_v31 = vmul.f32 -1.442695, %v5997_v61 }
 0xee3   :  { %12550 = vpow2.f32 %v11042_v18 }
 0xee4   :  { %12552 = vpow2.f32 %v11043_v31  ;;  %v16112_v31 = vld [vmem:[#allocation72_spill] sm:$0xff] }
 0xee5   :  { %12554 = vtanh.f32 %v5999_v13 }
 0xee6   :  { %12556 = vpow2.f32 %v11044_v63 }
 0xeed   :  { %v12551_v57 = vpop.eup %12550 }
 0xeee   :  { %v6009_v33 = vadd.f32 1.0, %v12551_v57  ;;  %v12553_v7 = vpop.eup %12552 }
 0xeef   :  { %v6010_v19 = vadd.f32 1.0, %v12553_v7  ;;  %v12555_v8 = vpop.eup %12554 }
 0xef0   :  { %12558 = vrcp.f32 %v6009_v33  ;;  %v12557_v25 = vpop.eup %12556 }
 0xef1   :  { %12560 = vrcp.f32 %v6010_v19  ;;  %v6011_v24 = vadd.f32 1.0, %v12557_v25  ;;  %v16113_v19 = vsel %vm13516_vm3, %v16104_v26, %v16103_v49 }
 0xef3   :  { %12562 = vrcp.f32 %v6011_v24 }
 0xefa   :  { %v12559_v38 = vpop.eup %12558 }
 0xefb   :  { %v6020_v41 = vmul.f32 %v12559_v38, %v12555_v8  ;;  %v12561_v17 = vpop.eup %12560 }
 0xefc   :  { %v6019_v14 = vmul.f32 %v12561_v17, %v14816_v45  ;;  %v16114_v17 = vsel %vm13404_vm1, %v16107_v44, %v16106_v12 }
 0xefd   :  { %v12563_v18 = vpop.eup %12562 }
 0xefe   :  { %v14943_v58 = vadd.f32 %v6020_v41, %v6019_v14  ;;  %v16115_v14 = vsel %vm13520_vm4, %v16110_v15, %v16109_v32 }
 0xf00   :  { %12564 = vtanh.f32 %v14943_v58 }
 0xf0a   :  { %v12565_v57 = vpop.eup %12564 }
 0xf0b   :  { %v6023_v11 = vmul.f32 %v12565_v57, %v12563_v18 }
 0xf0d   :  { %v6031_v33 = vrot.slane %v6023_v11, %v13646_v3  ;;  %v6057_v7 = vpack.c.bf16 %v6023_v11, %v6023_v11 }
 0xf0f   :  { %v6032_v61 = vcombine.high %v6031_v33, %v6031_v33  ;;  %v6039_v13 = vrot.slane %v6031_v33, %v13646_v3  ;;  %6283 = vmatmul.mubr.bf16.vlgmr.msra.gmra.mrb[52].mxu0 %v6057_v7  ;;  %6324 = vmatmul.mubr.bf16.vlgmr.msra.gmra.mrb[64].mxu1 %v6057_v7 }
 0xf10   :  { %6587 = vmatpush1.bf16.msra.mxu0 %v14828_v47  ;;  %6628 = vmatpush1.bf16.msra.mxu1 %v14832_v16 }
 0xf11   :  { %v6046_v25 = vrot.slane %v6032_v61, %v13646_v3  ;;  %6049 = vst.msk [vmem:[#allocation3 + $0x3] sm:$0x1] %vm1829_vm5, %v6039_v13  ;;  %6588 = vmatprep.subr.bf16.mxu0 %v14836_v42  ;;  %6629 = vmatprep.subr.bf16.mxu1 %v14839_v5 }
 0xf12   :  { %6051 = vst.msk [vmem:[#allocation3 + $0x4] sm:$0x1] %vm1832_vm6, %v6039_v13  ;;  %6618 = vmatprep.mubr.bf16.mxu0 %v15962_v37  ;;  %6659 = vmatprep.mubr.bf16.mxu1 %v15962_v37 }
 0xf13   :  { %6050 = vst.msk [vmem:[#allocation3 + $0xb] sm:$0x1] %vm1829_vm5, %v6046_v25 }
 0xf14   :  { %6052 = vst.msk [vmem:[#allocation3 + $0xc] sm:$0x1] %vm1832_vm6, %v6046_v25  ;;  %6589 = vmatpush1.bf16.msra.mxu0 %v14843_v62  ;;  %6630 = vmatpush1.bf16.msra.mxu1 %v14847_v34 }
 0xf15   :  { %6590 = vmatprep.subr.bf16.mxu0 %v14849_v23  ;;  %6631 = vmatprep.subr.bf16.mxu1 %v14852_v27 }
 0xf18   :  { %6591 = vmatpush1.bf16.msra.mxu0 %v14855_v29  ;;  %6632 = vmatpush1.bf16.msra.mxu1 %v14859_v56 }
 0xf19   :  { %6592 = vmatprep.subr.bf16.mxu0 %v14861_v46  ;;  %6633 = vmatprep.subr.bf16.mxu1 %v14864_v50 }
 0xf1c   :  { %6593 = vmatpush1.bf16.msra.mxu0 %v14867_v51  ;;  %6634 = vmatpush1.bf16.msra.mxu1 %v14871_v52 }
 0xf1d   :  { %6594 = vmatprep.subr.bf16.mxu0 %v14873_v53  ;;  %6635 = vmatprep.subr.bf16.mxu1 %v14876_v54 }
 0xf20   :  { %6595 = vmatpush1.bf16.msra.mxu0 %v14879_v1  ;;  %6636 = vmatpush1.bf16.msra.mxu1 %v14883_v21 }
 0xf21   :  { %6596 = vmatprep.subr.bf16.mxu0 %v14885_v0  ;;  %6637 = vmatprep.subr.bf16.mxu1 %v14888_v10 }
 0xf24   :  { %6597 = vmatpush1.bf16.msra.mxu0 %v14891_v59  ;;  %6638 = vmatpush1.bf16.msra.mxu1 %v14895_v39 }
 0xf25   :  { %6598 = vmatprep.subr.bf16.mxu0 %v14897_v20  ;;  %6639 = vmatprep.subr.bf16.mxu1 %v14900_v2 }
 0xf28   :  { %6599 = vmatpush1.bf16.msra.mxu0 %v14903_v48  ;;  %6640 = vmatpush1.bf16.msra.mxu1 %v14907_v6 }
 0xf29   :  { %6600 = vmatprep.subr.bf16.mxu0 %v14909_v43  ;;  %6641 = vmatprep.subr.bf16.mxu1 %v14912_v28 }
 0xf2c   :  { %6601 = vmatpush1.bf16.msra.mxu0 %v14915_v4  ;;  %6642 = vmatpush1.bf16.msra.mxu1 %v14919_v22 }
 0xf2d   :  { %6922 = vmatprep.subr.bf16.mxu0 %v14830_v60  ;;  %6963 = vmatprep.subr.bf16.mxu1 %v14834_v55 }
 0xfe2   :  { %v6284_v45 = vpop.f32.mrb[52].mxu0  ;;  %v6325_v30 = vpop.f32.mrb[64].mxu1 }
 0xfe3   :  { %v6332_v63 = vadd.f32 %v6284_v45, %v16112_v31  ;;  %v6334_v8 = vadd.f32 %v6325_v30, %v16113_v19  ;;  %v6286_v38 = vpop.f32.mrb[53].mxu0  ;;  %v6327_v41 = vpop.f32.mrb[65].mxu1 }
 0xfe4   :  { %v6333_v24 = vadd.f32 %v6286_v38, %v16114_v17  ;;  %v6335_v18 = vadd.f32 %v6327_v41, %v16115_v14  ;;  %v6288_v57 = vpop.f32.mrb[54].mxu0  ;;  %v6329_v11 = vpop.f32.mrb[66].mxu1 }
 0xfe5   :  { %v11077_v33 = vmul.f32 -1.442695, %v6332_v63  ;;  %v6289_v7 = vpop.f32.mrb[55].mxu0  ;;  %v6330_v49 = vpop.f32.mrb[67].mxu1  ;;  %v11079_v61 = vmul.f32 -1.442695, %v6334_v8 }
 0xfe6   :  { %v11078_v26 = vmul.f32 -1.442695, %v6333_v24  ;;  %v16116_v7 = vld [vmem:[#allocation74_spill] sm:$0xff] }
 0xfe7   :  { %12566 = vpow2.f32 %v11077_v33 }
 0xfe8   :  { %12568 = vpow2.f32 %v11078_v26  ;;  %v16117_v26 = vld [vmem:[#allocation62_spill] sm:$0xff] }
 0xfe9   :  { %12570 = vtanh.f32 %v6335_v18 }
 0xfea   :  { %12572 = vpow2.f32 %v11079_v61  ;;  %v16118_v61 = vsel %vm13516_vm3, %v14530_v40, %v16117_v26 }
 0xff1   :  { %v12567_v13 = vpop.eup %12566 }
 0xff2   :  { %v6345_v25 = vadd.f32 1.0, %v12567_v13  ;;  %v12569_v12 = vpop.eup %12568 }
 0xff3   :  { %v6346_v44 = vadd.f32 1.0, %v12569_v12  ;;  %v12571_v45 = vpop.eup %12570 }
 0xff4   :  { %12574 = vrcp.f32 %v6345_v25  ;;  %v12573_v32 = vpop.eup %12572 }
 0xff5   :  { %12576 = vrcp.f32 %v6346_v44  ;;  %v6347_v63 = vadd.f32 1.0, %v12573_v32  ;;  %v16119_v44 = vld [vmem:[#allocation64_spill] sm:$0xff] }
 0xff7   :  { %12578 = vrcp.f32 %v6347_v63 }
 0xffe   :  { %v12575_v15 = vpop.eup %12574 }
 0xfff   :  { %v6356_v30 = vmul.f32 %v12575_v15, %v12571_v45  ;;  %v12577_v31 = vpop.eup %12576  ;;  %v16120_v45 = vld [vmem:[#allocation63_spill] sm:$0xff]  ;;  %v16123_v15 = vld [vmem:[#allocation65_spill] sm:$0xff] }
0x1000   :  { %v6355_v19 = vmul.f32 %v12577_v31, %v14943_v58  ;;  %v16121_v32 = vsel %vm13404_vm1, %v16119_v44, %v16120_v45 }
0x1001   :  { %v12579_v8 = vpop.eup %12578 }
0x1002   :  { %v15004_v38 = vadd.f32 %v6356_v30, %v6355_v19 }
0x1004   :  { %12580 = vtanh.f32 %v15004_v38 }
0x100e   :  { %v12581_v41 = vpop.eup %12580 }
0x100f   :  { %v6359_v17 = vmul.f32 %v12581_v41, %v12579_v8 }
0x1011   :  { %v6367_v24 = vrot.slane %v6359_v17, %v13646_v3  ;;  %v6393_v14 = vpack.c.bf16 %v6359_v17, %v6359_v17 }
0x1013   :  { %v6368_v18 = vcombine.high %v6367_v24, %v6367_v24  ;;  %v6375_v57 = vrot.slane %v6367_v24, %v13646_v3  ;;  %6619 = vmatmul.mubr.bf16.vlgmr.msra.gmra.mrb[56].mxu0 %v6393_v14  ;;  %6660 = vmatmul.mubr.bf16.vlgmr.msra.gmra.mrb[68].mxu1 %v6393_v14 }
0x1014   :  { %6923 = vmatpush1.bf16.msra.mxu0 %v14828_v47  ;;  %6964 = vmatpush1.bf16.msra.mxu1 %v14832_v16 }
0x1015   :  { %v6382_v58 = vrot.slane %v6368_v18, %v13646_v3  ;;  %6385 = vst.msk [vmem:[#allocation3 + $0x4] sm:$0x1] %vm1829_vm5, %v6375_v57  ;;  %6924 = vmatprep.subr.bf16.mxu0 %v14836_v42  ;;  %6965 = vmatprep.subr.bf16.mxu1 %v14839_v5 }
0x1016   :  { %6387 = vst.msk [vmem:[#allocation3 + $0x3] sm:$0x1] %vm1832_vm6, %v6375_v57  ;;  %6954 = vmatprep.mubr.bf16.mxu0 %v15962_v37  ;;  %6995 = vmatprep.mubr.bf16.mxu1 %v15962_v37 }
0x1017   :  { %6386 = vst.msk [vmem:[#allocation3 + $0xc] sm:$0x1] %vm1829_vm5, %v6382_v58 }
0x1018   :  { %6388 = vst.msk [vmem:[#allocation3 + $0xb] sm:$0x1] %vm1832_vm6, %v6382_v58  ;;  %6925 = vmatpush1.bf16.msra.mxu0 %v14843_v62  ;;  %6966 = vmatpush1.bf16.msra.mxu1 %v14847_v34 }
0x1019   :  { %6926 = vmatprep.subr.bf16.mxu0 %v14849_v23  ;;  %6967 = vmatprep.subr.bf16.mxu1 %v14852_v27 }
0x101c   :  { %6927 = vmatpush1.bf16.msra.mxu0 %v14855_v29  ;;  %6968 = vmatpush1.bf16.msra.mxu1 %v14859_v56 }
0x101d   :  { %6928 = vmatprep.subr.bf16.mxu0 %v14861_v46  ;;  %6969 = vmatprep.subr.bf16.mxu1 %v14864_v50 }
0x1020   :  { %6929 = vmatpush1.bf16.msra.mxu0 %v14867_v51  ;;  %6970 = vmatpush1.bf16.msra.mxu1 %v14871_v52 }
0x1021   :  { %6930 = vmatprep.subr.bf16.mxu0 %v14873_v53  ;;  %6971 = vmatprep.subr.bf16.mxu1 %v14876_v54 }
0x1024   :  { %6931 = vmatpush1.bf16.msra.mxu0 %v14879_v1  ;;  %6972 = vmatpush1.bf16.msra.mxu1 %v14883_v21 }
0x1025   :  { %6932 = vmatprep.subr.bf16.mxu0 %v14885_v0  ;;  %6973 = vmatprep.subr.bf16.mxu1 %v14888_v10 }
0x1028   :  { %6933 = vmatpush1.bf16.msra.mxu0 %v14891_v59  ;;  %6974 = vmatpush1.bf16.msra.mxu1 %v14895_v39 }
0x1029   :  { %6934 = vmatprep.subr.bf16.mxu0 %v14897_v20  ;;  %6975 = vmatprep.subr.bf16.mxu1 %v14900_v2 }
0x102c   :  { %6935 = vmatpush1.bf16.msra.mxu0 %v14903_v48  ;;  %6976 = vmatpush1.bf16.msra.mxu1 %v14907_v6 }
0x102d   :  { %6936 = vmatprep.subr.bf16.mxu0 %v14909_v43  ;;  %6977 = vmatprep.subr.bf16.mxu1 %v14912_v28 }
0x1030   :  { %6937 = vmatpush1.bf16.msra.mxu0 %v14915_v4  ;;  %6978 = vmatpush1.bf16.msra.mxu1 %v14919_v22 }
0x1031   :  { %7258 = vmatprep.subr.bf16.mxu0 %v14830_v60  ;;  %7299 = vmatprep.subr.bf16.mxu1 %v14834_v55  ;;  %v16122_v55 = vld [vmem:[#allocation66_spill] sm:$0xff] }
0x1032   :  { %v16124_v30 = vsel %vm13520_vm4, %v16122_v55, %v16123_v15 }
0x10e6   :  { %v6620_v11 = vpop.f32.mrb[56].mxu0  ;;  %v6661_v33 = vpop.f32.mrb[68].mxu1 }
0x10e7   :  { %v6668_v49 = vadd.f32 %v6620_v11, %v16116_v7  ;;  %v6670_v13 = vadd.f32 %v6661_v33, %v16118_v61  ;;  %v6622_v25 = vpop.f32.mrb[57].mxu0  ;;  %v6663_v12 = vpop.f32.mrb[69].mxu1 }
0x10e8   :  { %v6669_v60 = vadd.f32 %v6622_v25, %v16121_v32  ;;  %v6671_v31 = vadd.f32 %v6663_v12, %v16124_v30  ;;  %v6624_v63 = vpop.f32.mrb[58].mxu0  ;;  %v6665_v19 = vpop.f32.mrb[70].mxu1 }
0x10e9   :  { %v11112_v8 = vmul.f32 -1.442695, %v6668_v49  ;;  %v6625_v41 = vpop.f32.mrb[59].mxu0  ;;  %v6666_v40 = vpop.f32.mrb[71].mxu1  ;;  %v11114_v24 = vmul.f32 -1.442695, %v6670_v13 }
0x10ea   :  { %v11113_v17 = vmul.f32 -1.442695, %v6669_v60 }
0x10eb   :  { %12582 = vpow2.f32 %v11112_v8 }
0x10ec   :  { %12584 = vpow2.f32 %v11113_v17 }
0x10ed   :  { %12586 = vtanh.f32 %v6671_v31 }
0x10ee   :  { %12588 = vpow2.f32 %v11114_v24 }
0x10f5   :  { %v12583_v14 = vpop.eup %12582 }
0x10f6   :  { %v6681_v18 = vadd.f32 1.0, %v12583_v14  ;;  %v12585_v57 = vpop.eup %12584 }
0x10f7   :  { %v6682_v58 = vadd.f32 1.0, %v12585_v57  ;;  %v12587_v11 = vpop.eup %12586 }
0x10f8   :  { %12590 = vrcp.f32 %v6681_v18  ;;  %v12589_v33 = vpop.eup %12588 }
0x10f9   :  { %12592 = vrcp.f32 %v6682_v58  ;;  %v6683_v49 = vadd.f32 1.0, %v12589_v33 }
0x10fb   :  { %12594 = vrcp.f32 %v6683_v49  ;;  %v12924_v49 = vmov 0.0  }
0x1102   :  { %v12591_v7 = vpop.eup %12590 }
0x1103   :  { %v6692_v26 = vmul.f32 %v12591_v7, %v12587_v11  ;;  %v12593_v61 = vpop.eup %12592  ;;  %v12256_v7 = vld [vmem:[#allocation13 + $0x4] ss:$12 sps:$4 sm:$0xff]  }
0x1104   :  { %v6691_v25 = vmul.f32 %v12593_v61, %v15004_v38  ;;  %v12257_v61 = vld [vmem:[#allocation13 + $0x8] ss:$12 sps:$4 sm:$0xff]  }
0x1105   :  { %v12595_v13 = vpop.eup %12594 }
0x1106   :  { %v15065_v12 = vadd.f32 %v6692_v26, %v6691_v25  ;;  %v12254_v26 = vld [vmem:[#allocation13] ss:$12 sps:$4 sm:$0xff]   ;;  %v12260_v25 = vld [vmem:[#allocation13 + $0x1c] ss:$12 sps:$4 sm:$0xff]  }
0x1108   :  { %12596 = vtanh.f32 %v15065_v12 }
0x1112   :  { %v12597_v44 = vpop.eup %12596 }
0x1113   :  { %v6695_v45 = vmul.f32 %v12597_v44, %v12595_v13  ;;  %v12261_v13 = vld [vmem:[#allocation13 + $0x20] ss:$12 sps:$4 sm:$0xff]   ;;  %v12262_v44 = vld [vmem:[#allocation13 + $0x30] ss:$12 sps:$4 sm:$0xff]  }
0x1115   :  { %v6703_v32 = vrot.slane %v6695_v45, %v13646_v3  ;;  %v6729_v60 = vpack.c.bf16 %v6695_v45, %v6695_v45  ;;  %v12264_v45 = vld [vmem:[#allocation13 + $0x34] ss:$12 sps:$4 sm:$0xff]  }
0x1117   :  { %v6704_v55 = vcombine.high %v6703_v32, %v6703_v32  ;;  %v6711_v15 = vrot.slane %v6703_v32, %v13646_v3  ;;  %6955 = vmatmul.mubr.bf16.vlgmr.msra.gmra.mrb[60].mxu0 %v6729_v60  ;;  %6996 = vmatmul.mubr.bf16.vlgmr.msra.gmra.mrb[72].mxu1 %v6729_v60  ;;  %v12265_v32 = vld [vmem:[#allocation13 + $0x38] ss:$12 sps:$4 sm:$0xff]  }
0x1118   :  { %7259 = vmatpush1.bf16.msra.mxu0 %v14828_v47  ;;  %7300 = vmatpush1.bf16.msra.mxu1 %v14832_v16  ;;  %v12268_v60 = vld [vmem:[#allocation13 + $0x4c] ss:$12 sps:$4 sm:$0xff]  }
0x1119   :  { %v6718_v38 = vrot.slane %v6704_v55, %v13646_v3  ;;  %6721 = vst.msk [vmem:[#allocation3 + $0x5] sm:$0x1] %vm1829_vm5, %v6711_v15  ;;  %7260 = vmatprep.subr.bf16.mxu0 %v14836_v42  ;;  %7301 = vmatprep.subr.bf16.mxu1 %v14839_v5  ;;  %v16125_v42 = vld [vmem:[#allocation75_spill] sm:$0xff] }
0x111a   :  { %6723 = vst.msk [vmem:[#allocation3 + $0x2] sm:$0x1] %vm1832_vm6, %v6711_v15  ;;  %7290 = vmatprep.mubr.bf16.mxu0 %v15962_v37  ;;  %7331 = vmatprep.mubr.bf16.mxu1 %v15962_v37  ;;  %v12266_v55 = vld [vmem:[#allocation13 + $0x48] ss:$12 sps:$4 sm:$0xff]   ;;  %v12269_v15 = vld [vmem:[#allocation13 + $0x50] ss:$12 sps:$4 sm:$0xff]  }
0x111b   :  { %6722 = vst.msk [vmem:[#allocation3 + $0xd] sm:$0x1] %vm1829_vm5, %v6718_v38 }
0x111c   :  { %6724 = vst.msk [vmem:[#allocation3 + $0xa] sm:$0x1] %vm1832_vm6, %v6718_v38  ;;  %7261 = vmatpush1.bf16.msra.mxu0 %v14843_v62  ;;  %7302 = vmatpush1.bf16.msra.mxu1 %v14847_v34  ;;  %v16126_v62 = vld [vmem:[#allocation53_spill] sm:$0xff]  ;;  %v16127_v34 = vld [vmem:[#allocation48_spill] sm:$0xff] }
0x111d   :  { %7262 = vmatprep.subr.bf16.mxu0 %v14849_v23  ;;  %7303 = vmatprep.subr.bf16.mxu1 %v14852_v27  ;;  %v16128_v23 = vsel %vm13516_vm3, %v16126_v62, %v16127_v34  ;;  %v12272_v38 = vld [vmem:[#allocation13 + $0x64] ss:$12 sps:$4 sm:$0xff]   ;;  %v12277_v62 = vld [vmem:[#allocation13 + $0x80] ss:$12 sps:$4 sm:$0xff]  }
0x111e   :  { %v12280_v34 = vld [vmem:[#allocation13 + $0x94] ss:$12 sps:$4 sm:$0xff]  }
0x1120   :  { %7263 = vmatpush1.bf16.msra.mxu0 %v14855_v29  ;;  %7304 = vmatpush1.bf16.msra.mxu1 %v14859_v56 }
0x1121   :  { %7264 = vmatprep.subr.bf16.mxu0 %v14861_v46  ;;  %7305 = vmatprep.subr.bf16.mxu1 %v14864_v50  ;;  %v16129_v46 = vld [vmem:[#allocation35_spill] sm:$0xff]  ;;  %v16130_v50 = vld [vmem:[#allocation36_spill] sm:$0xff] }
0x1124   :  { %7265 = vmatpush1.bf16.msra.mxu0 %v14867_v51  ;;  %7306 = vmatpush1.bf16.msra.mxu1 %v14871_v52  ;;  %v16131_v51 = vsel %vm13404_vm1, %v16129_v46, %v16130_v50  ;;  %v12285_v46 = vld [vmem:[#allocation13 + $0xb0] ss:$12 sps:$4 sm:$0xff]  }
0x1125   :  { %7266 = vmatprep.subr.bf16.mxu0 %v14873_v53  ;;  %7307 = vmatprep.subr.bf16.mxu1 %v14876_v54  ;;  %v16132_v53 = vld [vmem:[#allocation56_spill] sm:$0xff]  ;;  %v16133_v54 = vld [vmem:[#allocation57_spill] sm:$0xff] }
0x1128   :  { %7267 = vmatpush1.bf16.msra.mxu0 %v14879_v1  ;;  %7308 = vmatpush1.bf16.msra.mxu1 %v14883_v21  ;;  %v16134_v1 = vsel %vm13520_vm4, %v16132_v53, %v16133_v54  ;;  %v16136_v54 = vld [vmem:[#allocation51_spill] sm:$0xff] }
0x1129   :  { %7268 = vmatprep.subr.bf16.mxu0 %v14885_v0  ;;  %7309 = vmatprep.subr.bf16.mxu1 %v14888_v10 }
0x112c   :  { %7269 = vmatpush1.bf16.msra.mxu0 %v14891_v59  ;;  %7310 = vmatpush1.bf16.msra.mxu1 %v14895_v39 }
0x112d   :  { %7270 = vmatprep.subr.bf16.mxu0 %v14897_v20  ;;  %7311 = vmatprep.subr.bf16.mxu1 %v14900_v2 }
0x1130   :  { %7271 = vmatpush1.bf16.msra.mxu0 %v14903_v48  ;;  %7312 = vmatpush1.bf16.msra.mxu1 %v14907_v6 }
0x1131   :  { %7272 = vmatprep.subr.bf16.mxu0 %v14909_v43  ;;  %7313 = vmatprep.subr.bf16.mxu1 %v14912_v28 }
0x1134   :  { %7273 = vmatpush1.bf16.msra.mxu0 %v14915_v4  ;;  %7314 = vmatpush1.bf16.msra.mxu1 %v14919_v22 }
0x1135   :  { %7577 = vmatprep.subr.bf16.mxu0 %v12256_v7  ;;  %11441 = vmatprep.subr.bf16.mxu1 %v12924_v49 }
0x11ea   :  { %v6956_v47 = vpop.f32.mrb[60].mxu0  ;;  %v6997_v16 = vpop.f32.mrb[72].mxu1 }
0x11eb   :  { %v7004_v5 = vadd.f32 %v6956_v47, %v16125_v42  ;;  %v7006_v27 = vadd.f32 %v6997_v16, %v16128_v23  ;;  %v6958_v29 = vpop.f32.mrb[61].mxu0  ;;  %v6999_v56 = vpop.f32.mrb[73].mxu1  ;;  %v12270_v47 = vld [vmem:[#allocation13 + $0x60] ss:$12 sps:$4 sm:$0xff]   ;;  %v12273_v16 = vld [vmem:[#allocation13 + $0x68] ss:$12 sps:$4 sm:$0xff]  }
0x11ec   :  { %v7005_v52 = vadd.f32 %v6958_v29, %v16131_v51  ;;  %v7007_v21 = vadd.f32 %v6999_v56, %v16134_v1  ;;  %v6960_v0 = vpop.f32.mrb[62].mxu0  ;;  %v7001_v10 = vpop.f32.mrb[74].mxu1  ;;  %v12276_v42 = vld [vmem:[#allocation13 + $0x7c] ss:$12 sps:$4 sm:$0xff]   ;;  %v12284_v29 = vld [vmem:[#allocation13 + $0xac] ss:$12 sps:$4 sm:$0xff]  }
0x11ed   :  { %v11147_v59 = vmul.f32 -1.442695, %v7004_v5  ;;  %v6961_v39 = vpop.f32.mrb[63].mxu0  ;;  %v7002_v20 = vpop.f32.mrb[75].mxu1  ;;  %v11149_v48 = vmul.f32 -1.442695, %v7006_v27 }
0x11ee   :  { %v11148_v2 = vmul.f32 -1.442695, %v7005_v52  ;;  %v12274_v5 = vld [vmem:[#allocation13 + $0x78] ss:$12 sps:$4 sm:$0xff]   ;;  %v12278_v23 = vld [vmem:[#allocation13 + $0x90] ss:$12 sps:$4 sm:$0xff]  }
0x11ef   :  { %12598 = vpow2.f32 %v11147_v59  ;;  %v12281_v27 = vld [vmem:[#allocation13 + $0x98] ss:$12 sps:$4 sm:$0xff]   ;;  %v12282_v56 = vld [vmem:[#allocation13 + $0xa8] ss:$12 sps:$4 sm:$0xff]  }
0x11f0   :  { %12600 = vpow2.f32 %v11148_v2  ;;  %v16135_v52 = vld [vmem:[#allocation76_spill] sm:$0xff]  ;;  %v16137_v1 = vld [vmem:[#allocation55_spill] sm:$0xff]  ;;  %v16139_v39 = vld [vmem:[#allocation34_spill] sm:$0xff] }
0x11f1   :  { %12602 = vtanh.f32 %v7007_v21  ;;  %v16138_v21 = vsel %vm13516_vm3, %v16136_v54, %v16137_v1  ;;  %v16140_v20 = vld [vmem:[#allocation38_spill] sm:$0xff] }
0x11f2   :  { %12604 = vpow2.f32 %v11149_v48  ;;  %v16141_v2 = vsel %vm13404_vm1, %v16139_v39, %v16140_v20  ;;  %vm10409_vm1 = vcmask 8192  }
0x11f9   :  { %v12599_v6 = vpop.eup %12598 }
0x11fa   :  { %v7017_v43 = vadd.f32 1.0, %v12599_v6  ;;  %v12601_v28 = vpop.eup %12600  ;;  %v16142_v6 = vld [vmem:[#allocation52_spill] sm:$0xff] }
0x11fb   :  { %v7018_v4 = vadd.f32 1.0, %v12601_v28  ;;  %v12603_v22 = vpop.eup %12602 }
0x11fc   :  { %12606 = vrcp.f32 %v7017_v43  ;;  %v12605_v30 = vpop.eup %12604  ;;  %v16143_v43 = vld [vmem:[#allocation58_spill] sm:$0xff] }
0x11fd   :  { %12608 = vrcp.f32 %v7018_v4  ;;  %v7019_v8 = vadd.f32 1.0, %v12605_v30  ;;  %v16144_v28 = vsel %vm13520_vm4, %v16142_v6, %v16143_v43 }
0x11ff   :  { %12610 = vrcp.f32 %v7019_v8 }
0x1206   :  { %v12607_v31 = vpop.eup %12606 }
0x1207   :  { %v7028_v63 = vmul.f32 %v12607_v31, %v12603_v22  ;;  %v12609_v19 = vpop.eup %12608 }
0x1208   :  { %v7027_v41 = vmul.f32 %v12609_v19, %v15065_v12  ;;  %v12258_v12 = vld [vmem:[#allocation13 + $0x18] ss:$12 sps:$4 sm:$0xff]  }
0x1209   :  { %v12611_v17 = vpop.eup %12610 }
0x120a   :  { %v15124_v40 = vadd.f32 %v7028_v63, %v7027_v41 }
0x120c   :  { %12612 = vtanh.f32 %v15124_v40 }
0x1216   :  { %v12613_v24 = vpop.eup %12612 }
0x1217   :  { %v7031_v14 = vmul.f32 %v12613_v24, %v12611_v17 }
0x1219   :  { %v7039_v18 = vrot.slane %v7031_v14, %v13646_v3  ;;  %v7065_v57 = vpack.c.bf16 %v7031_v14, %v7031_v14 }
0x121b   :  { %v7040_v58 = vcombine.high %v7039_v18, %v7039_v18  ;;  %v7047_v11 = vrot.slane %v7039_v18, %v13646_v3  ;;  %7291 = vmatmul.mubr.bf16.vlgmr.msra.gmra.mrb[64].mxu0 %v7065_v57  ;;  %7332 = vmatmul.mubr.bf16.vlgmr.msra.gmra.mrb[76].mxu1 %v7065_v57 }
0x121c   :  { %7609 = vmatprep.mubr.bf16.mxu0 %v15962_v37  ;;  %7578 = vmatpush1.bf16.msra.mxu0 %v12254_v26 }
0x121d   :  { %v7054_v33 = vrot.slane %v7040_v58, %v13646_v3  ;;  %7057 = vst.msk [vmem:[#allocation3 + $0x6] sm:$0x1] %vm1829_vm5, %v7047_v11  ;;  %11442 = vmatpush3.bf16.msra.mxu1 %v12257_v61  ;;  %7579 = vmatprep.subr.bf16.mxu0 %v12260_v25 }
0x121e   :  { %7059 = vst.msk [vmem:[#allocation3 + $0x1] sm:$0x1] %vm1832_vm6, %v7047_v11  ;;  %11443 = vmatprep.subr.bf16.mxu1 %v12924_v49  ;;  %11457 = vmatprep.mubr.msk.bf16.mxu1 %vm12925_vm7, %v12924_v49 }
0x121f   :  { %7058 = vst.msk [vmem:[#allocation3 + $0xe] sm:$0x1] %vm1829_vm5, %v7054_v33 }
0x1220   :  { %7060 = vst.msk [vmem:[#allocation3 + $0x9] sm:$0x1] %vm1832_vm6, %v7054_v33  ;;  %7580 = vmatpush1.bf16.msra.mxu0 %v12258_v12 }
0x1221   :  { %11444 = vmatpush3.bf16.msra.mxu1 %v12261_v13  ;;  %7581 = vmatprep.subr.bf16.mxu0 %v12264_v45 }
0x1222   :  { %11445 = vmatprep.subr.bf16.mxu1 %v12924_v49 }
0x1224   :  { %7582 = vmatpush1.bf16.msra.mxu0 %v12262_v44 }
0x1225   :  { %11446 = vmatpush3.bf16.msra.mxu1 %v12265_v32  ;;  %7583 = vmatprep.subr.bf16.mxu0 %v12268_v60 }
0x1226   :  { %11447 = vmatprep.subr.bf16.mxu1 %v12924_v49 }
0x1228   :  { %7584 = vmatpush1.bf16.msra.mxu0 %v12266_v55  ;;  %v7432_v55 = vld [vmem:[%s15791_s10] sm:$0x7]  ;;  %s12928_s10 = smov 80  }
0x1229   :  { %11448 = vmatpush3.bf16.msra.mxu1 %v12269_v15  ;;  %7585 = vmatprep.subr.bf16.mxu0 %v12272_v38  ;;  %v16145_v15 = vld [vmem:[#allocation29_spill] sm:$0xff] }
0x122a   :  { %11449 = vmatprep.subr.bf16.mxu1 %v12924_v49  ;;  %v7441_v38 = vrot.slane %v7432_v55, %v16145_v15 }
0x122c   :  { %7586 = vmatpush1.bf16.msra.mxu0 %v12270_v47 }
0x122d   :  { %11450 = vmatpush3.bf16.msra.mxu1 %v12273_v16  ;;  %7587 = vmatprep.subr.bf16.mxu0 %v12276_v42 }
0x122e   :  { %11451 = vmatprep.subr.bf16.mxu1 %v12924_v49 }
0x1230   :  { %7588 = vmatpush1.bf16.msra.mxu0 %v12274_v5 }
0x1231   :  { %11452 = vmatpush3.bf16.msra.mxu1 %v12277_v62  ;;  %7589 = vmatprep.subr.bf16.mxu0 %v12280_v34  ;;  %v16146_v62 = vld [vmem:[#allocation28_spill] sm:$0xff] }
0x1232   :  { %11453 = vmatprep.subr.bf16.mxu1 %v12924_v49  ;;  %v7437_v34 = vrot.slane %v7432_v55, %v16146_v62 }
0x1234   :  { %7590 = vmatpush1.bf16.msra.mxu0 %v12278_v23 }
0x1235   :  { %11454 = vmatpush3.bf16.msra.mxu1 %v12281_v27  ;;  %7591 = vmatprep.subr.bf16.mxu0 %v12284_v29 }
0x1236   :  { %11455 = vmatprep.subr.bf16.mxu1 %v12924_v49 }
0x1238   :  { %7592 = vmatpush1.bf16.msra.mxu0 %v12282_v56 }
0x1239   :  { %11456 = vmatpush3.bf16.msra.mxu1 %v12285_v46  ;;  %11485 = vmatprep.subr.bf16.mxu0 %v12924_v49 }
0x123a   :  { %11461 = vmatprep.subr.bf16.mxu1 %v12924_v49 }
0x12ee   :  { %v7292_v50 = vpop.f32.mrb[64].mxu0  ;;  %v7333_v51 = vpop.f32.mrb[76].mxu1 }
0x12ef   :  { %v7340_v53 = vadd.f32 %v7292_v50, %v16135_v52  ;;  %v7342_v0 = vadd.f32 %v7333_v51, %v16138_v21  ;;  %v7294_v10 = vpop.f32.mrb[65].mxu0  ;;  %v7335_v59 = vpop.f32.mrb[77].mxu1  ;;  %v16147_v21 = vld [vmem:[#allocation49_spill] sm:$0xff] }
0x12f0   :  { %v7341_v48 = vadd.f32 %v7294_v10, %v16141_v2  ;;  %v7343_v4 = vadd.f32 %v7335_v59, %v16144_v28  ;;  %v7296_v22 = vpop.f32.mrb[66].mxu0  ;;  %v7337_v9 = vpop.f32.mrb[78].mxu1 }
0x12f1   :  { %v11182_v30 = vmul.f32 -1.442695, %v7340_v53  ;;  %v7297_v31 = vpop.f32.mrb[67].mxu0  ;;  %v7338_v63 = vpop.f32.mrb[79].mxu1  ;;  %v11184_v8 = vmul.f32 -1.442695, %v7342_v0  ;;  %v7445_v0 = vrot.slane %v7432_v55, %v16147_v21 }
0x12f2   :  { %v11183_v19 = vmul.f32 -1.442695, %v7341_v48 }
0x12f3   :  { %12614 = vpow2.f32 %v11182_v30 }
0x12f4   :  { %12616 = vpow2.f32 %v11183_v19 }
0x12f5   :  { %12618 = vtanh.f32 %v7343_v4 }
0x12f6   :  { %12620 = vpow2.f32 %v11184_v8 }
0x12fd   :  { %v12615_v36 = vpop.eup %12614 }
0x12fe   :  { %v7353_v41 = vadd.f32 1.0, %v12615_v36  ;;  %v12617_v17 = vpop.eup %12616 }
0x12ff   :  { %v7354_v35 = vadd.f32 1.0, %v12617_v17  ;;  %v12619_v24 = vpop.eup %12618 }
0x1300   :  { %12622 = vrcp.f32 %v7353_v41  ;;  %v12621_v14 = vpop.eup %12620 }
0x1301   :  { %12624 = vrcp.f32 %v7354_v35  ;;  %v7355_v11 = vadd.f32 1.0, %v12621_v14 }
0x1303   :  { %12626 = vrcp.f32 %v7355_v11 }
0x130a   :  { %v12623_v18 = vpop.eup %12622 }
0x130b   :  { %v7364_v57 = vmul.f32 %v12623_v18, %v12619_v24  ;;  %v12625_v58 = vpop.eup %12624 }
0x130c   :  { %v7363_v33 = vmul.f32 %v12625_v58, %v15124_v40 }
0x130d   :  { %v12627_v26 = vpop.eup %12626 }
0x130e   :  { %v7365_v7 = vadd.f32 %v7364_v57, %v7363_v33 }
0x1310   :  { %12628 = vtanh.f32 %v7365_v7 }
0x131a   :  { %v12629_v61 = vpop.eup %12628 }
0x131b   :  { %v7367_v25 = vmul.f32 %v12629_v61, %v12627_v26 }
0x131d   :  { %v7375_v12 = vrot.slane %v7367_v25, %v13646_v3 }
0x131f   :  { %v7376_v13 = vcombine.high %v7375_v12, %v7375_v12  ;;  %v7383_v44 = vrot.slane %v7375_v12, %v13646_v3 }
0x1321   :  { %v7390_v45 = vrot.slane %v7376_v13, %v13646_v3  ;;  %7393 = vst.msk [vmem:[#allocation3 + $0x7] sm:$0x1] %vm1829_vm5, %v7383_v44 }
0x1322   :  { %7395 = vst.msk [vmem:[#allocation3] sm:$0x1] %vm1832_vm6, %v7383_v44 }
0x1323   :  { %7394 = vst.msk [vmem:[#allocation3 + $0xf] sm:$0x1] %vm1829_vm5, %v7390_v45 }
0x1324   :  { %7396 = vst.msk [vmem:[#allocation3 + $0x8] sm:$0x1] %vm1832_vm6, %v7390_v45 }
0x1329   :  { %v7397_v40 = vld [vmem:[#allocation3] sm:$0xff] }
0x132b   :  { %v7398_v32 = vld [vmem:[#allocation3 + $0x8] sm:$0xff] }
0x132c   :  { %v7399_v60 = vpack.c.bf16 %v7398_v32, %v7397_v40 }
0x132e   :  { %7610 = vmatmul.mubr.bf16.vlgmr.msra.gmra.mrb[68].mxu0 %v7399_v60  ;;  %11458 = vmatmul.mubr.bf16.vlgmr.msra.gmra.mrb[80].mxu1 %v7399_v60 }
0x132f   :  { %11463 = vmatprep.mubr.msk.bf16.mxu1 %vm12925_vm7, %v12924_v49  ;;  %11487 = vmatprep.mubr.msk.bf16.mxu0 %vm12925_vm7, %v12924_v49 }
0x1401   :  { %v7611_v47 = vpop.f32.mrb[68].mxu0  ;;  %v7654_v16 = vpop.f32.mrb[80].mxu1 }
0x1402   :  { %v7613_v42 = vpop.f32.mrb[69].mxu0  ;;  %v11459_v5 = vpop.f32.mrb[81].mxu1  ;;  %v7612_v51 = vadd.f32 %v7611_v47, %v7437_v34  ;;  %v15230_v59 = vadd.f32 %v7654_v16, %v7445_v0 }
0x1403   :  { %v7614_v23 = vadd.f32 %v7613_v42, %v7441_v38  ;;  %v7615_v27 = vpop.f32.mrb[70].mxu0  ;;  %v7657_v29 = vpop.f32.mrb[82].mxu1 }
0x1404   :  { %v7617_v56 = vpop.f32.mrb[71].mxu0  ;;  %v11460_v46 = vpop.f32.mrb[83].mxu1  ;;  %v7793_v53 = vpack.c.bf16 %v7612_v51, %v7612_v51  ;;  %v15205_v1 = vadd.f32 %v7615_v27, %v7437_v34  ;;  %v15228_v10 = vadd.f32 %v7657_v29, %v7445_v0 }
0x1405   :  { %7709 = vrot.lane.b32.xlu1 %v7614_v23, %s12926_s1  ;;  %7706 = vrot.lane.b32.xlu0 %v7614_v23, %s12927_s0  ;;  %v7809_v50 = vpack.c.bf16 %v7614_v23, %v7614_v23  ;;  %v15199_v54 = vadd.f32 %v7617_v56, %v7441_v38 }
0x1406   :  { %v11713_v39 = vpack.i.bf16 %v15228_v10, %v15230_v59  ;;  %v7801_v42 = vpack.c.bf16 %v15205_v1, %v15205_v1 }
0x1407   :  { %v7830_v52 = vsel %vm7825_vm8, %v7809_v50, 0  ;;  %v7817_v26 = vpack.c.bf16 %v15199_v54, %v15199_v54 }
0x1408   :  { %11462 = vmatpush3.bf16.xpose.msra.mxu1 %v7830_v52 }
0x1409   :  { %7665 = vrot.lane.b32.xlu1 %v7612_v51, %s12926_s1  ;;  %7662 = vrot.lane.b32.xlu0 %v7612_v51, %s12927_s0  ;;  %v8198_v45 = vsel %vm7825_vm8, %v7817_v26, 0 }
0x140a   :  { %11467 = vmatprep.subr.bf16.mxu1 %v12924_v49 }
0x140d   :  { %7715 = vrot.lane.b32.xlu1 %v7614_v23, %s12919_s7  ;;  %7712 = vrot.lane.b32.xlu0 %v7614_v23, %s12928_s10 }
0x140f   :  { %11464 = vmatmul.mubr.msk.bf16.vlgmr.msra.gmra.mrb[84].mxu1 %vm7825_vm8, %v7793_v53 }
0x1410   :  { %11469 = vmatprep.mubr.msk.bf16.mxu1 %vm12925_vm7, %v12924_v49 }
0x1411   :  { %7718 = vrot.lane.b32.xlu1 %v7614_v23, %s12915_s29  ;;  %7668 = vrot.lane.b32.xlu0 %v7612_v51, %s12928_s10 }
0x1415   :  { %7721 = vrot.lane.b32.xlu1 %v7614_v23, %s12929_s18  ;;  %7671 = vrot.lane.b32.xlu0 %v7612_v51, %s12919_s7 }
0x1419   :  { %7724 = vrot.lane.b32.xlu1 %v7614_v23, %s12910_s20  ;;  %7674 = vrot.lane.b32.xlu0 %v7612_v51, %s12915_s29 }
0x141d   :  { %7680 = vrot.lane.b32.xlu1 %v7612_v51, %s12910_s20  ;;  %7677 = vrot.lane.b32.xlu0 %v7612_v51, %s12929_s18 }
0x1421   :  { %7731 = vrot.lane.b32.xlu1 %v15199_v54, %s12926_s1  ;;  %7728 = vrot.lane.b32.xlu0 %v15199_v54, %s12927_s0 }
0x1425   :  { %7734 = vrot.lane.b32.xlu1 %v15199_v54, %s12928_s10  ;;  %7684 = vrot.lane.b32.xlu0 %v15205_v1, %s12927_s0 }
0x1429   :  { %7737 = vrot.lane.b32.xlu1 %v15199_v54, %s12919_s7  ;;  %7687 = vrot.lane.b32.xlu0 %v15205_v1, %s12926_s1 }
0x142d   :  { %7740 = vrot.lane.b32.xlu1 %v15199_v54, %s12915_s29  ;;  %7690 = vrot.lane.b32.xlu0 %v15205_v1, %s12928_s10 }
0x1431   :  { %7743 = vrot.lane.b32.xlu1 %v15199_v54, %s12929_s18  ;;  %7693 = vrot.lane.b32.xlu0 %v15205_v1, %s12919_s7 }
0x1435   :  { %7746 = vrot.lane.b32.xlu1 %v15199_v54, %s12910_s20  ;;  %7696 = vrot.lane.b32.xlu0 %v15205_v1, %s12915_s29 }
0x1439   :  { %7702 = vrot.lane.b32.xlu1 %v15205_v1, %s12910_s20  ;;  %7699 = vrot.lane.b32.xlu0 %v15205_v1, %s12929_s18 }
0x143d   :  { %11714 = vrot.lane.b32.xlu1 %v11713_v39, %s12927_s0  ;;  %7753 = vrot.lane.b32.xlu0 %v15230_v59, %s12926_s1 }
0x1441   :  { %7756 = vrot.lane.b32.xlu1 %v15230_v59, %s12928_s10  ;;  %7762 = vrot.lane.b32.xlu0 %v15230_v59, %s12915_s29 }
0x1445   :  { %7759 = vrot.lane.b32.xlu1 %v15230_v59, %s12919_s7  ;;  %7768 = vrot.lane.b32.xlu0 %v15230_v59, %s12910_s20 }
0x1449   :  { %7765 = vrot.lane.b32.xlu1 %v15230_v59, %s12929_s18 }
0x1477   :  { %v7710_v20 = vpop.permute.xlu1 %7709  ;;  %v7707_v2 = vpop.permute.xlu0 %7706 }
0x1478   :  { %v7810_v48 = vpack.c.bf16 %v7707_v2, %v7707_v2  ;;  %v7811_v4 = vpack.c.bf16 %v7710_v20, %v7710_v20 }
0x147a   :  { %v7876_v6 = vsel %vm7825_vm8, %v7810_v48, 0  ;;  %v7922_v63 = vsel %vm7825_vm8, %v7811_v4, 0 }
0x147b   :  { %v7666_v43 = vpop.permute.xlu1 %7665  ;;  %v7663_v28 = vpop.permute.xlu0 %7662  ;;  %11468 = vmatpush3.bf16.xpose.msra.mxu1 %v7876_v6 }
0x147c   :  { %11473 = vmatprep.subr.bf16.mxu1 %v12924_v49  ;;  %v7794_v30 = vpack.c.bf16 %v7663_v28, %v7663_v28  ;;  %v7795_v24 = vpack.c.bf16 %v7666_v43, %v7666_v43 }
0x147f   :  { %v7716_v22 = vpop.permute.xlu1 %7715  ;;  %v7713_v9 = vpop.permute.xlu0 %7712 }
0x1480   :  { %v7813_v31 = vpack.c.bf16 %v7716_v22, %v7716_v22  ;;  %v7812_v41 = vpack.c.bf16 %v7713_v9, %v7713_v9 }
0x1482   :  { %v8014_v19 = vsel %vm7825_vm8, %v7813_v31, 0  ;;  %11470 = vmatmul.mubr.msk.bf16.vlgmr.msra.gmra.mrb[88].mxu1 %vm7825_vm8, %v7794_v30  ;;  %v7968_v57 = vsel %vm7825_vm8, %v7812_v41, 0  ;;  %v8771_v30 = vpack.c.bf16 %v15230_v59, %v15230_v59 }
0x1483   :  { %11486 = vmatpush3.bf16.xpose.msra.mxu0 %v8014_v19  ;;  %v7719_v8 = vpop.permute.xlu1 %7718  ;;  %v7669_v36 = vpop.permute.xlu0 %7668  ;;  %11474 = vmatpush3.bf16.xpose.msra.mxu1 %v7922_v63 }
0x1484   :  { %11475 = vmatprep.mubr.msk.bf16.mxu1 %vm12925_vm7, %v12924_v49  ;;  %11479 = vmatprep.subr.bf16.mxu1 %v12924_v49  ;;  %v7814_v7 = vpack.c.bf16 %v7719_v8, %v7719_v8  ;;  %v7796_v12 = vpack.c.bf16 %v7669_v36, %v7669_v36  ;;  %v8792_v36 = vsel %vm8790_vm9, %v8771_v30, 0 }
0x1485   :  { %11497 = vmatprep.subr.bf16.mxu0 %v12924_v49 }
0x1486   :  { %v8060_v44 = vsel %vm7825_vm8, %v7814_v7, 0 }
0x1487   :  { %v7722_v17 = vpop.permute.xlu1 %7721  ;;  %v7672_v35 = vpop.permute.xlu0 %7671 }
0x1488   :  { %v7815_v14 = vpack.c.bf16 %v7722_v17, %v7722_v17  ;;  %v7797_v18 = vpack.c.bf16 %v7672_v35, %v7672_v35 }
0x148a   :  { %v8106_v58 = vsel %vm7825_vm8, %v7815_v14, 0  ;;  %11476 = vmatmul.mubr.msk.bf16.vlgmr.msra.gmra.mrb[92].mxu1 %vm7825_vm8, %v7795_v24  ;;  %11488 = vmatmul.mubr.msk.bf16.vlgmr.msra.gmra.mrb[72].mxu0 %vm7825_vm8, %v7797_v18 }
0x148b   :  { %v7725_v11 = vpop.permute.xlu1 %7724  ;;  %11498 = vmatpush3.bf16.xpose.msra.mxu0 %v8106_v58  ;;  %v7675_v33 = vpop.permute.xlu0 %7674  ;;  %11480 = vmatpush3.bf16.xpose.msra.mxu1 %v7968_v57 }
0x148c   :  { %11481 = vmatprep.mubr.msk.bf16.mxu1 %vm12925_vm7, %v12924_v49  ;;  %11499 = vmatprep.mubr.msk.bf16.mxu0 %vm12925_vm7, %v12924_v49  ;;  %v7816_v60 = vpack.c.bf16 %v7725_v11, %v7725_v11  ;;  %v7798_v16 = vpack.c.bf16 %v7675_v33, %v7675_v33 }
0x148d   :  { %11491 = vmatprep.subr.bf16.mxu1 %v12924_v49  ;;  %11509 = vmatprep.subr.bf16.mxu0 %v12924_v49 }
0x148e   :  { %v8152_v5 = vsel %vm7825_vm8, %v7816_v60, 0 }
0x148f   :  { %v7681_v61 = vpop.permute.xlu1 %7680  ;;  %v7678_v25 = vpop.permute.xlu0 %7677 }
0x1490   :  { %v7799_v13 = vpack.c.bf16 %v7678_v25, %v7678_v25  ;;  %v7800_v51 = vpack.c.bf16 %v7681_v61, %v7681_v61 }
0x1492   :  { %11482 = vmatmul.mubr.msk.bf16.vlgmr.msra.gmra.mrb[96].mxu1 %vm7825_vm8, %v7796_v12  ;;  %11500 = vmatmul.mubr.msk.bf16.vlgmr.msra.gmra.mrb[76].mxu0 %vm7825_vm8, %v7799_v13 }
0x1493   :  { %v7732_v40 = vpop.permute.xlu1 %7731  ;;  %11510 = vmatpush3.bf16.xpose.msra.mxu0 %v8198_v45  ;;  %v7729_v32 = vpop.permute.xlu0 %7728  ;;  %11492 = vmatpush3.bf16.xpose.msra.mxu1 %v8060_v44 }
0x1494   :  { %11493 = vmatprep.mubr.msk.bf16.mxu1 %vm12925_vm7, %v12924_v49  ;;  %11511 = vmatprep.mubr.msk.bf16.mxu0 %vm12925_vm7, %v12924_v49  ;;  %v7819_v55 = vpack.c.bf16 %v7732_v40, %v7732_v40  ;;  %v7818_v29 = vpack.c.bf16 %v7729_v32, %v7729_v32 }
0x1495   :  { %11503 = vmatprep.subr.bf16.mxu1 %v12924_v49  ;;  %11521 = vmatprep.subr.bf16.mxu0 %v12924_v49 }
0x1496   :  { %v8290_v34 = vsel %vm7825_vm8, %v7819_v55, 0  ;;  %v8244_v53 = vsel %vm7825_vm8, %v7818_v29, 0 }
0x1497   :  { %v7735_v38 = vpop.permute.xlu1 %7734  ;;  %v7685_v47 = vpop.permute.xlu0 %7684 }
0x1498   :  { %v7820_v39 = vpack.c.bf16 %v7735_v38, %v7735_v38  ;;  %v7802_v48 = vpack.c.bf16 %v7685_v47, %v7685_v47 }
0x149a   :  { %11494 = vmatmul.mubr.msk.bf16.vlgmr.msra.gmra.mrb[100].mxu1 %vm7825_vm8, %v7798_v16  ;;  %11512 = vmatmul.mubr.msk.bf16.vlgmr.msra.gmra.mrb[80].mxu0 %vm7825_vm8, %v7801_v42  ;;  %v8336_v43 = vsel %vm7825_vm8, %v7820_v39, 0 }
0x149b   :  { %v7738_v23 = vpop.permute.xlu1 %7737  ;;  %11522 = vmatpush3.bf16.xpose.msra.mxu0 %v8290_v34  ;;  %v7688_v27 = vpop.permute.xlu0 %7687  ;;  %11504 = vmatpush3.bf16.xpose.msra.mxu1 %v8152_v5 }
0x149c   :  { %11505 = vmatprep.mubr.msk.bf16.mxu1 %vm12925_vm7, %v12924_v49  ;;  %11523 = vmatprep.mubr.msk.bf16.mxu0 %vm12925_vm7, %v12924_v49  ;;  %v7821_v56 = vpack.c.bf16 %v7738_v23, %v7738_v23  ;;  %v7803_v52 = vpack.c.bf16 %v7688_v27, %v7688_v27 }
0x149d   :  { %11515 = vmatprep.subr.bf16.mxu1 %v12924_v49  ;;  %11533 = vmatprep.subr.bf16.mxu0 %v12924_v49 }
0x149e   :  { %v8382_v54 = vsel %vm7825_vm8, %v7821_v56, 0 }
0x149f   :  { %v7741_v46 = vpop.permute.xlu1 %7740  ;;  %v7691_v50 = vpop.permute.xlu0 %7690 }
0x14a0   :  { %v7822_v9 = vpack.c.bf16 %v7741_v46, %v7741_v46  ;;  %v7804_v31 = vpack.c.bf16 %v7691_v50, %v7691_v50 }
0x14a2   :  { %11506 = vmatmul.mubr.msk.bf16.vlgmr.msra.gmra.mrb[104].mxu1 %vm7825_vm8, %v7800_v51  ;;  %11524 = vmatmul.mubr.msk.bf16.vlgmr.msra.gmra.mrb[84].mxu0 %vm7825_vm8, %v7803_v52  ;;  %v8428_v8 = vsel %vm7825_vm8, %v7822_v9, 0 }
0x14a3   :  { %v7744_v1 = vpop.permute.xlu1 %7743  ;;  %11534 = vmatpush3.bf16.xpose.msra.mxu0 %v8382_v54  ;;  %v7694_v0 = vpop.permute.xlu0 %7693  ;;  %11516 = vmatpush3.bf16.xpose.msra.mxu1 %v8244_v53 }
0x14a4   :  { %11517 = vmatprep.mubr.msk.bf16.mxu1 %vm12925_vm7, %v12924_v49  ;;  %11535 = vmatprep.mubr.msk.bf16.mxu0 %vm12925_vm7, %v12924_v49  ;;  %v7823_v20 = vpack.c.bf16 %v7744_v1, %v7744_v1  ;;  %v7805_v6 = vpack.c.bf16 %v7694_v0, %v7694_v0 }
0x14a5   :  { %11527 = vmatprep.subr.bf16.mxu1 %v12924_v49  ;;  %11545 = vmatprep.subr.bf16.mxu0 %v12924_v49 }
0x14a6   :  { %v8474_v28 = vsel %vm7825_vm8, %v7823_v20, 0 }
0x14a7   :  { %v7697_v2 = vpop.permute.xlu0 %7696  ;;  %v7747_v4 = vpop.permute.xlu1 %7746 }
0x14a8   :  { %v7824_v59 = vpack.c.bf16 %v7747_v4, %v7747_v4  ;;  %v7806_v17 = vpack.c.bf16 %v7697_v2, %v7697_v2 }
0x14aa   :  { %11518 = vmatmul.mubr.msk.bf16.vlgmr.msra.gmra.mrb[108].mxu1 %vm7825_vm8, %v7802_v48  ;;  %11536 = vmatmul.mubr.msk.bf16.vlgmr.msra.gmra.mrb[88].mxu0 %vm7825_vm8, %v7805_v6  ;;  %v8520_v35 = vsel %vm7825_vm8, %v7824_v59, 0 }
0x14ab   :  { %11546 = vmatpush3.bf16.xpose.msra.mxu0 %v8474_v28  ;;  %11528 = vmatpush3.bf16.xpose.msra.mxu1 %v8336_v43  ;;  %v7700_v22 = vpop.permute.xlu0 %7699  ;;  %v7703_v19 = vpop.permute.xlu1 %7702 }
0x14ac   :  { %11529 = vmatprep.mubr.msk.bf16.mxu1 %vm12925_vm7, %v12924_v49  ;;  %11547 = vmatprep.mubr.msk.bf16.mxu0 %vm12925_vm7, %v12924_v49  ;;  %v7807_v63 = vpack.c.bf16 %v7700_v22, %v7700_v22  ;;  %v7808_v18 = vpack.c.bf16 %v7703_v19, %v7703_v19 }
0x14ad   :  { %11539 = vmatprep.subr.bf16.mxu1 %v12924_v49  ;;  %11557 = vmatprep.subr.bf16.mxu0 %v12924_v49 }
0x14af   :  { %v15326_v41 = vpop.permute.xlu1 %11714  ;;  %v15347_v32 = vpop.permute.xlu0 %7753 }
0x14b0   :  { %v11716_v24 = vunpack.i.l.bf16 %v15326_v41 }
0x14b2   :  { %11530 = vmatmul.mubr.msk.bf16.vlgmr.msra.gmra.mrb[112].mxu1 %vm7825_vm8, %v7804_v31  ;;  %11548 = vmatmul.mubr.msk.bf16.vlgmr.msra.gmra.mrb[92].mxu0 %vm7825_vm8, %v7807_v63  ;;  %v8772_v14 = vpack.c.bf16 %v11716_v24, %v11716_v24 }
0x14b3   :  { %11558 = vmatpush3.bf16.msra.mxu0 %v8792_v36  ;;  %11540 = vmatpush3.bf16.xpose.msra.mxu1 %v8428_v8  ;;  %v15357_v46 = vpop.permute.xlu0 %7762 }
0x14b4   :  { %11541 = vmatprep.mubr.msk.bf16.mxu1 %vm12925_vm7, %v12924_v49  ;;  %11551 = vmatprep.subr.bf16.mxu1 %v12924_v49  ;;  %v8838_v57 = vsel %vm8790_vm9, %v8772_v14, 0 }
0x14b5   :  { %11559 = vmatprep.mubr.msk.bf16.mxu0 %vm12925_vm7, %v12924_v49  ;;  %11569 = vmatprep.subr.bf16.mxu0 %v12924_v49 }
0x14b7   :  { %v15367_v43 = vpop.permute.xlu0 %7768 }
0x14ba   :  { %11542 = vmatmul.mubr.msk.bf16.vlgmr.msra.gmra.mrb[116].mxu1 %vm7825_vm8, %v7806_v17 }
0x14bb   :  { %11552 = vmatpush3.bf16.xpose.msra.mxu1 %v8520_v35  ;;  %11553 = vmatprep.mubr.msk.bf16.mxu1 %vm12925_vm7, %v12924_v49 }
0x14bc   :  { %11563 = vmatprep.subr.bf16.mxu1 %v12924_v49 }
0x14c2   :  { %11554 = vmatmul.mubr.msk.bf16.vlgmr.msra.gmra.mrb[120].mxu1 %vm7825_vm8, %v7808_v18 }
0x14c3   :  { %11564 = vmatpush3.bf16.msra.mxu1 %v8838_v57  ;;  %11565 = vmatprep.mubr.msk.bf16.mxu1 %vm12925_vm7, %v12924_v49 }
0x14c4   :  { %11575 = vmatprep.subr.bf16.mxu1 %v12924_v49 }
0x14e2   :  { %v7866_v58 = vpop.f32.mrb[84].mxu1 }
0x14e3   :  { %v15339_v11 = vmul.f32 0.25, %v7866_v58  ;;  %v11465_v33 = vpop.f32.mrb[85].mxu1 }
0x14e4   :  { %v7869_v7 = vpop.f32.mrb[86].mxu1 }
0x14e5   :  { %v11466_v26 = vpop.f32.mrb[87].mxu1  ;;  %v8579_v61 = vsel %vm8578_vm10, %v15339_v11, -inf }
0x14e6   :  { %8580 = vmax.xlane.f32.xlu0 %v8579_v61 }
0x1555   :  { %v7912_v25 = vpop.f32.mrb[88].mxu1 }
0x1556   :  { %v15343_v12 = vmul.f32 0.25, %v7912_v25  ;;  %v11471_v13 = vpop.f32.mrb[89].mxu1 }
0x1557   :  { %v7915_v44 = vpop.f32.mrb[90].mxu1 }
0x1558   :  { %v11472_v45 = vpop.f32.mrb[91].mxu1  ;;  %v8582_v40 = vsel %vm8578_vm10, %v15343_v12, -inf }
0x1559   :  { %8583 = vmax.xlane.f32.xlu1 %v8582_v40 }
0x155d   :  { %v7958_v60 = vpop.f32.mrb[92].mxu1  ;;  %v8050_v55 = vpop.f32.mrb[72].mxu0 }
0x155e   :  { %v15349_v38 = vmul.f32 0.25, %v7958_v60  ;;  %v15351_v47 = vmul.f32 0.25, %v8050_v55  ;;  %v11477_v16 = vpop.f32.mrb[93].mxu1  ;;  %v11489_v42 = vpop.f32.mrb[73].mxu0 }
0x155f   :  { %v7961_v5 = vpop.f32.mrb[94].mxu1  ;;  %v8053_v34 = vpop.f32.mrb[74].mxu0 }
0x1560   :  { %v11478_v23 = vpop.f32.mrb[95].mxu1  ;;  %v11490_v27 = vpop.f32.mrb[75].mxu0  ;;  %v8591_v29 = vsel %vm8578_vm10, %v15351_v47, -inf  ;;  %v8585_v56 = vsel %vm8578_vm10, %v15349_v38, -inf }
0x1561   :  { %8592 = vmax.xlane.f32.xlu1 %v8591_v29  ;;  %8586 = vmax.xlane.f32.xlu0 %v8585_v56 }
0x1565   :  { %v8004_v50 = vpop.f32.mrb[96].mxu1  ;;  %v8142_v51 = vpop.f32.mrb[76].mxu0 }
0x1566   :  { %v15359_v52 = vmul.f32 0.25, %v8004_v50  ;;  %v15361_v53 = vmul.f32 0.25, %v8142_v51  ;;  %v11483_v54 = vpop.f32.mrb[97].mxu1  ;;  %v11501_v1 = vpop.f32.mrb[77].mxu0 }
0x1567   :  { %v8007_v0 = vpop.f32.mrb[98].mxu1  ;;  %v8145_v39 = vpop.f32.mrb[78].mxu0 }
0x1568   :  { %v11484_v20 = vpop.f32.mrb[99].mxu1  ;;  %v11502_v2 = vpop.f32.mrb[79].mxu0  ;;  %v8597_v48 = vsel %vm8578_vm10, %v15361_v53, -inf  ;;  %v8588_v6 = vsel %vm8578_vm10, %v15359_v52, -inf }
0x1569   :  { %8598 = vmax.xlane.f32.xlu1 %v8597_v48  ;;  %8589 = vmax.xlane.f32.xlu0 %v8588_v6 }
0x156d   :  { %v8096_v28 = vpop.f32.mrb[100].mxu1  ;;  %v8234_v4 = vpop.f32.mrb[80].mxu0 }
0x156e   :  { %v15369_v22 = vmul.f32 0.25, %v8096_v28  ;;  %v15371_v9 = vmul.f32 0.25, %v8234_v4  ;;  %v11495_v30 = vpop.f32.mrb[101].mxu1  ;;  %v11513_v31 = vpop.f32.mrb[81].mxu0 }
0x156f   :  { %v8099_v63 = vpop.f32.mrb[102].mxu1  ;;  %v8237_v19 = vpop.f32.mrb[82].mxu0 }
0x1570   :  { %v11496_v8 = vpop.f32.mrb[103].mxu1  ;;  %v11514_v36 = vpop.f32.mrb[83].mxu0  ;;  %v8603_v59 = vsel %vm8578_vm10, %v15371_v9, -inf  ;;  %v8594_v17 = vsel %vm8578_vm10, %v15369_v22, -inf }
0x1571   :  { %8604 = vmax.xlane.f32.xlu1 %v8603_v59  ;;  %8595 = vmax.xlane.f32.xlu0 %v8594_v17 }
0x1573   :  { %v8581_v35 = vpop.xlane.xlu0 %8580 }
0x1574   :  { %v8627_v7 = vsub.f32 %v15339_v11, %v8581_v35 }
0x1575   :  { %v8188_v24 = vpop.f32.mrb[104].mxu1  ;;  %v8326_v14 = vpop.f32.mrb[84].mxu0 }
0x1576   :  { %v15377_v18 = vmul.f32 0.25, %v8188_v24  ;;  %v15379_v57 = vmul.f32 0.25, %v8326_v14  ;;  %v11507_v58 = vpop.f32.mrb[105].mxu1  ;;  %v11525_v33 = vpop.f32.mrb[85].mxu0  ;;  %v8643_v40 = vmul.f32 1.442695, %v8627_v7 }
0x1577   :  { %v8191_v26 = vpop.f32.mrb[106].mxu1  ;;  %v8329_v61 = vpop.f32.mrb[86].mxu0 }
0x1578   :  { %v11508_v25 = vpop.f32.mrb[107].mxu1  ;;  %v11526_v13 = vpop.f32.mrb[87].mxu0  ;;  %v8609_v44 = vsel %vm8578_vm10, %v15379_v57, -inf  ;;  %v8600_v45 = vsel %vm8578_vm10, %v15377_v18, -inf  ;;  %12630 = vpow2.f32 %v8643_v40 }
0x1579   :  { %8610 = vmax.xlane.f32.xlu1 %v8609_v44  ;;  %8601 = vmax.xlane.f32.xlu0 %v8600_v45  ;;  %v15418_v61 = vpop.permute.xlu1 %7756 }
0x157d   :  { %v8280_v60 = vpop.f32.mrb[108].mxu1  ;;  %v8418_v55 = vpop.f32.mrb[88].mxu0 }
0x157e   :  { %v15386_v16 = vmul.f32 0.25, %v8280_v60  ;;  %v15388_v42 = vmul.f32 0.25, %v8418_v55  ;;  %v11519_v11 = vpop.f32.mrb[109].mxu1  ;;  %v11537_v5 = vpop.f32.mrb[89].mxu0 }
0x157f   :  { %v8283_v34 = vpop.f32.mrb[110].mxu1  ;;  %v8421_v23 = vpop.f32.mrb[90].mxu0 }
0x1580   :  { %v11520_v27 = vpop.f32.mrb[111].mxu1  ;;  %v11538_v29 = vpop.f32.mrb[91].mxu0  ;;  %v8615_v56 = vsel %vm8578_vm10, %v15388_v42, -inf  ;;  %v8606_v50 = vsel %vm8578_vm10, %v15386_v16, -inf }
0x1581   :  { %8616 = vmax.xlane.f32.xlu1 %v8615_v56  ;;  %8607 = vmax.xlane.f32.xlu0 %v8606_v50  ;;  %v15420_v25 = vpop.permute.xlu1 %7759 }
0x1582   :  { %v15402_v31 = vpop.eup %12630 }
0x1583   :  { %v8675_v63 = vsel %vm8578_vm10, %v15402_v31, 0.0 }
0x1585   :  { %v8372_v51 = vpop.f32.mrb[112].mxu1  ;;  %v8510_v54 = vpop.f32.mrb[92].mxu0 }
0x1586   :  { %v15394_v1 = vmul.f32 0.25, %v8372_v51  ;;  %v15396_v0 = vmul.f32 0.25, %v8510_v54  ;;  %v11531_v39 = vpop.f32.mrb[113].mxu1  ;;  %v11549_v20 = vpop.f32.mrb[93].mxu0 }
0x1587   :  { %v8375_v2 = vpop.f32.mrb[114].mxu1  ;;  %v8513_v48 = vpop.f32.mrb[94].mxu0 }
0x1588   :  { %v11532_v6 = vpop.f32.mrb[115].mxu1  ;;  %v11550_v28 = vpop.f32.mrb[95].mxu0  ;;  %v8621_v4 = vsel %vm8578_vm10, %v15396_v0, -inf  ;;  %v8612_v30 = vsel %vm8578_vm10, %v15394_v1, -inf }
0x1589   :  { %8622 = vmax.xlane.f32.xlu1 %v8621_v4  ;;  %8613 = vmax.xlane.f32.xlu0 %v8612_v30  ;;  %v15422_v13 = vpop.permute.xlu1 %7765 }
0x158d   :  { %8676 = vadd.xlane.f32.xlu1 %v8675_v63  ;;  %v8464_v19 = vpop.f32.mrb[116].mxu1 }
0x158e   :  { %v15406_v8 = vmul.f32 0.25, %v8464_v19  ;;  %v11543_v36 = vpop.f32.mrb[117].mxu1 }
0x158f   :  { %v8467_v59 = vpop.f32.mrb[118].mxu1 }
0x1590   :  { %v11544_v17 = vpop.f32.mrb[119].mxu1  ;;  %v8618_v35 = vsel %vm8578_vm10, %v15406_v8, -inf }
0x1591   :  { %8619 = vmax.xlane.f32.xlu0 %v8618_v35 }
0x1595   :  { %v8556_v24 = vpop.f32.mrb[120].mxu1 }
0x1596   :  { %v11555_v14 = vpop.f32.mrb[121].mxu1  ;;  %v15414_v7 = vmul.f32 0.25, %v8556_v24 }
0x1597   :  { %v8559_v58 = vpop.f32.mrb[122].mxu1 }
0x1598   :  { %v11556_v33 = vpop.f32.mrb[123].mxu1  ;;  %v8624_v26 = vsel %vm8578_vm10, %v15414_v7, -inf }
0x159e   :  { %7778 = vrot.lane.b32.xlu1 %v15228_v10, %s12928_s10 }
0x15a7   :  { %7775 = vrot.lane.b32.xlu0 %v15228_v10, %s12926_s1 }
0x15c6   :  { %8625 = vmax.xlane.f32.xlu0 %v8624_v26 }
0x15e6   :  { %v8584_v44 = vpop.xlane.xlu1 %8583 }
0x15e7   :  { %v8628_v45 = vsub.f32 %v15343_v12, %v8584_v44 }
0x15e9   :  { %v8645_v40 = vmul.f32 1.442695, %v8628_v45 }
0x15eb   :  { %12632 = vpow2.f32 %v8645_v40 }
0x15ee   :  { %v8593_v60 = vpop.xlane.xlu1 %8592  ;;  %v8587_v55 = vpop.xlane.xlu0 %8586 }
0x15ef   :  { %v8631_v11 = vsub.f32 %v15351_v47, %v8593_v60  ;;  %v8629_v5 = vsub.f32 %v15349_v38, %v8587_v55 }
0x15f1   :  { %v8651_v34 = vmul.f32 1.442695, %v8631_v11  ;;  %v8647_v23 = vmul.f32 1.442695, %v8629_v5 }
0x15f3   :  { %12634 = vpow2.f32 %v8651_v34 }
0x15f4   :  { %12636 = vpow2.f32 %v8647_v23 }
0x15f5   :  { %v15427_v27 = vpop.eup %12632 }
0x15f6   :  { %v8599_v29 = vpop.xlane.xlu1 %8598  ;;  %v8590_v56 = vpop.xlane.xlu0 %8589  ;;  %v8678_v50 = vsel %vm8578_vm10, %v15427_v27, 0.0 }
0x15f7   :  { %v8633_v12 = vsub.f32 %v15361_v53, %v8599_v29  ;;  %v8630_v51 = vsub.f32 %v15359_v52, %v8590_v56  ;;  %8679 = vadd.xlane.f32.xlu0 %v8678_v50  ;;  %v8773_v50 = vpack.c.bf16 %v15347_v32, %v15347_v32 }
0x15f9   :  { %v8655_v54 = vmul.f32 1.442695, %v8633_v12  ;;  %v8649_v47 = vmul.f32 1.442695, %v8630_v51 }
0x15fb   :  { %12638 = vpow2.f32 %v8655_v54 }
0x15fc   :  { %12640 = vpow2.f32 %v8649_v47  ;;  %v8884_v47 = vsel %vm8790_vm9, %v8773_v50, 0 }
0x15fd   :  { %v15433_v38 = vpop.eup %12634 }
0x15fe   :  { %v8596_v39 = vpop.xlane.xlu0 %8595  ;;  %v8687_v20 = vsel %vm8578_vm10, %v15433_v38, 0.0  ;;  %v15437_v2 = vpop.eup %12636 }
0x15ff   :  { %v8632_v48 = vsub.f32 %v15369_v22, %v8596_v39  ;;  %8688 = vadd.xlane.f32.xlu1 %v8687_v20  ;;  %v8681_v52 = vsel %vm8578_vm10, %v15437_v2, 0.0  ;;  %v8605_v22 = vpop.xlane.xlu1 %8604 }
0x1600   :  { %v8635_v5 = vsub.f32 %v15371_v9, %v8605_v22 }
0x1601   :  { %v8653_v6 = vmul.f32 1.442695, %v8632_v48 }
0x1602   :  { %v8659_v23 = vmul.f32 1.442695, %v8635_v5 }
0x1603   :  { %8682 = vadd.xlane.f32.xlu1 %v8681_v52  ;;  %12642 = vpow2.f32 %v8653_v6 }
0x1605   :  { %v15442_v53 = vpop.eup %12638 }
0x1606   :  { %v8602_v28 = vpop.xlane.xlu0 %8601  ;;  %v8693_v4 = vsel %vm8578_vm10, %v15442_v53, 0.0  ;;  %v15446_v30 = vpop.eup %12640 }
0x1607   :  { %v8634_v63 = vsub.f32 %v15377_v18, %v8602_v28  ;;  %8694 = vadd.xlane.f32.xlu0 %v8693_v4  ;;  %v8684_v36 = vsel %vm8578_vm10, %v15446_v30, 0.0  ;;  %v8611_v17 = vpop.xlane.xlu1 %8610 }
0x1609   :  { %v8657_v19 = vmul.f32 1.442695, %v8634_v63 }
0x160b   :  { %8685 = vadd.xlane.f32.xlu0 %v8684_v36  ;;  %12644 = vpow2.f32 %v8657_v19 }
0x160d   :  { %v15451_v59 = vpop.eup %12642 }
0x160e   :  { %v8608_v35 = vpop.xlane.xlu0 %8607  ;;  %v8690_v14 = vsel %vm8578_vm10, %v15451_v59, 0.0  ;;  %v8617_v18 = vpop.xlane.xlu1 %8616 }
0x160f   :  { %v8636_v24 = vsub.f32 %v15386_v16, %v8608_v35  ;;  %8691 = vadd.xlane.f32.xlu0 %v8690_v14  ;;  %v8639_v54 = vsub.f32 %v15388_v42, %v8617_v18 }
0x1611   :  { %v8661_v58 = vmul.f32 1.442695, %v8636_v24 }
0x1613   :  { %12646 = vpow2.f32 %v8661_v58 }
0x1614   :  { %7781 = vrot.lane.b32.xlu1 %v15228_v10, %s12919_s7 }
0x1615   :  { %v15458_v33 = vpop.eup %12644 }
0x1616   :  { %v8623_v26 = vpop.xlane.xlu1 %8622  ;;  %v8614_v44 = vpop.xlane.xlu0 %8613  ;;  %v8696_v40 = vsel %vm8578_vm10, %v15458_v33, 0.0 }
0x1617   :  { %v8638_v45 = vsub.f32 %v15394_v1, %v8614_v44  ;;  %8697 = vadd.xlane.f32.xlu0 %v8696_v40  ;;  %v8637_v1 = vsub.f32 %v15379_v57, %v8611_v17  ;;  %v8667_v57 = vmul.f32 1.442695, %v8639_v54  ;;  %v8641_v32 = vsub.f32 %v15396_v0, %v8623_v26 }
0x1618   :  { %v8777_v54 = vpack.c.bf16 %v15422_v13, %v15422_v13 }
0x1619   :  { %v8665_v16 = vmul.f32 1.442695, %v8638_v45  ;;  %v8663_v51 = vmul.f32 1.442695, %v8637_v1  ;;  %v8774_v45 = vpack.c.bf16 %v15418_v61, %v15418_v61 }
0x161a   :  { %v8677_v60 = vpop.xlane.xlu1 %8676 }
0x161b   :  { %12648 = vpow2.f32 %v8665_v16 }
0x161c   :  { %12650 = vrcp.f32 %v8677_v60 }
0x161d   :  { %v15463_v55 = vpop.eup %12646  ;;  %12652 = vpow2.f32 %v8659_v23 }
0x161e   :  { %v8702_v11 = vsel %vm8578_vm10, %v15463_v55, 0.0  ;;  %12654 = vpow2.f32 %v8663_v51  ;;  %v8620_v4 = vpop.xlane.xlu0 %8619  ;;  %v15517_v18 = vpop.permute.xlu1 %7778 }
0x161f   :  { %8703 = vadd.xlane.f32.xlu0 %v8702_v11  ;;  %12656 = vpow2.f32 %v8667_v57  ;;  %v8640_v63 = vsub.f32 %v15406_v8, %v8620_v4  ;;  %v8930_v11 = vsel %vm8790_vm9, %v8774_v45, 0 }
0x1621   :  { %v8669_v19 = vmul.f32 1.442695, %v8640_v63  ;;  %v11717_v63 = vunpack.i.h.bf16 %v15326_v41 }
0x1622   :  { %v15502_v22 = vpop.permute.xlu0 %7775 }
0x1625   :  { %v15468_v34 = vpop.eup %12648 }
0x1626   :  { %v12651_v29 = vpop.eup %12650  ;;  %v8708_v56 = vsel %vm8578_vm10, %v15468_v34, 0.0 }
0x1627   :  { %v8724_v12 = vmul.f32 %v12651_v29, %v15402_v31  ;;  %8709 = vadd.xlane.f32.xlu0 %v8708_v56  ;;  %v8671_v31 = vmul.f32 1.442695, %v8641_v32  ;;  %v15483_v39 = vpop.eup %12652 }
0x1628   :  { %v8699_v42 = vsel %vm8578_vm10, %v15483_v39, 0.0  ;;  %v15487_v20 = vpop.eup %12654 }
0x1629   :  { %v8755_v9 = vpack.c.bf16 %v8724_v12, %v8724_v12  ;;  %12658 = vpow2.f32 %v8671_v31  ;;  %v8705_v48 = vsel %vm8578_vm10, %v15487_v20, 0.0  ;;  %v15491_v6 = vpop.eup %12656 }
0x162a   :  { %v8711_v0 = vsel %vm8578_vm10, %v15491_v6, 0.0  ;;  %12660 = vpow2.f32 %v8669_v19 }
0x162b   :  { %11560 = vmatmul.mubr.msk.bf16.vlgmr.msra.gmra.mrb[96].mxu0 %vm8578_vm10, %v8755_v9 }
0x162c   :  { %11570 = vmatpush3.bf16.msra.mxu0 %v8884_v47  ;;  %11571 = vmatprep.mubr.msk.bf16.mxu0 %vm12925_vm7, %v12924_v49 }
0x162d   :  { %11581 = vmatprep.subr.bf16.mxu0 %v12924_v49 }
0x1633   :  { %v15497_v52 = vpop.eup %12658 }
0x1634   :  { %v8717_v28 = vsel %vm8578_vm10, %v15497_v52, 0.0  ;;  %v15505_v24 = vpop.eup %12660 }
0x1635   :  { %v8714_v14 = vsel %vm8578_vm10, %v15505_v24, 0.0 }
0x1638   :  { %8700 = vadd.xlane.f32.xlu1 %v8699_v42 }
0x163c   :  { %8706 = vadd.xlane.f32.xlu1 %v8705_v48 }
0x163d   :  { %7784 = vrot.lane.b32.xlu0 %v15228_v10, %s12915_s29 }
0x1640   :  { %8712 = vadd.xlane.f32.xlu1 %v8711_v0  ;;  %v8779_v0 = vpack.c.bf16 %v15228_v10, %v15228_v10 }
0x1644   :  { %8718 = vadd.xlane.f32.xlu1 %v8717_v28 }
0x1653   :  { %v8626_v36 = vpop.xlane.xlu0 %8625 }
0x1654   :  { %v8642_v17 = vsub.f32 %v15414_v7, %v8626_v36  ;;  %v9160_v36 = vsel %vm8790_vm9, %v8779_v0, 0 }
0x1656   :  { %v8673_v35 = vmul.f32 1.442695, %v8642_v17 }
0x1658   :  { %12662 = vpow2.f32 %v8673_v35 }
0x165c   :  { %8715 = vadd.xlane.f32.xlu0 %v8714_v14 }
0x1662   :  { %v15509_v58 = vpop.eup %12662 }
0x1663   :  { %v8720_v8 = vsel %vm8578_vm10, %v15509_v58, 0.0 }
0x1664   :  { %8721 = vadd.xlane.f32.xlu1 %v8720_v8  ;;  %v8782_v8 = vpack.c.bf16 %v15517_v18, %v15517_v18 }
0x1672   :  { %7790 = vrot.lane.b32.xlu0 %v15228_v10, %s12910_s20 }
0x1675   :  { %7787 = vrot.lane.b32.xlu1 %v15228_v10, %s12929_s18  ;;  %v8780_v10 = vpack.c.bf16 %v11717_v63, %v11717_v63 }
0x1677   :  { %v9206_v14 = vsel %vm8790_vm9, %v8780_v10, 0 }
0x1684   :  { %v8680_v7 = vpop.xlane.xlu0 %8679 }
0x1685   :  { %12664 = vrcp.f32 %v8680_v7 }
0x168c   :  { %v8689_v26 = vpop.xlane.xlu1 %8688 }
0x168f   :  { %v12665_v44 = vpop.eup %12664 }
0x1690   :  { %v8726_v40 = vmul.f32 %v12665_v44, %v15427_v27  ;;  %v8683_v16 = vpop.xlane.xlu1 %8682  ;;  %v8775_v27 = vpack.c.bf16 %v15420_v25, %v15420_v25  ;;  %v9298_v44 = vsel %vm8790_vm9, %v8782_v8, 0 }
0x1691   :  { %12666 = vrcp.f32 %v8683_v16 }
0x1692   :  { %v8756_v60 = vpack.c.bf16 %v8726_v40, %v8726_v40  ;;  %12668 = vrcp.f32 %v8689_v26  ;;  %v8976_v12 = vsel %vm8790_vm9, %v8775_v27, 0 }
0x1694   :  { %11566 = vmatmul.mubr.msk.bf16.vlgmr.msra.gmra.mrb[124].mxu1 %vm8578_vm10, %v8756_v60  ;;  %v8695_v5 = vpop.xlane.xlu0 %8694  ;;  %v7782_v45 = vpop.permute.xlu1 %7781 }
0x1695   :  { %11576 = vmatpush3.bf16.msra.mxu1 %v8930_v11  ;;  %11577 = vmatprep.mubr.msk.bf16.mxu1 %vm12925_vm7, %v12924_v49 }
0x1696   :  { %11587 = vmatprep.subr.bf16.mxu1 %v12924_v49 }
0x1698   :  { %v8686_v23 = vpop.xlane.xlu0 %8685 }
0x1699   :  { %12670 = vrcp.f32 %v8686_v23 }
0x169a   :  { %12672 = vrcp.f32 %v8695_v5 }
0x169b   :  { %v12667_v61 = vpop.eup %12666 }
0x169c   :  { %v8728_v1 = vmul.f32 %v12667_v61, %v15437_v2  ;;  %v8692_v29 = vpop.xlane.xlu0 %8691  ;;  %v12669_v50 = vpop.eup %12668  ;;  %v8776_v2 = vpack.c.bf16 %v15357_v46, %v15357_v46  ;;  %v8781_v61 = vpack.c.bf16 %v15502_v22, %v15502_v22 }
0x169d   :  { %12674 = vrcp.f32 %v8692_v29  ;;  %v8732_v51 = vmul.f32 %v12669_v50, %v15433_v38  ;;  %v9068_v38 = vsel %vm8790_vm9, %v8777_v54, 0 }
0x169e   :  { %v8757_v56 = vpack.c.bf16 %v8728_v1, %v8728_v1  ;;  %v9022_v48 = vsel %vm8790_vm9, %v8776_v2, 0 }
0x169f   :  { %v8759_v32 = vpack.c.bf16 %v8732_v51, %v8732_v51 }
0x16a0   :  { %11572 = vmatmul.mubr.msk.bf16.vlgmr.msra.gmra.mrb[100].mxu0 %vm8578_vm10, %v8757_v56  ;;  %v9252_v56 = vsel %vm8790_vm9, %v8781_v61, 0 }
0x16a1   :  { %11582 = vmatpush3.bf16.msra.mxu0 %v8976_v12  ;;  %11583 = vmatprep.mubr.msk.bf16.mxu0 %vm12925_vm7, %v12924_v49  ;;  %v8783_v12 = vpack.c.bf16 %v7782_v45, %v7782_v45 }
0x16a2   :  { %11593 = vmatprep.subr.bf16.mxu0 %v12924_v49 }
0x16a3   :  { %v12671_v25 = vpop.eup %12670 }
0x16a4   :  { %v8730_v9 = vmul.f32 %v12671_v25, %v15446_v30  ;;  %v8698_v47 = vpop.xlane.xlu0 %8697  ;;  %v12673_v31 = vpop.eup %12672  ;;  %v8778_v30 = vpack.c.bf16 %v15367_v43, %v15367_v43 }
0x16a5   :  { %12676 = vrcp.f32 %v8698_v47  ;;  %v8736_v46 = vmul.f32 %v12673_v31, %v15442_v53 }
0x16a6   :  { %v8758_v57 = vpack.c.bf16 %v8730_v9, %v8730_v9  ;;  %v9114_v19 = vsel %vm8790_vm9, %v8778_v30, 0 }
0x16a7   :  { %v12675_v42 = vpop.eup %12674 }
0x16a8   :  { %11578 = vmatmul.mubr.msk.bf16.vlgmr.msra.gmra.mrb[128].mxu1 %vm8578_vm10, %v8758_v57  ;;  %11584 = vmatmul.mubr.msk.bf16.vlgmr.msra.gmra.mrb[104].mxu0 %vm8578_vm10, %v8759_v32  ;;  %v8734_v13 = vmul.f32 %v12675_v42, %v15451_v59  ;;  %v8761_v59 = vpack.c.bf16 %v8736_v46, %v8736_v46 }
0x16a9   :  { %11588 = vmatpush3.bf16.msra.mxu1 %v9022_v48  ;;  %11594 = vmatpush3.bf16.msra.mxu0 %v9068_v38 }
0x16aa   :  { %11589 = vmatprep.mubr.msk.bf16.mxu1 %vm12925_vm7, %v12924_v49  ;;  %11595 = vmatprep.mubr.msk.bf16.mxu0 %vm12925_vm7, %v12924_v49  ;;  %v8760_v53 = vpack.c.bf16 %v8734_v13, %v8734_v13 }
0x16ab   :  { %11599 = vmatprep.subr.bf16.mxu1 %v12924_v49  ;;  %11605 = vmatprep.subr.bf16.mxu0 %v12924_v49 }
0x16ac   :  { %v8704_v28 = vpop.xlane.xlu0 %8703 }
0x16ad   :  { %12678 = vrcp.f32 %v8704_v28 }
0x16af   :  { %v12677_v4 = vpop.eup %12676 }
0x16b0   :  { %11590 = vmatmul.mubr.msk.bf16.vlgmr.msra.gmra.mrb[132].mxu1 %vm8578_vm10, %v8760_v53  ;;  %11596 = vmatmul.mubr.msk.bf16.vlgmr.msra.gmra.mrb[108].mxu0 %vm8578_vm10, %v8761_v59  ;;  %v8738_v43 = vmul.f32 %v12677_v4, %v15458_v33 }
0x16b1   :  { %11600 = vmatpush3.bf16.msra.mxu1 %v9114_v19  ;;  %11606 = vmatpush3.bf16.msra.mxu0 %v9160_v36 }
0x16b2   :  { %11601 = vmatprep.mubr.msk.bf16.mxu1 %vm12925_vm7, %v12924_v49  ;;  %11611 = vmatprep.subr.bf16.mxu1 %v12924_v49  ;;  %v8762_v17 = vpack.c.bf16 %v8738_v43, %v8738_v43 }
0x16b3   :  { %11607 = vmatprep.mubr.msk.bf16.mxu0 %vm12925_vm7, %v12924_v49  ;;  %11617 = vmatprep.subr.bf16.mxu0 %v12924_v49 }
0x16b4   :  { %v8710_v41 = vpop.xlane.xlu0 %8709 }
0x16b5   :  { %12680 = vrcp.f32 %v8710_v41 }
0x16b7   :  { %v12679_v35 = vpop.eup %12678 }
0x16b8   :  { %11602 = vmatmul.mubr.msk.bf16.vlgmr.msra.gmra.mrb[136].mxu1 %vm8578_vm10, %v8762_v17  ;;  %v8742_v33 = vmul.f32 %v12679_v35, %v15463_v55  ;;  %v7785_v40 = vpop.permute.xlu0 %7784 }
0x16b9   :  { %11612 = vmatpush3.bf16.msra.mxu1 %v9206_v14  ;;  %11613 = vmatprep.mubr.msk.bf16.mxu1 %vm12925_vm7, %v12924_v49  ;;  %v8784_v55 = vpack.c.bf16 %v7785_v40, %v7785_v40 }
0x16ba   :  { %11623 = vmatprep.subr.bf16.mxu1 %v12924_v49  ;;  %v8764_v7 = vpack.c.bf16 %v8742_v33, %v8742_v33 }
0x16bb   :  { %v9390_v11 = vsel %vm8790_vm9, %v8784_v55, 0 }
0x16bf   :  { %v12681_v26 = vpop.eup %12680 }
0x16c0   :  { %11614 = vmatmul.mubr.msk.bf16.vlgmr.msra.gmra.mrb[140].mxu1 %vm8578_vm10, %v8764_v7  ;;  %v8746_v16 = vmul.f32 %v12681_v26, %v15468_v34 }
0x16c1   :  { %11624 = vmatpush3.bf16.msra.mxu1 %v9298_v44  ;;  %11625 = vmatprep.mubr.msk.bf16.mxu1 %vm12925_vm7, %v12924_v49 }
0x16c2   :  { %11635 = vmatprep.subr.bf16.mxu1 %v12924_v49  ;;  %v8766_v18 = vpack.c.bf16 %v8746_v16, %v8746_v16 }
0x16c5   :  { %v8701_v60 = vpop.xlane.xlu1 %8700 }
0x16c6   :  { %12682 = vrcp.f32 %v8701_v60 }
0x16c8   :  { %11626 = vmatmul.mubr.msk.bf16.vlgmr.msra.gmra.mrb[144].mxu1 %vm8578_vm10, %v8766_v18 }
0x16c9   :  { %11636 = vmatpush3.bf16.msra.mxu1 %v9390_v11  ;;  %v8707_v5 = vpop.xlane.xlu1 %8706  ;;  %11637 = vmatprep.mubr.msk.bf16.mxu1 %vm12925_vm7, %v12924_v49 }
0x16ca   :  { %12684 = vrcp.f32 %v8707_v5  ;;  %11647 = vmatprep.subr.bf16.mxu1 %v12924_v49 }
0x16cd   :  { %v8713_v23 = vpop.xlane.xlu1 %8712 }
0x16ce   :  { %12686 = vrcp.f32 %v8713_v23 }
0x16d0   :  { %v12683_v34 = vpop.eup %12682 }
0x16d1   :  { %v8740_v27 = vmul.f32 %v12683_v34, %v15483_v39  ;;  %v9344_v39 = vsel %vm8790_vm9, %v8783_v12, 0 }
0x16d3   :  { %v8763_v1 = vpack.c.bf16 %v8740_v27, %v8740_v27 }
0x16d4   :  { %v12685_v29 = vpop.eup %12684 }
0x16d5   :  { %11608 = vmatmul.mubr.msk.bf16.vlgmr.msra.gmra.mrb[112].mxu0 %vm8578_vm10, %v8763_v1  ;;  %v8744_v50 = vmul.f32 %v12685_v29, %v15487_v20  ;;  %v8719_v20 = vpop.xlane.xlu1 %8718 }
0x16d6   :  { %11618 = vmatpush3.bf16.msra.mxu0 %v9252_v56  ;;  %11619 = vmatprep.mubr.msk.bf16.mxu0 %vm12925_vm7, %v12924_v49  ;;  %12688 = vrcp.f32 %v8719_v20 }
0x16d7   :  { %11629 = vmatprep.subr.bf16.mxu0 %v12924_v49  ;;  %v8765_v51 = vpack.c.bf16 %v8744_v50, %v8744_v50 }
0x16d8   :  { %v12687_v22 = vpop.eup %12686 }
0x16d9   :  { %v8748_v25 = vmul.f32 %v12687_v22, %v15491_v6 }
0x16db   :  { %v8767_v2 = vpack.c.bf16 %v8748_v25, %v8748_v25 }
0x16dd   :  { %11620 = vmatmul.mubr.msk.bf16.vlgmr.msra.gmra.mrb[116].mxu0 %vm8578_vm10, %v8765_v51 }
0x16de   :  { %11630 = vmatpush3.bf16.msra.mxu0 %v9344_v39  ;;  %11631 = vmatprep.mubr.msk.bf16.mxu0 %vm12925_vm7, %v12924_v49 }
0x16df   :  { %11641 = vmatprep.subr.bf16.mxu0 %v12924_v49 }
0x16e0   :  { %v12689_v47 = vpop.eup %12688 }
0x16e1   :  { %v8752_v6 = vmul.f32 %v12689_v47, %v15497_v52 }
0x16e3   :  { %v8769_v0 = vpack.c.bf16 %v8752_v6, %v8752_v6  ;;  %v12286_v6 = vld [vmem:[#allocation15] sm:$0xff]  }
0x16e5   :  { %11632 = vmatmul.mubr.msk.bf16.vlgmr.msra.gmra.mrb[120].mxu0 %vm8578_vm10, %v8767_v2 }
0x16e6   :  { %11643 = vmatprep.mubr.msk.bf16.mxu0 %vm12925_vm7, %v12924_v49 }
0x16e9   :  { %v8716_v54 = vpop.xlane.xlu0 %8715 }
0x16ea   :  { %12690 = vrcp.f32 %v8716_v54 }
0x16ed   :  { %v7791_v57 = vpop.permute.xlu0 %7790 }
0x16ee   :  { %v8786_v48 = vpack.c.bf16 %v7791_v57, %v7791_v57 }
0x16f0   :  { %v9482_v30 = vsel %vm8790_vm9, %v8786_v48, 0 }
0x16f1   :  { %v8722_v9 = vpop.xlane.xlu1 %8721 }
0x16f2   :  { %12692 = vrcp.f32 %v8722_v9 }
0x16f4   :  { %v12691_v32 = vpop.eup %12690 }
0x16f5   :  { %v7788_v31 = vpop.permute.xlu1 %7787  ;;  %v8750_v42 = vmul.f32 %v12691_v32, %v15505_v24 }
0x16f6   :  { %v8785_v38 = vpack.c.bf16 %v7788_v31, %v7788_v31 }
0x16f7   :  { %v8768_v13 = vpack.c.bf16 %v8750_v42, %v8750_v42 }
0x16f8   :  { %v9436_v46 = vsel %vm8790_vm9, %v8785_v38, 0 }
0x16f9   :  { %11642 = vmatpush3.bf16.msra.mxu0 %v9436_v46  ;;  %11638 = vmatmul.mubr.msk.bf16.vlgmr.msra.gmra.mrb[148].mxu1 %vm8578_vm10, %v8768_v13  ;;  %v12287_v46 = vld [vmem:[#allocation15 + $0x8] sm:$0xff]  }
0x16fa   :  { %11653 = vmatprep.subr.bf16.mxu0 %v12924_v49  ;;  %11648 = vmatpush3.bf16.msra.mxu1 %v9482_v30  ;;  %v12288_v30 = vld [vmem:[#allocation15 + $0x10] sm:$0xff]  }
0x16fb   :  { %11649 = vmatprep.mubr.msk.bf16.mxu1 %vm12925_vm7, %v12924_v49 }
0x16fc   :  { %v12693_v52 = vpop.eup %12692  ;;  %11644 = vmatmul.mubr.msk.bf16.vlgmr.msra.gmra.mrb[124].mxu0 %vm8578_vm10, %v8769_v0 }
0x16fd   :  { %v8754_v24 = vmul.f32 %v12693_v52, %v15509_v58  ;;  %11669 = vmatprep.mubr.msk.bf16.mxu0 %vm12925_vm7, %v12924_v49  ;;  %11654 = vmatpush3.bf16.msra.mxu0 %v12286_v6 }
0x16fe   :  { %v15618_v28 = vpop.f32.mrb[96].mxu0  ;;  %11655 = vmatprep.subr.bf16.mxu0 %v12924_v49 }
0x16ff   :  { %v8770_v53 = vpack.c.bf16 %v8754_v24, %v8754_v24  ;;  %v11561_v59 = vpop.f32.mrb[97].mxu0 }
0x1700   :  { %v8831_v4 = vpop.f32.mrb[98].mxu0  ;;  %v12289_v59 = vld [vmem:[#allocation15 + $0x18] sm:$0xff]  }
0x1701   :  { %v11562_v63 = vpop.f32.mrb[99].mxu0  ;;  %11650 = vmatmul.mubr.msk.bf16.vlgmr.msra.gmra.mrb[152].mxu1 %vm8578_vm10, %v8770_v53  ;;  %11656 = vmatpush3.bf16.msra.mxu0 %v12287_v46 }
0x1702   :  { %9983 = vmatprep.mubr.bf16.mxu1 %v15962_v37  ;;  %11657 = vmatprep.subr.bf16.mxu0 %v12924_v49  ;;  %v12290_v63 = vld [vmem:[#allocation15 + $0x20] sm:$0xff]  }
0x1705   :  { %11658 = vmatpush3.bf16.msra.mxu0 %v12288_v30 }
0x1706   :  { %11659 = vmatprep.subr.bf16.mxu0 %v12924_v49 }
0x1709   :  { %11660 = vmatpush3.bf16.msra.mxu0 %v12289_v59 }
0x170a   :  { %11661 = vmatprep.subr.bf16.mxu0 %v12924_v49 }
0x170d   :  { %11662 = vmatpush3.bf16.msra.mxu0 %v12290_v63  ;;  %v12297_v63 = vld [vmem:[#allocation16 + $0x8] ss:$16 sps:$4 sm:$0xff]  }
0x170e   :  { %11663 = vmatprep.subr.bf16.mxu0 %v12924_v49 }
0x1767   :  { %v8874_v19 = vpop.f32.mrb[124].mxu1 }
0x1768   :  { %v11567_v36 = vpop.f32.mrb[125].mxu1 }
0x1769   :  { %v8877_v43 = vpop.f32.mrb[126].mxu1  ;;  %v12292_v36 = vld [vmem:[#allocation15 + $0x30] sm:$0xff]  }
0x176a   :  { %v11568_v10 = vpop.f32.mrb[127].mxu1 }
0x1773   :  { %v8920_v41 = vpop.f32.mrb[100].mxu0 }
0x1774   :  { %v11573_v17 = vpop.f32.mrb[101].mxu0 }
0x1775   :  { %v8923_v58 = vpop.f32.mrb[102].mxu0  ;;  %v12293_v17 = vld [vmem:[#allocation15 + $0x38] sm:$0xff]  }
0x1776   :  { %v11574_v35 = vpop.f32.mrb[103].mxu0 }
0x177b   :  { %v8966_v14 = vpop.f32.mrb[128].mxu1  ;;  %v9012_v33 = vpop.f32.mrb[104].mxu0 }
0x177c   :  { %v11579_v8 = vpop.f32.mrb[129].mxu1  ;;  %v11585_v7 = vpop.f32.mrb[105].mxu0 }
0x177d   :  { %v8969_v26 = vpop.f32.mrb[130].mxu1  ;;  %v9015_v44 = vpop.f32.mrb[106].mxu0  ;;  %v12294_v7 = vld [vmem:[#allocation16] ss:$16 sps:$4 sm:$0xff]  }
0x177e   :  { %v11580_v45 = vpop.f32.mrb[131].mxu1  ;;  %v11586_v40 = vpop.f32.mrb[107].mxu0  ;;  %v12296_v26 = vld [vmem:[#allocation16 + $0x4] ss:$16 sps:$4 sm:$0xff]  }
0x177f   :  { %v12299_v45 = vld [vmem:[#allocation16 + $0xc] ss:$16 sps:$4 sm:$0xff]   ;;  %9951 = vmatprep.subr.bf16.mxu1 %v12296_v26  ;;  %v12302_v40 = vld [vmem:[#allocation16 + $0x24] ss:$16 sps:$4 sm:$0xff]   ;;  %v12321_v26 = vld [vmem:[#allocation16 + $0x88] ss:$16 sps:$4 sm:$0xff]  }
0x1780   :  { %9952 = vmatpush1.bf16.msra.mxu1 %v12294_v7  ;;  %v12320_v7 = vld [vmem:[#allocation16 + $0x84] ss:$16 sps:$4 sm:$0xff]  }
0x1781   :  { %9953 = vmatprep.subr.bf16.mxu1 %v12302_v40  ;;  %v12324_v40 = vld [vmem:[#allocation16 + $0xa0] ss:$16 sps:$4 sm:$0xff]  }
0x1783   :  { %v15622_v16 = vpop.f32.mrb[132].mxu1  ;;  %v15624_v55 = vpop.f32.mrb[108].mxu0 }
0x1784   :  { %v11591_v60 = vpop.f32.mrb[133].mxu1  ;;  %v11597_v18 = vpop.f32.mrb[109].mxu0 }
0x1785   :  { %v9061_v11 = vpop.f32.mrb[134].mxu1  ;;  %v9107_v5 = vpop.f32.mrb[110].mxu0 }
0x1786   :  { %v11592_v23 = vpop.f32.mrb[135].mxu1  ;;  %v11598_v34 = vpop.f32.mrb[111].mxu0 }
0x178b   :  { %v15626_v61 = vpop.f32.mrb[136].mxu1 }
0x178c   :  { %v11603_v27 = vpop.f32.mrb[137].mxu1 }
0x178d   :  { %v9153_v1 = vpop.f32.mrb[138].mxu1 }
0x178e   :  { %v11604_v29 = vpop.f32.mrb[139].mxu1 }
0x1793   :  { %v9242_v56 = vpop.f32.mrb[140].mxu1 }
0x1794   :  { %v11718_v50 = vpack.i.bf16 %v9242_v56, %v8874_v19  ;;  %v11615_v12 = vpop.f32.mrb[141].mxu1  ;;  %v12291_v19 = vld [vmem:[#allocation15 + $0x28] sm:$0xff]  }
0x1795   :  { %v9245_v51 = vpop.f32.mrb[142].mxu1  ;;  %11664 = vmatpush3.bf16.msra.mxu0 %v12291_v19 }
0x1796   :  { %11719 = vrot.lane.b32.xlu1 %v11718_v50, %s12910_s20  ;;  %v11616_v22 = vpop.f32.mrb[143].mxu1  ;;  %11665 = vmatprep.subr.bf16.mxu0 %v12924_v49 }
0x1799   :  { %11666 = vmatpush3.bf16.msra.mxu0 %v12292_v36  ;;  %v12305_v36 = vld [vmem:[#allocation16 + $0x2c] ss:$16 sps:$4 sm:$0xff]  }
0x179a   :  { %11667 = vmatprep.subr.bf16.mxu0 %v12924_v49 }
0x179b   :  { %v9334_v39 = vpop.f32.mrb[144].mxu1 }
0x179c   :  { %v11728_v25 = vpack.i.bf16 %v9334_v39, %v8966_v14  ;;  %v11627_v2 = vpop.f32.mrb[145].mxu1 }
0x179d   :  { %v9337_v20 = vpop.f32.mrb[146].mxu1  ;;  %11668 = vmatpush3.bf16.msra.mxu0 %v12293_v17  ;;  %v12306_v17 = vld [vmem:[#allocation16 + $0x40] ss:$16 sps:$4 sm:$0xff]  }
0x179e   :  { %11729 = vrot.lane.b32.xlu1 %v11728_v25, %s12915_s29  ;;  %v11628_v54 = vpop.f32.mrb[147].mxu1  ;;  %9992 = vmatprep.subr.bf16.mxu0 %v12299_v45  ;;  %v12326_v45 = vld [vmem:[#allocation16 + $0xa4] ss:$16 sps:$4 sm:$0xff]  }
0x17a8   :  { %v15630_v9 = vpop.f32.mrb[112].mxu0 }
0x17a9   :  { %v11609_v47 = vpop.f32.mrb[113].mxu0 }
0x17aa   :  { %v9199_v57 = vpop.f32.mrb[114].mxu0 }
0x17ab   :  { %v11610_v32 = vpop.f32.mrb[115].mxu0 }
0x17b0   :  { %v9288_v31 = vpop.f32.mrb[116].mxu0 }
0x17b1   :  { %v11723_v42 = vpack.i.bf16 %v9288_v31, %v8920_v41  ;;  %v11621_v48 = vpop.f32.mrb[117].mxu0 }
0x17b2   :  { %v9291_v38 = vpop.f32.mrb[118].mxu0 }
0x17b3   :  { %11724 = vrot.lane.b32.xlu0 %v11723_v42, %s12929_s18  ;;  %v11622_v13 = vpop.f32.mrb[119].mxu0 }
0x17b8   :  { %v9380_v0 = vpop.f32.mrb[120].mxu0 }
0x17b9   :  { %v11733_v52 = vpack.i.bf16 %v9380_v0, %v9012_v33  ;;  %v11633_v24 = vpop.f32.mrb[121].mxu0 }
0x17ba   :  { %v9383_v53 = vpop.f32.mrb[122].mxu0 }
0x17bb   :  { %11734 = vrot.lane.b32.xlu0 %v11733_v52, %s12919_s7  ;;  %v11634_v4 = vpop.f32.mrb[123].mxu0 }
0x17cc   :  { %v9426_v43 = vpop.f32.mrb[148].mxu1 }
0x17cd   :  { %v11738_v10 = vpack.i.bf16 %v9426_v43, %v15622_v16  ;;  %v11639_v41 = vpop.f32.mrb[149].mxu1  ;;  %v12300_v16 = vld [vmem:[#allocation16 + $0x20] ss:$16 sps:$4 sm:$0xff]   ;;  %v12303_v43 = vld [vmem:[#allocation16 + $0x28] ss:$16 sps:$4 sm:$0xff]  }
0x17ce   :  { %v9429_v58 = vpop.f32.mrb[150].mxu1  ;;  %9954 = vmatpush1.bf16.msra.mxu1 %v12300_v16  ;;  %v12311_v41 = vld [vmem:[#allocation16 + $0x4c] ss:$16 sps:$4 sm:$0xff]   ;;  %v12327_v16 = vld [vmem:[#allocation16 + $0xa8] ss:$16 sps:$4 sm:$0xff]  }
0x17cf   :  { %v9472_v35 = vpop.f32.mrb[124].mxu0  ;;  %11739 = vrot.lane.b32.xlu1 %v11738_v10, %s12928_s10  ;;  %v11640_v33 = vpop.f32.mrb[151].mxu1  ;;  %v12308_v10 = vld [vmem:[#allocation16 + $0x44] ss:$16 sps:$4 sm:$0xff]   ;;  %v12309_v58 = vld [vmem:[#allocation16 + $0x48] ss:$16 sps:$4 sm:$0xff]  }
0x17d0   :  { %v11743_v14 = vpack.i.bf16 %v9472_v35, %v15624_v55  ;;  %v11645_v8 = vpop.f32.mrb[125].mxu0  ;;  %9955 = vmatprep.subr.bf16.mxu1 %v12308_v10  ;;  %v12314_v35 = vld [vmem:[#allocation16 + $0x64] ss:$16 sps:$4 sm:$0xff]   ;;  %v12312_v33 = vld [vmem:[#allocation16 + $0x60] ss:$16 sps:$4 sm:$0xff]  }
0x17d1   :  { %v9475_v44 = vpop.f32.mrb[126].mxu0  ;;  %v12315_v8 = vld [vmem:[#allocation16 + $0x68] ss:$16 sps:$4 sm:$0xff]   ;;  %v12351_v10 = vld [vmem:[%s15796_s15 + $0xd0] sm:$0xff]  }
0x17d2   :  { %11744 = vrot.lane.b32.xlu0 %v11743_v14, %s12926_s1  ;;  %v11646_v49 = vpop.f32.mrb[127].mxu0  ;;  %9956 = vmatpush1.bf16.msra.mxu1 %v12306_v17  ;;  %v12317_v14 = vld [vmem:[#allocation16 + $0x6c] ss:$16 sps:$4 sm:$0xff]   ;;  %v12353_v17 = vld [vmem:[%s15796_s15 + $0x90] sm:$0xff]  }
0x17d3   :  { %9957 = vmatprep.subr.bf16.mxu1 %v12314_v35  ;;  %v12323_v44 = vld [vmem:[#allocation16 + $0x8c] ss:$16 sps:$4 sm:$0xff]  }
0x17d4   :  { %v9518_v60 = vpop.f32.mrb[152].mxu1  ;;  %v12329_v49 = vld [vmem:[#allocation16 + $0xac] ss:$16 sps:$4 sm:$0xff]  }
0x17d5   :  { %v11748_v55 = vpack.i.bf16 %v9518_v60, %v15626_v61  ;;  %v11651_v18 = vpop.f32.mrb[153].mxu1  ;;  %v12332_v60 = vld [vmem:[#allocation16 + $0xc4] ss:$16 sps:$4 sm:$0xff]   ;;  %v12355_v35 = vld [vmem:[%s15796_s15 + $0xd8] sm:$0xff]  }
0x17d6   :  { %v9521_v11 = vpop.f32.mrb[154].mxu1  ;;  %9958 = vmatpush1.bf16.msra.mxu1 %v12312_v33  ;;  %v12330_v18 = vld [vmem:[#allocation16 + $0xc0] ss:$16 sps:$4 sm:$0xff]   ;;  %v12357_v33 = vld [vmem:[%s15796_s15 + $0x98] sm:$0xff]  }
0x17d7   :  { %11749 = vrot.lane.b32.xlu1 %v11748_v55, %s12927_s0  ;;  %v11652_v5 = vpop.f32.mrb[155].mxu1  ;;  %9959 = vmatprep.subr.bf16.mxu1 %v12320_v7  ;;  %v12335_v55 = vld [vmem:[#allocation16 + $0xcc] ss:$16 sps:$4 sm:$0xff]   ;;  %v12333_v11 = vld [vmem:[#allocation16 + $0xc8] ss:$16 sps:$4 sm:$0xff]   ;;  %v12359_v7 = vld [vmem:[%s15796_s15 + $0xe0] sm:$0xff]  }
0x17d8   :  { %v12338_v5 = vld [vmem:[#allocation16 + $0xe4] ss:$16 sps:$4 sm:$0xff]  }
0x1808   :  { %v11720_v23 = vpop.permute.xlu1 %11719 }
0x1809   :  { %v11722_v1 = vunpack.i.h.bf16 %v11720_v23  ;;  %v11721_v29 = vunpack.i.l.bf16 %v11720_v23  ;;  %v12341_v23 = vld [vmem:[#allocation16 + $0xec] ss:$16 sps:$4 sm:$0xff]  }
0x180b   :  { %v9593_v22 = vsel %vm7825_vm8, %v15630_v9, %v11722_v1  ;;  %v9552_v61 = vsel %vm7825_vm8, %v15618_v28, %v11721_v29  ;;  %v12342_v1 = vld [vmem:[%s15796_s15 + $0x40] sm:$0xff]  }
0x180c   :  { %v12343_v29 = vld [vmem:[%s15796_s15 + $0xc0] sm:$0xff]  }
0x1810   :  { %v11730_v27 = vpop.permute.xlu1 %11729 }
0x1811   :  { %v11732_v47 = vunpack.i.h.bf16 %v11730_v27  ;;  %v11731_v57 = vunpack.i.l.bf16 %v11730_v27  ;;  %v12339_v27 = vld [vmem:[#allocation16 + $0xe8] ss:$16 sps:$4 sm:$0xff]  }
0x1825   :  { %v11725_v34 = vpop.permute.xlu0 %11724 }
0x1826   :  { %v11727_v50 = vunpack.i.h.bf16 %v11725_v34  ;;  %v11726_v12 = vunpack.i.l.bf16 %v11725_v34  ;;  %v12336_v34 = vld [vmem:[#allocation16 + $0xe0] ss:$16 sps:$4 sm:$0xff]  }
0x1828   :  { %v9554_v25 = vsel %vm9553_vm11, %v9552_v61, %v11726_v12  ;;  %v9594_v2 = vsel %vm9553_vm11, %v9593_v22, %v11727_v50 }
0x1829   :  { %v9556_v48 = vsel %vm9555_vm12, %v9554_v25, %v11731_v57  ;;  %v9595_v38 = vsel %vm9555_vm12, %v9594_v2, %v11732_v47 }
0x182d   :  { %v11735_v56 = vpop.permute.xlu0 %11734 }
0x182e   :  { %v11737_v20 = vunpack.i.h.bf16 %v11735_v56  ;;  %v11736_v54 = vunpack.i.l.bf16 %v11735_v56  ;;  %v11241_v56 = vld [vmem:[%s15793_s12] ss:$0 sm:$0xff] }
0x1830   :  { %v9558_v9 = vsel %vm9557_vm13, %v9556_v48, %v11736_v54  ;;  %v9596_v28 = vsel %vm9557_vm13, %v9595_v38, %v11737_v20 }
0x1841   :  { %v11740_v51 = vpop.permute.xlu1 %11739 }
0x1842   :  { %v11742_v32 = vunpack.i.h.bf16 %v11740_v51  ;;  %v11741_v31 = vunpack.i.l.bf16 %v11740_v51 }
0x1844   :  { %v11745_v39 = vpop.permute.xlu0 %11744  ;;  %v9597_v13 = vsel %vm9559_vm14, %v9596_v28, %v11742_v32  ;;  %v9560_v30 = vsel %vm9559_vm14, %v9558_v9, %v11741_v31 }
0x1845   :  { %v11747_v6 = vunpack.i.h.bf16 %v11745_v39  ;;  %v11746_v42 = vunpack.i.l.bf16 %v11745_v39 }
0x1847   :  { %v9562_v24 = vsel %vm9561_vm15, %v9560_v30, %v11746_v42  ;;  %v9598_v53 = vsel %vm9561_vm15, %v9597_v13, %v11747_v6 }
0x1849   :  { %v11750_v46 = vpop.permute.xlu1 %11749 }
0x184a   :  { %v11752_v0 = vunpack.i.h.bf16 %v11750_v46  ;;  %v11751_v52 = vunpack.i.l.bf16 %v11750_v46 }
0x184c   :  { %v9599_v59 = vsel %vm9563_vm0, %v9598_v53, %v11752_v0  ;;  %v9564_v4 = vsel %vm9563_vm0, %v9562_v24, %v11751_v52  ;;  %v12344_v24 = vld [vmem:[%s15796_s15] sm:$0xff]  }
0x184d   :  { %v9600_v19 = vpack.c.bf16 %v9599_v59, %v9564_v4  ;;  %v12345_v53 = vld [vmem:[%s15796_s15 + $0x80] sm:$0xff]   ;;  %v12346_v4 = vld [vmem:[%s15796_s15 + $0x48] sm:$0xff]  }
0x184f   :  { %11670 = vmatmul.mubr.bf16.vlgmr.msra.gmra.mrb[128].mxu0 %v9600_v19  ;;  %v12348_v19 = vld [vmem:[%s15796_s15 + $0x8] sm:$0xff]  }
0x1850   :  { %9993 = vmatpush1.bf16.msra.mxu0 %v12297_v63  ;;  %10024 = vmatprep.mubr.bf16.mxu0 %v15962_v37  ;;  %v12318_v37 = vld [vmem:[#allocation16 + $0x80] ss:$16 sps:$4 sm:$0xff]   ;;  %v12347_v63 = vld [vmem:[%s15796_s15 + $0xc8] sm:$0xff]  }
0x1851   :  { %9994 = vmatprep.subr.bf16.mxu0 %v12305_v36  ;;  %9960 = vmatpush1.bf16.msra.mxu1 %v12318_v37  ;;  %v12349_v36 = vld [vmem:[%s15796_s15 + $0x88] sm:$0xff]   ;;  %v12360_v37 = vld [vmem:[%s15796_s15 + $0x20] sm:$0xff]  }
0x1852   :  { %9961 = vmatprep.subr.bf16.mxu1 %v12326_v45  ;;  %v12363_v45 = vld [vmem:[%s15796_s15 + $0xe8] sm:$0xff]  }
0x1854   :  { %9995 = vmatpush1.bf16.msra.mxu0 %v12303_v43  ;;  %v12350_v43 = vld [vmem:[%s15796_s15 + $0x50] sm:$0xff]  }
0x1855   :  { %9996 = vmatprep.subr.bf16.mxu0 %v12311_v41  ;;  %9962 = vmatpush1.bf16.msra.mxu1 %v12324_v40  ;;  %v12352_v41 = vld [vmem:[%s15796_s15 + $0x10] sm:$0xff]   ;;  %v12365_v40 = vld [vmem:[%s15796_s15 + $0xa8] sm:$0xff]  }
0x1856   :  { %9963 = vmatprep.subr.bf16.mxu1 %v12332_v60  ;;  %v12367_v60 = vld [vmem:[%s15796_s15 + $0xf0] sm:$0xff]  }
0x1858   :  { %9997 = vmatpush1.bf16.msra.mxu0 %v12309_v58  ;;  %v12354_v58 = vld [vmem:[%s15796_s15 + $0x58] sm:$0xff]  }
0x1859   :  { %9998 = vmatprep.subr.bf16.mxu0 %v12317_v14  ;;  %9964 = vmatpush1.bf16.msra.mxu1 %v12330_v18  ;;  %v12356_v14 = vld [vmem:[%s15796_s15 + $0x18] sm:$0xff]   ;;  %v12369_v18 = vld [vmem:[%s15796_s15 + $0xb0] sm:$0xff]  }
0x185a   :  { %9965 = vmatprep.subr.bf16.mxu1 %v12338_v5  ;;  %v12371_v5 = vld [vmem:[%s15796_s15 + $0xf8] sm:$0xff]  }
0x185c   :  { %9999 = vmatpush1.bf16.msra.mxu0 %v12315_v8  ;;  %v12358_v8 = vld [vmem:[%s15796_s15 + $0x60] sm:$0xff]  }
0x185d   :  { %10000 = vmatprep.subr.bf16.mxu0 %v12323_v44  ;;  %9966 = vmatpush1.bf16.msra.mxu1 %v12336_v34  ;;  %v12362_v44 = vld [vmem:[%s15796_s15 + $0x68] sm:$0xff]   ;;  %v12373_v34 = vld [vmem:[%s15796_s15 + $0xb8] sm:$0xff]  }
0x185e   :  { %11397 = vmatprep.subr.bf16.mxu1 %v12342_v1 }
0x1860   :  { %10001 = vmatpush1.bf16.msra.mxu0 %v12321_v26  ;;  %v12361_v26 = vld [vmem:[%s15796_s15 + $0xa0] sm:$0xff]  }
0x1861   :  { %10002 = vmatprep.subr.bf16.mxu0 %v12329_v49  ;;  %v12364_v49 = vld [vmem:[%s15796_s15 + $0x28] sm:$0xff]  }
0x1864   :  { %10003 = vmatpush1.bf16.msra.mxu0 %v12327_v16  ;;  %v12366_v16 = vld [vmem:[%s15796_s15 + $0x70] sm:$0xff]  }
0x1865   :  { %10004 = vmatprep.subr.bf16.mxu0 %v12335_v55  ;;  %v12368_v55 = vld [vmem:[%s15796_s15 + $0x30] sm:$0xff]  }
0x1868   :  { %10005 = vmatpush1.bf16.msra.mxu0 %v12333_v11  ;;  %v12370_v11 = vld [vmem:[%s15796_s15 + $0x78] sm:$0xff]  }
0x1869   :  { %10006 = vmatprep.subr.bf16.mxu0 %v12341_v23  ;;  %v12372_v23 = vld [vmem:[%s15796_s15 + $0x38] sm:$0xff]  }
0x186c   :  { %10007 = vmatpush1.bf16.msra.mxu0 %v12339_v27  ;;  %v9762_v27 = vld [vmem:[%s15795_s14] sm:$0xf] }
0x186d   :  { %11419 = vmatprep.subr.bf16.mxu0 %v12343_v29  ;;  %v9767_v1 = vrot.slane %v9762_v27, %v16146_v62  ;;  %v9775_v29 = vrot.slane %v9762_v27, %v16147_v21 }
0x1922   :  { %v9706_v50 = vpop.f32.mrb[128].mxu0 }
0x1923   :  { %v9707_v12 = vadd.f32 %v11241_v56, %v9706_v50  ;;  %v11671_v51 = vpop.f32.mrb[129].mxu0  ;;  %v16148_v50 = vld [vmem:[#allocation50_spill] sm:$0xff] }
0x1924   :  { %v9709_v22 = vpop.f32.mrb[130].mxu0 }
0x1925   :  { %v9713_v61 = vrot.slane %v9707_v12, 4  ;;  %v9710_v39 = vadd.f32 %v11241_v56, %v9709_v22  ;;  %v11672_v25 = vpop.f32.mrb[131].mxu0  ;;  %v9771_v56 = vrot.slane %v9762_v27, %v16145_v15 }
0x1927   :  { %v9714_v2 = vadd.f32 %v9713_v61, %v9707_v12  ;;  %v9719_v20 = vrot.slane %v9710_v39, 4  ;;  %v9779_v12 = vrot.slane %v9762_v27, %v16148_v50 }
0x1929   :  { %v9715_v54 = vrot.slane %v9714_v2, 2  ;;  %v9720_v47 = vadd.f32 %v9719_v20, %v9710_v39 }
0x192b   :  { %v9716_v57 = vadd.f32 %v9715_v54, %v9714_v2  ;;  %v9721_v32 = vrot.slane %v9720_v47, 2 }
0x192d   :  { %v9717_v31 = vrot.slane %v9716_v57, 1  ;;  %v9722_v6 = vadd.f32 %v9721_v32, %v9720_v47 }
0x192f   :  { %v9718_v42 = vadd.f32 %v9717_v31, %v9716_v57  ;;  %v9723_v48 = vrot.slane %v9722_v6, 1 }
0x1931   :  { %v9726_v38 = vmul.f32 0.125, %v9718_v42  ;;  %v9724_v9 = vadd.f32 %v9723_v48, %v9722_v6 }
0x1933   :  { %v9728_v28 = vpack.c.bf16 %v9726_v38, %v9726_v38  ;;  %v9727_v46 = vmul.f32 0.125, %v9724_v9 }
0x1935   :  { %v9729_v13 = vpack.c.bf16 %v9727_v46, %v9727_v46  ;;  %v9786_v30 = vunpack.c.l.b16 %v9728_v28 }
0x1937   :  { %v9787_v0 = vunpack.c.l.b16 %v9729_v13  ;;  %v11282_v13 = vld [vmem:[%s16149_s26] ss:$0 sm:$0xff] }
0x1939   :  { %v9788_v52 = vsel %vm1470_vm2, %v9787_v0, %v9786_v30 }
0x193a   :  { %v9789_v59 = vpack.c.b16 %v9788_v52, %v9788_v52 }
0x193c   :  { %9984 = vmatmul.mubr.bf16.vlgmr.msra.gmra.mrb[156].mxu1 %v9789_v59  ;;  %10025 = vmatmul.mubr.bf16.vlgmr.msra.gmra.mrb[132].mxu0 %v9789_v59 }
0x193d   :  { %11398 = vmatpush3.bf16.msra.mxu1 %v12344_v24  ;;  %11420 = vmatpush3.bf16.msra.mxu0 %v12345_v53 }
0x193e   :  { %11399 = vmatprep.subr.bf16.mxu1 %v12346_v4  ;;  %11421 = vmatprep.subr.bf16.mxu0 %v12347_v63 }
0x1941   :  { %11400 = vmatpush3.bf16.msra.mxu1 %v12348_v19  ;;  %11422 = vmatpush3.bf16.msra.mxu0 %v12349_v36 }
0x1942   :  { %11401 = vmatprep.subr.bf16.mxu1 %v12350_v43  ;;  %11423 = vmatprep.subr.bf16.mxu0 %v12351_v10 }
0x1945   :  { %11402 = vmatpush3.bf16.msra.mxu1 %v12352_v41  ;;  %11424 = vmatpush3.bf16.msra.mxu0 %v12353_v17 }
0x1946   :  { %11403 = vmatprep.subr.bf16.mxu1 %v12354_v58  ;;  %11425 = vmatprep.subr.bf16.mxu0 %v12355_v35 }
0x1949   :  { %11404 = vmatpush3.bf16.msra.mxu1 %v12356_v14  ;;  %11426 = vmatpush3.bf16.msra.mxu0 %v12357_v33 }
0x194a   :  { %11405 = vmatprep.subr.bf16.mxu1 %v12358_v8  ;;  %11427 = vmatprep.subr.bf16.mxu0 %v12359_v7 }
0x194d   :  { %11406 = vmatpush3.bf16.msra.mxu1 %v12360_v37  ;;  %11428 = vmatpush3.bf16.msra.mxu0 %v12361_v26 }
0x194e   :  { %11407 = vmatprep.subr.bf16.mxu1 %v12362_v44  ;;  %11429 = vmatprep.subr.bf16.mxu0 %v12363_v45 }
0x1951   :  { %11408 = vmatpush3.bf16.msra.mxu1 %v12364_v49  ;;  %11430 = vmatpush3.bf16.msra.mxu0 %v12365_v40 }
0x1952   :  { %11409 = vmatprep.subr.bf16.mxu1 %v12366_v16  ;;  %11431 = vmatprep.subr.bf16.mxu0 %v12367_v60 }
0x1955   :  { %11410 = vmatpush3.bf16.msra.mxu1 %v12368_v55  ;;  %11432 = vmatpush3.bf16.msra.mxu0 %v12369_v18 }
0x1956   :  { %11411 = vmatprep.subr.bf16.mxu1 %v12370_v11  ;;  %11433 = vmatprep.subr.bf16.mxu0 %v12371_v5 }
0x1959   :  { %11412 = vmatpush3.bf16.msra.mxu1 %v12372_v23  ;;  %11434 = vmatpush3.bf16.msra.mxu0 %v12373_v34 }
0x1a0f   :  { %v9985_v51 = vpop.f32.mrb[156].mxu1  ;;  %v10026_v22 = vpop.f32.mrb[132].mxu0 }
0x1a10   :  { %v9986_v61 = vadd.f32 %v9985_v51, %v9767_v1  ;;  %v10027_v39 = vadd.f32 %v10026_v22, %v9775_v29  ;;  %v9987_v25 = vpop.f32.mrb[157].mxu1  ;;  %v10028_v2 = vpop.f32.mrb[133].mxu0 }
0x1a11   :  { %v9988_v20 = vadd.f32 %v9987_v25, %v9771_v56  ;;  %v10029_v54 = vadd.f32 %v10028_v2, %v9779_v12  ;;  %v9989_v47 = vpop.f32.mrb[158].mxu1  ;;  %v10030_v57 = vpop.f32.mrb[134].mxu0 }
0x1a12   :  { %v10033_v32 = vmax.f32 %v9986_v61, 0.0  ;;  %v10035_v31 = vmax.f32 %v10027_v39, 0.0  ;;  %v9990_v6 = vpop.f32.mrb[159].mxu1  ;;  %v10031_v62 = vpop.f32.mrb[135].mxu0 }
0x1a13   :  { %v10034_v42 = vmax.f32 %v9988_v20, 0.0  ;;  %v10036_v21 = vmax.f32 %v10029_v54, 0.0 }
0x1a14   :  { %v10037_v38 = vpack.c.bf16 %v10033_v32, %v10033_v32  ;;  %v10039_v9 = vpack.c.bf16 %v10035_v31, %v10035_v31 }
0x1a15   :  { %v10038_v48 = vpack.c.bf16 %v10034_v42, %v10034_v42  ;;  %v10040_v15 = vpack.c.bf16 %v10036_v21, %v10036_v21 }
0x1a17   :  { %10336 = vmatprep.mubr.bf16.mxu1 %v10038_v48  ;;  %10376 = vmatprep.mubr.bf16.mxu0 %v10040_v15 }
0x1a18   :  { %10337 = vmatmul.mubr.bf16.vlgmr.msra.gmra.mrb[160].mxu1 %v10037_v38  ;;  %10377 = vmatmul.mubr.bf16.vlgmr.msra.gmra.mrb[136].mxu0 %v10039_v9 }
0x1aeb   :  { %v11413_v28 = vpop.f32.mrb[160].mxu1  ;;  %v11435_v46 = vpop.f32.mrb[136].mxu0 }
0x1aec   :  { %v11414_v30 = vpop.f32.mrb[161].mxu1  ;;  %v11436_v0 = vpop.f32.mrb[137].mxu0 }
0x1aed   :  { %v11415_v52 = vadd.f32 %v11414_v30, %v11413_v28  ;;  %v11437_v24 = vadd.f32 %v11436_v0, %v11435_v46  ;;  %v11416_v53 = vpop.f32.mrb[162].mxu1  ;;  %v11438_v59 = vpop.f32.mrb[138].mxu0 }
0x1aee   :  { %v11417_v4 = vpop.f32.mrb[163].mxu1  ;;  %v11439_v63 = vpop.f32.mrb[139].mxu0 }
0x1aef   :  { %v10339_v19 = vadd.f32 %v11415_v52, %v11282_v13 }
0x1af1   :  { %v10379_v36 = vadd.f32 %v11437_v24, %v10339_v19 }
0x1af3   :  { %v10391_v43 = vrot.slane %v10379_v36, %v13646_v3 }
0x1af5   :  { %v10392_v10 = vcombine.high %v10391_v43, %v10391_v43  ;;  %v10399_v41 = vrot.slane %v10391_v43, %v13646_v3 }
0x1af7   :  { %v10406_v17 = vrot.slane %v10392_v10, %v13646_v3  ;;  %10410 = vst.msk [vmem:[#allocation18] sm:$0x1] %vm10409_vm1, %v10399_v41 }
0x1af9   :  { %10411 = vst.msk [vmem:[#allocation18 + $0x1] sm:$0x1] %vm10409_vm1, %v10406_v17 }
0x1afa   :  { %12881 = shalt.err (!%p12878_p12)
}
0x1afb   :  { %s16150_s23 = sld [smem:[#allocation80_spill]] }
0x1b01   :  { %s12882_s24 = scalar_lea.hbm %s16150_s23, 32 }
0x1b02   :  { %p12883_p13 = scmp.ne.s32.totalorder %s16150_s23, %s12882_s24  ;;  %p12886_p0 = scmp.lt.u32.totalorder %s12882_s24, %s16150_s23 }
0x1b04   :  { %p12888_p1 = pnand %p12886_p0, %p12883_p13 }
0x1b06   :  { %12891 = shalt.err (!%p12888_p1)
}
0x1b07   :  { %s12931_s1 = smov 1  }
0x1b08   :  { %10423 = dma.vmem_to_hbm [thread:$0]  %s10418_s25, 32, %s16150_s23, [#allocation6], %s12910_s20, %s12910_s20, %s12931_s1  }
0x1b09   :  { %12902 = dma.done.wait [#allocation6], 32  }
0x1b0a   :  { %12903 = vsyncadd [#allocation6], 4294967264 }
0x1b0b   :  { %10427 = vsyncpa [#allocation5], 1 }
0x1b0c   :  { %10428 = vsyncpa [#allocation8], 1 }
0x1b0d   :  { %10429 = vsyncpa [#allocation11], 1 }
0x1b0e   :  { %10430 = vsyncpa [#allocation14], 1 }
0x1b0f   :  { %10431 = vsyncpa [#allocation17], 1 }
0x1b10   :  { %10432 = vsyncpa [#allocation6], 1 }

</bundles_post_ra>
